<compile_context>
chip_gen: v7x
topology: tpu7x:2x2x1
jax: 0.10.0
libtpu: 0.0.40
codegen_flags: <defaults>
</compile_context>

<pallas_src>
import functools

import jax
import jax.numpy as jnp
from jax.experimental import pallas as pl
from jax.experimental.pallas import tpu as pltpu

LRELU_SLOPE = 0.1
GN_EPS = 1e-5
CONV_MAX_TILE = 2048      # N tile for the conv+GN kernel
ATT_TILE = 256            # N1 tile for the attention kernel


def _lrelu(x):
    return jnp.where(x >= 0, x, LRELU_SLOPE * x)


def _pad_amount(n, tile):
    """Return (tile, padded_n). Small n -> single full block (no 128-divisibility needed)."""
    if n <= tile:
        return n, n
    padded = ((n + tile - 1) // tile) * tile
    return tile, padded


def _vmem_limit(step_bytes, extra=4 * 1024 * 1024):
    return int(min(max(2 * step_bytes + extra, 6 * 1024 * 1024), 64 * 1024 * 1024))


# ----------------------------------------------------------------------------
# Kernel A: 1x1 Conv1d + GroupNorm + LeakyReLU (+ fused residual add).
#   grid = (B, 2, N_tiles):
#     phase 0: conv, accumulate per-channel sum / sumsq (masked padded lanes)
#     phase 1: conv again, apply group norm, lrelu, add residual, store.
#   Channels on sublanes, points on lanes.
# ----------------------------------------------------------------------------
def conv1d_gn_lrelu_kernel(*refs, groups, n_valid, tile_n, has_residual):
    if has_residual:
        x_ref, res_ref, w_ref, b_ref, g_ref, be_ref, o_ref, sum_ref, sq_ref = refs
    else:
        x_ref, w_ref, b_ref, g_ref, be_ref, o_ref, sum_ref, sq_ref = refs
        res_ref = None

    phase = pl.program_id(1)
    t = pl.program_id(2)

    # 1x1 conv (recomputed in both phases; MXU work is cheap vs HBM traffic)
    x = x_ref[0]                                                    # [Cin, tn]
    y = jnp.dot(w_ref[...].astype(jnp.bfloat16), x.astype(jnp.bfloat16),
                preferred_element_type=jnp.float32) + b_ref[...]    # [Cout, tn]
    cout, tn = y.shape
    gs = cout // groups

    @pl.when((phase == 0) & (t == 0))
    def _init():
        sum_ref[...] = jnp.zeros_like(sum_ref)
        sq_ref[...] = jnp.zeros_like(sq_ref)

    @pl.when(phase == 0)
    def _accumulate_stats():
        # mask lanes beyond the true N (padded epilogue tile)
        lane = jax.lax.broadcasted_iota(jnp.int32, (1, tn), 1) + t * tile_n
        valid = (lane < n_valid).astype(jnp.float32)
        ym = y * valid
        sum_ref[...] = sum_ref[...] + jnp.sum(ym, axis=1, keepdims=True)
        sq_ref[...] = sq_ref[...] + jnp.sum(ym * ym, axis=1, keepdims=True)

    @pl.when(phase == 1)
    def _normalize_and_store():
        inv_cnt = 1.0 / (float(gs) * float(n_valid))
        csum = sum_ref[...]                                         # [Cout, 1]
        csq = sq_ref[...]
        scales, shifts = [], []
        for g in range(groups):            # static, small (Cout // 16 groups)
            gsum = jnp.sum(csum[g * gs:(g + 1) * gs], keepdims=True)   # [1,1]
            gsq = jnp.sum(csq[g * gs:(g + 1) * gs], keepdims=True)
            mean = gsum * inv_cnt
            var = gsq * inv_cnt - mean * mean
            istd = jax.lax.rsqrt(var + GN_EPS)
            scales.append(jnp.broadcast_to(istd, (gs, 1)))
            shifts.append(jnp.broadcast_to(-mean * istd, (gs, 1)))
        scale = jnp.concatenate(scales, axis=0) * g_ref[...]        # [Cout, 1]
        shift = jnp.concatenate(shifts, axis=0) * g_ref[...] + be_ref[...]
        out = _lrelu(y * scale + shift)
        if has_residual:
            out = out + res_ref[0].astype(jnp.float32)
        o_ref[0] = out.astype(o_ref.dtype)


def conv1d_gn_lrelu(x, w, b, gamma, beta, *, groups, residual=None,
                    out_dtype=jnp.bfloat16):
    """x: [B, Cin, N] -> [B, Cout, N]  (Conv1d k=1 + GroupNorm + LeakyReLU(0.1) [+ res])."""
    B, Cin, N = x.shape
    Cout = w.shape[0]
    assert Cout % groups == 0, "GroupNorm: channels must be divisible by groups"
    tn, n_pad = _pad_amount(N, CONV_MAX_TILE)
    if n_pad != N:
        x = jnp.pad(x, ((0, 0), (0, 0), (0, n_pad - N)))
        if residual is not None:
            residual = jnp.pad(residual, ((0, 0), (0, 0), (0, n_pad - N)))
    n_tiles = n_pad // tn
    has_res = residual is not None

    kernel = functools.partial(conv1d_gn_lrelu_kernel, groups=groups,
                               n_valid=N, tile_n=tn, has_residual=has_res)

    data_map = lambda bb, ph, t: (bb, 0, t)
    late_map = lambda bb, ph, t: (bb, 0, t * ph)   # only advances in phase 1
    const_map = lambda bb, ph, t: (0, 0)

    in_specs = [pl.BlockSpec((1, Cin, tn), data_map)]
    args = [x]
    if has_res:
        in_specs.append(pl.BlockSpec((1, Cout, tn), late_map))
        args.append(residual)
    in_specs += [
        pl.BlockSpec((Cout, Cin), const_map),
        pl.BlockSpec((Cout, 1), const_map),
        pl.BlockSpec((Cout, 1), const_map),
        pl.BlockSpec((Cout, 1), const_map),
    ]
    args += [w, b, gamma, beta]

    out_isz = jnp.dtype(out_dtype).itemsize
    step_bytes = (Cin * tn * x.dtype.itemsize
                  + (Cout * tn * residual.dtype.itemsize if has_res else 0)
                  + Cout * tn * out_isz + Cout * tn * 4)
    bytes_accessed = (2 * B * Cin * n_pad * x.dtype.itemsize
                      + B * Cout * n_pad * out_isz
                      + (B * Cout * n_pad * residual.dtype.itemsize if has_res else 0))

    out = pl.pallas_call(
        kernel,
        out_shape=jax.ShapeDtypeStruct((B, Cout, n_pad), out_dtype),
        grid=(B, 2, n_tiles),
        in_specs=in_specs,
        out_specs=pl.BlockSpec((1, Cout, tn), late_map),
        scratch_shapes=[pltpu.VMEM((Cout, 1), jnp.float32),
                        pltpu.VMEM((Cout, 1), jnp.float32)],
        compiler_params=pltpu.CompilerParams(
            dimension_semantics=("parallel", "arbitrary", "arbitrary"),
            vmem_limit_bytes=_vmem_limit(step_bytes)),
        cost_estimate=pl.CostEstimate(
            flops=int(4 * B * Cout * Cin * n_pad),
            transcendentals=0,
            bytes_accessed=int(bytes_accessed)),
    )(*args)
    if n_pad != N:
        out = out[:, :, :N]
    return out


# ----------------------------------------------------------------------------
# Kernel B: RPP attention core, channels-first / points-on-lanes layout.
#   Per neighbor s (static S-unrolled loop):
#     enc   = lrelu(W4[4C,3] @ rel_s[3,TN] + b4)        (fused q|k|v1|v2 encoders)
#     [q;v] = blockdiag(Wqk, Wv)[2C,2C] @ [f1*eq ; f2*ev1]
#   Softmax over the S neighbors (f32), weighted sum + skip, lane-dense store [C,TN].
# ----------------------------------------------------------------------------
def rpp_atten_kernel(rel_ref, f1_ref, f2_ref, w4_ref, b4_ref, wqv_ref, o_ref,
                     *, scale, nsample):
    S = nsample
    f1 = f1_ref[0].astype(jnp.float32)                  # [C, TN]
    C, TN = f1.shape
    w4 = w4_ref[...].astype(jnp.bfloat16)               # [4C, 3]
    b4 = b4_ref[...]                                    # [4C, 1]
    wqv = wqv_ref[...].astype(jnp.bfloat16)             # [2C, 2C] block-diag

    scores = []
    values = []
    for s in range(S):                                  # static unroll, S small
        rel_s = rel_ref[0, s].astype(jnp.bfloat16)      # [3, TN]
        f2_s = f2_ref[0, s].astype(jnp.float32)         # [C, TN]

        enc = jnp.dot(w4, rel_s, preferred_element_type=jnp.float32) + b4   # [4C, TN]
        enc = _lrelu(enc)
        eq = enc[0 * C:1 * C]                            # sublane slices (free)
        ek = enc[1 * C:2 * C]
        ev1 = enc[2 * C:3 * C]
        ev2 = enc[3 * C:4 * C]

        qin = f1 * eq                                    # [C, TN]
        vin = f2_s * ev1                                 # [C, TN]
        qv = jnp.dot(wqv,
                     jnp.concatenate([qin, vin], axis=0).astype(jnp.bfloat16),
                     preferred_element_type=jnp.float32)            # [2C, TN]
        q = qv[0:C]
        v = qv[C:2 * C] * ev2                            # [C, TN]
        k = f2_s * ek

        scores.append(jnp.sum(q * k, axis=0, keepdims=True))        # [1, TN]
        values.append(v)

    att = jnp.concatenate(scores, axis=0) * scale        # [S, TN]  (f32)
    att = att - jnp.max(att, axis=0, keepdims=True)
    p = jnp.exp(att)
    inv = pl.reciprocal(jnp.sum(p, axis=0, keepdims=True), approx=True)   # [1, TN]

    acc = values[0] * p[0:1]
    for s in range(1, S):
        acc = acc + values[s] * p[s:s + 1]
    o_ref[0] = (acc * inv + f1).astype(o_ref.dtype)       # [C, TN] + skip connection


def rpp_attention(rel, feat1_cf, feat2_g, w4, b4, wqv):
    """rel [B,S,3,N1] f32, feat1_cf [B,C,N1] bf16, feat2_g [B,S,C,N1] bf16 -> [B,C,N1] bf16."""
    B, S, _, N1 = rel.shape
    C = feat1_cf.shape[1]
    scale = 1.0 / (float(C) ** 0.5)
    tn, n_pad = _pad_amount(N1, ATT_TILE)
    if n_pad != N1:
        pad = n_pad - N1
        rel = jnp.pad(rel, ((0, 0), (0, 0), (0, 0), (0, pad)))
        feat1_cf = jnp.pad(feat1_cf, ((0, 0), (0, 0), (0, pad)))
        feat2_g = jnp.pad(feat2_g, ((0, 0), (0, 0), (0, 0), (0, pad)))
    n_tiles = n_pad // tn

    kernel = functools.partial(rpp_atten_kernel, scale=scale, nsample=S)
    const_map = lambda bb, t: (0, 0)

    step_bytes = (S * 3 * tn * 4 + C * tn * 2 + S * C * tn * 2 + C * tn * 2
                  + S * C * tn * 4 + 4 * C * tn * 4)
    flops = B * n_pad * S * (2 * 4 * C * 3 + 2 * (2 * C) * (2 * C) + 12 * C)
    bytes_accessed = (rel.size * rel.dtype.itemsize
                      + feat1_cf.size * feat1_cf.dtype.itemsize
                      + feat2_g.size * feat2_g.dtype.itemsize
                      + B * C * n_pad * 2)

    out = pl.pallas_call(
        kernel,
        out_shape=jax.ShapeDtypeStruct((B, C, n_pad), jnp.bfloat16),
        grid=(B, n_tiles),
        in_specs=[
            pl.BlockSpec((1, S, 3, tn), lambda bb, t: (bb, 0, 0, t)),
            pl.BlockSpec((1, C, tn), lambda bb, t: (bb, 0, t)),
            pl.BlockSpec((1, S, C, tn), lambda bb, t: (bb, 0, 0, t)),
            pl.BlockSpec((4 * C, 3), const_map),
            pl.BlockSpec((4 * C, 1), const_map),
            pl.BlockSpec((2 * C, 2 * C), const_map),
        ],
        out_specs=pl.BlockSpec((1, C, tn), lambda bb, t: (bb, 0, t)),
        compiler_params=pltpu.CompilerParams(
            dimension_semantics=("parallel", "parallel"),
            vmem_limit_bytes=_vmem_limit(step_bytes, extra=8 * 1024 * 1024)),
        cost_estimate=pl.CostEstimate(flops=int(flops),
                                      transcendentals=int(B * n_pad * S),
                                      bytes_accessed=int(bytes_accessed)),
    )(rel, feat1_cf, feat2_g, w4, b4, wqv)
    if n_pad != N1:
        out = out[:, :, :N1]
    return out


# ----------------------------------------------------------------------------
# JAX glue: knn_point + index_points (data-dependent top-k / gather).
# Outputs are produced directly in the kernel-ready channels-first layouts.
# ----------------------------------------------------------------------------
def knn_and_gather(xyz1, xyz2, feat2_cf, nsample):
    # TODO(synk): fuse this gather into the attention kernel (VMEM-resident feat2 per
    # batch + idx scalar-prefetch / manual DMA) to remove the S-expanded HBM round trip.
    xyz1_t = jnp.transpose(xyz1, (0, 2, 1))            # [B, N1, 3]
    xyz2_t = jnp.transpose(xyz2, (0, 2, 1))            # [B, N2, 3]
    d = (jnp.sum(xyz1_t ** 2, axis=-1)[:, :, None]
         + jnp.sum(xyz2_t ** 2, axis=-1)[:, None, :]
         - 2.0 * jnp.einsum('bnd,bmd->bnm', xyz1_t, xyz2_t))
    _, idx = jax.lax.top_k(-d, nsample)                # [B, N1, S]

    xyz2_g = jax.vmap(lambda pts, i: pts[i])(xyz2_t, idx)       # [B, N1, S, 3]
    rel = xyz2_g - xyz1_t[:, :, None, :]                        # [B, N1, S, 3]
    rel = jnp.transpose(rel, (0, 2, 3, 1))                      # [B, S, 3, N1]

    feat2_g = jax.vmap(lambda f, i: f[:, i])(feat2_cf, idx)     # [B, C, N1, S]
    feat2_g = jnp.transpose(feat2_g, (0, 3, 1, 2))              # [B, S, C, N1]
    return rel, feat2_g


# ----------------------------------------------------------------------------
# Full UpSampleAtten forward
# ----------------------------------------------------------------------------
def upsample_atten_forward(params, xyz1, xyz2, feat1, feat2, nsample):
    C1 = params['w_pos'].shape[0]        # in_feat_1
    Co = params['w_ff'].shape[0]         # out_feat

    # pre_forward: Conv1d(in_feat_2 -> in_feat_1) + GN + LeakyReLU      (bf16 out)
    feat2_pre = conv1d_gn_lrelu(feat2, params['w_pre'], params['b_pre'],
                                params['g_pre'], params['be_pre'], groups=C1 // 16)

    # pos_encoder (shared weights), residual adds fused into the kernel epilogue
    feat1_pos = conv1d_gn_lrelu(xyz1, params['w_pos'], params['b_pos'],
                                params['g_pos'], params['be_pos'], groups=C1 // 16,
                                residual=feat1)
    feat2_pos = conv1d_gn_lrelu(xyz2, params['w_pos'], params['b_pos'],
                                params['g_pos'], params['be_pos'], groups=C1 // 16,
                                residual=feat2_pre)

    rel, feat2_g = knn_and_gather(xyz1, xyz2, feat2_pos, nsample)

    # attention (channels-first in, channels-first bf16 out)
    feat_new = rpp_attention(rel, feat1_pos, feat2_g,
                             params['w4'], params['b4'], params['wqv'])   # [B, C1, N1]

    out_feat = conv1d_gn_lrelu(feat_new, params['w_ff'], params['b_ff'],
                               params['g_ff'], params['be_ff'], groups=Co // 16,
                               out_dtype=jnp.float32)
    return xyz1, out_feat


# ----------------------------------------------------------------------------
# Deterministic parameter init (shapes derived from the PyTorch __init__);
# weights stored in kernel-ready layouts (fused encoders, block-diag projection,
# [Cout,1] biases).
# ----------------------------------------------------------------------------
def init_params(key, in_feat_1, in_feat_2, out_feat):
    C1, C2, Co = in_feat_1, in_feat_2, out_feat
    ks = jax.random.split(key, 16)
    w = lambda k, s: 0.1 * jax.random.normal(k, s, jnp.float32)
    col = lambda v: v.reshape(-1, 1)

    # early q/k/v1/v2 encoders (Conv2d 3->C1), fused along output channels: [4C1, 3]
    wq, wk, wv1, wv2 = (w(ks[i], (C1, 3)) for i in (4, 6, 8, 10))
    bq, bk, bv1, bv2 = (w(ks[i], (C1,)) for i in (5, 7, 9, 11))
    # qk / v encoders (Conv2d C1->C1, no bias) fused as a block-diagonal [2C1, 2C1]
    wqk = w(ks[12], (C1, C1))
    wv = w(ks[13], (C1, C1))
    wqv = jnp.zeros((2 * C1, 2 * C1), jnp.float32)
    wqv = wqv.at[:C1, :C1].set(wqk).at[C1:, C1:].set(wv)

    return {
        # pre_forward
        'w_pre': w(ks[0], (C1, C2)), 'b_pre': col(w(ks[1], (C1,))),
        'g_pre': jnp.ones((C1, 1), jnp.float32), 'be_pre': jnp.zeros((C1, 1), jnp.float32),
        # pos_encoder
        'w_pos': w(ks[2], (C1, 3)), 'b_pos': col(w(ks[3], (C1,))),
        'g_pos': jnp.ones((C1, 1), jnp.float32), 'be_pos': jnp.zeros((C1, 1), jnp.float32),
        # fused early encoders (row order q|k|v1|v2)
        'w4': jnp.concatenate([wq, wk, wv1, wv2], axis=0),           # [4C1, 3]
        'b4': jnp.concatenate([bq, bk, bv1, bv2]).reshape(-1, 1),    # [4C1, 1]
        # fused qk/v projections
        'wqv': wqv,                                                  # [2C1, 2C1]
        # feed_forward
        'w_ff': w(ks[14], (Co, C1)), 'b_ff': col(w(ks[15], (Co,))),
        'g_ff': jnp.ones((Co, 1), jnp.float32), 'be_ff': jnp.zeros((Co, 1), jnp.float32),
    }


if __name__ == "__main__":
    B, N1, N2 = 2, 16, 32
    nsample = 8
    in_feat_1, in_feat_2, out_feat = 32, 64, 32

    key = jax.random.PRNGKey(0)
    k1, k2, k3, k4, kp = jax.random.split(key, 5)
    xyz1 = jax.random.normal(k1, (B, 3, N1), jnp.float32)
    xyz2 = jax.random.normal(k2, (B, 3, N2), jnp.float32)
    feat1 = jax.random.normal(k3, (B, in_feat_1, N1), jnp.float32)
    feat2 = jax.random.normal(k4, (B, in_feat_2, N2), jnp.float32)

    params = init_params(kp, in_feat_1, in_feat_2, out_feat)

    fwd = jax.jit(functools.partial(upsample_atten_forward, nsample=nsample))
    out_xyz, out_feat_arr = fwd(params, xyz1, xyz2, feat1, feat2)
    jax.block_until_ready(out_feat_arr)

    assert out_xyz.shape == (B, 3, N1)
    assert out_feat_arr.shape == (B, out_feat, N1)
    assert out_feat_arr.dtype == jnp.float32
    assert bool(jnp.all(jnp.isfinite(out_feat_arr)))
    print("KERNEL_OK")
</pallas_src>

<mosaic_0001>
module attributes {stable_mosaic.version = 11 : i64} {
  func.func @conv1d_gn_lrelu_kernel(%arg0: i32, %arg1: i32, %arg2: i32, %arg3: memref<1x64x32xf32, #tpu.memory_space<vmem>>, %arg4: memref<32x64xf32, #tpu.memory_space<vmem>>, %arg5: memref<32x1xf32, #tpu.memory_space<vmem>>, %arg6: memref<32x1xf32, #tpu.memory_space<vmem>>, %arg7: memref<32x1xf32, #tpu.memory_space<vmem>>, %arg8: memref<1x32x32xbf16, #tpu.memory_space<vmem>>, %arg9: memref<32x1xf32, #tpu.memory_space<vmem>>, %arg10: memref<32x1xf32, #tpu.memory_space<vmem>>) attributes {dimension_semantics = [#tpu.dimension_semantics<parallel>, #tpu.dimension_semantics<arbitrary>, #tpu.dimension_semantics<arbitrary>], iteration_bounds = array<i64: 2, 2, 1>, scalar_prefetch = 0 : i64, scratch_operands = 2 : i64, tpu.core_type = #tpu.core_type<tc>, window_params = [{transform_indices = @transform_0, window_bounds = array<i64: 1, 64, 32>}, {pipeline_mode = #tpu.pipeline_mode<synchronous>, transform_indices = @transform_1, window_bounds = array<i64: 32, 64>}, {pipeline_mode = #tpu.pipeline_mode<synchronous>, transform_indices = @transform_2, window_bounds = array<i64: 32, 1>}, {pipeline_mode = #tpu.pipeline_mode<synchronous>, transform_indices = @transform_3, window_bounds = array<i64: 32, 1>}, {pipeline_mode = #tpu.pipeline_mode<synchronous>, transform_indices = @transform_4, window_bounds = array<i64: 32, 1>}, {transform_indices = @transform_5, window_bounds = array<i64: 1, 32, 32>}]} {
    %c0 = arith.constant 0 : index
    %c0_0 = arith.constant 0 : index
    %c0_1 = arith.constant 0 : index
    %0 = vector.load %arg3[%c0, %c0_0, %c0_1] : memref<1x64x32xf32, #tpu.memory_space<vmem>>, vector<1x64x32xf32>
    %1 = vector.shape_cast %0 : vector<1x64x32xf32> to vector<64x32xf32>
    %c0_2 = arith.constant 0 : index
    %c0_3 = arith.constant 0 : index
    %2 = vector.load %arg4[%c0_2, %c0_3] : memref<32x64xf32, #tpu.memory_space<vmem>>, vector<32x64xf32>
    %3 = arith.truncf %2 : vector<32x64xf32> to vector<32x64xbf16>
    %4 = arith.truncf %1 : vector<64x32xf32> to vector<64x32xbf16>
    %cst = arith.constant dense<0.000000e+00> : vector<32x32xf32>
    %5 = tpu.matmul %3, %4, %cst {dimension_numbers = #tpu.dot_dimension_numbers<[1], [0], [0], [1], [0, 0, 1, 1], [], []>} : vector<32x64xbf16>, vector<64x32xbf16>, vector<32x32xf32> -> vector<32x32xf32>
    %c0_4 = arith.constant 0 : index
    %c0_5 = arith.constant 0 : index
    %6 = vector.load %arg5[%c0_4, %c0_5] : memref<32x1xf32, #tpu.memory_space<vmem>>, vector<32x1xf32>
    %7 = vector.broadcast %6 : vector<32x1xf32> to vector<32x32xf32>
    %8 = arith.addf %5, %7 : vector<32x32xf32>
    %c0_i32 = arith.constant 0 : i32
    %9 = arith.cmpi eq, %arg1, %c0_i32 : i32
    %c0_i32_6 = arith.constant 0 : i32
    %10 = arith.cmpi eq, %arg2, %c0_i32_6 : i32
    %11 = arith.andi %9, %10 : i1
    %12 = arith.extui %11 : i1 to i32
    %c0_i32_7 = arith.constant 0 : i32
    %13 = arith.cmpi ne, %12, %c0_i32_7 : i32
    scf.if %13 {
      %cst_11 = arith.constant 0.000000e+00 : f32
      %20 = vector.broadcast %cst_11 : f32 to vector<32x1xf32>
      %c0_12 = arith.constant 0 : index
      %c0_13 = arith.constant 0 : index
      %21 = vector.load %arg9[%c0_12, %c0_13] : memref<32x1xf32, #tpu.memory_space<vmem>>, vector<32x1xf32>
      tpu.vector_store %arg9[%c0_12, %c0_13], %20 {strides = array<i32>} : memref<32x1xf32, #tpu.memory_space<vmem>>, vector<32x1xf32>,
      %cst_14 = arith.constant 0.000000e+00 : f32
      %22 = vector.broadcast %cst_14 : f32 to vector<32x1xf32>
      %c0_15 = arith.constant 0 : index
      %c0_16 = arith.constant 0 : index
      %23 = vector.load %arg10[%c0_15, %c0_16] : memref<32x1xf32, #tpu.memory_space<vmem>>, vector<32x1xf32>
      tpu.vector_store %arg10[%c0_15, %c0_16], %22 {strides = array<i32>} : memref<32x1xf32, #tpu.memory_space<vmem>>, vector<32x1xf32>,
    } else {
    }
    %c0_i32_8 = arith.constant 0 : i32
    %14 = arith.cmpi eq, %arg1, %c0_i32_8 : i32
    %15 = arith.extui %14 : i1 to i32
    %c0_i32_9 = arith.constant 0 : i32
    %16 = arith.cmpi ne, %15, %c0_i32_9 : i32
    scf.if %16 {
      %20 = tpu.iota {dimensions = array<i32: 1>} : vector<1x32xi32>
      %c32_i32 = arith.constant 32 : i32
      %21 = arith.muli %arg2, %c32_i32 : i32
      %22 = vector.broadcast %21 : i32 to vector<1x32xi32>
      %23 = arith.addi %20, %22 : vector<1x32xi32>
      %c32_i32_11 = arith.constant 32 : i32
      %24 = vector.broadcast %c32_i32_11 : i32 to vector<1x32xi32>
      %25 = arith.cmpi slt, %23, %24 : vector<1x32xi32>
      %26 = arith.extui %25 : vector<1x32xi1> to vector<1x32xi32>
      %27 = arith.sitofp %26 : vector<1x32xi32> to vector<1x32xf32>
      %28 = vector.broadcast %27 : vector<1x32xf32> to vector<32x32xf32>
      %29 = arith.mulf %8, %28 : vector<32x32xf32>
      %c0_12 = arith.constant 0 : index
      %c0_13 = arith.constant 0 : index
      %30 = vector.load %arg9[%c0_12, %c0_13] : memref<32x1xf32, #tpu.memory_space<vmem>>, vector<32x1xf32>
      %cst_14 = arith.constant dense<0.000000e+00> : vector<32xf32>
      %31 = vector.multi_reduction <add>, %29, %cst_14 [1] : vector<32x32xf32> to vector<32xf32>
      %32 = vector.shape_cast %31 : vector<32xf32> to vector<32x1xf32>
      %33 = arith.addf %30, %32 : vector<32x1xf32>
      %c0_15 = arith.constant 0 : index
      %c0_16 = arith.constant 0 : index
      %34 = vector.load %arg9[%c0_15, %c0_16] : memref<32x1xf32, #tpu.memory_space<vmem>>, vector<32x1xf32>
      tpu.vector_store %arg9[%c0_15, %c0_16], %33 {strides = array<i32>} : memref<32x1xf32, #tpu.memory_space<vmem>>, vector<32x1xf32>,
      %c0_17 = arith.constant 0 : index
      %c0_18 = arith.constant 0 : index
      %35 = vector.load %arg10[%c0_17, %c0_18] : memref<32x1xf32, #tpu.memory_space<vmem>>, vector<32x1xf32>
      %36 = arith.mulf %29, %29 : vector<32x32xf32>
      %cst_19 = arith.constant dense<0.000000e+00> : vector<32xf32>
      %37 = vector.multi_reduction <add>, %36, %cst_19 [1] : vector<32x32xf32> to vector<32xf32>
      %38 = vector.shape_cast %37 : vector<32xf32> to vector<32x1xf32>
      %39 = arith.addf %35, %38 : vector<32x1xf32>
      %c0_20 = arith.constant 0 : index
      %c0_21 = arith.constant 0 : index
      %40 = vector.load %arg10[%c0_20, %c0_21] : memref<32x1xf32, #tpu.memory_space<vmem>>, vector<32x1xf32>
      tpu.vector_store %arg10[%c0_20, %c0_21], %39 {strides = array<i32>} : memref<32x1xf32, #tpu.memory_space<vmem>>, vector<32x1xf32>,
    } else {
    }
    %c1_i32 = arith.constant 1 : i32
    %17 = arith.cmpi eq, %arg1, %c1_i32 : i32
    %18 = arith.extui %17 : i1 to i32
    %c0_i32_10 = arith.constant 0 : i32
    %19 = arith.cmpi ne, %18, %c0_i32_10 : i32
    scf.if %19 {
      %c0_11 = arith.constant 0 : index
      %c0_12 = arith.constant 0 : index
      %20 = vector.load %arg9[%c0_11, %c0_12] : memref<32x1xf32, #tpu.memory_space<vmem>>, vector<32x1xf32>
      %c0_13 = arith.constant 0 : index
      %c0_14 = arith.constant 0 : index
      %21 = vector.load %arg10[%c0_13, %c0_14] : memref<32x1xf32, #tpu.memory_space<vmem>>, vector<32x1xf32>
      %22 = vector.extract_strided_slice %20 {offsets = [0, 0], sizes = [16, 1], strides = [1, 1]} : vector<32x1xf32> to vector<16x1xf32>
      %23 = vector.shape_cast %22 : vector<16x1xf32> to vector<1x16x1xf32>
      %cst_15 = arith.constant dense<0.000000e+00> : vector<1xf32>
      %24 = vector.multi_reduction <add>, %23, %cst_15 [1, 2] : vector<1x16x1xf32> to vector<1xf32>
      %25 = vector.shape_cast %24 : vector<1xf32> to vector<1x1x1xf32>
      %26 = vector.extract %25[0, 0, 0] : f32 from vector<1x1x1xf32>
      %27 = vector.broadcast %26 : f32 to vector<1x1xf32>
      %28 = vector.extract_strided_slice %21 {offsets = [0, 0], sizes = [16, 1], strides = [1, 1]} : vector<32x1xf32> to vector<16x1xf32>
      %29 = vector.shape_cast %28 : vector<16x1xf32> to vector<1x16x1xf32>
      %cst_16 = arith.constant dense<0.000000e+00> : vector<1xf32>
      %30 = vector.multi_reduction <add>, %29, %cst_16 [1, 2] : vector<1x16x1xf32> to vector<1xf32>
      %31 = vector.shape_cast %30 : vector<1xf32> to vector<1x1x1xf32>
      %32 = vector.extract %31[0, 0, 0] : f32 from vector<1x1x1xf32>
      %33 = vector.broadcast %32 : f32 to vector<1x1xf32>
      %cst_17 = arith.constant 0.001953125 : f32
      %34 = vector.broadcast %cst_17 : f32 to vector<1x1xf32>
      %35 = arith.mulf %27, %34 : vector<1x1xf32>
      %cst_18 = arith.constant 0.001953125 : f32
      %36 = vector.broadcast %cst_18 : f32 to vector<1x1xf32>
      %37 = arith.mulf %33, %36 : vector<1x1xf32>
      %38 = arith.mulf %35, %35 : vector<1x1xf32>
      %39 = arith.subf %37, %38 : vector<1x1xf32>
      %cst_19 = arith.constant 9.99999974E-6 : f32
      %40 = vector.broadcast %cst_19 : f32 to vector<1x1xf32>
      %41 = arith.addf %39, %40 : vector<1x1xf32>
      %42 = math.rsqrt %41 : vector<1x1xf32>
      %43 = vector.shape_cast %42 : vector<1x1xf32> to vector<1x1xf32>
      %44 = vector.broadcast %43 : vector<1x1xf32> to vector<16x1xf32>
      %cst_20 = arith.constant 0.000000e+00 : f32
      %45 = vector.broadcast %cst_20 : f32 to vector<1x1xf32>
      %46 = arith.subf %45, %35 : vector<1x1xf32>
      %47 = arith.mulf %46, %42 : vector<1x1xf32>
      %48 = vector.shape_cast %47 : vector<1x1xf32> to vector<1x1xf32>
      %49 = vector.broadcast %48 : vector<1x1xf32> to vector<16x1xf32>
      %50 = vector.extract_strided_slice %20 {offsets = [16, 0], sizes = [16, 1], strides = [1, 1]} : vector<32x1xf32> to vector<16x1xf32>
      %51 = vector.shape_cast %50 : vector<16x1xf32> to vector<1x16x1xf32>
      %cst_21 = arith.constant dense<0.000000e+00> : vector<1xf32>
      %52 = vector.multi_reduction <add>, %51, %cst_21 [1, 2] : vector<1x16x1xf32> to vector<1xf32>
      %53 = vector.shape_cast %52 : vector<1xf32> to vector<1x1x1xf32>
      %54 = vector.extract %53[0, 0, 0] : f32 from vector<1x1x1xf32>
      %55 = vector.broadcast %54 : f32 to vector<1x1xf32>
      %56 = vector.extract_strided_slice %21 {offsets = [16, 0], sizes = [16, 1], strides = [1, 1]} : vector<32x1xf32> to vector<16x1xf32>
      %57 = vector.shape_cast %56 : vector<16x1xf32> to vector<1x16x1xf32>
      %cst_22 = arith.constant dense<0.000000e+00> : vector<1xf32>
      %58 = vector.multi_reduction <add>, %57, %cst_22 [1, 2] : vector<1x16x1xf32> to vector<1xf32>
      %59 = vector.shape_cast %58 : vector<1xf32> to vector<1x1x1xf32>
      %60 = vector.extract %59[0, 0, 0] : f32 from vector<1x1x1xf32>
      %61 = vector.broadcast %60 : f32 to vector<1x1xf32>
      %cst_23 = arith.constant 0.001953125 : f32
      %62 = vector.broadcast %cst_23 : f32 to vector<1x1xf32>
      %63 = arith.mulf %55, %62 : vector<1x1xf32>
      %cst_24 = arith.constant 0.001953125 : f32
      %64 = vector.broadcast %cst_24 : f32 to vector<1x1xf32>
      %65 = arith.mulf %61, %64 : vector<1x1xf32>
      %66 = arith.mulf %63, %63 : vector<1x1xf32>
      %67 = arith.subf %65, %66 : vector<1x1xf32>
      %cst_25 = arith.constant 9.99999974E-6 : f32
      %68 = vector.broadcast %cst_25 : f32 to vector<1x1xf32>
      %69 = arith.addf %67, %68 : vector<1x1xf32>
      %70 = math.rsqrt %69 : vector<1x1xf32>
      %71 = vector.shape_cast %70 : vector<1x1xf32> to vector<1x1xf32>
      %72 = vector.broadcast %71 : vector<1x1xf32> to vector<16x1xf32>
      %cst_26 = arith.constant 0.000000e+00 : f32
      %73 = vector.broadcast %cst_26 : f32 to vector<1x1xf32>
      %74 = arith.subf %73, %63 : vector<1x1xf32>
      %75 = arith.mulf %74, %70 : vector<1x1xf32>
      %76 = vector.shape_cast %75 : vector<1x1xf32> to vector<1x1xf32>
      %77 = vector.broadcast %76 : vector<1x1xf32> to vector<16x1xf32>
      %78 = tpu.concatenate %44, %72 in 0 : vector<16x1xf32>, vector<16x1xf32> -> vector<32x1xf32>
      %c0_27 = arith.constant 0 : index
      %c0_28 = arith.constant 0 : index
      %79 = vector.load %arg6[%c0_27, %c0_28] : memref<32x1xf32, #tpu.memory_space<vmem>>, vector<32x1xf32>
      %80 = arith.mulf %78, %79 : vector<32x1xf32>
      %81 = tpu.concatenate %49, %77 in 0 : vector<16x1xf32>, vector<16x1xf32> -> vector<32x1xf32>
      %c0_29 = arith.constant 0 : index
      %c0_30 = arith.constant 0 : index
      %82 = vector.load %arg6[%c0_29, %c0_30] : memref<32x1xf32, #tpu.memory_space<vmem>>, vector<32x1xf32>
      %83 = arith.mulf %81, %82 : vector<32x1xf32>
      %c0_31 = arith.constant 0 : index
      %c0_32 = arith.constant 0 : index
      %84 = vector.load %arg7[%c0_31, %c0_32] : memref<32x1xf32, #tpu.memory_space<vmem>>, vector<32x1xf32>
      %85 = arith.addf %83, %84 : vector<32x1xf32>
      %86 = vector.broadcast %80 : vector<32x1xf32> to vector<32x32xf32>
      %87 = arith.mulf %8, %86 : vector<32x32xf32>
      %88 = vector.broadcast %85 : vector<32x1xf32> to vector<32x32xf32>
      %89 = arith.addf %87, %88 : vector<32x32xf32>
      %cst_33 = arith.constant 0.000000e+00 : f32
      %90 = vector.broadcast %cst_33 : f32 to vector<32x32xf32>
      %91 = arith.cmpf oge, %89, %90 : vector<32x32xf32>
      %cst_34 = arith.constant 1.000000e-01 : f32
      %92 = vector.broadcast %cst_34 : f32 to vector<32x32xf32>
      %93 = arith.mulf %92, %89 : vector<32x32xf32>
      %94 = arith.select %91, %89, %93 : vector<32x32xi1>, vector<32x32xf32>
      %95 = arith.truncf %94 : vector<32x32xf32> to vector<32x32xbf16>
      %c0_35 = arith.constant 0 : index
      %c0_36 = arith.constant 0 : index
      %c0_37 = arith.constant 0 : index
      %96 = vector.load %arg8[%c0_35, %c0_36, %c0_37] : memref<1x32x32xbf16, #tpu.memory_space<vmem>>, vector<1x32x32xbf16>
      %97 = vector.shape_cast %96 : vector<1x32x32xbf16> to vector<32x32xbf16>
      %98 = vector.shape_cast %95 : vector<32x32xbf16> to vector<1x32x32xbf16>
      tpu.vector_store %arg8[%c0_35, %c0_36, %c0_37], %98 {strides = array<i32>} : memref<1x32x32xbf16, #tpu.memory_space<vmem>>, vector<1x32x32xbf16>,
    } else {
    }
    return
  }
  func.func @transform_0(%arg0: i32, %arg1: i32, %arg2: i32) -> (i32, i32, i32) {
    %c0_i32 = arith.constant 0 : i32
    %c0_i32_0 = arith.constant 0 : i32
    return %arg0, %c0_i32, %arg2 : i32, i32, i32
  }
  func.func @transform_1(%arg0: i32, %arg1: i32, %arg2: i32) -> (i32, i32) {
    %c0_i32 = arith.constant 0 : i32
    %c0_i32_0 = arith.constant 0 : i32
    %c0_i32_1 = arith.constant 0 : i32
    return %c0_i32, %c0_i32_0 : i32, i32
  }
  func.func @transform_2(%arg0: i32, %arg1: i32, %arg2: i32) -> (i32, i32) {
    %c0_i32 = arith.constant 0 : i32
    %c0_i32_0 = arith.constant 0 : i32
    %c0_i32_1 = arith.constant 0 : i32
    return %c0_i32, %c0_i32_0 : i32, i32
  }
  func.func @transform_3(%arg0: i32, %arg1: i32, %arg2: i32) -> (i32, i32) {
    %c0_i32 = arith.constant 0 : i32
    %c0_i32_0 = arith.constant 0 : i32
    %c0_i32_1 = arith.constant 0 : i32
    return %c0_i32, %c0_i32_0 : i32, i32
  }
  func.func @transform_4(%arg0: i32, %arg1: i32, %arg2: i32) -> (i32, i32) {
    %c0_i32 = arith.constant 0 : i32
    %c0_i32_0 = arith.constant 0 : i32
    %c0_i32_1 = arith.constant 0 : i32
    return %c0_i32, %c0_i32_0 : i32, i32
  }
  func.func @transform_5(%arg0: i32, %arg1: i32, %arg2: i32) -> (i32, i32, i32) {
    %0 = arith.muli %arg2, %arg1 : i32
    %c0_i32 = arith.constant 0 : i32
    %c0_i32_0 = arith.constant 0 : i32
    return %arg0, %c0_i32, %0 : i32, i32, i32
  }
}

module attributes {stable_mosaic.version = 11 : i64} {
  func.func @conv1d_gn_lrelu_kernel(%arg0: i32, %arg1: i32, %arg2: i32, %arg3: memref<1x3x32xf32, #tpu.memory_space<vmem>>, %arg4: memref<1x32x32xbf16, #tpu.memory_space<vmem>>, %arg5: memref<32x3xf32, #tpu.memory_space<vmem>>, %arg6: memref<32x1xf32, #tpu.memory_space<vmem>>, %arg7: memref<32x1xf32, #tpu.memory_space<vmem>>, %arg8: memref<32x1xf32, #tpu.memory_space<vmem>>, %arg9: memref<1x32x32xbf16, #tpu.memory_space<vmem>>, %arg10: memref<32x1xf32, #tpu.memory_space<vmem>>, %arg11: memref<32x1xf32, #tpu.memory_space<vmem>>) attributes {dimension_semantics = [#tpu.dimension_semantics<parallel>, #tpu.dimension_semantics<arbitrary>, #tpu.dimension_semantics<arbitrary>], iteration_bounds = array<i64: 2, 2, 1>, scalar_prefetch = 0 : i64, scratch_operands = 2 : i64, tpu.core_type = #tpu.core_type<tc>, window_params = [{transform_indices = @transform_0, window_bounds = array<i64: 1, 3, 32>}, {transform_indices = @transform_1, window_bounds = array<i64: 1, 32, 32>}, {pipeline_mode = #tpu.pipeline_mode<synchronous>, transform_indices = @transform_2, window_bounds = array<i64: 32, 3>}, {pipeline_mode = #tpu.pipeline_mode<synchronous>, transform_indices = @transform_3, window_bounds = array<i64: 32, 1>}, {pipeline_mode = #tpu.pipeline_mode<synchronous>, transform_indices = @transform_4, window_bounds = array<i64: 32, 1>}, {pipeline_mode = #tpu.pipeline_mode<synchronous>, transform_indices = @transform_5, window_bounds = array<i64: 32, 1>}, {transform_indices = @transform_6, window_bounds = array<i64: 1, 32, 32>}]} {
    %c0 = arith.constant 0 : index
    %c0_0 = arith.constant 0 : index
    %c0_1 = arith.constant 0 : index
    %0 = vector.load %arg3[%c0, %c0_0, %c0_1] : memref<1x3x32xf32, #tpu.memory_space<vmem>>, vector<1x3x32xf32>
    %1 = vector.shape_cast %0 : vector<1x3x32xf32> to vector<3x32xf32>
    %c0_2 = arith.constant 0 : index
    %c0_3 = arith.constant 0 : index
    %2 = vector.load %arg5[%c0_2, %c0_3] : memref<32x3xf32, #tpu.memory_space<vmem>>, vector<32x3xf32>
    %3 = arith.truncf %2 : vector<32x3xf32> to vector<32x3xbf16>
    %4 = arith.truncf %1 : vector<3x32xf32> to vector<3x32xbf16>
    %cst = arith.constant dense<0.000000e+00> : vector<32x32xf32>
    %5 = tpu.matmul %3, %4, %cst {dimension_numbers = #tpu.dot_dimension_numbers<[1], [0], [0], [1], [0, 0, 1, 1], [], []>} : vector<32x3xbf16>, vector<3x32xbf16>, vector<32x32xf32> -> vector<32x32xf32>
    %c0_4 = arith.constant 0 : index
    %c0_5 = arith.constant 0 : index
    %6 = vector.load %arg6[%c0_4, %c0_5] : memref<32x1xf32, #tpu.memory_space<vmem>>, vector<32x1xf32>
    %7 = vector.broadcast %6 : vector<32x1xf32> to vector<32x32xf32>
    %8 = arith.addf %5, %7 : vector<32x32xf32>
    %c0_i32 = arith.constant 0 : i32
    %9 = arith.cmpi eq, %arg1, %c0_i32 : i32
    %c0_i32_6 = arith.constant 0 : i32
    %10 = arith.cmpi eq, %arg2, %c0_i32_6 : i32
    %11 = arith.andi %9, %10 : i1
    %12 = arith.extui %11 : i1 to i32
    %c0_i32_7 = arith.constant 0 : i32
    %13 = arith.cmpi ne, %12, %c0_i32_7 : i32
    scf.if %13 {
      %cst_11 = arith.constant 0.000000e+00 : f32
      %20 = vector.broadcast %cst_11 : f32 to vector<32x1xf32>
      %c0_12 = arith.constant 0 : index
      %c0_13 = arith.constant 0 : index
      %21 = vector.load %arg10[%c0_12, %c0_13] : memref<32x1xf32, #tpu.memory_space<vmem>>, vector<32x1xf32>
      tpu.vector_store %arg10[%c0_12, %c0_13], %20 {strides = array<i32>} : memref<32x1xf32, #tpu.memory_space<vmem>>, vector<32x1xf32>,
      %cst_14 = arith.constant 0.000000e+00 : f32
      %22 = vector.broadcast %cst_14 : f32 to vector<32x1xf32>
      %c0_15 = arith.constant 0 : index
      %c0_16 = arith.constant 0 : index
      %23 = vector.load %arg11[%c0_15, %c0_16] : memref<32x1xf32, #tpu.memory_space<vmem>>, vector<32x1xf32>
      tpu.vector_store %arg11[%c0_15, %c0_16], %22 {strides = array<i32>} : memref<32x1xf32, #tpu.memory_space<vmem>>, vector<32x1xf32>,
    } else {
    }
    %c0_i32_8 = arith.constant 0 : i32
    %14 = arith.cmpi eq, %arg1, %c0_i32_8 : i32
    %15 = arith.extui %14 : i1 to i32
    %c0_i32_9 = arith.constant 0 : i32
    %16 = arith.cmpi ne, %15, %c0_i32_9 : i32
    scf.if %16 {
      %20 = tpu.iota {dimensions = array<i32: 1>} : vector<1x32xi32>
      %c32_i32 = arith.constant 32 : i32
      %21 = arith.muli %arg2, %c32_i32 : i32
      %22 = vector.broadcast %21 : i32 to vector<1x32xi32>
      %23 = arith.addi %20, %22 : vector<1x32xi32>
      %c32_i32_11 = arith.constant 32 : i32
      %24 = vector.broadcast %c32_i32_11 : i32 to vector<1x32xi32>
      %25 = arith.cmpi slt, %23, %24 : vector<1x32xi32>
      %26 = arith.extui %25 : vector<1x32xi1> to vector<1x32xi32>
      %27 = arith.sitofp %26 : vector<1x32xi32> to vector<1x32xf32>
      %28 = vector.broadcast %27 : vector<1x32xf32> to vector<32x32xf32>
      %29 = arith.mulf %8, %28 : vector<32x32xf32>
      %c0_12 = arith.constant 0 : index
      %c0_13 = arith.constant 0 : index
      %30 = vector.load %arg10[%c0_12, %c0_13] : memref<32x1xf32, #tpu.memory_space<vmem>>, vector<32x1xf32>
      %cst_14 = arith.constant dense<0.000000e+00> : vector<32xf32>
      %31 = vector.multi_reduction <add>, %29, %cst_14 [1] : vector<32x32xf32> to vector<32xf32>
      %32 = vector.shape_cast %31 : vector<32xf32> to vector<32x1xf32>
      %33 = arith.addf %30, %32 : vector<32x1xf32>
      %c0_15 = arith.constant 0 : index
      %c0_16 = arith.constant 0 : index
      %34 = vector.load %arg10[%c0_15, %c0_16] : memref<32x1xf32, #tpu.memory_space<vmem>>, vector<32x1xf32>
      tpu.vector_store %arg10[%c0_15, %c0_16], %33 {strides = array<i32>} : memref<32x1xf32, #tpu.memory_space<vmem>>, vector<32x1xf32>,
      %c0_17 = arith.constant 0 : index
      %c0_18 = arith.constant 0 : index
      %35 = vector.load %arg11[%c0_17, %c0_18] : memref<32x1xf32, #tpu.memory_space<vmem>>, vector<32x1xf32>
      %36 = arith.mulf %29, %29 : vector<32x32xf32>
      %cst_19 = arith.constant dense<0.000000e+00> : vector<32xf32>
      %37 = vector.multi_reduction <add>, %36, %cst_19 [1] : vector<32x32xf32> to vector<32xf32>
      %38 = vector.shape_cast %37 : vector<32xf32> to vector<32x1xf32>
      %39 = arith.addf %35, %38 : vector<32x1xf32>
      %c0_20 = arith.constant 0 : index
      %c0_21 = arith.constant 0 : index
      %40 = vector.load %arg11[%c0_20, %c0_21] : memref<32x1xf32, #tpu.memory_space<vmem>>, vector<32x1xf32>
      tpu.vector_store %arg11[%c0_20, %c0_21], %39 {strides = array<i32>} : memref<32x1xf32, #tpu.memory_space<vmem>>, vector<32x1xf32>,
    } else {
    }
    %c1_i32 = arith.constant 1 : i32
    %17 = arith.cmpi eq, %arg1, %c1_i32 : i32
    %18 = arith.extui %17 : i1 to i32
    %c0_i32_10 = arith.constant 0 : i32
    %19 = arith.cmpi ne, %18, %c0_i32_10 : i32
    scf.if %19 {
      %c0_11 = arith.constant 0 : index
      %c0_12 = arith.constant 0 : index
      %20 = vector.load %arg10[%c0_11, %c0_12] : memref<32x1xf32, #tpu.memory_space<vmem>>, vector<32x1xf32>
      %c0_13 = arith.constant 0 : index
      %c0_14 = arith.constant 0 : index
      %21 = vector.load %arg11[%c0_13, %c0_14] : memref<32x1xf32, #tpu.memory_space<vmem>>, vector<32x1xf32>
      %22 = vector.extract_strided_slice %20 {offsets = [0, 0], sizes = [16, 1], strides = [1, 1]} : vector<32x1xf32> to vector<16x1xf32>
      %23 = vector.shape_cast %22 : vector<16x1xf32> to vector<1x16x1xf32>
      %cst_15 = arith.constant dense<0.000000e+00> : vector<1xf32>
      %24 = vector.multi_reduction <add>, %23, %cst_15 [1, 2] : vector<1x16x1xf32> to vector<1xf32>
      %25 = vector.shape_cast %24 : vector<1xf32> to vector<1x1x1xf32>
      %26 = vector.extract %25[0, 0, 0] : f32 from vector<1x1x1xf32>
      %27 = vector.broadcast %26 : f32 to vector<1x1xf32>
      %28 = vector.extract_strided_slice %21 {offsets = [0, 0], sizes = [16, 1], strides = [1, 1]} : vector<32x1xf32> to vector<16x1xf32>
      %29 = vector.shape_cast %28 : vector<16x1xf32> to vector<1x16x1xf32>
      %cst_16 = arith.constant dense<0.000000e+00> : vector<1xf32>
      %30 = vector.multi_reduction <add>, %29, %cst_16 [1, 2] : vector<1x16x1xf32> to vector<1xf32>
      %31 = vector.shape_cast %30 : vector<1xf32> to vector<1x1x1xf32>
      %32 = vector.extract %31[0, 0, 0] : f32 from vector<1x1x1xf32>
      %33 = vector.broadcast %32 : f32 to vector<1x1xf32>
      %cst_17 = arith.constant 0.001953125 : f32
      %34 = vector.broadcast %cst_17 : f32 to vector<1x1xf32>
      %35 = arith.mulf %27, %34 : vector<1x1xf32>
      %cst_18 = arith.constant 0.001953125 : f32
      %36 = vector.broadcast %cst_18 : f32 to vector<1x1xf32>
      %37 = arith.mulf %33, %36 : vector<1x1xf32>
      %38 = arith.mulf %35, %35 : vector<1x1xf32>
      %39 = arith.subf %37, %38 : vector<1x1xf32>
      %cst_19 = arith.constant 9.99999974E-6 : f32
      %40 = vector.broadcast %cst_19 : f32 to vector<1x1xf32>
      %41 = arith.addf %39, %40 : vector<1x1xf32>
      %42 = math.rsqrt %41 : vector<1x1xf32>
      %43 = vector.shape_cast %42 : vector<1x1xf32> to vector<1x1xf32>
      %44 = vector.broadcast %43 : vector<1x1xf32> to vector<16x1xf32>
      %cst_20 = arith.constant 0.000000e+00 : f32
      %45 = vector.broadcast %cst_20 : f32 to vector<1x1xf32>
      %46 = arith.subf %45, %35 : vector<1x1xf32>
      %47 = arith.mulf %46, %42 : vector<1x1xf32>
      %48 = vector.shape_cast %47 : vector<1x1xf32> to vector<1x1xf32>
      %49 = vector.broadcast %48 : vector<1x1xf32> to vector<16x1xf32>
      %50 = vector.extract_strided_slice %20 {offsets = [16, 0], sizes = [16, 1], strides = [1, 1]} : vector<32x1xf32> to vector<16x1xf32>
      %51 = vector.shape_cast %50 : vector<16x1xf32> to vector<1x16x1xf32>
      %cst_21 = arith.constant dense<0.000000e+00> : vector<1xf32>
      %52 = vector.multi_reduction <add>, %51, %cst_21 [1, 2] : vector<1x16x1xf32> to vector<1xf32>
      %53 = vector.shape_cast %52 : vector<1xf32> to vector<1x1x1xf32>
      %54 = vector.extract %53[0, 0, 0] : f32 from vector<1x1x1xf32>
      %55 = vector.broadcast %54 : f32 to vector<1x1xf32>
      %56 = vector.extract_strided_slice %21 {offsets = [16, 0], sizes = [16, 1], strides = [1, 1]} : vector<32x1xf32> to vector<16x1xf32>
      %57 = vector.shape_cast %56 : vector<16x1xf32> to vector<1x16x1xf32>
      %cst_22 = arith.constant dense<0.000000e+00> : vector<1xf32>
      %58 = vector.multi_reduction <add>, %57, %cst_22 [1, 2] : vector<1x16x1xf32> to vector<1xf32>
      %59 = vector.shape_cast %58 : vector<1xf32> to vector<1x1x1xf32>
      %60 = vector.extract %59[0, 0, 0] : f32 from vector<1x1x1xf32>
      %61 = vector.broadcast %60 : f32 to vector<1x1xf32>
      %cst_23 = arith.constant 0.001953125 : f32
      %62 = vector.broadcast %cst_23 : f32 to vector<1x1xf32>
      %63 = arith.mulf %55, %62 : vector<1x1xf32>
      %cst_24 = arith.constant 0.001953125 : f32
      %64 = vector.broadcast %cst_24 : f32 to vector<1x1xf32>
      %65 = arith.mulf %61, %64 : vector<1x1xf32>
      %66 = arith.mulf %63, %63 : vector<1x1xf32>
      %67 = arith.subf %65, %66 : vector<1x1xf32>
      %cst_25 = arith.constant 9.99999974E-6 : f32
      %68 = vector.broadcast %cst_25 : f32 to vector<1x1xf32>
      %69 = arith.addf %67, %68 : vector<1x1xf32>
      %70 = math.rsqrt %69 : vector<1x1xf32>
      %71 = vector.shape_cast %70 : vector<1x1xf32> to vector<1x1xf32>
      %72 = vector.broadcast %71 : vector<1x1xf32> to vector<16x1xf32>
      %cst_26 = arith.constant 0.000000e+00 : f32
      %73 = vector.broadcast %cst_26 : f32 to vector<1x1xf32>
      %74 = arith.subf %73, %63 : vector<1x1xf32>
      %75 = arith.mulf %74, %70 : vector<1x1xf32>
      %76 = vector.shape_cast %75 : vector<1x1xf32> to vector<1x1xf32>
      %77 = vector.broadcast %76 : vector<1x1xf32> to vector<16x1xf32>
      %78 = tpu.concatenate %44, %72 in 0 : vector<16x1xf32>, vector<16x1xf32> -> vector<32x1xf32>
      %c0_27 = arith.constant 0 : index
      %c0_28 = arith.constant 0 : index
      %79 = vector.load %arg7[%c0_27, %c0_28] : memref<32x1xf32, #tpu.memory_space<vmem>>, vector<32x1xf32>
      %80 = arith.mulf %78, %79 : vector<32x1xf32>
      %81 = tpu.concatenate %49, %77 in 0 : vector<16x1xf32>, vector<16x1xf32> -> vector<32x1xf32>
      %c0_29 = arith.constant 0 : index
      %c0_30 = arith.constant 0 : index
      %82 = vector.load %arg7[%c0_29, %c0_30] : memref<32x1xf32, #tpu.memory_space<vmem>>, vector<32x1xf32>
      %83 = arith.mulf %81, %82 : vector<32x1xf32>
      %c0_31 = arith.constant 0 : index
      %c0_32 = arith.constant 0 : index
      %84 = vector.load %arg8[%c0_31, %c0_32] : memref<32x1xf32, #tpu.memory_space<vmem>>, vector<32x1xf32>
      %85 = arith.addf %83, %84 : vector<32x1xf32>
      %86 = vector.broadcast %80 : vector<32x1xf32> to vector<32x32xf32>
      %87 = arith.mulf %8, %86 : vector<32x32xf32>
      %88 = vector.broadcast %85 : vector<32x1xf32> to vector<32x32xf32>
      %89 = arith.addf %87, %88 : vector<32x32xf32>
      %cst_33 = arith.constant 0.000000e+00 : f32
      %90 = vector.broadcast %cst_33 : f32 to vector<32x32xf32>
      %91 = arith.cmpf oge, %89, %90 : vector<32x32xf32>
      %cst_34 = arith.constant 1.000000e-01 : f32
      %92 = vector.broadcast %cst_34 : f32 to vector<32x32xf32>
      %93 = arith.mulf %92, %89 : vector<32x32xf32>
      %94 = arith.select %91, %89, %93 : vector<32x32xi1>, vector<32x32xf32>
      %c0_35 = arith.constant 0 : index
      %c0_36 = arith.constant 0 : index
      %c0_37 = arith.constant 0 : index
      %95 = vector.load %arg4[%c0_35, %c0_36, %c0_37] : memref<1x32x32xbf16, #tpu.memory_space<vmem>>, vector<1x32x32xbf16>
      %96 = vector.shape_cast %95 : vector<1x32x32xbf16> to vector<32x32xbf16>
      %97 = arith.extf %96 : vector<32x32xbf16> to vector<32x32xf32>
      %98 = arith.addf %94, %97 : vector<32x32xf32>
      %99 = arith.truncf %98 : vector<32x32xf32> to vector<32x32xbf16>
      %c0_38 = arith.constant 0 : index
      %c0_39 = arith.constant 0 : index
      %c0_40 = arith.constant 0 : index
      %100 = vector.load %arg9[%c0_38, %c0_39, %c0_40] : memref<1x32x32xbf16, #tpu.memory_space<vmem>>, vector<1x32x32xbf16>
      %101 = vector.shape_cast %100 : vector<1x32x32xbf16> to vector<32x32xbf16>
      %102 = vector.shape_cast %99 : vector<32x32xbf16> to vector<1x32x32xbf16>
      tpu.vector_store %arg9[%c0_38, %c0_39, %c0_40], %102 {strides = array<i32>} : memref<1x32x32xbf16, #tpu.memory_space<vmem>>, vector<1x32x32xbf16>,
    } else {
    }
    return
  }
  func.func @transform_0(%arg0: i32, %arg1: i32, %arg2: i32) -> (i32, i32, i32) {
    %c0_i32 = arith.constant 0 : i32
    %c0_i32_0 = arith.constant 0 : i32
    return %arg0, %c0_i32, %arg2 : i32, i32, i32
  }
  func.func @transform_1(%arg0: i32, %arg1: i32, %arg2: i32) -> (i32, i32, i32) {
    %0 = arith.muli %arg2, %arg1 : i32
    %c0_i32 = arith.constant 0 : i32
    %c0_i32_0 = arith.constant 0 : i32
    return %arg0, %c0_i32, %0 : i32, i32, i32
  }
  func.func @transform_2(%arg0: i32, %arg1: i32, %arg2: i32) -> (i32, i32) {
    %c0_i32 = arith.constant 0 : i32
    %c0_i32_0 = arith.constant 0 : i32
    %c0_i32_1 = arith.constant 0 : i32
    return %c0_i32, %c0_i32_0 : i32, i32
  }
  func.func @transform_3(%arg0: i32, %arg1: i32, %arg2: i32) -> (i32, i32) {
    %c0_i32 = arith.constant 0 : i32
    %c0_i32_0 = arith.constant 0 : i32
    %c0_i32_1 = arith.constant 0 : i32
    return %c0_i32, %c0_i32_0 : i32, i32
  }
  func.func @transform_4(%arg0: i32, %arg1: i32, %arg2: i32) -> (i32, i32) {
    %c0_i32 = arith.constant 0 : i32
    %c0_i32_0 = arith.constant 0 : i32
    %c0_i32_1 = arith.constant 0 : i32
    return %c0_i32, %c0_i32_0 : i32, i32
  }
  func.func @transform_5(%arg0: i32, %arg1: i32, %arg2: i32) -> (i32, i32) {
    %c0_i32 = arith.constant 0 : i32
    %c0_i32_0 = arith.constant 0 : i32
    %c0_i32_1 = arith.constant 0 : i32
    return %c0_i32, %c0_i32_0 : i32, i32
  }
  func.func @transform_6(%arg0: i32, %arg1: i32, %arg2: i32) -> (i32, i32, i32) {
    %0 = arith.muli %arg2, %arg1 : i32
    %c0_i32 = arith.constant 0 : i32
    %c0_i32_0 = arith.constant 0 : i32
    return %arg0, %c0_i32, %0 : i32, i32, i32
  }
}

module attributes {stable_mosaic.version = 11 : i64} {
  func.func @conv1d_gn_lrelu_kernel(%arg0: i32, %arg1: i32, %arg2: i32, %arg3: memref<1x3x16xf32, #tpu.memory_space<vmem>>, %arg4: memref<1x32x16xf32, #tpu.memory_space<vmem>>, %arg5: memref<32x3xf32, #tpu.memory_space<vmem>>, %arg6: memref<32x1xf32, #tpu.memory_space<vmem>>, %arg7: memref<32x1xf32, #tpu.memory_space<vmem>>, %arg8: memref<32x1xf32, #tpu.memory_space<vmem>>, %arg9: memref<1x32x16xbf16, #tpu.memory_space<vmem>>, %arg10: memref<32x1xf32, #tpu.memory_space<vmem>>, %arg11: memref<32x1xf32, #tpu.memory_space<vmem>>) attributes {dimension_semantics = [#tpu.dimension_semantics<parallel>, #tpu.dimension_semantics<arbitrary>, #tpu.dimension_semantics<arbitrary>], iteration_bounds = array<i64: 2, 2, 1>, scalar_prefetch = 0 : i64, scratch_operands = 2 : i64, tpu.core_type = #tpu.core_type<tc>, window_params = [{transform_indices = @transform_0, window_bounds = array<i64: 1, 3, 16>}, {transform_indices = @transform_1, window_bounds = array<i64: 1, 32, 16>}, {pipeline_mode = #tpu.pipeline_mode<synchronous>, transform_indices = @transform_2, window_bounds = array<i64: 32, 3>}, {pipeline_mode = #tpu.pipeline_mode<synchronous>, transform_indices = @transform_3, window_bounds = array<i64: 32, 1>}, {pipeline_mode = #tpu.pipeline_mode<synchronous>, transform_indices = @transform_4, window_bounds = array<i64: 32, 1>}, {pipeline_mode = #tpu.pipeline_mode<synchronous>, transform_indices = @transform_5, window_bounds = array<i64: 32, 1>}, {transform_indices = @transform_6, window_bounds = array<i64: 1, 32, 16>}]} {
    %c0 = arith.constant 0 : index
    %c0_0 = arith.constant 0 : index
    %c0_1 = arith.constant 0 : index
    %0 = vector.load %arg3[%c0, %c0_0, %c0_1] : memref<1x3x16xf32, #tpu.memory_space<vmem>>, vector<1x3x16xf32>
    %1 = vector.shape_cast %0 : vector<1x3x16xf32> to vector<3x16xf32>
    %c0_2 = arith.constant 0 : index
    %c0_3 = arith.constant 0 : index
    %2 = vector.load %arg5[%c0_2, %c0_3] : memref<32x3xf32, #tpu.memory_space<vmem>>, vector<32x3xf32>
    %3 = arith.truncf %2 : vector<32x3xf32> to vector<32x3xbf16>
    %4 = arith.truncf %1 : vector<3x16xf32> to vector<3x16xbf16>
    %cst = arith.constant dense<0.000000e+00> : vector<32x16xf32>
    %5 = tpu.matmul %3, %4, %cst {dimension_numbers = #tpu.dot_dimension_numbers<[1], [0], [0], [1], [0, 0, 1, 1], [], []>} : vector<32x3xbf16>, vector<3x16xbf16>, vector<32x16xf32> -> vector<32x16xf32>
    %c0_4 = arith.constant 0 : index
    %c0_5 = arith.constant 0 : index
    %6 = vector.load %arg6[%c0_4, %c0_5] : memref<32x1xf32, #tpu.memory_space<vmem>>, vector<32x1xf32>
    %7 = vector.broadcast %6 : vector<32x1xf32> to vector<32x16xf32>
    %8 = arith.addf %5, %7 : vector<32x16xf32>
    %c0_i32 = arith.constant 0 : i32
    %9 = arith.cmpi eq, %arg1, %c0_i32 : i32
    %c0_i32_6 = arith.constant 0 : i32
    %10 = arith.cmpi eq, %arg2, %c0_i32_6 : i32
    %11 = arith.andi %9, %10 : i1
    %12 = arith.extui %11 : i1 to i32
    %c0_i32_7 = arith.constant 0 : i32
    %13 = arith.cmpi ne, %12, %c0_i32_7 : i32
    scf.if %13 {
      %cst_11 = arith.constant 0.000000e+00 : f32
      %20 = vector.broadcast %cst_11 : f32 to vector<32x1xf32>
      %c0_12 = arith.constant 0 : index
      %c0_13 = arith.constant 0 : index
      %21 = vector.load %arg10[%c0_12, %c0_13] : memref<32x1xf32, #tpu.memory_space<vmem>>, vector<32x1xf32>
      tpu.vector_store %arg10[%c0_12, %c0_13], %20 {strides = array<i32>} : memref<32x1xf32, #tpu.memory_space<vmem>>, vector<32x1xf32>,
      %cst_14 = arith.constant 0.000000e+00 : f32
      %22 = vector.broadcast %cst_14 : f32 to vector<32x1xf32>
      %c0_15 = arith.constant 0 : index
      %c0_16 = arith.constant 0 : index
      %23 = vector.load %arg11[%c0_15, %c0_16] : memref<32x1xf32, #tpu.memory_space<vmem>>, vector<32x1xf32>
      tpu.vector_store %arg11[%c0_15, %c0_16], %22 {strides = array<i32>} : memref<32x1xf32, #tpu.memory_space<vmem>>, vector<32x1xf32>,
    } else {
    }
    %c0_i32_8 = arith.constant 0 : i32
    %14 = arith.cmpi eq, %arg1, %c0_i32_8 : i32
    %15 = arith.extui %14 : i1 to i32
    %c0_i32_9 = arith.constant 0 : i32
    %16 = arith.cmpi ne, %15, %c0_i32_9 : i32
    scf.if %16 {
      %20 = tpu.iota {dimensions = array<i32: 1>} : vector<1x16xi32>
      %c16_i32 = arith.constant 16 : i32
      %21 = arith.muli %arg2, %c16_i32 : i32
      %22 = vector.broadcast %21 : i32 to vector<1x16xi32>
      %23 = arith.addi %20, %22 : vector<1x16xi32>
      %c16_i32_11 = arith.constant 16 : i32
      %24 = vector.broadcast %c16_i32_11 : i32 to vector<1x16xi32>
      %25 = arith.cmpi slt, %23, %24 : vector<1x16xi32>
      %26 = arith.extui %25 : vector<1x16xi1> to vector<1x16xi32>
      %27 = arith.sitofp %26 : vector<1x16xi32> to vector<1x16xf32>
      %28 = vector.broadcast %27 : vector<1x16xf32> to vector<32x16xf32>
      %29 = arith.mulf %8, %28 : vector<32x16xf32>
      %c0_12 = arith.constant 0 : index
      %c0_13 = arith.constant 0 : index
      %30 = vector.load %arg10[%c0_12, %c0_13] : memref<32x1xf32, #tpu.memory_space<vmem>>, vector<32x1xf32>
      %cst_14 = arith.constant dense<0.000000e+00> : vector<32xf32>
      %31 = vector.multi_reduction <add>, %29, %cst_14 [1] : vector<32x16xf32> to vector<32xf32>
      %32 = vector.shape_cast %31 : vector<32xf32> to vector<32x1xf32>
      %33 = arith.addf %30, %32 : vector<32x1xf32>
      %c0_15 = arith.constant 0 : index
      %c0_16 = arith.constant 0 : index
      %34 = vector.load %arg10[%c0_15, %c0_16] : memref<32x1xf32, #tpu.memory_space<vmem>>, vector<32x1xf32>
      tpu.vector_store %arg10[%c0_15, %c0_16], %33 {strides = array<i32>} : memref<32x1xf32, #tpu.memory_space<vmem>>, vector<32x1xf32>,
      %c0_17 = arith.constant 0 : index
      %c0_18 = arith.constant 0 : index
      %35 = vector.load %arg11[%c0_17, %c0_18] : memref<32x1xf32, #tpu.memory_space<vmem>>, vector<32x1xf32>
      %36 = arith.mulf %29, %29 : vector<32x16xf32>
      %cst_19 = arith.constant dense<0.000000e+00> : vector<32xf32>
      %37 = vector.multi_reduction <add>, %36, %cst_19 [1] : vector<32x16xf32> to vector<32xf32>
      %38 = vector.shape_cast %37 : vector<32xf32> to vector<32x1xf32>
      %39 = arith.addf %35, %38 : vector<32x1xf32>
      %c0_20 = arith.constant 0 : index
      %c0_21 = arith.constant 0 : index
      %40 = vector.load %arg11[%c0_20, %c0_21] : memref<32x1xf32, #tpu.memory_space<vmem>>, vector<32x1xf32>
      tpu.vector_store %arg11[%c0_20, %c0_21], %39 {strides = array<i32>} : memref<32x1xf32, #tpu.memory_space<vmem>>, vector<32x1xf32>,
    } else {
    }
    %c1_i32 = arith.constant 1 : i32
    %17 = arith.cmpi eq, %arg1, %c1_i32 : i32
    %18 = arith.extui %17 : i1 to i32
    %c0_i32_10 = arith.constant 0 : i32
    %19 = arith.cmpi ne, %18, %c0_i32_10 : i32
    scf.if %19 {
      %c0_11 = arith.constant 0 : index
      %c0_12 = arith.constant 0 : index
      %20 = vector.load %arg10[%c0_11, %c0_12] : memref<32x1xf32, #tpu.memory_space<vmem>>, vector<32x1xf32>
      %c0_13 = arith.constant 0 : index
      %c0_14 = arith.constant 0 : index
      %21 = vector.load %arg11[%c0_13, %c0_14] : memref<32x1xf32, #tpu.memory_space<vmem>>, vector<32x1xf32>
      %22 = vector.extract_strided_slice %20 {offsets = [0, 0], sizes = [16, 1], strides = [1, 1]} : vector<32x1xf32> to vector<16x1xf32>
      %23 = vector.shape_cast %22 : vector<16x1xf32> to vector<1x16x1xf32>
      %cst_15 = arith.constant dense<0.000000e+00> : vector<1xf32>
      %24 = vector.multi_reduction <add>, %23, %cst_15 [1, 2] : vector<1x16x1xf32> to vector<1xf32>
      %25 = vector.shape_cast %24 : vector<1xf32> to vector<1x1x1xf32>
      %26 = vector.extract %25[0, 0, 0] : f32 from vector<1x1x1xf32>
      %27 = vector.broadcast %26 : f32 to vector<1x1xf32>
      %28 = vector.extract_strided_slice %21 {offsets = [0, 0], sizes = [16, 1], strides = [1, 1]} : vector<32x1xf32> to vector<16x1xf32>
      %29 = vector.shape_cast %28 : vector<16x1xf32> to vector<1x16x1xf32>
      %cst_16 = arith.constant dense<0.000000e+00> : vector<1xf32>
      %30 = vector.multi_reduction <add>, %29, %cst_16 [1, 2] : vector<1x16x1xf32> to vector<1xf32>
      %31 = vector.shape_cast %30 : vector<1xf32> to vector<1x1x1xf32>
      %32 = vector.extract %31[0, 0, 0] : f32 from vector<1x1x1xf32>
      %33 = vector.broadcast %32 : f32 to vector<1x1xf32>
      %cst_17 = arith.constant 3.906250e-03 : f32
      %34 = vector.broadcast %cst_17 : f32 to vector<1x1xf32>
      %35 = arith.mulf %27, %34 : vector<1x1xf32>
      %cst_18 = arith.constant 3.906250e-03 : f32
      %36 = vector.broadcast %cst_18 : f32 to vector<1x1xf32>
      %37 = arith.mulf %33, %36 : vector<1x1xf32>
      %38 = arith.mulf %35, %35 : vector<1x1xf32>
      %39 = arith.subf %37, %38 : vector<1x1xf32>
      %cst_19 = arith.constant 9.99999974E-6 : f32
      %40 = vector.broadcast %cst_19 : f32 to vector<1x1xf32>
      %41 = arith.addf %39, %40 : vector<1x1xf32>
      %42 = math.rsqrt %41 : vector<1x1xf32>
      %43 = vector.shape_cast %42 : vector<1x1xf32> to vector<1x1xf32>
      %44 = vector.broadcast %43 : vector<1x1xf32> to vector<16x1xf32>
      %cst_20 = arith.constant 0.000000e+00 : f32
      %45 = vector.broadcast %cst_20 : f32 to vector<1x1xf32>
      %46 = arith.subf %45, %35 : vector<1x1xf32>
      %47 = arith.mulf %46, %42 : vector<1x1xf32>
      %48 = vector.shape_cast %47 : vector<1x1xf32> to vector<1x1xf32>
      %49 = vector.broadcast %48 : vector<1x1xf32> to vector<16x1xf32>
      %50 = vector.extract_strided_slice %20 {offsets = [16, 0], sizes = [16, 1], strides = [1, 1]} : vector<32x1xf32> to vector<16x1xf32>
      %51 = vector.shape_cast %50 : vector<16x1xf32> to vector<1x16x1xf32>
      %cst_21 = arith.constant dense<0.000000e+00> : vector<1xf32>
      %52 = vector.multi_reduction <add>, %51, %cst_21 [1, 2] : vector<1x16x1xf32> to vector<1xf32>
      %53 = vector.shape_cast %52 : vector<1xf32> to vector<1x1x1xf32>
      %54 = vector.extract %53[0, 0, 0] : f32 from vector<1x1x1xf32>
      %55 = vector.broadcast %54 : f32 to vector<1x1xf32>
      %56 = vector.extract_strided_slice %21 {offsets = [16, 0], sizes = [16, 1], strides = [1, 1]} : vector<32x1xf32> to vector<16x1xf32>
      %57 = vector.shape_cast %56 : vector<16x1xf32> to vector<1x16x1xf32>
      %cst_22 = arith.constant dense<0.000000e+00> : vector<1xf32>
      %58 = vector.multi_reduction <add>, %57, %cst_22 [1, 2] : vector<1x16x1xf32> to vector<1xf32>
      %59 = vector.shape_cast %58 : vector<1xf32> to vector<1x1x1xf32>
      %60 = vector.extract %59[0, 0, 0] : f32 from vector<1x1x1xf32>
      %61 = vector.broadcast %60 : f32 to vector<1x1xf32>
      %cst_23 = arith.constant 3.906250e-03 : f32
      %62 = vector.broadcast %cst_23 : f32 to vector<1x1xf32>
      %63 = arith.mulf %55, %62 : vector<1x1xf32>
      %cst_24 = arith.constant 3.906250e-03 : f32
      %64 = vector.broadcast %cst_24 : f32 to vector<1x1xf32>
      %65 = arith.mulf %61, %64 : vector<1x1xf32>
      %66 = arith.mulf %63, %63 : vector<1x1xf32>
      %67 = arith.subf %65, %66 : vector<1x1xf32>
      %cst_25 = arith.constant 9.99999974E-6 : f32
      %68 = vector.broadcast %cst_25 : f32 to vector<1x1xf32>
      %69 = arith.addf %67, %68 : vector<1x1xf32>
      %70 = math.rsqrt %69 : vector<1x1xf32>
      %71 = vector.shape_cast %70 : vector<1x1xf32> to vector<1x1xf32>
      %72 = vector.broadcast %71 : vector<1x1xf32> to vector<16x1xf32>
      %cst_26 = arith.constant 0.000000e+00 : f32
      %73 = vector.broadcast %cst_26 : f32 to vector<1x1xf32>
      %74 = arith.subf %73, %63 : vector<1x1xf32>
      %75 = arith.mulf %74, %70 : vector<1x1xf32>
      %76 = vector.shape_cast %75 : vector<1x1xf32> to vector<1x1xf32>
      %77 = vector.broadcast %76 : vector<1x1xf32> to vector<16x1xf32>
      %78 = tpu.concatenate %44, %72 in 0 : vector<16x1xf32>, vector<16x1xf32> -> vector<32x1xf32>
      %c0_27 = arith.constant 0 : index
      %c0_28 = arith.constant 0 : index
      %79 = vector.load %arg7[%c0_27, %c0_28] : memref<32x1xf32, #tpu.memory_space<vmem>>, vector<32x1xf32>
      %80 = arith.mulf %78, %79 : vector<32x1xf32>
      %81 = tpu.concatenate %49, %77 in 0 : vector<16x1xf32>, vector<16x1xf32> -> vector<32x1xf32>
      %c0_29 = arith.constant 0 : index
      %c0_30 = arith.constant 0 : index
      %82 = vector.load %arg7[%c0_29, %c0_30] : memref<32x1xf32, #tpu.memory_space<vmem>>, vector<32x1xf32>
      %83 = arith.mulf %81, %82 : vector<32x1xf32>
      %c0_31 = arith.constant 0 : index
      %c0_32 = arith.constant 0 : index
      %84 = vector.load %arg8[%c0_31, %c0_32] : memref<32x1xf32, #tpu.memory_space<vmem>>, vector<32x1xf32>
      %85 = arith.addf %83, %84 : vector<32x1xf32>
      %86 = vector.broadcast %80 : vector<32x1xf32> to vector<32x16xf32>
      %87 = arith.mulf %8, %86 : vector<32x16xf32>
      %88 = vector.broadcast %85 : vector<32x1xf32> to vector<32x16xf32>
      %89 = arith.addf %87, %88 : vector<32x16xf32>
      %cst_33 = arith.constant 0.000000e+00 : f32
      %90 = vector.broadcast %cst_33 : f32 to vector<32x16xf32>
      %91 = arith.cmpf oge, %89, %90 : vector<32x16xf32>
      %cst_34 = arith.constant 1.000000e-01 : f32
      %92 = vector.broadcast %cst_34 : f32 to vector<32x16xf32>
      %93 = arith.mulf %92, %89 : vector<32x16xf32>
      %94 = arith.select %91, %89, %93 : vector<32x16xi1>, vector<32x16xf32>
      %c0_35 = arith.constant 0 : index
      %c0_36 = arith.constant 0 : index
      %c0_37 = arith.constant 0 : index
      %95 = vector.load %arg4[%c0_35, %c0_36, %c0_37] : memref<1x32x16xf32, #tpu.memory_space<vmem>>, vector<1x32x16xf32>
      %96 = vector.shape_cast %95 : vector<1x32x16xf32> to vector<32x16xf32>
      %97 = arith.addf %94, %96 : vector<32x16xf32>
      %98 = arith.truncf %97 : vector<32x16xf32> to vector<32x16xbf16>
      %c0_38 = arith.constant 0 : index
      %c0_39 = arith.constant 0 : index
      %c0_40 = arith.constant 0 : index
      %99 = vector.load %arg9[%c0_38, %c0_39, %c0_40] : memref<1x32x16xbf16, #tpu.memory_space<vmem>>, vector<1x32x16xbf16>
      %100 = vector.shape_cast %99 : vector<1x32x16xbf16> to vector<32x16xbf16>
      %101 = vector.shape_cast %98 : vector<32x16xbf16> to vector<1x32x16xbf16>
      tpu.vector_store %arg9[%c0_38, %c0_39, %c0_40], %101 {strides = array<i32>} : memref<1x32x16xbf16, #tpu.memory_space<vmem>>, vector<1x32x16xbf16>,
    } else {
    }
    return
  }
  func.func @transform_0(%arg0: i32, %arg1: i32, %arg2: i32) -> (i32, i32, i32) {
    %c0_i32 = arith.constant 0 : i32
    %c0_i32_0 = arith.constant 0 : i32
    return %arg0, %c0_i32, %arg2 : i32, i32, i32
  }
  func.func @transform_1(%arg0: i32, %arg1: i32, %arg2: i32) -> (i32, i32, i32) {
    %0 = arith.muli %arg2, %arg1 : i32
    %c0_i32 = arith.constant 0 : i32
    %c0_i32_0 = arith.constant 0 : i32
    return %arg0, %c0_i32, %0 : i32, i32, i32
  }
  func.func @transform_2(%arg0: i32, %arg1: i32, %arg2: i32) -> (i32, i32) {
    %c0_i32 = arith.constant 0 : i32
    %c0_i32_0 = arith.constant 0 : i32
    %c0_i32_1 = arith.constant 0 : i32
    return %c0_i32, %c0_i32_0 : i32, i32
  }
  func.func @transform_3(%arg0: i32, %arg1: i32, %arg2: i32) -> (i32, i32) {
    %c0_i32 = arith.constant 0 : i32
    %c0_i32_0 = arith.constant 0 : i32
    %c0_i32_1 = arith.constant 0 : i32
    return %c0_i32, %c0_i32_0 : i32, i32
  }
  func.func @transform_4(%arg0: i32, %arg1: i32, %arg2: i32) -> (i32, i32) {
    %c0_i32 = arith.constant 0 : i32
    %c0_i32_0 = arith.constant 0 : i32
    %c0_i32_1 = arith.constant 0 : i32
    return %c0_i32, %c0_i32_0 : i32, i32
  }
  func.func @transform_5(%arg0: i32, %arg1: i32, %arg2: i32) -> (i32, i32) {
    %c0_i32 = arith.constant 0 : i32
    %c0_i32_0 = arith.constant 0 : i32
    %c0_i32_1 = arith.constant 0 : i32
    return %c0_i32, %c0_i32_0 : i32, i32
  }
  func.func @transform_6(%arg0: i32, %arg1: i32, %arg2: i32) -> (i32, i32, i32) {
    %0 = arith.muli %arg2, %arg1 : i32
    %c0_i32 = arith.constant 0 : i32
    %c0_i32_0 = arith.constant 0 : i32
    return %arg0, %c0_i32, %0 : i32, i32, i32
  }
}

module attributes {stable_mosaic.version = 11 : i64} {
  func.func @rpp_atten_kernel(%arg0: i32, %arg1: i32, %arg2: memref<1x8x3x16xf32, #tpu.memory_space<vmem>>, %arg3: memref<1x32x16xbf16, #tpu.memory_space<vmem>>, %arg4: memref<1x8x32x16xbf16, #tpu.memory_space<vmem>>, %arg5: memref<128x3xf32, #tpu.memory_space<vmem>>, %arg6: memref<128x1xf32, #tpu.memory_space<vmem>>, %arg7: memref<64x64xf32, #tpu.memory_space<vmem>>, %arg8: memref<1x32x16xbf16, #tpu.memory_space<vmem>>) attributes {dimension_semantics = [#tpu.dimension_semantics<parallel>, #tpu.dimension_semantics<parallel>], iteration_bounds = array<i64: 2, 1>, scalar_prefetch = 0 : i64, scratch_operands = 0 : i64, tpu.core_type = #tpu.core_type<tc>, window_params = [{transform_indices = @transform_0, window_bounds = array<i64: 1, 8, 3, 16>}, {transform_indices = @transform_1, window_bounds = array<i64: 1, 32, 16>}, {transform_indices = @transform_2, window_bounds = array<i64: 1, 8, 32, 16>}, {pipeline_mode = #tpu.pipeline_mode<synchronous>, transform_indices = @transform_3, window_bounds = array<i64: 128, 3>}, {pipeline_mode = #tpu.pipeline_mode<synchronous>, transform_indices = @transform_4, window_bounds = array<i64: 128, 1>}, {pipeline_mode = #tpu.pipeline_mode<synchronous>, transform_indices = @transform_5, window_bounds = array<i64: 64, 64>}, {transform_indices = @transform_6, window_bounds = array<i64: 1, 32, 16>}]} {
    %c0 = arith.constant 0 : index
    %c0_0 = arith.constant 0 : index
    %c0_1 = arith.constant 0 : index
    %0 = vector.load %arg3[%c0, %c0_0, %c0_1] : memref<1x32x16xbf16, #tpu.memory_space<vmem>>, vector<1x32x16xbf16>
    %1 = vector.shape_cast %0 : vector<1x32x16xbf16> to vector<32x16xbf16>
    %2 = arith.extf %1 : vector<32x16xbf16> to vector<32x16xf32>
    %c0_2 = arith.constant 0 : index
    %c0_3 = arith.constant 0 : index
    %3 = vector.load %arg5[%c0_2, %c0_3] : memref<128x3xf32, #tpu.memory_space<vmem>>, vector<128x3xf32>
    %4 = arith.truncf %3 : vector<128x3xf32> to vector<128x3xbf16>
    %c0_4 = arith.constant 0 : index
    %c0_5 = arith.constant 0 : index
    %5 = vector.load %arg6[%c0_4, %c0_5] : memref<128x1xf32, #tpu.memory_space<vmem>>, vector<128x1xf32>
    %c0_6 = arith.constant 0 : index
    %c0_7 = arith.constant 0 : index
    %6 = vector.load %arg7[%c0_6, %c0_7] : memref<64x64xf32, #tpu.memory_space<vmem>>, vector<64x64xf32>
    %7 = arith.truncf %6 : vector<64x64xf32> to vector<64x64xbf16>
    %c0_8 = arith.constant 0 : index
    %c0_9 = arith.constant 0 : index
    %c0_10 = arith.constant 0 : index
    %c0_11 = arith.constant 0 : index
    %8 = vector.load %arg2[%c0_8, %c0_9, %c0_10, %c0_11] : memref<1x8x3x16xf32, #tpu.memory_space<vmem>>, vector<1x1x3x16xf32>
    %9 = vector.shape_cast %8 : vector<1x1x3x16xf32> to vector<3x16xf32>
    %10 = arith.truncf %9 : vector<3x16xf32> to vector<3x16xbf16>
    %c0_12 = arith.constant 0 : index
    %c0_13 = arith.constant 0 : index
    %c0_14 = arith.constant 0 : index
    %c0_15 = arith.constant 0 : index
    %11 = vector.load %arg4[%c0_12, %c0_13, %c0_14, %c0_15] : memref<1x8x32x16xbf16, #tpu.memory_space<vmem>>, vector<1x1x32x16xbf16>
    %12 = vector.shape_cast %11 : vector<1x1x32x16xbf16> to vector<32x16xbf16>
    %13 = arith.extf %12 : vector<32x16xbf16> to vector<32x16xf32>
    %cst = arith.constant dense<0.000000e+00> : vector<128x16xf32>
    %14 = tpu.matmul %4, %10, %cst {dimension_numbers = #tpu.dot_dimension_numbers<[1], [0], [0], [1], [0, 0, 1, 1], [], []>} : vector<128x3xbf16>, vector<3x16xbf16>, vector<128x16xf32> -> vector<128x16xf32>
    %15 = vector.broadcast %5 : vector<128x1xf32> to vector<128x16xf32>
    %16 = arith.addf %14, %15 : vector<128x16xf32>
    %cst_16 = arith.constant 0.000000e+00 : f32
    %17 = vector.broadcast %cst_16 : f32 to vector<128x16xf32>
    %18 = arith.cmpf oge, %16, %17 : vector<128x16xf32>
    %cst_17 = arith.constant 1.000000e-01 : f32
    %19 = vector.broadcast %cst_17 : f32 to vector<128x16xf32>
    %20 = arith.mulf %19, %16 : vector<128x16xf32>
    %21 = arith.select %18, %16, %20 : vector<128x16xi1>, vector<128x16xf32>
    %22 = vector.extract_strided_slice %21 {offsets = [0, 0], sizes = [32, 16], strides = [1, 1]} : vector<128x16xf32> to vector<32x16xf32>
    %23 = vector.extract_strided_slice %21 {offsets = [32, 0], sizes = [32, 16], strides = [1, 1]} : vector<128x16xf32> to vector<32x16xf32>
    %24 = vector.extract_strided_slice %21 {offsets = [64, 0], sizes = [32, 16], strides = [1, 1]} : vector<128x16xf32> to vector<32x16xf32>
    %25 = vector.extract_strided_slice %21 {offsets = [96, 0], sizes = [32, 16], strides = [1, 1]} : vector<128x16xf32> to vector<32x16xf32>
    %26 = arith.mulf %2, %22 : vector<32x16xf32>
    %27 = arith.mulf %13, %24 : vector<32x16xf32>
    %28 = tpu.concatenate %26, %27 in 0 : vector<32x16xf32>, vector<32x16xf32> -> vector<64x16xf32>
    %29 = arith.truncf %28 : vector<64x16xf32> to vector<64x16xbf16>
    %cst_18 = arith.constant dense<0.000000e+00> : vector<64x16xf32>
    %30 = tpu.matmul %7, %29, %cst_18 {dimension_numbers = #tpu.dot_dimension_numbers<[1], [0], [0], [1], [0, 0, 1, 1], [], []>} : vector<64x64xbf16>, vector<64x16xbf16>, vector<64x16xf32> -> vector<64x16xf32>
    %31 = vector.extract_strided_slice %30 {offsets = [0, 0], sizes = [32, 16], strides = [1, 1]} : vector<64x16xf32> to vector<32x16xf32>
    %32 = vector.extract_strided_slice %30 {offsets = [32, 0], sizes = [32, 16], strides = [1, 1]} : vector<64x16xf32> to vector<32x16xf32>
    %33 = arith.mulf %32, %25 : vector<32x16xf32>
    %34 = arith.mulf %13, %23 : vector<32x16xf32>
    %35 = arith.mulf %31, %34 : vector<32x16xf32>
    %cst_19 = arith.constant dense<0.000000e+00> : vector<16xf32>
    %36 = vector.multi_reduction <add>, %35, %cst_19 [0] : vector<32x16xf32> to vector<16xf32>
    %37 = vector.shape_cast %36 : vector<16xf32> to vector<1x16xf32>
    %c0_20 = arith.constant 0 : index
    %c1 = arith.constant 1 : index
    %c0_21 = arith.constant 0 : index
    %c0_22 = arith.constant 0 : index
    %38 = vector.load %arg2[%c0_20, %c1, %c0_21, %c0_22] : memref<1x8x3x16xf32, #tpu.memory_space<vmem>>, vector<1x1x3x16xf32>
    %39 = vector.shape_cast %38 : vector<1x1x3x16xf32> to vector<3x16xf32>
    %40 = arith.truncf %39 : vector<3x16xf32> to vector<3x16xbf16>
    %c0_23 = arith.constant 0 : index
    %c1_24 = arith.constant 1 : index
    %c0_25 = arith.constant 0 : index
    %c0_26 = arith.constant 0 : index
    %41 = vector.load %arg4[%c0_23, %c1_24, %c0_25, %c0_26] : memref<1x8x32x16xbf16, #tpu.memory_space<vmem>>, vector<1x1x32x16xbf16>
    %42 = vector.shape_cast %41 : vector<1x1x32x16xbf16> to vector<32x16xbf16>
    %43 = arith.extf %42 : vector<32x16xbf16> to vector<32x16xf32>
    %cst_27 = arith.constant dense<0.000000e+00> : vector<128x16xf32>
    %44 = tpu.matmul %4, %40, %cst_27 {dimension_numbers = #tpu.dot_dimension_numbers<[1], [0], [0], [1], [0, 0, 1, 1], [], []>} : vector<128x3xbf16>, vector<3x16xbf16>, vector<128x16xf32> -> vector<128x16xf32>
    %45 = vector.broadcast %5 : vector<128x1xf32> to vector<128x16xf32>
    %46 = arith.addf %44, %45 : vector<128x16xf32>
    %cst_28 = arith.constant 0.000000e+00 : f32
    %47 = vector.broadcast %cst_28 : f32 to vector<128x16xf32>
    %48 = arith.cmpf oge, %46, %47 : vector<128x16xf32>
    %cst_29 = arith.constant 1.000000e-01 : f32
    %49 = vector.broadcast %cst_29 : f32 to vector<128x16xf32>
    %50 = arith.mulf %49, %46 : vector<128x16xf32>
    %51 = arith.select %48, %46, %50 : vector<128x16xi1>, vector<128x16xf32>
    %52 = vector.extract_strided_slice %51 {offsets = [0, 0], sizes = [32, 16], strides = [1, 1]} : vector<128x16xf32> to vector<32x16xf32>
    %53 = vector.extract_strided_slice %51 {offsets = [32, 0], sizes = [32, 16], strides = [1, 1]} : vector<128x16xf32> to vector<32x16xf32>
    %54 = vector.extract_strided_slice %51 {offsets = [64, 0], sizes = [32, 16], strides = [1, 1]} : vector<128x16xf32> to vector<32x16xf32>
    %55 = vector.extract_strided_slice %51 {offsets = [96, 0], sizes = [32, 16], strides = [1, 1]} : vector<128x16xf32> to vector<32x16xf32>
    %56 = arith.mulf %2, %52 : vector<32x16xf32>
    %57 = arith.mulf %43, %54 : vector<32x16xf32>
    %58 = tpu.concatenate %56, %57 in 0 : vector<32x16xf32>, vector<32x16xf32> -> vector<64x16xf32>
    %59 = arith.truncf %58 : vector<64x16xf32> to vector<64x16xbf16>
    %cst_30 = arith.constant dense<0.000000e+00> : vector<64x16xf32>
    %60 = tpu.matmul %7, %59, %cst_30 {dimension_numbers = #tpu.dot_dimension_numbers<[1], [0], [0], [1], [0, 0, 1, 1], [], []>} : vector<64x64xbf16>, vector<64x16xbf16>, vector<64x16xf32> -> vector<64x16xf32>
    %61 = vector.extract_strided_slice %60 {offsets = [0, 0], sizes = [32, 16], strides = [1, 1]} : vector<64x16xf32> to vector<32x16xf32>
    %62 = vector.extract_strided_slice %60 {offsets = [32, 0], sizes = [32, 16], strides = [1, 1]} : vector<64x16xf32> to vector<32x16xf32>
    %63 = arith.mulf %62, %55 : vector<32x16xf32>
    %64 = arith.mulf %43, %53 : vector<32x16xf32>
    %65 = arith.mulf %61, %64 : vector<32x16xf32>
    %cst_31 = arith.constant dense<0.000000e+00> : vector<16xf32>
    %66 = vector.multi_reduction <add>, %65, %cst_31 [0] : vector<32x16xf32> to vector<16xf32>
    %67 = vector.shape_cast %66 : vector<16xf32> to vector<1x16xf32>
    %c0_32 = arith.constant 0 : index
    %c2 = arith.constant 2 : index
    %c0_33 = arith.constant 0 : index
    %c0_34 = arith.constant 0 : index
    %68 = vector.load %arg2[%c0_32, %c2, %c0_33, %c0_34] : memref<1x8x3x16xf32, #tpu.memory_space<vmem>>, vector<1x1x3x16xf32>
    %69 = vector.shape_cast %68 : vector<1x1x3x16xf32> to vector<3x16xf32>
    %70 = arith.truncf %69 : vector<3x16xf32> to vector<3x16xbf16>
    %c0_35 = arith.constant 0 : index
    %c2_36 = arith.constant 2 : index
    %c0_37 = arith.constant 0 : index
    %c0_38 = arith.constant 0 : index
    %71 = vector.load %arg4[%c0_35, %c2_36, %c0_37, %c0_38] : memref<1x8x32x16xbf16, #tpu.memory_space<vmem>>, vector<1x1x32x16xbf16>
    %72 = vector.shape_cast %71 : vector<1x1x32x16xbf16> to vector<32x16xbf16>
    %73 = arith.extf %72 : vector<32x16xbf16> to vector<32x16xf32>
    %cst_39 = arith.constant dense<0.000000e+00> : vector<128x16xf32>
    %74 = tpu.matmul %4, %70, %cst_39 {dimension_numbers = #tpu.dot_dimension_numbers<[1], [0], [0], [1], [0, 0, 1, 1], [], []>} : vector<128x3xbf16>, vector<3x16xbf16>, vector<128x16xf32> -> vector<128x16xf32>
    %75 = vector.broadcast %5 : vector<128x1xf32> to vector<128x16xf32>
    %76 = arith.addf %74, %75 : vector<128x16xf32>
    %cst_40 = arith.constant 0.000000e+00 : f32
    %77 = vector.broadcast %cst_40 : f32 to vector<128x16xf32>
    %78 = arith.cmpf oge, %76, %77 : vector<128x16xf32>
    %cst_41 = arith.constant 1.000000e-01 : f32
    %79 = vector.broadcast %cst_41 : f32 to vector<128x16xf32>
    %80 = arith.mulf %79, %76 : vector<128x16xf32>
    %81 = arith.select %78, %76, %80 : vector<128x16xi1>, vector<128x16xf32>
    %82 = vector.extract_strided_slice %81 {offsets = [0, 0], sizes = [32, 16], strides = [1, 1]} : vector<128x16xf32> to vector<32x16xf32>
    %83 = vector.extract_strided_slice %81 {offsets = [32, 0], sizes = [32, 16], strides = [1, 1]} : vector<128x16xf32> to vector<32x16xf32>
    %84 = vector.extract_strided_slice %81 {offsets = [64, 0], sizes = [32, 16], strides = [1, 1]} : vector<128x16xf32> to vector<32x16xf32>
    %85 = vector.extract_strided_slice %81 {offsets = [96, 0], sizes = [32, 16], strides = [1, 1]} : vector<128x16xf32> to vector<32x16xf32>
    %86 = arith.mulf %2, %82 : vector<32x16xf32>
    %87 = arith.mulf %73, %84 : vector<32x16xf32>
    %88 = tpu.concatenate %86, %87 in 0 : vector<32x16xf32>, vector<32x16xf32> -> vector<64x16xf32>
    %89 = arith.truncf %88 : vector<64x16xf32> to vector<64x16xbf16>
    %cst_42 = arith.constant dense<0.000000e+00> : vector<64x16xf32>
    %90 = tpu.matmul %7, %89, %cst_42 {dimension_numbers = #tpu.dot_dimension_numbers<[1], [0], [0], [1], [0, 0, 1, 1], [], []>} : vector<64x64xbf16>, vector<64x16xbf16>, vector<64x16xf32> -> vector<64x16xf32>
    %91 = vector.extract_strided_slice %90 {offsets = [0, 0], sizes = [32, 16], strides = [1, 1]} : vector<64x16xf32> to vector<32x16xf32>
    %92 = vector.extract_strided_slice %90 {offsets = [32, 0], sizes = [32, 16], strides = [1, 1]} : vector<64x16xf32> to vector<32x16xf32>
    %93 = arith.mulf %92, %85 : vector<32x16xf32>
    %94 = arith.mulf %73, %83 : vector<32x16xf32>
    %95 = arith.mulf %91, %94 : vector<32x16xf32>
    %cst_43 = arith.constant dense<0.000000e+00> : vector<16xf32>
    %96 = vector.multi_reduction <add>, %95, %cst_43 [0] : vector<32x16xf32> to vector<16xf32>
    %97 = vector.shape_cast %96 : vector<16xf32> to vector<1x16xf32>
    %c0_44 = arith.constant 0 : index
    %c3 = arith.constant 3 : index
    %c0_45 = arith.constant 0 : index
    %c0_46 = arith.constant 0 : index
    %98 = vector.load %arg2[%c0_44, %c3, %c0_45, %c0_46] : memref<1x8x3x16xf32, #tpu.memory_space<vmem>>, vector<1x1x3x16xf32>
    %99 = vector.shape_cast %98 : vector<1x1x3x16xf32> to vector<3x16xf32>
    %100 = arith.truncf %99 : vector<3x16xf32> to vector<3x16xbf16>
    %c0_47 = arith.constant 0 : index
    %c3_48 = arith.constant 3 : index
    %c0_49 = arith.constant 0 : index
    %c0_50 = arith.constant 0 : index
    %101 = vector.load %arg4[%c0_47, %c3_48, %c0_49, %c0_50] : memref<1x8x32x16xbf16, #tpu.memory_space<vmem>>, vector<1x1x32x16xbf16>
    %102 = vector.shape_cast %101 : vector<1x1x32x16xbf16> to vector<32x16xbf16>
    %103 = arith.extf %102 : vector<32x16xbf16> to vector<32x16xf32>
    %cst_51 = arith.constant dense<0.000000e+00> : vector<128x16xf32>
    %104 = tpu.matmul %4, %100, %cst_51 {dimension_numbers = #tpu.dot_dimension_numbers<[1], [0], [0], [1], [0, 0, 1, 1], [], []>} : vector<128x3xbf16>, vector<3x16xbf16>, vector<128x16xf32> -> vector<128x16xf32>
    %105 = vector.broadcast %5 : vector<128x1xf32> to vector<128x16xf32>
    %106 = arith.addf %104, %105 : vector<128x16xf32>
    %cst_52 = arith.constant 0.000000e+00 : f32
    %107 = vector.broadcast %cst_52 : f32 to vector<128x16xf32>
    %108 = arith.cmpf oge, %106, %107 : vector<128x16xf32>
    %cst_53 = arith.constant 1.000000e-01 : f32
    %109 = vector.broadcast %cst_53 : f32 to vector<128x16xf32>
    %110 = arith.mulf %109, %106 : vector<128x16xf32>
    %111 = arith.select %108, %106, %110 : vector<128x16xi1>, vector<128x16xf32>
    %112 = vector.extract_strided_slice %111 {offsets = [0, 0], sizes = [32, 16], strides = [1, 1]} : vector<128x16xf32> to vector<32x16xf32>
    %113 = vector.extract_strided_slice %111 {offsets = [32, 0], sizes = [32, 16], strides = [1, 1]} : vector<128x16xf32> to vector<32x16xf32>
    %114 = vector.extract_strided_slice %111 {offsets = [64, 0], sizes = [32, 16], strides = [1, 1]} : vector<128x16xf32> to vector<32x16xf32>
    %115 = vector.extract_strided_slice %111 {offsets = [96, 0], sizes = [32, 16], strides = [1, 1]} : vector<128x16xf32> to vector<32x16xf32>
    %116 = arith.mulf %2, %112 : vector<32x16xf32>
    %117 = arith.mulf %103, %114 : vector<32x16xf32>
    %118 = tpu.concatenate %116, %117 in 0 : vector<32x16xf32>, vector<32x16xf32> -> vector<64x16xf32>
    %119 = arith.truncf %118 : vector<64x16xf32> to vector<64x16xbf16>
    %cst_54 = arith.constant dense<0.000000e+00> : vector<64x16xf32>
    %120 = tpu.matmul %7, %119, %cst_54 {dimension_numbers = #tpu.dot_dimension_numbers<[1], [0], [0], [1], [0, 0, 1, 1], [], []>} : vector<64x64xbf16>, vector<64x16xbf16>, vector<64x16xf32> -> vector<64x16xf32>
    %121 = vector.extract_strided_slice %120 {offsets = [0, 0], sizes = [32, 16], strides = [1, 1]} : vector<64x16xf32> to vector<32x16xf32>
    %122 = vector.extract_strided_slice %120 {offsets = [32, 0], sizes = [32, 16], strides = [1, 1]} : vector<64x16xf32> to vector<32x16xf32>
    %123 = arith.mulf %122, %115 : vector<32x16xf32>
    %124 = arith.mulf %103, %113 : vector<32x16xf32>
    %125 = arith.mulf %121, %124 : vector<32x16xf32>
    %cst_55 = arith.constant dense<0.000000e+00> : vector<16xf32>
    %126 = vector.multi_reduction <add>, %125, %cst_55 [0] : vector<32x16xf32> to vector<16xf32>
    %127 = vector.shape_cast %126 : vector<16xf32> to vector<1x16xf32>
    %c0_56 = arith.constant 0 : index
    %c4 = arith.constant 4 : index
    %c0_57 = arith.constant 0 : index
    %c0_58 = arith.constant 0 : index
    %128 = vector.load %arg2[%c0_56, %c4, %c0_57, %c0_58] : memref<1x8x3x16xf32, #tpu.memory_space<vmem>>, vector<1x1x3x16xf32>
    %129 = vector.shape_cast %128 : vector<1x1x3x16xf32> to vector<3x16xf32>
    %130 = arith.truncf %129 : vector<3x16xf32> to vector<3x16xbf16>
    %c0_59 = arith.constant 0 : index
    %c4_60 = arith.constant 4 : index
    %c0_61 = arith.constant 0 : index
    %c0_62 = arith.constant 0 : index
    %131 = vector.load %arg4[%c0_59, %c4_60, %c0_61, %c0_62] : memref<1x8x32x16xbf16, #tpu.memory_space<vmem>>, vector<1x1x32x16xbf16>
    %132 = vector.shape_cast %131 : vector<1x1x32x16xbf16> to vector<32x16xbf16>
    %133 = arith.extf %132 : vector<32x16xbf16> to vector<32x16xf32>
    %cst_63 = arith.constant dense<0.000000e+00> : vector<128x16xf32>
    %134 = tpu.matmul %4, %130, %cst_63 {dimension_numbers = #tpu.dot_dimension_numbers<[1], [0], [0], [1], [0, 0, 1, 1], [], []>} : vector<128x3xbf16>, vector<3x16xbf16>, vector<128x16xf32> -> vector<128x16xf32>
    %135 = vector.broadcast %5 : vector<128x1xf32> to vector<128x16xf32>
    %136 = arith.addf %134, %135 : vector<128x16xf32>
    %cst_64 = arith.constant 0.000000e+00 : f32
    %137 = vector.broadcast %cst_64 : f32 to vector<128x16xf32>
    %138 = arith.cmpf oge, %136, %137 : vector<128x16xf32>
    %cst_65 = arith.constant 1.000000e-01 : f32
    %139 = vector.broadcast %cst_65 : f32 to vector<128x16xf32>
    %140 = arith.mulf %139, %136 : vector<128x16xf32>
    %141 = arith.select %138, %136, %140 : vector<128x16xi1>, vector<128x16xf32>
    %142 = vector.extract_strided_slice %141 {offsets = [0, 0], sizes = [32, 16], strides = [1, 1]} : vector<128x16xf32> to vector<32x16xf32>
    %143 = vector.extract_strided_slice %141 {offsets = [32, 0], sizes = [32, 16], strides = [1, 1]} : vector<128x16xf32> to vector<32x16xf32>
    %144 = vector.extract_strided_slice %141 {offsets = [64, 0], sizes = [32, 16], strides = [1, 1]} : vector<128x16xf32> to vector<32x16xf32>
    %145 = vector.extract_strided_slice %141 {offsets = [96, 0], sizes = [32, 16], strides = [1, 1]} : vector<128x16xf32> to vector<32x16xf32>
    %146 = arith.mulf %2, %142 : vector<32x16xf32>
    %147 = arith.mulf %133, %144 : vector<32x16xf32>
    %148 = tpu.concatenate %146, %147 in 0 : vector<32x16xf32>, vector<32x16xf32> -> vector<64x16xf32>
    %149 = arith.truncf %148 : vector<64x16xf32> to vector<64x16xbf16>
    %cst_66 = arith.constant dense<0.000000e+00> : vector<64x16xf32>
    %150 = tpu.matmul %7, %149, %cst_66 {dimension_numbers = #tpu.dot_dimension_numbers<[1], [0], [0], [1], [0, 0, 1, 1], [], []>} : vector<64x64xbf16>, vector<64x16xbf16>, vector<64x16xf32> -> vector<64x16xf32>
    %151 = vector.extract_strided_slice %150 {offsets = [0, 0], sizes = [32, 16], strides = [1, 1]} : vector<64x16xf32> to vector<32x16xf32>
    %152 = vector.extract_strided_slice %150 {offsets = [32, 0], sizes = [32, 16], strides = [1, 1]} : vector<64x16xf32> to vector<32x16xf32>
    %153 = arith.mulf %152, %145 : vector<32x16xf32>
    %154 = arith.mulf %133, %143 : vector<32x16xf32>
    %155 = arith.mulf %151, %154 : vector<32x16xf32>
    %cst_67 = arith.constant dense<0.000000e+00> : vector<16xf32>
    %156 = vector.multi_reduction <add>, %155, %cst_67 [0] : vector<32x16xf32> to vector<16xf32>
    %157 = vector.shape_cast %156 : vector<16xf32> to vector<1x16xf32>
    %c0_68 = arith.constant 0 : index
    %c5 = arith.constant 5 : index
    %c0_69 = arith.constant 0 : index
    %c0_70 = arith.constant 0 : index
    %158 = vector.load %arg2[%c0_68, %c5, %c0_69, %c0_70] : memref<1x8x3x16xf32, #tpu.memory_space<vmem>>, vector<1x1x3x16xf32>
    %159 = vector.shape_cast %158 : vector<1x1x3x16xf32> to vector<3x16xf32>
    %160 = arith.truncf %159 : vector<3x16xf32> to vector<3x16xbf16>
    %c0_71 = arith.constant 0 : index
    %c5_72 = arith.constant 5 : index
    %c0_73 = arith.constant 0 : index
    %c0_74 = arith.constant 0 : index
    %161 = vector.load %arg4[%c0_71, %c5_72, %c0_73, %c0_74] : memref<1x8x32x16xbf16, #tpu.memory_space<vmem>>, vector<1x1x32x16xbf16>
    %162 = vector.shape_cast %161 : vector<1x1x32x16xbf16> to vector<32x16xbf16>
    %163 = arith.extf %162 : vector<32x16xbf16> to vector<32x16xf32>
    %cst_75 = arith.constant dense<0.000000e+00> : vector<128x16xf32>
    %164 = tpu.matmul %4, %160, %cst_75 {dimension_numbers = #tpu.dot_dimension_numbers<[1], [0], [0], [1], [0, 0, 1, 1], [], []>} : vector<128x3xbf16>, vector<3x16xbf16>, vector<128x16xf32> -> vector<128x16xf32>
    %165 = vector.broadcast %5 : vector<128x1xf32> to vector<128x16xf32>
    %166 = arith.addf %164, %165 : vector<128x16xf32>
    %cst_76 = arith.constant 0.000000e+00 : f32
    %167 = vector.broadcast %cst_76 : f32 to vector<128x16xf32>
    %168 = arith.cmpf oge, %166, %167 : vector<128x16xf32>
    %cst_77 = arith.constant 1.000000e-01 : f32
    %169 = vector.broadcast %cst_77 : f32 to vector<128x16xf32>
    %170 = arith.mulf %169, %166 : vector<128x16xf32>
    %171 = arith.select %168, %166, %170 : vector<128x16xi1>, vector<128x16xf32>
    %172 = vector.extract_strided_slice %171 {offsets = [0, 0], sizes = [32, 16], strides = [1, 1]} : vector<128x16xf32> to vector<32x16xf32>
    %173 = vector.extract_strided_slice %171 {offsets = [32, 0], sizes = [32, 16], strides = [1, 1]} : vector<128x16xf32> to vector<32x16xf32>
    %174 = vector.extract_strided_slice %171 {offsets = [64, 0], sizes = [32, 16], strides = [1, 1]} : vector<128x16xf32> to vector<32x16xf32>
    %175 = vector.extract_strided_slice %171 {offsets = [96, 0], sizes = [32, 16], strides = [1, 1]} : vector<128x16xf32> to vector<32x16xf32>
    %176 = arith.mulf %2, %172 : vector<32x16xf32>
    %177 = arith.mulf %163, %174 : vector<32x16xf32>
    %178 = tpu.concatenate %176, %177 in 0 : vector<32x16xf32>, vector<32x16xf32> -> vector<64x16xf32>
    %179 = arith.truncf %178 : vector<64x16xf32> to vector<64x16xbf16>
    %cst_78 = arith.constant dense<0.000000e+00> : vector<64x16xf32>
    %180 = tpu.matmul %7, %179, %cst_78 {dimension_numbers = #tpu.dot_dimension_numbers<[1], [0], [0], [1], [0, 0, 1, 1], [], []>} : vector<64x64xbf16>, vector<64x16xbf16>, vector<64x16xf32> -> vector<64x16xf32>
    %181 = vector.extract_strided_slice %180 {offsets = [0, 0], sizes = [32, 16], strides = [1, 1]} : vector<64x16xf32> to vector<32x16xf32>
    %182 = vector.extract_strided_slice %180 {offsets = [32, 0], sizes = [32, 16], strides = [1, 1]} : vector<64x16xf32> to vector<32x16xf32>
    %183 = arith.mulf %182, %175 : vector<32x16xf32>
    %184 = arith.mulf %163, %173 : vector<32x16xf32>
    %185 = arith.mulf %181, %184 : vector<32x16xf32>
    %cst_79 = arith.constant dense<0.000000e+00> : vector<16xf32>
    %186 = vector.multi_reduction <add>, %185, %cst_79 [0] : vector<32x16xf32> to vector<16xf32>
    %187 = vector.shape_cast %186 : vector<16xf32> to vector<1x16xf32>
    %c0_80 = arith.constant 0 : index
    %c6 = arith.constant 6 : index
    %c0_81 = arith.constant 0 : index
    %c0_82 = arith.constant 0 : index
    %188 = vector.load %arg2[%c0_80, %c6, %c0_81, %c0_82] : memref<1x8x3x16xf32, #tpu.memory_space<vmem>>, vector<1x1x3x16xf32>
    %189 = vector.shape_cast %188 : vector<1x1x3x16xf32> to vector<3x16xf32>
    %190 = arith.truncf %189 : vector<3x16xf32> to vector<3x16xbf16>
    %c0_83 = arith.constant 0 : index
    %c6_84 = arith.constant 6 : index
    %c0_85 = arith.constant 0 : index
    %c0_86 = arith.constant 0 : index
    %191 = vector.load %arg4[%c0_83, %c6_84, %c0_85, %c0_86] : memref<1x8x32x16xbf16, #tpu.memory_space<vmem>>, vector<1x1x32x16xbf16>
    %192 = vector.shape_cast %191 : vector<1x1x32x16xbf16> to vector<32x16xbf16>
    %193 = arith.extf %192 : vector<32x16xbf16> to vector<32x16xf32>
    %cst_87 = arith.constant dense<0.000000e+00> : vector<128x16xf32>
    %194 = tpu.matmul %4, %190, %cst_87 {dimension_numbers = #tpu.dot_dimension_numbers<[1], [0], [0], [1], [0, 0, 1, 1], [], []>} : vector<128x3xbf16>, vector<3x16xbf16>, vector<128x16xf32> -> vector<128x16xf32>
    %195 = vector.broadcast %5 : vector<128x1xf32> to vector<128x16xf32>
    %196 = arith.addf %194, %195 : vector<128x16xf32>
    %cst_88 = arith.constant 0.000000e+00 : f32
    %197 = vector.broadcast %cst_88 : f32 to vector<128x16xf32>
    %198 = arith.cmpf oge, %196, %197 : vector<128x16xf32>
    %cst_89 = arith.constant 1.000000e-01 : f32
    %199 = vector.broadcast %cst_89 : f32 to vector<128x16xf32>
    %200 = arith.mulf %199, %196 : vector<128x16xf32>
    %201 = arith.select %198, %196, %200 : vector<128x16xi1>, vector<128x16xf32>
    %202 = vector.extract_strided_slice %201 {offsets = [0, 0], sizes = [32, 16], strides = [1, 1]} : vector<128x16xf32> to vector<32x16xf32>
    %203 = vector.extract_strided_slice %201 {offsets = [32, 0], sizes = [32, 16], strides = [1, 1]} : vector<128x16xf32> to vector<32x16xf32>
    %204 = vector.extract_strided_slice %201 {offsets = [64, 0], sizes = [32, 16], strides = [1, 1]} : vector<128x16xf32> to vector<32x16xf32>
    %205 = vector.extract_strided_slice %201 {offsets = [96, 0], sizes = [32, 16], strides = [1, 1]} : vector<128x16xf32> to vector<32x16xf32>
    %206 = arith.mulf %2, %202 : vector<32x16xf32>
    %207 = arith.mulf %193, %204 : vector<32x16xf32>
    %208 = tpu.concatenate %206, %207 in 0 : vector<32x16xf32>, vector<32x16xf32> -> vector<64x16xf32>
    %209 = arith.truncf %208 : vector<64x16xf32> to vector<64x16xbf16>
    %cst_90 = arith.constant dense<0.000000e+00> : vector<64x16xf32>
    %210 = tpu.matmul %7, %209, %cst_90 {dimension_numbers = #tpu.dot_dimension_numbers<[1], [0], [0], [1], [0, 0, 1, 1], [], []>} : vector<64x64xbf16>, vector<64x16xbf16>, vector<64x16xf32> -> vector<64x16xf32>
    %211 = vector.extract_strided_slice %210 {offsets = [0, 0], sizes = [32, 16], strides = [1, 1]} : vector<64x16xf32> to vector<32x16xf32>
    %212 = vector.extract_strided_slice %210 {offsets = [32, 0], sizes = [32, 16], strides = [1, 1]} : vector<64x16xf32> to vector<32x16xf32>
    %213 = arith.mulf %212, %205 : vector<32x16xf32>
    %214 = arith.mulf %193, %203 : vector<32x16xf32>
    %215 = arith.mulf %211, %214 : vector<32x16xf32>
    %cst_91 = arith.constant dense<0.000000e+00> : vector<16xf32>
    %216 = vector.multi_reduction <add>, %215, %cst_91 [0] : vector<32x16xf32> to vector<16xf32>
    %217 = vector.shape_cast %216 : vector<16xf32> to vector<1x16xf32>
    %c0_92 = arith.constant 0 : index
    %c7 = arith.constant 7 : index
    %c0_93 = arith.constant 0 : index
    %c0_94 = arith.constant 0 : index
    %218 = vector.load %arg2[%c0_92, %c7, %c0_93, %c0_94] : memref<1x8x3x16xf32, #tpu.memory_space<vmem>>, vector<1x1x3x16xf32>
    %219 = vector.shape_cast %218 : vector<1x1x3x16xf32> to vector<3x16xf32>
    %220 = arith.truncf %219 : vector<3x16xf32> to vector<3x16xbf16>
    %c0_95 = arith.constant 0 : index
    %c7_96 = arith.constant 7 : index
    %c0_97 = arith.constant 0 : index
    %c0_98 = arith.constant 0 : index
    %221 = vector.load %arg4[%c0_95, %c7_96, %c0_97, %c0_98] : memref<1x8x32x16xbf16, #tpu.memory_space<vmem>>, vector<1x1x32x16xbf16>
    %222 = vector.shape_cast %221 : vector<1x1x32x16xbf16> to vector<32x16xbf16>
    %223 = arith.extf %222 : vector<32x16xbf16> to vector<32x16xf32>
    %cst_99 = arith.constant dense<0.000000e+00> : vector<128x16xf32>
    %224 = tpu.matmul %4, %220, %cst_99 {dimension_numbers = #tpu.dot_dimension_numbers<[1], [0], [0], [1], [0, 0, 1, 1], [], []>} : vector<128x3xbf16>, vector<3x16xbf16>, vector<128x16xf32> -> vector<128x16xf32>
    %225 = vector.broadcast %5 : vector<128x1xf32> to vector<128x16xf32>
    %226 = arith.addf %224, %225 : vector<128x16xf32>
    %cst_100 = arith.constant 0.000000e+00 : f32
    %227 = vector.broadcast %cst_100 : f32 to vector<128x16xf32>
    %228 = arith.cmpf oge, %226, %227 : vector<128x16xf32>
    %cst_101 = arith.constant 1.000000e-01 : f32
    %229 = vector.broadcast %cst_101 : f32 to vector<128x16xf32>
    %230 = arith.mulf %229, %226 : vector<128x16xf32>
    %231 = arith.select %228, %226, %230 : vector<128x16xi1>, vector<128x16xf32>
    %232 = vector.extract_strided_slice %231 {offsets = [0, 0], sizes = [32, 16], strides = [1, 1]} : vector<128x16xf32> to vector<32x16xf32>
    %233 = vector.extract_strided_slice %231 {offsets = [32, 0], sizes = [32, 16], strides = [1, 1]} : vector<128x16xf32> to vector<32x16xf32>
    %234 = vector.extract_strided_slice %231 {offsets = [64, 0], sizes = [32, 16], strides = [1, 1]} : vector<128x16xf32> to vector<32x16xf32>
    %235 = vector.extract_strided_slice %231 {offsets = [96, 0], sizes = [32, 16], strides = [1, 1]} : vector<128x16xf32> to vector<32x16xf32>
    %236 = arith.mulf %2, %232 : vector<32x16xf32>
    %237 = arith.mulf %223, %234 : vector<32x16xf32>
    %238 = tpu.concatenate %236, %237 in 0 : vector<32x16xf32>, vector<32x16xf32> -> vector<64x16xf32>
    %239 = arith.truncf %238 : vector<64x16xf32> to vector<64x16xbf16>
    %cst_102 = arith.constant dense<0.000000e+00> : vector<64x16xf32>
    %240 = tpu.matmul %7, %239, %cst_102 {dimension_numbers = #tpu.dot_dimension_numbers<[1], [0], [0], [1], [0, 0, 1, 1], [], []>} : vector<64x64xbf16>, vector<64x16xbf16>, vector<64x16xf32> -> vector<64x16xf32>
    %241 = vector.extract_strided_slice %240 {offsets = [0, 0], sizes = [32, 16], strides = [1, 1]} : vector<64x16xf32> to vector<32x16xf32>
    %242 = vector.extract_strided_slice %240 {offsets = [32, 0], sizes = [32, 16], strides = [1, 1]} : vector<64x16xf32> to vector<32x16xf32>
    %243 = arith.mulf %242, %235 : vector<32x16xf32>
    %244 = arith.mulf %223, %233 : vector<32x16xf32>
    %245 = arith.mulf %241, %244 : vector<32x16xf32>
    %cst_103 = arith.constant dense<0.000000e+00> : vector<16xf32>
    %246 = vector.multi_reduction <add>, %245, %cst_103 [0] : vector<32x16xf32> to vector<16xf32>
    %247 = vector.shape_cast %246 : vector<16xf32> to vector<1x16xf32>
    %248 = tpu.concatenate %37, %67, %97, %127, %157, %187, %217, %247 in 0 : vector<1x16xf32>, vector<1x16xf32>, vector<1x16xf32>, vector<1x16xf32>, vector<1x16xf32>, vector<1x16xf32>, vector<1x16xf32>, vector<1x16xf32> -> vector<8x16xf32>
    %cst_104 = arith.constant 0.176776692 : f32
    %249 = vector.broadcast %cst_104 : f32 to vector<8x16xf32>
    %250 = arith.mulf %248, %249 : vector<8x16xf32>
    %cst_105 = arith.constant dense<0xFF800000> : vector<16xf32>
    %251 = vector.multi_reduction <maximumf>, %250, %cst_105 [0] : vector<8x16xf32> to vector<16xf32>
    %252 = vector.shape_cast %251 : vector<16xf32> to vector<1x16xf32>
    %253 = vector.broadcast %252 : vector<1x16xf32> to vector<8x16xf32>
    %254 = arith.subf %250, %253 : vector<8x16xf32>
    %255 = math.exp %254 : vector<8x16xf32>
    %cst_106 = arith.constant dense<0.000000e+00> : vector<16xf32>
    %256 = vector.multi_reduction <add>, %255, %cst_106 [0] : vector<8x16xf32> to vector<16xf32>
    %257 = vector.shape_cast %256 : vector<16xf32> to vector<1x16xf32>
    %258 = tpu.reciprocal %257 {approx = true} : vector<1x16xf32> -> vector<1x16xf32>
    %259 = vector.extract_strided_slice %255 {offsets = [0, 0], sizes = [1, 16], strides = [1, 1]} : vector<8x16xf32> to vector<1x16xf32>
    %260 = vector.broadcast %259 : vector<1x16xf32> to vector<32x16xf32>
    %261 = arith.mulf %33, %260 : vector<32x16xf32>
    %262 = vector.extract_strided_slice %255 {offsets = [1, 0], sizes = [1, 16], strides = [1, 1]} : vector<8x16xf32> to vector<1x16xf32>
    %263 = vector.broadcast %262 : vector<1x16xf32> to vector<32x16xf32>
    %264 = arith.mulf %63, %263 : vector<32x16xf32>
    %265 = arith.addf %261, %264 : vector<32x16xf32>
    %266 = vector.extract_strided_slice %255 {offsets = [2, 0], sizes = [1, 16], strides = [1, 1]} : vector<8x16xf32> to vector<1x16xf32>
    %267 = vector.broadcast %266 : vector<1x16xf32> to vector<32x16xf32>
    %268 = arith.mulf %93, %267 : vector<32x16xf32>
    %269 = arith.addf %265, %268 : vector<32x16xf32>
    %270 = vector.extract_strided_slice %255 {offsets = [3, 0], sizes = [1, 16], strides = [1, 1]} : vector<8x16xf32> to vector<1x16xf32>
    %271 = vector.broadcast %270 : vector<1x16xf32> to vector<32x16xf32>
    %272 = arith.mulf %123, %271 : vector<32x16xf32>
    %273 = arith.addf %269, %272 : vector<32x16xf32>
    %274 = vector.extract_strided_slice %255 {offsets = [4, 0], sizes = [1, 16], strides = [1, 1]} : vector<8x16xf32> to vector<1x16xf32>
    %275 = vector.broadcast %274 : vector<1x16xf32> to vector<32x16xf32>
    %276 = arith.mulf %153, %275 : vector<32x16xf32>
    %277 = arith.addf %273, %276 : vector<32x16xf32>
    %278 = vector.extract_strided_slice %255 {offsets = [5, 0], sizes = [1, 16], strides = [1, 1]} : vector<8x16xf32> to vector<1x16xf32>
    %279 = vector.broadcast %278 : vector<1x16xf32> to vector<32x16xf32>
    %280 = arith.mulf %183, %279 : vector<32x16xf32>
    %281 = arith.addf %277, %280 : vector<32x16xf32>
    %282 = vector.extract_strided_slice %255 {offsets = [6, 0], sizes = [1, 16], strides = [1, 1]} : vector<8x16xf32> to vector<1x16xf32>
    %283 = vector.broadcast %282 : vector<1x16xf32> to vector<32x16xf32>
    %284 = arith.mulf %213, %283 : vector<32x16xf32>
    %285 = arith.addf %281, %284 : vector<32x16xf32>
    %286 = vector.extract_strided_slice %255 {offsets = [7, 0], sizes = [1, 16], strides = [1, 1]} : vector<8x16xf32> to vector<1x16xf32>
    %287 = vector.broadcast %286 : vector<1x16xf32> to vector<32x16xf32>
    %288 = arith.mulf %243, %287 : vector<32x16xf32>
    %289 = arith.addf %285, %288 : vector<32x16xf32>
    %290 = vector.broadcast %258 : vector<1x16xf32> to vector<32x16xf32>
    %291 = arith.mulf %289, %290 : vector<32x16xf32>
    %292 = arith.addf %291, %2 : vector<32x16xf32>
    %293 = arith.truncf %292 : vector<32x16xf32> to vector<32x16xbf16>
    %c0_107 = arith.constant 0 : index
    %c0_108 = arith.constant 0 : index
    %c0_109 = arith.constant 0 : index
    %294 = vector.load %arg8[%c0_107, %c0_108, %c0_109] : memref<1x32x16xbf16, #tpu.memory_space<vmem>>, vector<1x32x16xbf16>
    %295 = vector.shape_cast %294 : vector<1x32x16xbf16> to vector<32x16xbf16>
    %296 = vector.shape_cast %293 : vector<32x16xbf16> to vector<1x32x16xbf16>
    tpu.vector_store %arg8[%c0_107, %c0_108, %c0_109], %296 {strides = array<i32>} : memref<1x32x16xbf16, #tpu.memory_space<vmem>>, vector<1x32x16xbf16>,
    return
  }
  func.func @transform_0(%arg0: i32, %arg1: i32) -> (i32, i32, i32, i32) {
    %c0_i32 = arith.constant 0 : i32
    %c0_i32_0 = arith.constant 0 : i32
    %c0_i32_1 = arith.constant 0 : i32
    return %arg0, %c0_i32, %c0_i32_0, %arg1 : i32, i32, i32, i32
  }
  func.func @transform_1(%arg0: i32, %arg1: i32) -> (i32, i32, i32) {
    %c0_i32 = arith.constant 0 : i32
    %c0_i32_0 = arith.constant 0 : i32
    return %arg0, %c0_i32, %arg1 : i32, i32, i32
  }
  func.func @transform_2(%arg0: i32, %arg1: i32) -> (i32, i32, i32, i32) {
    %c0_i32 = arith.constant 0 : i32
    %c0_i32_0 = arith.constant 0 : i32
    %c0_i32_1 = arith.constant 0 : i32
    return %arg0, %c0_i32, %c0_i32_0, %arg1 : i32, i32, i32, i32
  }
  func.func @transform_3(%arg0: i32, %arg1: i32) -> (i32, i32) {
    %c0_i32 = arith.constant 0 : i32
    %c0_i32_0 = arith.constant 0 : i32
    %c0_i32_1 = arith.constant 0 : i32
    return %c0_i32, %c0_i32_0 : i32, i32
  }
  func.func @transform_4(%arg0: i32, %arg1: i32) -> (i32, i32) {
    %c0_i32 = arith.constant 0 : i32
    %c0_i32_0 = arith.constant 0 : i32
    %c0_i32_1 = arith.constant 0 : i32
    return %c0_i32, %c0_i32_0 : i32, i32
  }
  func.func @transform_5(%arg0: i32, %arg1: i32) -> (i32, i32) {
    %c0_i32 = arith.constant 0 : i32
    %c0_i32_0 = arith.constant 0 : i32
    %c0_i32_1 = arith.constant 0 : i32
    return %c0_i32, %c0_i32_0 : i32, i32
  }
  func.func @transform_6(%arg0: i32, %arg1: i32) -> (i32, i32, i32) {
    %c0_i32 = arith.constant 0 : i32
    %c0_i32_0 = arith.constant 0 : i32
    return %arg0, %c0_i32, %arg1 : i32, i32, i32
  }
}

module attributes {stable_mosaic.version = 11 : i64} {
  func.func @conv1d_gn_lrelu_kernel(%arg0: i32, %arg1: i32, %arg2: i32, %arg3: memref<1x32x16xbf16, #tpu.memory_space<vmem>>, %arg4: memref<32x32xf32, #tpu.memory_space<vmem>>, %arg5: memref<32x1xf32, #tpu.memory_space<vmem>>, %arg6: memref<32x1xf32, #tpu.memory_space<vmem>>, %arg7: memref<32x1xf32, #tpu.memory_space<vmem>>, %arg8: memref<1x32x16xf32, #tpu.memory_space<vmem>>, %arg9: memref<32x1xf32, #tpu.memory_space<vmem>>, %arg10: memref<32x1xf32, #tpu.memory_space<vmem>>) attributes {dimension_semantics = [#tpu.dimension_semantics<parallel>, #tpu.dimension_semantics<arbitrary>, #tpu.dimension_semantics<arbitrary>], iteration_bounds = array<i64: 2, 2, 1>, scalar_prefetch = 0 : i64, scratch_operands = 2 : i64, tpu.core_type = #tpu.core_type<tc>, window_params = [{transform_indices = @transform_0, window_bounds = array<i64: 1, 32, 16>}, {pipeline_mode = #tpu.pipeline_mode<synchronous>, transform_indices = @transform_1, window_bounds = array<i64: 32, 32>}, {pipeline_mode = #tpu.pipeline_mode<synchronous>, transform_indices = @transform_2, window_bounds = array<i64: 32, 1>}, {pipeline_mode = #tpu.pipeline_mode<synchronous>, transform_indices = @transform_3, window_bounds = array<i64: 32, 1>}, {pipeline_mode = #tpu.pipeline_mode<synchronous>, transform_indices = @transform_4, window_bounds = array<i64: 32, 1>}, {transform_indices = @transform_5, window_bounds = array<i64: 1, 32, 16>}]} {
    %c0 = arith.constant 0 : index
    %c0_0 = arith.constant 0 : index
    %c0_1 = arith.constant 0 : index
    %0 = vector.load %arg3[%c0, %c0_0, %c0_1] : memref<1x32x16xbf16, #tpu.memory_space<vmem>>, vector<1x32x16xbf16>
    %1 = vector.shape_cast %0 : vector<1x32x16xbf16> to vector<32x16xbf16>
    %c0_2 = arith.constant 0 : index
    %c0_3 = arith.constant 0 : index
    %2 = vector.load %arg4[%c0_2, %c0_3] : memref<32x32xf32, #tpu.memory_space<vmem>>, vector<32x32xf32>
    %3 = arith.truncf %2 : vector<32x32xf32> to vector<32x32xbf16>
    %cst = arith.constant dense<0.000000e+00> : vector<32x16xf32>
    %4 = tpu.matmul %3, %1, %cst {dimension_numbers = #tpu.dot_dimension_numbers<[1], [0], [0], [1], [0, 0, 1, 1], [], []>} : vector<32x32xbf16>, vector<32x16xbf16>, vector<32x16xf32> -> vector<32x16xf32>
    %c0_4 = arith.constant 0 : index
    %c0_5 = arith.constant 0 : index
    %5 = vector.load %arg5[%c0_4, %c0_5] : memref<32x1xf32, #tpu.memory_space<vmem>>, vector<32x1xf32>
    %6 = vector.broadcast %5 : vector<32x1xf32> to vector<32x16xf32>
    %7 = arith.addf %4, %6 : vector<32x16xf32>
    %c0_i32 = arith.constant 0 : i32
    %8 = arith.cmpi eq, %arg1, %c0_i32 : i32
    %c0_i32_6 = arith.constant 0 : i32
    %9 = arith.cmpi eq, %arg2, %c0_i32_6 : i32
    %10 = arith.andi %8, %9 : i1
    %11 = arith.extui %10 : i1 to i32
    %c0_i32_7 = arith.constant 0 : i32
    %12 = arith.cmpi ne, %11, %c0_i32_7 : i32
    scf.if %12 {
      %cst_11 = arith.constant 0.000000e+00 : f32
      %19 = vector.broadcast %cst_11 : f32 to vector<32x1xf32>
      %c0_12 = arith.constant 0 : index
      %c0_13 = arith.constant 0 : index
      %20 = vector.load %arg9[%c0_12, %c0_13] : memref<32x1xf32, #tpu.memory_space<vmem>>, vector<32x1xf32>
      tpu.vector_store %arg9[%c0_12, %c0_13], %19 {strides = array<i32>} : memref<32x1xf32, #tpu.memory_space<vmem>>, vector<32x1xf32>,
      %cst_14 = arith.constant 0.000000e+00 : f32
      %21 = vector.broadcast %cst_14 : f32 to vector<32x1xf32>
      %c0_15 = arith.constant 0 : index
      %c0_16 = arith.constant 0 : index
      %22 = vector.load %arg10[%c0_15, %c0_16] : memref<32x1xf32, #tpu.memory_space<vmem>>, vector<32x1xf32>
      tpu.vector_store %arg10[%c0_15, %c0_16], %21 {strides = array<i32>} : memref<32x1xf32, #tpu.memory_space<vmem>>, vector<32x1xf32>,
    } else {
    }
    %c0_i32_8 = arith.constant 0 : i32
    %13 = arith.cmpi eq, %arg1, %c0_i32_8 : i32
    %14 = arith.extui %13 : i1 to i32
    %c0_i32_9 = arith.constant 0 : i32
    %15 = arith.cmpi ne, %14, %c0_i32_9 : i32
    scf.if %15 {
      %19 = tpu.iota {dimensions = array<i32: 1>} : vector<1x16xi32>
      %c16_i32 = arith.constant 16 : i32
      %20 = arith.muli %arg2, %c16_i32 : i32
      %21 = vector.broadcast %20 : i32 to vector<1x16xi32>
      %22 = arith.addi %19, %21 : vector<1x16xi32>
      %c16_i32_11 = arith.constant 16 : i32
      %23 = vector.broadcast %c16_i32_11 : i32 to vector<1x16xi32>
      %24 = arith.cmpi slt, %22, %23 : vector<1x16xi32>
      %25 = arith.extui %24 : vector<1x16xi1> to vector<1x16xi32>
      %26 = arith.sitofp %25 : vector<1x16xi32> to vector<1x16xf32>
      %27 = vector.broadcast %26 : vector<1x16xf32> to vector<32x16xf32>
      %28 = arith.mulf %7, %27 : vector<32x16xf32>
      %c0_12 = arith.constant 0 : index
      %c0_13 = arith.constant 0 : index
      %29 = vector.load %arg9[%c0_12, %c0_13] : memref<32x1xf32, #tpu.memory_space<vmem>>, vector<32x1xf32>
      %cst_14 = arith.constant dense<0.000000e+00> : vector<32xf32>
      %30 = vector.multi_reduction <add>, %28, %cst_14 [1] : vector<32x16xf32> to vector<32xf32>
      %31 = vector.shape_cast %30 : vector<32xf32> to vector<32x1xf32>
      %32 = arith.addf %29, %31 : vector<32x1xf32>
      %c0_15 = arith.constant 0 : index
      %c0_16 = arith.constant 0 : index
      %33 = vector.load %arg9[%c0_15, %c0_16] : memref<32x1xf32, #tpu.memory_space<vmem>>, vector<32x1xf32>
      tpu.vector_store %arg9[%c0_15, %c0_16], %32 {strides = array<i32>} : memref<32x1xf32, #tpu.memory_space<vmem>>, vector<32x1xf32>,
      %c0_17 = arith.constant 0 : index
      %c0_18 = arith.constant 0 : index
      %34 = vector.load %arg10[%c0_17, %c0_18] : memref<32x1xf32, #tpu.memory_space<vmem>>, vector<32x1xf32>
      %35 = arith.mulf %28, %28 : vector<32x16xf32>
      %cst_19 = arith.constant dense<0.000000e+00> : vector<32xf32>
      %36 = vector.multi_reduction <add>, %35, %cst_19 [1] : vector<32x16xf32> to vector<32xf32>
      %37 = vector.shape_cast %36 : vector<32xf32> to vector<32x1xf32>
      %38 = arith.addf %34, %37 : vector<32x1xf32>
      %c0_20 = arith.constant 0 : index
      %c0_21 = arith.constant 0 : index
      %39 = vector.load %arg10[%c0_20, %c0_21] : memref<32x1xf32, #tpu.memory_space<vmem>>, vector<32x1xf32>
      tpu.vector_store %arg10[%c0_20, %c0_21], %38 {strides = array<i32>} : memref<32x1xf32, #tpu.memory_space<vmem>>, vector<32x1xf32>,
    } else {
    }
    %c1_i32 = arith.constant 1 : i32
    %16 = arith.cmpi eq, %arg1, %c1_i32 : i32
    %17 = arith.extui %16 : i1 to i32
    %c0_i32_10 = arith.constant 0 : i32
    %18 = arith.cmpi ne, %17, %c0_i32_10 : i32
    scf.if %18 {
      %c0_11 = arith.constant 0 : index
      %c0_12 = arith.constant 0 : index
      %19 = vector.load %arg9[%c0_11, %c0_12] : memref<32x1xf32, #tpu.memory_space<vmem>>, vector<32x1xf32>
      %c0_13 = arith.constant 0 : index
      %c0_14 = arith.constant 0 : index
      %20 = vector.load %arg10[%c0_13, %c0_14] : memref<32x1xf32, #tpu.memory_space<vmem>>, vector<32x1xf32>
      %21 = vector.extract_strided_slice %19 {offsets = [0, 0], sizes = [16, 1], strides = [1, 1]} : vector<32x1xf32> to vector<16x1xf32>
      %22 = vector.shape_cast %21 : vector<16x1xf32> to vector<1x16x1xf32>
      %cst_15 = arith.constant dense<0.000000e+00> : vector<1xf32>
      %23 = vector.multi_reduction <add>, %22, %cst_15 [1, 2] : vector<1x16x1xf32> to vector<1xf32>
      %24 = vector.shape_cast %23 : vector<1xf32> to vector<1x1x1xf32>
      %25 = vector.extract %24[0, 0, 0] : f32 from vector<1x1x1xf32>
      %26 = vector.broadcast %25 : f32 to vector<1x1xf32>
      %27 = vector.extract_strided_slice %20 {offsets = [0, 0], sizes = [16, 1], strides = [1, 1]} : vector<32x1xf32> to vector<16x1xf32>
      %28 = vector.shape_cast %27 : vector<16x1xf32> to vector<1x16x1xf32>
      %cst_16 = arith.constant dense<0.000000e+00> : vector<1xf32>
      %29 = vector.multi_reduction <add>, %28, %cst_16 [1, 2] : vector<1x16x1xf32> to vector<1xf32>
      %30 = vector.shape_cast %29 : vector<1xf32> to vector<1x1x1xf32>
      %31 = vector.extract %30[0, 0, 0] : f32 from vector<1x1x1xf32>
      %32 = vector.broadcast %31 : f32 to vector<1x1xf32>
      %cst_17 = arith.constant 3.906250e-03 : f32
      %33 = vector.broadcast %cst_17 : f32 to vector<1x1xf32>
      %34 = arith.mulf %26, %33 : vector<1x1xf32>
      %cst_18 = arith.constant 3.906250e-03 : f32
      %35 = vector.broadcast %cst_18 : f32 to vector<1x1xf32>
      %36 = arith.mulf %32, %35 : vector<1x1xf32>
      %37 = arith.mulf %34, %34 : vector<1x1xf32>
      %38 = arith.subf %36, %37 : vector<1x1xf32>
      %cst_19 = arith.constant 9.99999974E-6 : f32
      %39 = vector.broadcast %cst_19 : f32 to vector<1x1xf32>
      %40 = arith.addf %38, %39 : vector<1x1xf32>
      %41 = math.rsqrt %40 : vector<1x1xf32>
      %42 = vector.shape_cast %41 : vector<1x1xf32> to vector<1x1xf32>
      %43 = vector.broadcast %42 : vector<1x1xf32> to vector<16x1xf32>
      %cst_20 = arith.constant 0.000000e+00 : f32
      %44 = vector.broadcast %cst_20 : f32 to vector<1x1xf32>
      %45 = arith.subf %44, %34 : vector<1x1xf32>
      %46 = arith.mulf %45, %41 : vector<1x1xf32>
      %47 = vector.shape_cast %46 : vector<1x1xf32> to vector<1x1xf32>
      %48 = vector.broadcast %47 : vector<1x1xf32> to vector<16x1xf32>
      %49 = vector.extract_strided_slice %19 {offsets = [16, 0], sizes = [16, 1], strides = [1, 1]} : vector<32x1xf32> to vector<16x1xf32>
      %50 = vector.shape_cast %49 : vector<16x1xf32> to vector<1x16x1xf32>
      %cst_21 = arith.constant dense<0.000000e+00> : vector<1xf32>
      %51 = vector.multi_reduction <add>, %50, %cst_21 [1, 2] : vector<1x16x1xf32> to vector<1xf32>
      %52 = vector.shape_cast %51 : vector<1xf32> to vector<1x1x1xf32>
      %53 = vector.extract %52[0, 0, 0] : f32 from vector<1x1x1xf32>
      %54 = vector.broadcast %53 : f32 to vector<1x1xf32>
      %55 = vector.extract_strided_slice %20 {offsets = [16, 0], sizes = [16, 1], strides = [1, 1]} : vector<32x1xf32> to vector<16x1xf32>
      %56 = vector.shape_cast %55 : vector<16x1xf32> to vector<1x16x1xf32>
      %cst_22 = arith.constant dense<0.000000e+00> : vector<1xf32>
      %57 = vector.multi_reduction <add>, %56, %cst_22 [1, 2] : vector<1x16x1xf32> to vector<1xf32>
      %58 = vector.shape_cast %57 : vector<1xf32> to vector<1x1x1xf32>
      %59 = vector.extract %58[0, 0, 0] : f32 from vector<1x1x1xf32>
      %60 = vector.broadcast %59 : f32 to vector<1x1xf32>
      %cst_23 = arith.constant 3.906250e-03 : f32
      %61 = vector.broadcast %cst_23 : f32 to vector<1x1xf32>
      %62 = arith.mulf %54, %61 : vector<1x1xf32>
      %cst_24 = arith.constant 3.906250e-03 : f32
      %63 = vector.broadcast %cst_24 : f32 to vector<1x1xf32>
      %64 = arith.mulf %60, %63 : vector<1x1xf32>
      %65 = arith.mulf %62, %62 : vector<1x1xf32>
      %66 = arith.subf %64, %65 : vector<1x1xf32>
      %cst_25 = arith.constant 9.99999974E-6 : f32
      %67 = vector.broadcast %cst_25 : f32 to vector<1x1xf32>
      %68 = arith.addf %66, %67 : vector<1x1xf32>
      %69 = math.rsqrt %68 : vector<1x1xf32>
      %70 = vector.shape_cast %69 : vector<1x1xf32> to vector<1x1xf32>
      %71 = vector.broadcast %70 : vector<1x1xf32> to vector<16x1xf32>
      %cst_26 = arith.constant 0.000000e+00 : f32
      %72 = vector.broadcast %cst_26 : f32 to vector<1x1xf32>
      %73 = arith.subf %72, %62 : vector<1x1xf32>
      %74 = arith.mulf %73, %69 : vector<1x1xf32>
      %75 = vector.shape_cast %74 : vector<1x1xf32> to vector<1x1xf32>
      %76 = vector.broadcast %75 : vector<1x1xf32> to vector<16x1xf32>
      %77 = tpu.concatenate %43, %71 in 0 : vector<16x1xf32>, vector<16x1xf32> -> vector<32x1xf32>
      %c0_27 = arith.constant 0 : index
      %c0_28 = arith.constant 0 : index
      %78 = vector.load %arg6[%c0_27, %c0_28] : memref<32x1xf32, #tpu.memory_space<vmem>>, vector<32x1xf32>
      %79 = arith.mulf %77, %78 : vector<32x1xf32>
      %80 = tpu.concatenate %48, %76 in 0 : vector<16x1xf32>, vector<16x1xf32> -> vector<32x1xf32>
      %c0_29 = arith.constant 0 : index
      %c0_30 = arith.constant 0 : index
      %81 = vector.load %arg6[%c0_29, %c0_30] : memref<32x1xf32, #tpu.memory_space<vmem>>, vector<32x1xf32>
      %82 = arith.mulf %80, %81 : vector<32x1xf32>
      %c0_31 = arith.constant 0 : index
      %c0_32 = arith.constant 0 : index
      %83 = vector.load %arg7[%c0_31, %c0_32] : memref<32x1xf32, #tpu.memory_space<vmem>>, vector<32x1xf32>
      %84 = arith.addf %82, %83 : vector<32x1xf32>
      %85 = vector.broadcast %79 : vector<32x1xf32> to vector<32x16xf32>
      %86 = arith.mulf %7, %85 : vector<32x16xf32>
      %87 = vector.broadcast %84 : vector<32x1xf32> to vector<32x16xf32>
      %88 = arith.addf %86, %87 : vector<32x16xf32>
      %cst_33 = arith.constant 0.000000e+00 : f32
      %89 = vector.broadcast %cst_33 : f32 to vector<32x16xf32>
      %90 = arith.cmpf oge, %88, %89 : vector<32x16xf32>
      %cst_34 = arith.constant 1.000000e-01 : f32
      %91 = vector.broadcast %cst_34 : f32 to vector<32x16xf32>
      %92 = arith.mulf %91, %88 : vector<32x16xf32>
      %93 = arith.select %90, %88, %92 : vector<32x16xi1>, vector<32x16xf32>
      %c0_35 = arith.constant 0 : index
      %c0_36 = arith.constant 0 : index
      %c0_37 = arith.constant 0 : index
      %94 = vector.load %arg8[%c0_35, %c0_36, %c0_37] : memref<1x32x16xf32, #tpu.memory_space<vmem>>, vector<1x32x16xf32>
      %95 = vector.shape_cast %94 : vector<1x32x16xf32> to vector<32x16xf32>
      %96 = vector.shape_cast %93 : vector<32x16xf32> to vector<1x32x16xf32>
      tpu.vector_store %arg8[%c0_35, %c0_36, %c0_37], %96 {strides = array<i32>} : memref<1x32x16xf32, #tpu.memory_space<vmem>>, vector<1x32x16xf32>,
    } else {
    }
    return
  }
  func.func @transform_0(%arg0: i32, %arg1: i32, %arg2: i32) -> (i32, i32, i32) {
    %c0_i32 = arith.constant 0 : i32
    %c0_i32_0 = arith.constant 0 : i32
    return %arg0, %c0_i32, %arg2 : i32, i32, i32
  }
  func.func @transform_1(%arg0: i32, %arg1: i32, %arg2: i32) -> (i32, i32) {
    %c0_i32 = arith.constant 0 : i32
    %c0_i32_0 = arith.constant 0 : i32
    %c0_i32_1 = arith.constant 0 : i32
    return %c0_i32, %c0_i32_0 : i32, i32
  }
  func.func @transform_2(%arg0: i32, %arg1: i32, %arg2: i32) -> (i32, i32) {
    %c0_i32 = arith.constant 0 : i32
    %c0_i32_0 = arith.constant 0 : i32
    %c0_i32_1 = arith.constant 0 : i32
    return %c0_i32, %c0_i32_0 : i32, i32
  }
  func.func @transform_3(%arg0: i32, %arg1: i32, %arg2: i32) -> (i32, i32) {
    %c0_i32 = arith.constant 0 : i32
    %c0_i32_0 = arith.constant 0 : i32
    %c0_i32_1 = arith.constant 0 : i32
    return %c0_i32, %c0_i32_0 : i32, i32
  }
  func.func @transform_4(%arg0: i32, %arg1: i32, %arg2: i32) -> (i32, i32) {
    %c0_i32 = arith.constant 0 : i32
    %c0_i32_0 = arith.constant 0 : i32
    %c0_i32_1 = arith.constant 0 : i32
    return %c0_i32, %c0_i32_0 : i32, i32
  }
  func.func @transform_5(%arg0: i32, %arg1: i32, %arg2: i32) -> (i32, i32, i32) {
    %0 = arith.muli %arg2, %arg1 : i32
    %c0_i32 = arith.constant 0 : i32
    %c0_i32_0 = arith.constant 0 : i32
    return %arg0, %c0_i32, %0 : i32, i32, i32
  }
}

</mosaic_0001>

<bundles_post_ra>
// kernel: upsample_atten_forward.5
= control target key start
LH: loop header
LB: loop body
LE: loop exit
PB: predicated region body
PF: predicated region fallthrough
CT: control target
= control target key end

     0   :  { %s906_s18 = smov 0   ;;  %s908_s19 = smov 0   ;;  %s1062_s0 = inlined_call_operand.vmem [shape: f32[2,64,32], index: 0, kind: input, shape index: {}]   ;;  %s1063_s1 = inlined_call_operand.vmem [shape: f32[32,64], index: 1, kind: input, shape index: {}]   ;;  %s1064_s2 = inlined_call_operand.vmem [shape: f32[32,1], index: 2, kind: input, shape index: {}]   ;;  %s1065_s3 = inlined_call_operand.vmem [shape: f32[32,1], index: 3, kind: input, shape index: {}]   ;;  %s1066_s4 = inlined_call_operand.vmem [shape: f32[32,1], index: 4, kind: input, shape index: {}]   ;;  %s1067_s5 = inlined_call_operand.vmem [shape: bf16[2,32,32], index: 5, kind: output, shape index: {}]  }
   0x1   :  { %s910_s20 = smov 0   ;;  %s912_s21 = smov 0  }
   0x2   :  { %s914_s22 = smov 0  }
   0x3 LB: > { %s30_s23 = sadd.s32 1, %s862_s20  ;;  %s34_s24 = sadd.s32 1, %s866_s21  ;;  %s870_s22 = sphi %s914_s22, %s15_s22   ;;  %s866_s21 = sphi %s912_s21, %s1071_s21   ;;  %s862_s20 = sphi %s910_s20, %s1070_s20   ;;  %s858_s19 = sphi %s908_s19, %s1069_s19   ;;  %s854_s18 = sphi %s906_s18, %s1068_s18  }
   0x4   : > { %p32_p0 = scmp.ge.s32.totalorder %s30_s23, 2  ;;  %p730_p1 = scmp.ge.s32.totalorder %s870_s22, 1 }
   0x5   : > { %p215_p2 = scmp.lt.s32.totalorder %s870_s22, 5 }
   0x6   : > { %s1073_s23 = smov (%p32_p0, %s30_s23), 0  ;;  %s1075_s24 = smov (!%p32_p0, %s34_s24), %s866_s21 }
   0x7   : > { %p216_p3 = pnand %p730_p1, %p215_p2  ;;  %p36_p4 = scmp.ge.s32.totalorder %s1075_s24, 2 }
   0x8   : > { %p250_p5 = scmp.lt.s32.totalorder (!%p216_p3), %s858_s19, 1  ;;  %v277_v0 = vld [vmem:[%s1063_s1] sm:$0xff] (!%p216_p3)  ;;  %v278_v1 = vld [vmem:[%s1063_s1 + $0x8] sm:$0xff] (!%p216_p3)  ;;  %vm311_vm0 = vcmask (!%p216_p3), 523264   ;;  %v872_v3 = vmov (!%p216_p3), 0   ;;  %v289_v4 = vld [vmem:[%s1064_s2 + $0x10] sm:$0xff] (!%p216_p3) }
   0x9   : > { %s1077_s24 = smov (%p36_p4, %s1075_s24), 0  ;;  %219 = sbr.rel (%p216_p3) target bundleno = 815 (0x32f), region = 40 }
   0xa   : > { %v281_v2 = vpack.c.bf16 (!%p216_p3), %v278_v1, %v277_v0  ;;  %825 = vset.pattern.permute.xlu1 (!%p216_p3), %v872_v3  ;;  %824 = vset.pattern.permute.xlu0 (!%p216_p3), %v872_v3  ;;  %v287_v5 = vld [vmem:[%s1064_s2] sm:$0xff] (!%p216_p3)  ;;  %v290_v6 = vld [vmem:[%s1064_s2 + $0x18] sm:$0xff] (!%p216_p3)  ;;  %v288_v7 = vld [vmem:[%s1064_s2 + $0x8] sm:$0xff] (!%p216_p3)  ;;  %p367_p6 = scmp.eq.s32.totalorder (!%p216_p3), %s854_s18, 0 }
   0xb   : > { %303 = vperm.xlu1 (!%p216_p3), %825, %v289_v4   ;;  %293 = vperm.xlu0 (!%p216_p3), %824, %v287_v5   ;;  %v279_v20 = vld [vmem:[%s1063_s1 + $0x10] sm:$0xff] (!%p216_p3)  ;;  %v280_v21 = vld [vmem:[%s1063_s1 + $0x18] sm:$0xff] (!%p216_p3) }
   0xc   : > { %768 = vmatprep.mubr.msk.bf16.mxu0 (!%p216_p3), %vm311_vm0, %v281_v2  ;;  %v282_v22 = vpack.c.bf16 (!%p216_p3), %v280_v21, %v279_v20 }
   0xf   : > { %308 = vperm.xlu1 (!%p216_p3), %825, %v290_v6   ;;  %298 = vperm.xlu0 (!%p216_p3), %824, %v288_v7  }
  0x10   : > { %s1079_s19 = smov (!%p250_p5, %s858_s19), 1  ;;  %vm373_vm1 = vcmask (%p367_p6), 7168   ;;  %v873_v35 = vmov (%p367_p6), 0.0  }
  0x11   : > { %s747_s12 = sshll.u32 %s1079_s19, 6  ;;  %s748_s13 = sshll.u32 %s1079_s19, 4  ;;  %374 = vst.msk [vmem:[#allocation2] sm:$0xff] (%p367_p6), %vm373_vm1, %v873_v35  ;;  %375 = vst.msk [vmem:[#allocation2 + $0x8] sm:$0xff] (%p367_p6), %vm373_vm1, %v873_v35 }
  0x12   : > { %s257_s16 = scalar_lea.vmem %s1062_s0, %s747_s12  ;;  %s963_s26 = scalar_lea.vmem %s1067_s5, %s748_s13  ;;  %376 = vst.msk [vmem:[#allocation2 + $0x10] sm:$0xff] (%p367_p6), %vm373_vm1, %v873_v35  ;;  %377 = vst.msk [vmem:[#allocation2 + $0x18] sm:$0xff] (%p367_p6), %vm373_vm1, %v873_v35 }
  0x13   : > { %v269_v8 = vld [vmem:[%s257_s16] sm:$0xff]  ;;  %v270_v9 = vld [vmem:[%s257_s16 + $0x8] sm:$0xff]  ;;  %v271_v10 = vld [vmem:[%s257_s16 + $0x10] sm:$0xff]  ;;  %378 = vst.msk [vmem:[#allocation3] sm:$0xff] (%p367_p6), %vm373_vm1, %v873_v35 }
  0x14   : > { %v283_v11 = vpack.c.bf16 %v270_v9, %v269_v8  ;;  %v272_v12 = vld [vmem:[%s257_s16 + $0x18] sm:$0xff]  ;;  %v273_v14 = vld [vmem:[%s257_s16 + $0x20] sm:$0xff]  ;;  %v274_v15 = vld [vmem:[%s257_s16 + $0x28] sm:$0xff]  ;;  %379 = vst.msk [vmem:[#allocation3 + $0x8] sm:$0xff] (%p367_p6), %vm373_vm1, %v873_v35 }
  0x15   : > { %v284_v13 = vpack.c.bf16 %v272_v12, %v271_v10  ;;  %v285_v16 = vpack.c.bf16 %v274_v15, %v273_v14  ;;  %v275_v17 = vld [vmem:[%s257_s16 + $0x30] sm:$0xff]  ;;  %v276_v18 = vld [vmem:[%s257_s16 + $0x38] sm:$0xff]  ;;  %380 = vst.msk [vmem:[#allocation3 + $0x10] sm:$0xff] (%p367_p6), %vm373_vm1, %v873_v35  ;;  %381 = vst.msk [vmem:[#allocation3 + $0x18] sm:$0xff] (%p367_p6), %vm373_vm1, %v873_v35 }
  0x16   : > { %760 = vmatprep.subr.bf16.mxu0 %v283_v11  ;;  %v286_v19 = vpack.c.bf16 %v276_v18, %v275_v17 }
  0x17   : > { %761 = vmatpush3.bf16.msra.mxu0 %v283_v11 }
  0x18   : > { %762 = vmatprep.subr.bf16.mxu0 %v284_v13 }
  0x1b   : > { %763 = vmatpush3.bf16.msra.mxu0 %v284_v13 }
  0x1c   : > { %764 = vmatprep.subr.bf16.mxu0 %v285_v16 }
  0x1f   : > { %765 = vmatpush3.bf16.msra.mxu0 %v285_v16 }
  0x20   : > { %766 = vmatprep.subr.bf16.mxu0 %v286_v19 }
  0x23   : > { %767 = vmatpush3.bf16.msra.mxu0 %v286_v19 }
  0x26   : > { %769 = vmatmul.mubr.msk.bf16.vlgmr.msra.gmra.mrb[0].mxu0 %vm311_vm0, %v282_v22 }
  0x8a   : > { %v304_v23 = vpop.permute.xlu1 %303  ;;  %v294_v24 = vpop.permute.xlu0 %293 }
  0x8e   : > { %v309_v28 = vpop.permute.xlu1 %308  ;;  %v299_v31 = vpop.permute.xlu0 %298 }
  0xf7   : > { %372 = sbr.rel (!%p367_p6) target bundleno = 254 (0xfe), region = 44 }
  0xf9   : > { %v770_v25 = vpop.f32.mrb[0].mxu0 }
  0xfa   : > { %v973_v26 = vadd.f32 %v770_v25, %v304_v23  ;;  %v352_v27 = vpop.f32.mrb[1].mxu0 }
  0xfb   : > { %v975_v29 = vadd.f32 %v352_v27, %v294_v24  ;;  %v771_v30 = vpop.f32.mrb[2].mxu0 }
  0xfc   : > { %v977_v32 = vadd.f32 %v771_v30, %v309_v28  ;;  %v355_v33 = vpop.f32.mrb[3].mxu0 }
  0xfd   : > { %v979_v34 = vadd.f32 %v355_v33, %v299_v31 }
  0xfe PF: > { %p738_p7 = scmp.ne.s32.totalorder %s854_s18, 0 }
  0xff   : > { %v385_v36 = vlaneseq (!%p738_p7)  ;;  %v874_v38 = vmov (!%p738_p7), 0.0   ;;  %vm401_vm3 = vcmask (!%p738_p7), 261120   ;;  %v399_v56 = vld [vmem:[#allocation2 + $0x10] sm:$0xff] (!%p738_p7)  ;;  %v397_v57 = vld [vmem:[#allocation2] sm:$0xff] (!%p738_p7)  ;;  %vm418_vm4 = vcmask (!%p738_p7), 7168   ;;  %v400_v62 = vld [vmem:[#allocation2 + $0x18] sm:$0xff] (!%p738_p7) }
 0x100   : > { %384 = sbr.rel (%p738_p7) target bundleno = 421 (0x1a5), region = 48  ;;  %v398_v63 = vld [vmem:[#allocation2 + $0x8] sm:$0xff] (!%p738_p7)  ;;  %v423_v5 = vld [vmem:[#allocation3] sm:$0xff] (!%p738_p7)  ;;  %v426_v10 = vld [vmem:[#allocation3 + $0x18] sm:$0xff] (!%p738_p7) }
 0x101   : > { %v386_v37 = vand.u32 (!%p738_p7), 127, %v385_v36  ;;  %v424_v4 = vld [vmem:[#allocation3 + $0x8] sm:$0xff] (!%p738_p7)  ;;  %v425_v11 = vld [vmem:[#allocation3 + $0x10] sm:$0xff] (!%p738_p7) }
 0x103   : > { %vm390_vm2 = vcmp.lt.s32.totalorder (!%p738_p7), %v386_v37, 32 }
 0x104   : > { %v739_v39 = vsel (!%p738_p7), %vm390_vm2, 1.0, %v874_v38 }
 0x105   : > { %v395_v40 = vmul.f32 (!%p738_p7), %v739_v39, %v973_v26  ;;  %v393_v41 = vmul.f32 (!%p738_p7), %v739_v39, %v975_v29  ;;  %v396_v42 = vmul.f32 (!%p738_p7), %v739_v39, %v977_v32  ;;  %v394_v43 = vmul.f32 (!%p738_p7), %v739_v39, %v979_v34 }
 0x107   : > { %v408_v44 = vsel %vm401_vm3, %v395_v40, 0.0  ;;  %v402_v45 = vsel %vm401_vm3, %v393_v41, 0.0  ;;  %v411_v46 = vsel %vm401_vm3, %v396_v42, 0.0  ;;  %v405_v47 = vsel %vm401_vm3, %v394_v43, 0.0 }
 0x108   : > { %409 = vadd.xlane.f32.xlu1 %v408_v44  ;;  %403 = vadd.xlane.f32.xlu0 %v402_v45  ;;  %v428_v48 = vmul.f32 %v394_v43, %v394_v43  ;;  %v427_v49 = vmul.f32 %v393_v41, %v393_v41  ;;  %v430_v52 = vmul.f32 %v396_v42, %v396_v42 }
 0x109   : > { %v429_v53 = vmul.f32 %v395_v40, %v395_v40 }
 0x10a   : > { %v434_v50 = vsel %vm401_vm3, %v428_v48, 0.0  ;;  %v431_v51 = vsel %vm401_vm3, %v427_v49, 0.0  ;;  %v440_v54 = vsel %vm401_vm3, %v430_v52, 0.0 }
 0x10b   : > { %v437_v55 = vsel %vm401_vm3, %v429_v53, 0.0 }
 0x10c   : > { %412 = vadd.xlane.f32.xlu1 %v411_v46  ;;  %406 = vadd.xlane.f32.xlu0 %v405_v47 }
 0x110   : > { %435 = vadd.xlane.f32.xlu1 %v434_v50  ;;  %432 = vadd.xlane.f32.xlu0 %v431_v51 }
 0x114   : > { %441 = vadd.xlane.f32.xlu1 %v440_v54  ;;  %438 = vadd.xlane.f32.xlu0 %v437_v55 }
 0x195   : > { %v410_v58 = vpop.xlane.xlu1 %409  ;;  %v404_v59 = vpop.xlane.xlu0 %403 }
 0x196   : > { %v416_v60 = vadd.f32 %v410_v58, %v399_v56  ;;  %v414_v61 = vadd.f32 %v404_v59, %v397_v57 }
 0x198   : > { %421 = vst.msk [vmem:[#allocation2 + $0x10] sm:$0xff] %vm418_vm4, %v416_v60  ;;  %419 = vst.msk [vmem:[#allocation2] sm:$0xff] %vm418_vm4, %v414_v61 }
 0x199   : > { %v413_v0 = vpop.xlane.xlu1 %412  ;;  %v407_v1 = vpop.xlane.xlu0 %406 }
 0x19a   : > { %v417_v2 = vadd.f32 %v413_v0, %v400_v62  ;;  %v415_v3 = vadd.f32 %v407_v1, %v398_v63 }
 0x19c   : > { %422 = vst.msk [vmem:[#allocation2 + $0x18] sm:$0xff] %vm418_vm4, %v417_v2  ;;  %420 = vst.msk [vmem:[#allocation2 + $0x8] sm:$0xff] %vm418_vm4, %v415_v3 }
 0x19d   : > { %v436_v6 = vpop.xlane.xlu1 %435  ;;  %v433_v7 = vpop.xlane.xlu0 %432 }
 0x19e   : > { %v444_v8 = vadd.f32 %v436_v6, %v424_v4  ;;  %v443_v9 = vadd.f32 %v433_v7, %v423_v5 }
 0x1a0   : > { %448 = vst.msk [vmem:[#allocation3 + $0x8] sm:$0xff] %vm418_vm4, %v444_v8  ;;  %447 = vst.msk [vmem:[#allocation3] sm:$0xff] %vm418_vm4, %v443_v9 }
 0x1a1   : > { %v442_v12 = vpop.xlane.xlu1 %441  ;;  %v439_v13 = vpop.xlane.xlu0 %438 }
 0x1a2   : > { %v446_v14 = vadd.f32 %v442_v12, %v426_v10  ;;  %v445_v15 = vadd.f32 %v439_v13, %v425_v11 }
 0x1a4   : > { %450 = vst.msk [vmem:[#allocation3 + $0x18] sm:$0xff] %vm418_vm4, %v446_v14  ;;  %449 = vst.msk [vmem:[#allocation3 + $0x10] sm:$0xff] %vm418_vm4, %v445_v15 }
 0x1a5 PF: > { %p740_p8 = scmp.ne.s32.totalorder %s854_s18, 1 }
 0x1a6   : > { %v457_v16 = vld [vmem:[#allocation2 + $0x10] sm:$0xff] (!%p740_p8)  ;;  %v458_v17 = vld [vmem:[#allocation2 + $0x18] sm:$0xff] (!%p740_p8)  ;;  %vm463_vm5 = vcmask (!%p740_p8), 7168   ;;  %v455_v18 = vld [vmem:[#allocation2] sm:$0xff] (!%p740_p8)  ;;  %v875_v40 = vmov (!%p740_p8), 0   ;;  %vm628_vm7 = vcmask (!%p740_p8), 257024  }
 0x1a7   : > { %454 = sbr.rel (%p740_p8) target bundleno = 815 (0x32f), region = 52  ;;  %v498_v19 = vsel (!%p740_p8), %vm463_vm5, %v457_v16, 0.0  ;;  %v499_v20 = vsel (!%p740_p8), %vm463_vm5, %v458_v17, 0.0  ;;  %v456_v21 = vld [vmem:[#allocation2 + $0x8] sm:$0xff] (!%p740_p8)  ;;  %v464_v22 = vsel (!%p740_p8), %vm463_vm5, %v455_v18, 0.0  ;;  %v459_v31 = vld [vmem:[#allocation3] sm:$0xff] (!%p740_p8)  ;;  %827 = vset.pattern.permute.xlu1 (!%p740_p8), %v875_v40  ;;  %826 = vset.pattern.permute.xlu0 (!%p740_p8), %v875_v40 }
 0x1a8   : > { %v500_v25 = vadd.f32 (!%p740_p8), %v499_v20, %v498_v19  ;;  %v465_v27 = vsel (!%p740_p8), %vm463_vm5, %v456_v21, 0.0  ;;  %v460_v33 = vld [vmem:[#allocation3 + $0x8] sm:$0xff] (!%p740_p8)  ;;  %v477_v36 = vsel (!%p740_p8), %vm463_vm5, %v459_v31, 0.0  ;;  %v532_v20 = vld [vmem:[%s1065_s3] sm:$0xff] (!%p740_p8)  ;;  %v535_v31 = vld [vmem:[%s1065_s3 + $0x18] sm:$0xff] (!%p740_p8) }
 0x1a9   : > { %v466_v35 = vadd.f32 (!%p740_p8), %v465_v27, %v464_v22  ;;  %v478_v37 = vsel (!%p740_p8), %vm463_vm5, %v460_v33, 0.0  ;;  %v533_v19 = vld [vmem:[%s1065_s3 + $0x8] sm:$0xff] (!%p740_p8) }
 0x1aa   : > { %501 = vadd.xlane.f32.xlu1 (!%p740_p8), %v500_v25  ;;  %v479_v39 = vadd.f32 (!%p740_p8), %v478_v37, %v477_v36  ;;  %v544_v36 = vld [vmem:[%s1066_s4] sm:$0xff] (!%p740_p8) }
 0x1ab   : > { %v461_v23 = vld [vmem:[#allocation3 + $0x10] sm:$0xff] (!%p740_p8)  ;;  %v462_v24 = vld [vmem:[#allocation3 + $0x18] sm:$0xff] (!%p740_p8)  ;;  %467 = vadd.xlane.f32.xlu0 (!%p740_p8), %v466_v35 }
 0x1ac   : > { %v511_v28 = vsel (!%p740_p8), %vm463_vm5, %v461_v23, 0.0  ;;  %v512_v30 = vsel (!%p740_p8), %vm463_vm5, %v462_v24, 0.0  ;;  %v534_v24 = vld [vmem:[%s1065_s3 + $0x10] sm:$0xff] (!%p740_p8) }
 0x1ad   : > { %v513_v38 = vadd.f32 (!%p740_p8), %v512_v30, %v511_v28 }
 0x1af   : > { %514 = vadd.xlane.f32.xlu1 %v513_v38  ;;  %480 = vadd.xlane.f32.xlu0 %v479_v39 }
 0x237   : > { %v502_v41 = vpop.xlane.xlu1 %501 }
 0x238   : > { %v503_v42 = vrot.slane %v502_v41, 4  ;;  %v468_v43 = vpop.xlane.xlu0 %467 }
 0x239   : > { %v469_v44 = vrot.slane %v468_v43, 4 }
 0x23a   : > { %v504_v45 = vadd.f32 %v503_v42, %v502_v41  ;;  %v545_v41 = vld [vmem:[%s1066_s4 + $0x8] sm:$0xff] }
 0x23b   : > { %v470_v46 = vadd.f32 %v469_v44, %v468_v43  ;;  %v546_v44 = vld [vmem:[%s1066_s4 + $0x10] sm:$0xff] }
 0x23c   : > { %v515_v47 = vpop.xlane.xlu1 %514  ;;  %v505_v48 = vrot.slane %v504_v45, 2  ;;  %v481_v50 = vpop.xlane.xlu0 %480 }
 0x23d   : > { %v516_v49 = vrot.slane %v515_v47, 4  ;;  %v471_v51 = vrot.slane %v470_v46, 2  ;;  %v482_v52 = vrot.slane %v481_v50, 4 }
 0x23e   : > { %v506_v57 = vadd.f32 %v505_v48, %v504_v45 }
 0x23f   : > { %v517_v53 = vadd.f32 %v516_v49, %v515_v47  ;;  %v483_v54 = vadd.f32 %v482_v52, %v481_v50  ;;  %v472_v55 = vadd.f32 %v471_v51, %v470_v46  ;;  %v547_v47 = vld [vmem:[%s1066_s4 + $0x18] sm:$0xff] }
 0x240   : > { %v507_v63 = vrot.slane %v506_v57, 1 }
 0x241   : > { %v518_v56 = vrot.slane %v517_v53, 2  ;;  %v484_v58 = vrot.slane %v483_v54, 2  ;;  %v473_v59 = vrot.slane %v472_v55, 1 }
 0x242   : > { %v508_v4 = vadd.f32 %v507_v63, %v506_v57 }
 0x243   : > { %v519_v60 = vadd.f32 %v518_v56, %v517_v53  ;;  %v474_v61 = vadd.f32 %v473_v59, %v472_v55  ;;  %v485_v62 = vadd.f32 %v484_v58, %v483_v54 }
 0x245   : > { %v520_v0 = vrot.slane %v519_v60, 1  ;;  %772 = vpush %v474_v61  ;;  %v486_v1 = vrot.slane %v485_v62, 1 }
 0x247   : > { %v487_v2 = vadd.f32 %v486_v1, %v485_v62  ;;  %v521_v3 = vadd.f32 %v520_v0, %v519_v60 }
 0x249   : > { %774 = vpush %v487_v2 }
 0x24a   : > { %776 = vpush %v508_v4 }
 0x24b   : > { %778 = vpush %v521_v3 }
 0x276   : > { %s773_s18 = spop %772 }
 0x277   : > { %v476_v5 = vstv %s773_s18 }
 0x278   : > { %v490_v6 = vmul.f32 0.001953125, %v476_v5 }
 0x27a   : > { %s775_s30 = spop %774  ;;  %v492_v8 = vmul.f32 %v490_v6, %v490_v6  ;;  %v496_v27 = vsub.f32 0.0, %v490_v6 }
 0x27b   : > { %v489_v7 = vstv %s775_s30  ;;  %s777_s6 = spop %776 }
 0x27c   : > { %v491_v9 = vmul.f32 0.001953125, %v489_v7  ;;  %v510_v10 = vstv %s777_s6  ;;  %s779_s7 = spop %778 }
 0x27d   : > { %v524_v11 = vmul.f32 0.001953125, %v510_v10  ;;  %v523_v12 = vstv %s779_s7 }
 0x27e   : > { %v493_v13 = vsub.f32 %v491_v9, %v492_v8  ;;  %v525_v15 = vmul.f32 0.001953125, %v523_v12 }
 0x27f   : > { %v526_v14 = vmul.f32 %v524_v11, %v524_v11  ;;  %v530_v37 = vsub.f32 0.0, %v524_v11 }
 0x280   : > { %v494_v16 = vadd.f32 1e-05, %v493_v13 }
 0x281   : > { %v527_v17 = vsub.f32 %v525_v15, %v526_v14 }
 0x282   : > { %828 = vrsqrt.f32 %v494_v16 }
 0x283   : > { %v528_v18 = vadd.f32 1e-05, %v527_v17 }
 0x285   : > { %830 = vrsqrt.f32 %v528_v18 }
 0x28c   : > { %v829_v21 = vpop.eup %828 }
 0x28d   : > { %v537_v22 = vmul.f32 %v829_v21, %v533_v19  ;;  %v536_v23 = vmul.f32 %v829_v21, %v532_v20  ;;  %v497_v30 = vmul.f32 %v829_v21, %v496_v27 }
 0x28f   : > { %v831_v25 = vpop.eup %830  ;;  %559 = vperm.xlu1 %827, %v537_v22   ;;  %554 = vperm.xlu0 %826, %v536_v23   ;;  %v540_v35 = vmul.f32 %v532_v20, %v497_v30  ;;  %v541_v39 = vmul.f32 %v533_v19, %v497_v30 }
 0x290   : > { %v538_v28 = vmul.f32 %v831_v25, %v534_v24  ;;  %v539_v33 = vmul.f32 %v831_v25, %v535_v31  ;;  %v531_v40 = vmul.f32 %v831_v25, %v530_v37 }
 0x291   : > { %v548_v38 = vadd.f32 %v544_v36, %v540_v35  ;;  %v549_v42 = vadd.f32 %v545_v41, %v541_v39 }
 0x292   : > { %v542_v43 = vmul.f32 %v534_v24, %v531_v40  ;;  %v543_v46 = vmul.f32 %v535_v31, %v531_v40 }
 0x293   : > { %564 = vperm.xlu1 %827, %v538_v28  }
 0x294   : > { %v550_v45 = vadd.f32 %v546_v44, %v542_v43  ;;  %v551_v48 = vadd.f32 %v547_v47, %v543_v46 }
 0x297   : > { %569 = vperm.xlu1 %827, %v539_v33  }
 0x29b   : > { %578 = vperm.xlu1 %827, %v548_v38  }
 0x29f   : > { %583 = vperm.xlu1 %827, %v549_v42  }
 0x2a3   : > { %588 = vperm.xlu1 %827, %v550_v45  }
 0x2a7   : > { %593 = vperm.xlu1 %827, %v551_v48  }
 0x30e   : > { %v560_v49 = vpop.permute.xlu1 %559  ;;  %v555_v51 = vpop.permute.xlu0 %554 }
 0x30f   : > { %v572_v53 = vmul.f32 %v555_v51, %v975_v29  ;;  %v573_v56 = vmul.f32 %v560_v49, %v979_v34 }
 0x312   : > { %v565_v50 = vpop.permute.xlu1 %564 }
 0x313   : > { %v574_v62 = vmul.f32 %v565_v50, %v973_v26 }
 0x316   : > { %v570_v52 = vpop.permute.xlu1 %569 }
 0x317   : > { %v575_v2 = vmul.f32 %v570_v52, %v977_v32 }
 0x31a   : > { %v579_v54 = vpop.permute.xlu1 %578 }
 0x31b   : > { %v596_v55 = vadd.f32 %v579_v54, %v572_v53 }
 0x31d   : > { %vm600_vm6 = vcmp.ge.f32.partialorder %v596_v55, 0.0  ;;  %v604_v57 = vmul.f32 0.1, %v596_v55 }
 0x31e   : > { %v584_v58 = vpop.permute.xlu1 %583 }
 0x31f   : > { %v608_v59 = vsel %vm600_vm6, %v596_v55, %v604_v57  ;;  %v597_v60 = vadd.f32 %v584_v58, %v573_v56 }
 0x320   : > { %v750_v61 = vpack.c.bf16 %v608_v59, %v608_v59 }
 0x321   : > { %vm601_vm8 = vcmp.ge.f32.partialorder %v597_v60, 0.0  ;;  %v605_v63 = vmul.f32 0.1, %v597_v60 }
 0x322   : > { %629 = vst.msk [vmem:[%s963_s26] sm:$0xf] %vm628_vm7, %v750_v61  ;;  %v589_v29 = vpop.permute.xlu1 %588 }
 0x323   : > { %v609_v0 = vsel %vm601_vm8, %v597_v60, %v605_v63  ;;  %v598_v1 = vadd.f32 %v589_v29, %v574_v62 }
 0x324   : > { %v751_v34 = vpack.c.bf16 %v609_v0, %v609_v0 }
 0x325   : > { %vm602_vm9 = vcmp.ge.f32.partialorder %v598_v1, 0.0  ;;  %v606_v3 = vmul.f32 0.1, %v598_v1 }
 0x326   : > { %630 = vst.msk [vmem:[%s963_s26 + $0x4] sm:$0xf] %vm628_vm7, %v751_v34  ;;  %v594_v4 = vpop.permute.xlu1 %593 }
 0x327   : > { %v610_v5 = vsel %vm602_vm9, %v598_v1, %v606_v3  ;;  %v599_v6 = vadd.f32 %v594_v4, %v575_v2 }
 0x328   : > { %v752_v26 = vpack.c.bf16 %v610_v5, %v610_v5 }
 0x329   : > { %vm603_vm10 = vcmp.ge.f32.partialorder %v599_v6, 0.0  ;;  %v607_v7 = vmul.f32 0.1, %v599_v6 }
 0x32a   : > { %631 = vst.msk [vmem:[%s963_s26 + $0x8] sm:$0xf] %vm628_vm7, %v752_v26 }
 0x32b   : > { %v611_v8 = vsel %vm603_vm10, %v599_v6, %v607_v7 }
 0x32c   : > { %v753_v9 = vpack.c.bf16 %v611_v8, %v611_v8 }
 0x32e   : > { %632 = vst.msk [vmem:[%s963_s26 + $0xc] sm:$0xf] %vm628_vm7, %v753_v9 }
 0x32f PF: > { %s15_s22 = sadd.s32 1, %s870_s22   ;;  %s1068_s18 = smov %s862_s20 }
 0x330   : > { %p12_p9 = scmp.ge.s32.totalorder %s15_s22, 6   ;;  %s1069_s19 = smov %s866_s21 }
 0x331   : > { %s1070_s20 = smov %s1073_s23  ;;  %s1071_s21 = smov %s1077_s24 }
 0x332   :  { %14 = sbr.rel (!%p12_p9) target bundleno = 3 (0x3), region = 82 }

// kernel: upsample_atten_forward.7
= control target key start
LH: loop header
LB: loop body
LE: loop exit
PB: predicated region body
PF: predicated region fallthrough
CT: control target
= control target key end

     0   :  { %s1000_s21 = smov 0   ;;  %s1002_s22 = smov 0   ;;  %s1163_s0 = inlined_call_operand.vmem [shape: f32[2,3,32], index: 0, kind: input, shape index: {}]   ;;  %s1164_s1 = inlined_call_operand.vmem [shape: bf16[2,32,32], index: 1, kind: input, shape index: {}]   ;;  %s1165_s2 = inlined_call_operand.vmem [shape: f32[32,3], index: 2, kind: input, shape index: {}]   ;;  %s1166_s3 = inlined_call_operand.vmem [shape: f32[32,1], index: 3, kind: input, shape index: {}]   ;;  %s1167_s4 = inlined_call_operand.vmem [shape: f32[32,1], index: 4, kind: input, shape index: {}]   ;;  %s1168_s5 = inlined_call_operand.vmem [shape: f32[32,1], index: 5, kind: input, shape index: {}]   ;;  %s1169_s6 = inlined_call_operand.vmem [shape: bf16[2,32,32], index: 6, kind: output, shape index: {}]  }
   0x1   :  { %s1004_s23 = smov 0   ;;  %s1006_s24 = smov 0  }
   0x2   :  { %s1008_s25 = smov 0  }
   0x3 LB: > { %s31_s26 = sadd.s32 1, %s950_s23  ;;  %s35_s27 = sadd.s32 1, %s954_s24  ;;  %s958_s25 = sphi %s1008_s25, %s16_s25   ;;  %s954_s24 = sphi %s1006_s24, %s1173_s24   ;;  %s950_s23 = sphi %s1004_s23, %s1172_s23   ;;  %s946_s22 = sphi %s1002_s22, %s1171_s22   ;;  %s942_s21 = sphi %s1000_s21, %s1170_s21  }
   0x4   : > { %p33_p0 = scmp.ge.s32.totalorder %s31_s26, 2  ;;  %p816_p1 = scmp.ge.s32.totalorder %s958_s25, 1 }
   0x5   : > { %p258_p2 = scmp.lt.s32.totalorder %s958_s25, 5 }
   0x6   : > { %s1175_s26 = smov (%p33_p0, %s31_s26), 0  ;;  %s1177_s27 = smov (!%p33_p0, %s35_s27), %s954_s24 }
   0x7   : > { %p259_p3 = pnand %p816_p1, %p258_p2  ;;  %p37_p4 = scmp.ge.s32.totalorder %s1177_s27, 2 }
   0x8   : > { %p303_p5 = scmp.lt.s32.totalorder (!%p259_p3), %s946_s22, 1  ;;  %vm370_vm0 = vcmask (!%p259_p3), 1040384   ;;  %v332_v0 = vld [vmem:[%s1165_s2] sm:$0xff] (!%p259_p3)  ;;  %v333_v1 = vld [vmem:[%s1165_s2 + $0x8] sm:$0xff] (!%p259_p3)  ;;  %vm363_vm1 = vcmask (!%p259_p3), 23552   ;;  %v341_v3 = vld [vmem:[%s1166_s3 + $0x10] sm:$0xff] (!%p259_p3) }
   0x9   : > { %s1179_s27 = smov (%p37_p4, %s1177_s27), 0  ;;  %262 = sbr.rel (%p259_p3) target bundleno = 807 (0x327), region = 44 }
   0xa   : > { %v336_v2 = vpack.c.bf16 (!%p259_p3), %v333_v1, %v332_v0  ;;  %v960_v4 = vmov (!%p259_p3), 0   ;;  %v339_v5 = vld [vmem:[%s1166_s3] sm:$0xff] (!%p259_p3)  ;;  %vm371_vm2 = vcmask (!%p259_p3), 1041408   ;;  %v961_v6 = vmov (!%p259_p3), 65535   ;;  %v342_v8 = vld [vmem:[%s1166_s3 + $0x18] sm:$0xff] (!%p259_p3)  ;;  %v340_v9 = vld [vmem:[%s1166_s3 + $0x8] sm:$0xff] (!%p259_p3) }
   0xb   : > { %913 = vset.pattern.permute.xlu1 (!%p259_p3), %v960_v4  ;;  %912 = vset.pattern.permute.xlu0 (!%p259_p3), %v960_v4  ;;  %v372_v7 = vsel (!%p259_p3), %vm370_vm0, 4294967295, %v961_v6  ;;  %v334_v13 = vld [vmem:[%s1165_s2 + $0x10] sm:$0xff] (!%p259_p3)  ;;  %v335_v14 = vld [vmem:[%s1165_s2 + $0x18] sm:$0xff] (!%p259_p3)  ;;  %p426_p6 = scmp.eq.s32.totalorder (!%p259_p3), %s942_s21, 0 }
   0xc   : > { %855 = vmatprep.mubr.msk.bf16.mxu0 (!%p259_p3), %vm363_vm1, %v336_v2  ;;  %355 = vperm.xlu1 (!%p259_p3), %913, %v341_v3   ;;  %v373_v11 = vsel (!%p259_p3), %vm371_vm2, %v372_v7, 0  ;;  %v337_v16 = vpack.c.bf16 (!%p259_p3), %v335_v14, %v334_v13 }
   0xd   : > { %345 = vperm.xlu0 (!%p259_p3), %912, %v339_v5  }
  0x10   : > { %s1181_s22 = smov (!%p303_p5, %s946_s22), 1  ;;  %360 = vperm.xlu1 %913, %v342_v8   ;;  %vm432_vm3 = vcmask (%p426_p6), 7168   ;;  %v962_v29 = vmov (%p426_p6), 0.0  }
  0x11   : > { %s817_s12 = sshll.u32 %s1181_s22, 2  ;;  %s834_s13 = sshll.u32 %s1181_s22, 4  ;;  %350 = vperm.xlu0 %912, %v340_v9   ;;  %433 = vst.msk [vmem:[#allocation2] sm:$0xff] (%p426_p6), %vm432_vm3, %v962_v29  ;;  %434 = vst.msk [vmem:[#allocation2 + $0x8] sm:$0xff] (%p426_p6), %vm432_vm3, %v962_v29 }
  0x12   : > { %s309_s18 = scalar_lea.vmem %s1163_s0, %s817_s12  ;;  %s1054_s28 = scalar_lea.vmem %s1164_s1, %s834_s13  ;;  %435 = vst.msk [vmem:[#allocation2 + $0x10] sm:$0xff] (%p426_p6), %vm432_vm3, %v962_v29  ;;  %436 = vst.msk [vmem:[#allocation2 + $0x18] sm:$0xff] (%p426_p6), %vm432_vm3, %v962_v29 }
  0x13   : > { %s1062_s8 = scalar_lea.vmem %s1169_s6, %s834_s13  ;;  %v331_v10 = vld [vmem:[%s309_s18] sm:$0x7]  ;;  %437 = vst.msk [vmem:[#allocation3] sm:$0xff] (%p426_p6), %vm432_vm3, %v962_v29  ;;  %438 = vst.msk [vmem:[#allocation3 + $0x8] sm:$0xff] (%p426_p6), %vm432_vm3, %v962_v29 }
  0x14   : > { %v338_v12 = vpack.c.bf16 %v331_v10, %v331_v10  ;;  %439 = vst.msk [vmem:[#allocation3 + $0x10] sm:$0xff] (%p426_p6), %vm432_vm3, %v962_v29  ;;  %440 = vst.msk [vmem:[#allocation3 + $0x18] sm:$0xff] (%p426_p6), %vm432_vm3, %v962_v29 }
  0x16   : > { %v375_v15 = vand.u32 %v373_v11, %v338_v12 }
  0x18   : > { %853 = vmatprep.subr.bf16.mxu0 %v375_v15 }
  0x19   : > { %854 = vmatpush3.bf16.msra.mxu0 %v375_v15 }
  0x1c   : > { %856 = vmatmul.mubr.msk.bf16.vlgmr.msra.gmra.mrb[0].mxu0 %vm363_vm1, %v337_v16 }
  0x8b   : > { %v356_v17 = vpop.permute.xlu1 %355 }
  0x8c   : > { %v346_v18 = vpop.permute.xlu0 %345 }
  0x8f   : > { %v361_v22 = vpop.permute.xlu1 %360 }
  0x90   : > { %v351_v25 = vpop.permute.xlu0 %350 }
  0xed   : > { %431 = sbr.rel (!%p426_p6) target bundleno = 244 (0xf4), region = 48 }
  0xef   : > { %v857_v19 = vpop.f32.mrb[0].mxu0 }
  0xf0   : > { %v1072_v20 = vadd.f32 %v857_v19, %v356_v17  ;;  %v411_v21 = vpop.f32.mrb[1].mxu0 }
  0xf1   : > { %v1074_v23 = vadd.f32 %v411_v21, %v346_v18  ;;  %v858_v24 = vpop.f32.mrb[2].mxu0 }
  0xf2   : > { %v1076_v26 = vadd.f32 %v858_v24, %v361_v22  ;;  %v414_v27 = vpop.f32.mrb[3].mxu0 }
  0xf3   : > { %v1078_v28 = vadd.f32 %v414_v27, %v351_v25 }
  0xf4 PF: > { %p825_p7 = scmp.ne.s32.totalorder %s942_s21, 0 }
  0xf5   : > { %v444_v30 = vlaneseq (!%p825_p7)  ;;  %v963_v32 = vmov (!%p825_p7), 0.0   ;;  %vm460_vm5 = vcmask (!%p825_p7), 261120   ;;  %v458_v50 = vld [vmem:[#allocation2 + $0x10] sm:$0xff] (!%p825_p7)  ;;  %v456_v51 = vld [vmem:[#allocation2] sm:$0xff] (!%p825_p7)  ;;  %vm477_vm6 = vcmask (!%p825_p7), 7168   ;;  %v459_v56 = vld [vmem:[#allocation2 + $0x18] sm:$0xff] (!%p825_p7) }
  0xf6   : > { %443 = sbr.rel (%p825_p7) target bundleno = 411 (0x19b), region = 52  ;;  %v457_v57 = vld [vmem:[#allocation2 + $0x8] sm:$0xff] (!%p825_p7)  ;;  %v482_v63 = vld [vmem:[#allocation3] sm:$0xff] (!%p825_p7)  ;;  %v485_v4 = vld [vmem:[#allocation3 + $0x18] sm:$0xff] (!%p825_p7) }
  0xf7   : > { %v445_v31 = vand.u32 (!%p825_p7), 127, %v444_v30  ;;  %v483_v62 = vld [vmem:[#allocation3 + $0x8] sm:$0xff] (!%p825_p7)  ;;  %v484_v5 = vld [vmem:[#allocation3 + $0x10] sm:$0xff] (!%p825_p7) }
  0xf9   : > { %vm449_vm4 = vcmp.lt.s32.totalorder (!%p825_p7), %v445_v31, 32 }
  0xfa   : > { %v826_v33 = vsel (!%p825_p7), %vm449_vm4, 1.0, %v963_v32 }
  0xfb   : > { %v454_v34 = vmul.f32 (!%p825_p7), %v826_v33, %v1072_v20  ;;  %v452_v35 = vmul.f32 (!%p825_p7), %v826_v33, %v1074_v23  ;;  %v455_v36 = vmul.f32 (!%p825_p7), %v826_v33, %v1076_v26  ;;  %v453_v37 = vmul.f32 (!%p825_p7), %v826_v33, %v1078_v28 }
  0xfd   : > { %v467_v38 = vsel %vm460_vm5, %v454_v34, 0.0  ;;  %v461_v39 = vsel %vm460_vm5, %v452_v35, 0.0  ;;  %v470_v40 = vsel %vm460_vm5, %v455_v36, 0.0  ;;  %v464_v41 = vsel %vm460_vm5, %v453_v37, 0.0 }
  0xfe   : > { %468 = vadd.xlane.f32.xlu1 %v467_v38  ;;  %462 = vadd.xlane.f32.xlu0 %v461_v39  ;;  %v487_v42 = vmul.f32 %v453_v37, %v453_v37  ;;  %v486_v43 = vmul.f32 %v452_v35, %v452_v35  ;;  %v489_v46 = vmul.f32 %v455_v36, %v455_v36 }
  0xff   : > { %v488_v47 = vmul.f32 %v454_v34, %v454_v34 }
 0x100   : > { %v493_v44 = vsel %vm460_vm5, %v487_v42, 0.0  ;;  %v490_v45 = vsel %vm460_vm5, %v486_v43, 0.0  ;;  %v499_v48 = vsel %vm460_vm5, %v489_v46, 0.0 }
 0x101   : > { %v496_v49 = vsel %vm460_vm5, %v488_v47, 0.0 }
 0x102   : > { %471 = vadd.xlane.f32.xlu1 %v470_v40  ;;  %465 = vadd.xlane.f32.xlu0 %v464_v41 }
 0x106   : > { %494 = vadd.xlane.f32.xlu1 %v493_v44  ;;  %491 = vadd.xlane.f32.xlu0 %v490_v45 }
 0x10a   : > { %500 = vadd.xlane.f32.xlu1 %v499_v48  ;;  %497 = vadd.xlane.f32.xlu0 %v496_v49 }
 0x18b   : > { %v469_v52 = vpop.xlane.xlu1 %468  ;;  %v463_v53 = vpop.xlane.xlu0 %462 }
 0x18c   : > { %v475_v54 = vadd.f32 %v469_v52, %v458_v50  ;;  %v473_v55 = vadd.f32 %v463_v53, %v456_v51 }
 0x18e   : > { %480 = vst.msk [vmem:[#allocation2 + $0x10] sm:$0xff] %vm477_vm6, %v475_v54  ;;  %478 = vst.msk [vmem:[#allocation2] sm:$0xff] %vm477_vm6, %v473_v55 }
 0x18f   : > { %v472_v58 = vpop.xlane.xlu1 %471  ;;  %v466_v59 = vpop.xlane.xlu0 %465 }
 0x190   : > { %v476_v60 = vadd.f32 %v472_v58, %v459_v56  ;;  %v474_v61 = vadd.f32 %v466_v59, %v457_v57 }
 0x192   : > { %481 = vst.msk [vmem:[#allocation2 + $0x18] sm:$0xff] %vm477_vm6, %v476_v60  ;;  %479 = vst.msk [vmem:[#allocation2 + $0x8] sm:$0xff] %vm477_vm6, %v474_v61 }
 0x193   : > { %v495_v0 = vpop.xlane.xlu1 %494  ;;  %v492_v1 = vpop.xlane.xlu0 %491 }
 0x194   : > { %v503_v2 = vadd.f32 %v495_v0, %v483_v62  ;;  %v502_v3 = vadd.f32 %v492_v1, %v482_v63 }
 0x196   : > { %507 = vst.msk [vmem:[#allocation3 + $0x8] sm:$0xff] %vm477_vm6, %v503_v2  ;;  %506 = vst.msk [vmem:[#allocation3] sm:$0xff] %vm477_vm6, %v502_v3 }
 0x197   : > { %v501_v6 = vpop.xlane.xlu1 %500  ;;  %v498_v7 = vpop.xlane.xlu0 %497 }
 0x198   : > { %v505_v8 = vadd.f32 %v501_v6, %v485_v4  ;;  %v504_v9 = vadd.f32 %v498_v7, %v484_v5 }
 0x19a   : > { %509 = vst.msk [vmem:[#allocation3 + $0x18] sm:$0xff] %vm477_vm6, %v505_v8  ;;  %508 = vst.msk [vmem:[#allocation3 + $0x10] sm:$0xff] %vm477_vm6, %v504_v9 }
 0x19b PF: > { %p827_p8 = scmp.ne.s32.totalorder %s942_s21, 1 }
 0x19c   : > { %v516_v10 = vld [vmem:[#allocation2 + $0x10] sm:$0xff] (!%p827_p8)  ;;  %v517_v11 = vld [vmem:[#allocation2 + $0x18] sm:$0xff] (!%p827_p8)  ;;  %vm522_vm7 = vcmask (!%p827_p8), 7168   ;;  %v514_v12 = vld [vmem:[#allocation2] sm:$0xff] (!%p827_p8)  ;;  %v964_v34 = vmov (!%p827_p8), 0   ;;  %vm699_vm9 = vcmask (!%p827_p8), 257024  }
 0x19d   : > { %513 = sbr.rel (%p827_p8) target bundleno = 807 (0x327), region = 56  ;;  %v557_v13 = vsel (!%p827_p8), %vm522_vm7, %v516_v10, 0.0  ;;  %v558_v14 = vsel (!%p827_p8), %vm522_vm7, %v517_v11, 0.0  ;;  %v515_v15 = vld [vmem:[#allocation2 + $0x8] sm:$0xff] (!%p827_p8)  ;;  %v523_v16 = vsel (!%p827_p8), %vm522_vm7, %v514_v12, 0.0  ;;  %v518_v25 = vld [vmem:[#allocation3] sm:$0xff] (!%p827_p8)  ;;  %915 = vset.pattern.permute.xlu1 (!%p827_p8), %v964_v34  ;;  %914 = vset.pattern.permute.xlu0 (!%p827_p8), %v964_v34 }
 0x19e   : > { %v559_v19 = vadd.f32 (!%p827_p8), %v558_v14, %v557_v13  ;;  %v524_v21 = vsel (!%p827_p8), %vm522_vm7, %v515_v15, 0.0  ;;  %v519_v27 = vld [vmem:[#allocation3 + $0x8] sm:$0xff] (!%p827_p8)  ;;  %v536_v30 = vsel (!%p827_p8), %vm522_vm7, %v518_v25, 0.0  ;;  %v591_v14 = vld [vmem:[%s1167_s4] sm:$0xff] (!%p827_p8)  ;;  %v594_v25 = vld [vmem:[%s1167_s4 + $0x18] sm:$0xff] (!%p827_p8) }
 0x19f   : > { %v525_v29 = vadd.f32 (!%p827_p8), %v524_v21, %v523_v16  ;;  %v537_v31 = vsel (!%p827_p8), %vm522_vm7, %v519_v27, 0.0  ;;  %v592_v13 = vld [vmem:[%s1167_s4 + $0x8] sm:$0xff] (!%p827_p8) }
 0x1a0   : > { %560 = vadd.xlane.f32.xlu1 (!%p827_p8), %v559_v19  ;;  %v538_v33 = vadd.f32 (!%p827_p8), %v537_v31, %v536_v30  ;;  %v603_v30 = vld [vmem:[%s1168_s5] sm:$0xff] (!%p827_p8) }
 0x1a1   : > { %v520_v17 = vld [vmem:[#allocation3 + $0x10] sm:$0xff] (!%p827_p8)  ;;  %v521_v18 = vld [vmem:[#allocation3 + $0x18] sm:$0xff] (!%p827_p8)  ;;  %526 = vadd.xlane.f32.xlu0 (!%p827_p8), %v525_v29 }
 0x1a2   : > { %v570_v22 = vsel (!%p827_p8), %vm522_vm7, %v520_v17, 0.0  ;;  %v571_v24 = vsel (!%p827_p8), %vm522_vm7, %v521_v18, 0.0  ;;  %v593_v18 = vld [vmem:[%s1167_s4 + $0x10] sm:$0xff] (!%p827_p8) }
 0x1a3   : > { %v572_v32 = vadd.f32 (!%p827_p8), %v571_v24, %v570_v22 }
 0x1a5   : > { %573 = vadd.xlane.f32.xlu1 %v572_v32  ;;  %539 = vadd.xlane.f32.xlu0 %v538_v33 }
 0x22d   : > { %v561_v35 = vpop.xlane.xlu1 %560 }
 0x22e   : > { %v562_v36 = vrot.slane %v561_v35, 4  ;;  %v527_v37 = vpop.xlane.xlu0 %526 }
 0x22f   : > { %v528_v38 = vrot.slane %v527_v37, 4 }
 0x230   : > { %v563_v39 = vadd.f32 %v562_v36, %v561_v35  ;;  %v604_v35 = vld [vmem:[%s1168_s5 + $0x8] sm:$0xff] }
 0x231   : > { %v529_v40 = vadd.f32 %v528_v38, %v527_v37  ;;  %v605_v38 = vld [vmem:[%s1168_s5 + $0x10] sm:$0xff] }
 0x232   : > { %v574_v41 = vpop.xlane.xlu1 %573  ;;  %v564_v42 = vrot.slane %v563_v39, 2  ;;  %v540_v44 = vpop.xlane.xlu0 %539 }
 0x233   : > { %v575_v43 = vrot.slane %v574_v41, 4  ;;  %v530_v45 = vrot.slane %v529_v40, 2  ;;  %v541_v46 = vrot.slane %v540_v44, 4 }
 0x234   : > { %v565_v51 = vadd.f32 %v564_v42, %v563_v39 }
 0x235   : > { %v576_v47 = vadd.f32 %v575_v43, %v574_v41  ;;  %v542_v48 = vadd.f32 %v541_v46, %v540_v44  ;;  %v531_v49 = vadd.f32 %v530_v45, %v529_v40  ;;  %v606_v41 = vld [vmem:[%s1168_s5 + $0x18] sm:$0xff] }
 0x236   : > { %v566_v57 = vrot.slane %v565_v51, 1 }
 0x237   : > { %v577_v50 = vrot.slane %v576_v47, 2  ;;  %v543_v52 = vrot.slane %v542_v48, 2  ;;  %v532_v53 = vrot.slane %v531_v49, 1 }
 0x238   : > { %v567_v62 = vadd.f32 %v566_v57, %v565_v51 }
 0x239   : > { %v578_v54 = vadd.f32 %v577_v50, %v576_v47  ;;  %v533_v55 = vadd.f32 %v532_v53, %v531_v49  ;;  %v544_v56 = vadd.f32 %v543_v52, %v542_v48  ;;  %v842_v48 = vld [vmem:[%s1054_s28] sm:$0xff]  }
 0x23a   : > { %v843_v51 = vunpack.c.l.bf16 %v842_v48 }
 0x23b   : > { %v579_v58 = vrot.slane %v578_v54, 1  ;;  %859 = vpush %v533_v55  ;;  %v545_v59 = vrot.slane %v544_v56, 1 }
 0x23d   : > { %v546_v60 = vadd.f32 %v545_v59, %v544_v56  ;;  %v580_v61 = vadd.f32 %v579_v58, %v578_v54  ;;  %v844_v58 = vunpack.c.h.bf16 %v842_v48 }
 0x23f   : > { %861 = vpush %v546_v60  ;;  %v849_v60 = vld [vmem:[%s1054_s28 + $0x8] sm:$0xff]  }
 0x240   : > { %863 = vpush %v567_v62 }
 0x241   : > { %865 = vpush %v580_v61 }
 0x26c   : > { %s860_s21 = spop %859 }
 0x26d   : > { %v535_v63 = vstv %s860_s21 }
 0x26e   : > { %v549_v0 = vmul.f32 0.001953125, %v535_v63 }
 0x270   : > { %s862_s13 = spop %861  ;;  %v551_v2 = vmul.f32 %v549_v0, %v549_v0  ;;  %v555_v21 = vsub.f32 0.0, %v549_v0 }
 0x271   : > { %v548_v1 = vstv %s862_s13  ;;  %s864_s14 = spop %863 }
 0x272   : > { %v550_v3 = vmul.f32 0.001953125, %v548_v1  ;;  %v569_v4 = vstv %s864_s14  ;;  %s866_s15 = spop %865  ;;  %v847_v1 = vunpack.c.l.bf16 %v849_v60 }
 0x273   : > { %v583_v5 = vmul.f32 0.001953125, %v569_v4  ;;  %v582_v6 = vstv %s866_s15 }
 0x274   : > { %v552_v7 = vsub.f32 %v550_v3, %v551_v2  ;;  %v584_v9 = vmul.f32 0.001953125, %v582_v6 }
 0x275   : > { %v585_v8 = vmul.f32 %v583_v5, %v583_v5  ;;  %v589_v31 = vsub.f32 0.0, %v583_v5 }
 0x276   : > { %v553_v10 = vadd.f32 1e-05, %v552_v7 }
 0x277   : > { %v586_v11 = vsub.f32 %v584_v9, %v585_v8  ;;  %v848_v8 = vunpack.c.h.bf16 %v849_v60 }
 0x278   : > { %916 = vrsqrt.f32 %v553_v10 }
 0x279   : > { %v587_v12 = vadd.f32 1e-05, %v586_v11 }
 0x27b   : > { %918 = vrsqrt.f32 %v587_v12 }
 0x282   : > { %v917_v15 = vpop.eup %916 }
 0x283   : > { %v596_v16 = vmul.f32 %v917_v15, %v592_v13  ;;  %v595_v17 = vmul.f32 %v917_v15, %v591_v14  ;;  %v556_v24 = vmul.f32 %v917_v15, %v555_v21 }
 0x285   : > { %v919_v19 = vpop.eup %918  ;;  %618 = vperm.xlu1 %915, %v596_v16   ;;  %613 = vperm.xlu0 %914, %v595_v17   ;;  %v599_v29 = vmul.f32 %v591_v14, %v556_v24  ;;  %v600_v33 = vmul.f32 %v592_v13, %v556_v24 }
 0x286   : > { %v597_v22 = vmul.f32 %v919_v19, %v593_v18  ;;  %v598_v27 = vmul.f32 %v919_v19, %v594_v25  ;;  %v590_v34 = vmul.f32 %v919_v19, %v589_v31 }
 0x287   : > { %v607_v32 = vadd.f32 %v603_v30, %v599_v29  ;;  %v608_v36 = vadd.f32 %v604_v35, %v600_v33 }
 0x288   : > { %v601_v37 = vmul.f32 %v593_v18, %v590_v34  ;;  %v602_v40 = vmul.f32 %v594_v25, %v590_v34 }
 0x289   : > { %623 = vperm.xlu1 %915, %v597_v22  }
 0x28a   : > { %v609_v39 = vadd.f32 %v605_v38, %v601_v37  ;;  %v610_v42 = vadd.f32 %v606_v41, %v602_v40 }
 0x28d   : > { %628 = vperm.xlu1 %915, %v598_v27  }
 0x291   : > { %637 = vperm.xlu1 %915, %v607_v32  }
 0x295   : > { %642 = vperm.xlu1 %915, %v608_v36  }
 0x299   : > { %647 = vperm.xlu1 %915, %v609_v39  }
 0x29d   : > { %652 = vperm.xlu1 %915, %v610_v42  }
 0x304   : > { %v619_v43 = vpop.permute.xlu1 %618  ;;  %v614_v45 = vpop.permute.xlu0 %613 }
 0x305   : > { %v631_v47 = vmul.f32 %v614_v45, %v1074_v23  ;;  %v632_v52 = vmul.f32 %v619_v43, %v1078_v28 }
 0x308   : > { %v624_v44 = vpop.permute.xlu1 %623 }
 0x309   : > { %v633_v59 = vmul.f32 %v624_v44, %v1072_v20 }
 0x30c   : > { %v629_v46 = vpop.permute.xlu1 %628 }
 0x30d   : > { %v634_v2 = vmul.f32 %v629_v46, %v1076_v26 }
 0x310   : > { %v638_v49 = vpop.permute.xlu1 %637 }
 0x311   : > { %v655_v50 = vadd.f32 %v638_v49, %v631_v47 }
 0x313   : > { %vm659_vm8 = vcmp.ge.f32.partialorder %v655_v50, 0.0  ;;  %v663_v53 = vmul.f32 0.1, %v655_v50 }
 0x314   : > { %v643_v54 = vpop.permute.xlu1 %642 }
 0x315   : > { %v667_v55 = vsel %vm659_vm8, %v655_v50, %v663_v53  ;;  %v656_v56 = vadd.f32 %v643_v54, %v632_v52 }
 0x316   : > { %v679_v57 = vadd.f32 %v843_v51, %v667_v55 }
 0x317   : > { %vm660_vm10 = vcmp.ge.f32.partialorder %v656_v56, 0.0  ;;  %v664_v23 = vmul.f32 0.1, %v656_v56 }
 0x318   : > { %v837_v61 = vpack.c.bf16 %v679_v57, %v679_v57  ;;  %v648_v62 = vpop.permute.xlu1 %647 }
 0x319   : > { %v668_v63 = vsel %vm660_vm10, %v656_v56, %v664_v23  ;;  %v657_v0 = vadd.f32 %v648_v62, %v633_v59 }
 0x31a   : > { %700 = vst.msk [vmem:[%s1062_s8] sm:$0xf] %vm699_vm9, %v837_v61  ;;  %v680_v28 = vadd.f32 %v844_v58, %v668_v63 }
 0x31b   : > { %vm661_vm11 = vcmp.ge.f32.partialorder %v657_v0, 0.0  ;;  %v665_v3 = vmul.f32 0.1, %v657_v0 }
 0x31c   : > { %v838_v20 = vpack.c.bf16 %v680_v28, %v680_v28  ;;  %v653_v4 = vpop.permute.xlu1 %652 }
 0x31d   : > { %v669_v5 = vsel %vm661_vm11, %v657_v0, %v665_v3  ;;  %v658_v6 = vadd.f32 %v653_v4, %v634_v2 }
 0x31e   : > { %701 = vst.msk [vmem:[%s1062_s8 + $0x4] sm:$0xf] %vm699_vm9, %v838_v20  ;;  %v681_v7 = vadd.f32 %v847_v1, %v669_v5 }
 0x31f   : > { %vm662_vm12 = vcmp.ge.f32.partialorder %v658_v6, 0.0  ;;  %v666_v9 = vmul.f32 0.1, %v658_v6 }
 0x320   : > { %v839_v10 = vpack.c.bf16 %v681_v7, %v681_v7 }
 0x321   : > { %v670_v11 = vsel %vm662_vm12, %v658_v6, %v666_v9 }
 0x322   : > { %702 = vst.msk [vmem:[%s1062_s8 + $0x8] sm:$0xf] %vm699_vm9, %v839_v10  ;;  %v682_v12 = vadd.f32 %v848_v8, %v670_v11 }
 0x324   : > { %v840_v13 = vpack.c.bf16 %v682_v12, %v682_v12 }
 0x326   : > { %703 = vst.msk [vmem:[%s1062_s8 + $0xc] sm:$0xf] %vm699_vm9, %v840_v13 }
 0x327 PF: > { %s16_s25 = sadd.s32 1, %s958_s25   ;;  %s1170_s21 = smov %s950_s23 }
 0x328   : > { %p13_p9 = scmp.ge.s32.totalorder %s16_s25, 6   ;;  %s1171_s22 = smov %s954_s24 }
 0x329   : > { %s1172_s23 = smov %s1175_s26  ;;  %s1173_s24 = smov %s1179_s27 }
 0x32a   :  { %15 = sbr.rel (!%p13_p9) target bundleno = 3 (0x3), region = 89 }

// kernel: upsample_atten_forward.6
= control target key start
LH: loop header
LB: loop body
LE: loop exit
PB: predicated region body
PF: predicated region fallthrough
CT: control target
= control target key end

     0   :  { %s987_s21 = smov 0   ;;  %s989_s22 = smov 0   ;;  %s1152_s0 = inlined_call_operand.vmem [shape: f32[2,3,16], index: 0, kind: input, shape index: {}]   ;;  %s1153_s1 = inlined_call_operand.vmem [shape: f32[2,32,16], index: 1, kind: input, shape index: {}]   ;;  %s1154_s2 = inlined_call_operand.vmem [shape: f32[32,3], index: 2, kind: input, shape index: {}]   ;;  %s1155_s3 = inlined_call_operand.vmem [shape: f32[32,1], index: 3, kind: input, shape index: {}]   ;;  %s1156_s4 = inlined_call_operand.vmem [shape: f32[32,1], index: 4, kind: input, shape index: {}]   ;;  %s1157_s5 = inlined_call_operand.vmem [shape: f32[32,1], index: 5, kind: input, shape index: {}]   ;;  %s1158_s6 = inlined_call_operand.vmem [shape: bf16[2,32,16], index: 6, kind: output, shape index: {}]  }
   0x1   :  { %s991_s23 = smov 0   ;;  %s993_s24 = smov 0  }
   0x2   :  { %s995_s25 = smov 0  }
   0x3 LB: > { %s31_s26 = sadd.s32 1, %s937_s23  ;;  %s35_s27 = sadd.s32 1, %s941_s24  ;;  %s945_s25 = sphi %s995_s25, %s16_s25   ;;  %s941_s24 = sphi %s993_s24, %s1162_s24   ;;  %s937_s23 = sphi %s991_s23, %s1161_s23   ;;  %s933_s22 = sphi %s989_s22, %s1160_s22   ;;  %s929_s21 = sphi %s987_s21, %s1159_s21  }
   0x4   : > { %p33_p0 = scmp.ge.s32.totalorder %s31_s26, 2  ;;  %p812_p1 = scmp.ge.s32.totalorder %s945_s25, 1 }
   0x5   : > { %p258_p2 = scmp.lt.s32.totalorder %s945_s25, 5 }
   0x6   : > { %s1164_s26 = smov (%p33_p0, %s31_s26), 0  ;;  %s1166_s27 = smov (!%p33_p0, %s35_s27), %s941_s24 }
   0x7   : > { %p259_p3 = pnand %p812_p1, %p258_p2  ;;  %p37_p4 = scmp.ge.s32.totalorder %s1166_s27, 2 }
   0x8   : > { %p303_p5 = scmp.lt.s32.totalorder (!%p259_p3), %s933_s22, 1  ;;  %vm370_vm0 = vcmask (!%p259_p3), 1040384   ;;  %v332_v0 = vld [vmem:[%s1154_s2] sm:$0xff] (!%p259_p3)  ;;  %v333_v1 = vld [vmem:[%s1154_s2 + $0x8] sm:$0xff] (!%p259_p3)  ;;  %vm363_vm1 = vcmask (!%p259_p3), 23552   ;;  %v341_v3 = vld [vmem:[%s1155_s3 + $0x10] sm:$0xff] (!%p259_p3) }
   0x9   : > { %s1168_s27 = smov (%p37_p4, %s1166_s27), 0  ;;  %262 = sbr.rel (%p259_p3) target bundleno = 807 (0x327), region = 44 }
   0xa   : > { %v336_v2 = vpack.c.bf16 (!%p259_p3), %v333_v1, %v332_v0  ;;  %v947_v4 = vmov (!%p259_p3), 0   ;;  %v339_v5 = vld [vmem:[%s1155_s3] sm:$0xff] (!%p259_p3)  ;;  %vm371_vm2 = vcmask (!%p259_p3), 1041408   ;;  %v948_v6 = vmov (!%p259_p3), 65535   ;;  %v342_v8 = vld [vmem:[%s1155_s3 + $0x18] sm:$0xff] (!%p259_p3)  ;;  %v340_v9 = vld [vmem:[%s1155_s3 + $0x8] sm:$0xff] (!%p259_p3) }
   0xb   : > { %900 = vset.pattern.permute.xlu1 (!%p259_p3), %v947_v4  ;;  %899 = vset.pattern.permute.xlu0 (!%p259_p3), %v947_v4  ;;  %v372_v7 = vsel (!%p259_p3), %vm370_vm0, 4294967295, %v948_v6  ;;  %v334_v13 = vld [vmem:[%s1154_s2 + $0x10] sm:$0xff] (!%p259_p3)  ;;  %v335_v14 = vld [vmem:[%s1154_s2 + $0x18] sm:$0xff] (!%p259_p3)  ;;  %p426_p6 = scmp.eq.s32.totalorder (!%p259_p3), %s929_s21, 0 }
   0xc   : > { %842 = vmatprep.mubr.msk.bf16.mxu0 (!%p259_p3), %vm363_vm1, %v336_v2  ;;  %355 = vperm.xlu1 (!%p259_p3), %900, %v341_v3   ;;  %v373_v11 = vsel (!%p259_p3), %vm371_vm2, %v372_v7, 0  ;;  %v337_v16 = vpack.c.bf16 (!%p259_p3), %v335_v14, %v334_v13 }
   0xd   : > { %345 = vperm.xlu0 (!%p259_p3), %899, %v339_v5  }
  0x10   : > { %s1170_s22 = smov (!%p303_p5, %s933_s22), 1  ;;  %360 = vperm.xlu1 %900, %v342_v8   ;;  %vm432_vm3 = vcmask (%p426_p6), 7168   ;;  %v949_v29 = vmov (%p426_p6), 0.0  }
  0x11   : > { %s813_s12 = sshll.u32 %s1170_s22, 2  ;;  %s830_s13 = sshll.u32 %s1170_s22, 5  ;;  %350 = vperm.xlu0 %899, %v340_v9   ;;  %433 = vst.msk [vmem:[#allocation2] sm:$0xff] (%p426_p6), %vm432_vm3, %v949_v29  ;;  %434 = vst.msk [vmem:[#allocation2 + $0x8] sm:$0xff] (%p426_p6), %vm432_vm3, %v949_v29 }
  0x12   : > { %s309_s18 = scalar_lea.vmem %s1152_s0, %s813_s12  ;;  %s1041_s28 = scalar_lea.vmem %s1153_s1, %s830_s13  ;;  %435 = vst.msk [vmem:[#allocation2 + $0x10] sm:$0xff] (%p426_p6), %vm432_vm3, %v949_v29  ;;  %436 = vst.msk [vmem:[#allocation2 + $0x18] sm:$0xff] (%p426_p6), %vm432_vm3, %v949_v29 }
  0x13   : > { %s831_s7 = sshll.u32 %s1170_s22, 4  ;;  %v331_v10 = vld [vmem:[%s309_s18] sm:$0x7]  ;;  %437 = vst.msk [vmem:[#allocation3] sm:$0xff] (%p426_p6), %vm432_vm3, %v949_v29  ;;  %438 = vst.msk [vmem:[#allocation3 + $0x8] sm:$0xff] (%p426_p6), %vm432_vm3, %v949_v29 }
  0x14   : > { %s1049_s10 = scalar_lea.vmem %s1158_s6, %s831_s7  ;;  %v338_v12 = vpack.c.bf16 %v331_v10, %v331_v10  ;;  %439 = vst.msk [vmem:[#allocation3 + $0x10] sm:$0xff] (%p426_p6), %vm432_vm3, %v949_v29  ;;  %440 = vst.msk [vmem:[#allocation3 + $0x18] sm:$0xff] (%p426_p6), %vm432_vm3, %v949_v29 }
  0x16   : > { %v375_v15 = vand.u32 %v373_v11, %v338_v12 }
  0x18   : > { %840 = vmatprep.subr.bf16.mxu0 %v375_v15 }
  0x19   : > { %841 = vmatpush3.bf16.msra.mxu0 %v375_v15 }
  0x1c   : > { %843 = vmatmul.mubr.msk.bf16.vlgmr.msra.gmra.mrb[0].mxu0 %vm363_vm1, %v337_v16 }
  0x8b   : > { %v356_v17 = vpop.permute.xlu1 %355 }
  0x8c   : > { %v346_v18 = vpop.permute.xlu0 %345 }
  0x8f   : > { %v361_v22 = vpop.permute.xlu1 %360 }
  0x90   : > { %v351_v25 = vpop.permute.xlu0 %350 }
  0xed   : > { %431 = sbr.rel (!%p426_p6) target bundleno = 244 (0xf4), region = 48 }
  0xef   : > { %v844_v19 = vpop.f32.mrb[0].mxu0 }
  0xf0   : > { %v1059_v20 = vadd.f32 %v844_v19, %v356_v17  ;;  %v411_v21 = vpop.f32.mrb[1].mxu0 }
  0xf1   : > { %v1061_v23 = vadd.f32 %v411_v21, %v346_v18  ;;  %v845_v24 = vpop.f32.mrb[2].mxu0 }
  0xf2   : > { %v1063_v26 = vadd.f32 %v845_v24, %v361_v22  ;;  %v414_v27 = vpop.f32.mrb[3].mxu0 }
  0xf3   : > { %v1065_v28 = vadd.f32 %v414_v27, %v351_v25 }
  0xf4 PF: > { %p821_p7 = scmp.ne.s32.totalorder %s929_s21, 0 }
  0xf5   : > { %v444_v30 = vlaneseq (!%p821_p7)  ;;  %v950_v32 = vmov (!%p821_p7), 0.0   ;;  %vm460_vm5 = vcmask (!%p821_p7), 130048   ;;  %v458_v50 = vld [vmem:[#allocation2 + $0x10] sm:$0xff] (!%p821_p7)  ;;  %v456_v51 = vld [vmem:[#allocation2] sm:$0xff] (!%p821_p7)  ;;  %vm477_vm6 = vcmask (!%p821_p7), 7168   ;;  %v459_v56 = vld [vmem:[#allocation2 + $0x18] sm:$0xff] (!%p821_p7) }
  0xf6   : > { %443 = sbr.rel (%p821_p7) target bundleno = 411 (0x19b), region = 52  ;;  %v457_v57 = vld [vmem:[#allocation2 + $0x8] sm:$0xff] (!%p821_p7)  ;;  %v482_v63 = vld [vmem:[#allocation3] sm:$0xff] (!%p821_p7)  ;;  %v485_v4 = vld [vmem:[#allocation3 + $0x18] sm:$0xff] (!%p821_p7) }
  0xf7   : > { %v445_v31 = vand.u32 (!%p821_p7), 127, %v444_v30  ;;  %v483_v62 = vld [vmem:[#allocation3 + $0x8] sm:$0xff] (!%p821_p7)  ;;  %v484_v5 = vld [vmem:[#allocation3 + $0x10] sm:$0xff] (!%p821_p7) }
  0xf9   : > { %vm449_vm4 = vcmp.lt.s32.totalorder (!%p821_p7), %v445_v31, 16 }
  0xfa   : > { %v822_v33 = vsel (!%p821_p7), %vm449_vm4, 1.0, %v950_v32 }
  0xfb   : > { %v454_v34 = vmul.f32 (!%p821_p7), %v822_v33, %v1059_v20  ;;  %v452_v35 = vmul.f32 (!%p821_p7), %v822_v33, %v1061_v23  ;;  %v455_v36 = vmul.f32 (!%p821_p7), %v822_v33, %v1063_v26  ;;  %v453_v37 = vmul.f32 (!%p821_p7), %v822_v33, %v1065_v28 }
  0xfd   : > { %v467_v38 = vsel %vm460_vm5, %v454_v34, 0.0  ;;  %v461_v39 = vsel %vm460_vm5, %v452_v35, 0.0  ;;  %v470_v40 = vsel %vm460_vm5, %v455_v36, 0.0  ;;  %v464_v41 = vsel %vm460_vm5, %v453_v37, 0.0 }
  0xfe   : > { %468 = vadd.xlane.f32.xlu1 %v467_v38  ;;  %462 = vadd.xlane.f32.xlu0 %v461_v39  ;;  %v487_v42 = vmul.f32 %v453_v37, %v453_v37  ;;  %v486_v43 = vmul.f32 %v452_v35, %v452_v35  ;;  %v489_v46 = vmul.f32 %v455_v36, %v455_v36 }
  0xff   : > { %v488_v47 = vmul.f32 %v454_v34, %v454_v34 }
 0x100   : > { %v493_v44 = vsel %vm460_vm5, %v487_v42, 0.0  ;;  %v490_v45 = vsel %vm460_vm5, %v486_v43, 0.0  ;;  %v499_v48 = vsel %vm460_vm5, %v489_v46, 0.0 }
 0x101   : > { %v496_v49 = vsel %vm460_vm5, %v488_v47, 0.0 }
 0x102   : > { %471 = vadd.xlane.f32.xlu1 %v470_v40  ;;  %465 = vadd.xlane.f32.xlu0 %v464_v41 }
 0x106   : > { %494 = vadd.xlane.f32.xlu1 %v493_v44  ;;  %491 = vadd.xlane.f32.xlu0 %v490_v45 }
 0x10a   : > { %500 = vadd.xlane.f32.xlu1 %v499_v48  ;;  %497 = vadd.xlane.f32.xlu0 %v496_v49 }
 0x18b   : > { %v469_v52 = vpop.xlane.xlu1 %468  ;;  %v463_v53 = vpop.xlane.xlu0 %462 }
 0x18c   : > { %v475_v54 = vadd.f32 %v469_v52, %v458_v50  ;;  %v473_v55 = vadd.f32 %v463_v53, %v456_v51 }
 0x18e   : > { %480 = vst.msk [vmem:[#allocation2 + $0x10] sm:$0xff] %vm477_vm6, %v475_v54  ;;  %478 = vst.msk [vmem:[#allocation2] sm:$0xff] %vm477_vm6, %v473_v55 }
 0x18f   : > { %v472_v58 = vpop.xlane.xlu1 %471  ;;  %v466_v59 = vpop.xlane.xlu0 %465 }
 0x190   : > { %v476_v60 = vadd.f32 %v472_v58, %v459_v56  ;;  %v474_v61 = vadd.f32 %v466_v59, %v457_v57 }
 0x192   : > { %481 = vst.msk [vmem:[#allocation2 + $0x18] sm:$0xff] %vm477_vm6, %v476_v60  ;;  %479 = vst.msk [vmem:[#allocation2 + $0x8] sm:$0xff] %vm477_vm6, %v474_v61 }
 0x193   : > { %v495_v0 = vpop.xlane.xlu1 %494  ;;  %v492_v1 = vpop.xlane.xlu0 %491 }
 0x194   : > { %v503_v2 = vadd.f32 %v495_v0, %v483_v62  ;;  %v502_v3 = vadd.f32 %v492_v1, %v482_v63 }
 0x196   : > { %507 = vst.msk [vmem:[#allocation3 + $0x8] sm:$0xff] %vm477_vm6, %v503_v2  ;;  %506 = vst.msk [vmem:[#allocation3] sm:$0xff] %vm477_vm6, %v502_v3 }
 0x197   : > { %v501_v6 = vpop.xlane.xlu1 %500  ;;  %v498_v7 = vpop.xlane.xlu0 %497 }
 0x198   : > { %v505_v8 = vadd.f32 %v501_v6, %v485_v4  ;;  %v504_v9 = vadd.f32 %v498_v7, %v484_v5 }
 0x19a   : > { %509 = vst.msk [vmem:[#allocation3 + $0x18] sm:$0xff] %vm477_vm6, %v505_v8  ;;  %508 = vst.msk [vmem:[#allocation3 + $0x10] sm:$0xff] %vm477_vm6, %v504_v9 }
 0x19b PF: > { %p823_p8 = scmp.ne.s32.totalorder %s929_s21, 1 }
 0x19c   : > { %v516_v10 = vld [vmem:[#allocation2 + $0x10] sm:$0xff] (!%p823_p8)  ;;  %v517_v11 = vld [vmem:[#allocation2 + $0x18] sm:$0xff] (!%p823_p8)  ;;  %vm522_vm7 = vcmask (!%p823_p8), 7168   ;;  %v514_v12 = vld [vmem:[#allocation2] sm:$0xff] (!%p823_p8)  ;;  %v951_v34 = vmov (!%p823_p8), 0   ;;  %vm695_vm9 = vcmask (!%p823_p8), 125952  }
 0x19d   : > { %513 = sbr.rel (%p823_p8) target bundleno = 807 (0x327), region = 56  ;;  %v557_v13 = vsel (!%p823_p8), %vm522_vm7, %v516_v10, 0.0  ;;  %v558_v14 = vsel (!%p823_p8), %vm522_vm7, %v517_v11, 0.0  ;;  %v515_v15 = vld [vmem:[#allocation2 + $0x8] sm:$0xff] (!%p823_p8)  ;;  %v523_v16 = vsel (!%p823_p8), %vm522_vm7, %v514_v12, 0.0  ;;  %v518_v25 = vld [vmem:[#allocation3] sm:$0xff] (!%p823_p8)  ;;  %902 = vset.pattern.permute.xlu1 (!%p823_p8), %v951_v34  ;;  %901 = vset.pattern.permute.xlu0 (!%p823_p8), %v951_v34 }
 0x19e   : > { %v559_v19 = vadd.f32 (!%p823_p8), %v558_v14, %v557_v13  ;;  %v524_v21 = vsel (!%p823_p8), %vm522_vm7, %v515_v15, 0.0  ;;  %v519_v27 = vld [vmem:[#allocation3 + $0x8] sm:$0xff] (!%p823_p8)  ;;  %v536_v30 = vsel (!%p823_p8), %vm522_vm7, %v518_v25, 0.0  ;;  %v591_v14 = vld [vmem:[%s1156_s4] sm:$0xff] (!%p823_p8)  ;;  %v594_v25 = vld [vmem:[%s1156_s4 + $0x18] sm:$0xff] (!%p823_p8) }
 0x19f   : > { %v525_v29 = vadd.f32 (!%p823_p8), %v524_v21, %v523_v16  ;;  %v537_v31 = vsel (!%p823_p8), %vm522_vm7, %v519_v27, 0.0  ;;  %v592_v13 = vld [vmem:[%s1156_s4 + $0x8] sm:$0xff] (!%p823_p8) }
 0x1a0   : > { %560 = vadd.xlane.f32.xlu1 (!%p823_p8), %v559_v19  ;;  %v538_v33 = vadd.f32 (!%p823_p8), %v537_v31, %v536_v30  ;;  %v603_v30 = vld [vmem:[%s1157_s5] sm:$0xff] (!%p823_p8) }
 0x1a1   : > { %v520_v17 = vld [vmem:[#allocation3 + $0x10] sm:$0xff] (!%p823_p8)  ;;  %v521_v18 = vld [vmem:[#allocation3 + $0x18] sm:$0xff] (!%p823_p8)  ;;  %526 = vadd.xlane.f32.xlu0 (!%p823_p8), %v525_v29 }
 0x1a2   : > { %v570_v22 = vsel (!%p823_p8), %vm522_vm7, %v520_v17, 0.0  ;;  %v571_v24 = vsel (!%p823_p8), %vm522_vm7, %v521_v18, 0.0  ;;  %v593_v18 = vld [vmem:[%s1156_s4 + $0x10] sm:$0xff] (!%p823_p8) }
 0x1a3   : > { %v572_v32 = vadd.f32 (!%p823_p8), %v571_v24, %v570_v22 }
 0x1a5   : > { %573 = vadd.xlane.f32.xlu1 %v572_v32  ;;  %539 = vadd.xlane.f32.xlu0 %v538_v33 }
 0x22d   : > { %v561_v35 = vpop.xlane.xlu1 %560 }
 0x22e   : > { %v562_v36 = vrot.slane %v561_v35, 4  ;;  %v527_v37 = vpop.xlane.xlu0 %526 }
 0x22f   : > { %v528_v38 = vrot.slane %v527_v37, 4 }
 0x230   : > { %v563_v39 = vadd.f32 %v562_v36, %v561_v35  ;;  %v604_v35 = vld [vmem:[%s1157_s5 + $0x8] sm:$0xff] }
 0x231   : > { %v529_v40 = vadd.f32 %v528_v38, %v527_v37  ;;  %v605_v38 = vld [vmem:[%s1157_s5 + $0x10] sm:$0xff] }
 0x232   : > { %v574_v41 = vpop.xlane.xlu1 %573  ;;  %v564_v42 = vrot.slane %v563_v39, 2  ;;  %v540_v44 = vpop.xlane.xlu0 %539 }
 0x233   : > { %v575_v43 = vrot.slane %v574_v41, 4  ;;  %v530_v45 = vrot.slane %v529_v40, 2  ;;  %v541_v46 = vrot.slane %v540_v44, 4 }
 0x234   : > { %v565_v51 = vadd.f32 %v564_v42, %v563_v39 }
 0x235   : > { %v576_v47 = vadd.f32 %v575_v43, %v574_v41  ;;  %v542_v48 = vadd.f32 %v541_v46, %v540_v44  ;;  %v531_v49 = vadd.f32 %v530_v45, %v529_v40  ;;  %v606_v41 = vld [vmem:[%s1157_s5 + $0x18] sm:$0xff] }
 0x236   : > { %v566_v57 = vrot.slane %v565_v51, 1 }
 0x237   : > { %v577_v50 = vrot.slane %v576_v47, 2  ;;  %v543_v52 = vrot.slane %v542_v48, 2  ;;  %v532_v53 = vrot.slane %v531_v49, 1 }
 0x238   : > { %v567_v62 = vadd.f32 %v566_v57, %v565_v51  ;;  %v671_v51 = vld [vmem:[%s1041_s28] sm:$0xff] }
 0x239   : > { %v578_v54 = vadd.f32 %v577_v50, %v576_v47  ;;  %v533_v55 = vadd.f32 %v532_v53, %v531_v49  ;;  %v544_v56 = vadd.f32 %v543_v52, %v542_v48 }
 0x23b   : > { %v579_v58 = vrot.slane %v578_v54, 1  ;;  %846 = vpush %v533_v55  ;;  %v545_v59 = vrot.slane %v544_v56, 1 }
 0x23d   : > { %v546_v60 = vadd.f32 %v545_v59, %v544_v56  ;;  %v580_v61 = vadd.f32 %v579_v58, %v578_v54  ;;  %v672_v58 = vld [vmem:[%s1041_s28 + $0x8] sm:$0xff] }
 0x23f   : > { %848 = vpush %v546_v60 }
 0x240   : > { %850 = vpush %v567_v62 }
 0x241   : > { %852 = vpush %v580_v61 }
 0x26c   : > { %s847_s21 = spop %846 }
 0x26d   : > { %v535_v63 = vstv %s847_s21 }
 0x26e   : > { %v549_v0 = vmul.f32 0.00390625, %v535_v63 }
 0x270   : > { %s849_s22 = spop %848  ;;  %v551_v2 = vmul.f32 %v549_v0, %v549_v0  ;;  %v555_v21 = vsub.f32 0.0, %v549_v0  ;;  %v673_v0 = vld [vmem:[%s1041_s28 + $0x10] sm:$0xff] }
 0x271   : > { %v548_v1 = vstv %s849_s22  ;;  %s851_s15 = spop %850 }
 0x272   : > { %v550_v3 = vmul.f32 0.00390625, %v548_v1  ;;  %v569_v4 = vstv %s851_s15  ;;  %s853_s16 = spop %852 }
 0x273   : > { %v583_v5 = vmul.f32 0.00390625, %v569_v4  ;;  %v582_v6 = vstv %s853_s16 }
 0x274   : > { %v552_v7 = vsub.f32 %v550_v3, %v551_v2  ;;  %v584_v9 = vmul.f32 0.00390625, %v582_v6  ;;  %v674_v6 = vld [vmem:[%s1041_s28 + $0x18] sm:$0xff] }
 0x275   : > { %v585_v8 = vmul.f32 %v583_v5, %v583_v5  ;;  %v589_v31 = vsub.f32 0.0, %v583_v5 }
 0x276   : > { %v553_v10 = vadd.f32 1e-05, %v552_v7 }
 0x277   : > { %v586_v11 = vsub.f32 %v584_v9, %v585_v8 }
 0x278   : > { %903 = vrsqrt.f32 %v553_v10 }
 0x279   : > { %v587_v12 = vadd.f32 1e-05, %v586_v11 }
 0x27b   : > { %905 = vrsqrt.f32 %v587_v12 }
 0x282   : > { %v904_v15 = vpop.eup %903 }
 0x283   : > { %v596_v16 = vmul.f32 %v904_v15, %v592_v13  ;;  %v595_v17 = vmul.f32 %v904_v15, %v591_v14  ;;  %v556_v24 = vmul.f32 %v904_v15, %v555_v21 }
 0x285   : > { %v906_v19 = vpop.eup %905  ;;  %618 = vperm.xlu1 %902, %v596_v16   ;;  %613 = vperm.xlu0 %901, %v595_v17   ;;  %v599_v29 = vmul.f32 %v591_v14, %v556_v24  ;;  %v600_v33 = vmul.f32 %v592_v13, %v556_v24 }
 0x286   : > { %v597_v22 = vmul.f32 %v906_v19, %v593_v18  ;;  %v598_v27 = vmul.f32 %v906_v19, %v594_v25  ;;  %v590_v34 = vmul.f32 %v906_v19, %v589_v31 }
 0x287   : > { %v607_v32 = vadd.f32 %v603_v30, %v599_v29  ;;  %v608_v36 = vadd.f32 %v604_v35, %v600_v33 }
 0x288   : > { %v601_v37 = vmul.f32 %v593_v18, %v590_v34  ;;  %v602_v40 = vmul.f32 %v594_v25, %v590_v34 }
 0x289   : > { %623 = vperm.xlu1 %902, %v597_v22  }
 0x28a   : > { %v609_v39 = vadd.f32 %v605_v38, %v601_v37  ;;  %v610_v42 = vadd.f32 %v606_v41, %v602_v40 }
 0x28d   : > { %628 = vperm.xlu1 %902, %v598_v27  }
 0x291   : > { %637 = vperm.xlu1 %902, %v607_v32  }
 0x295   : > { %642 = vperm.xlu1 %902, %v608_v36  }
 0x299   : > { %647 = vperm.xlu1 %902, %v609_v39  }
 0x29d   : > { %652 = vperm.xlu1 %902, %v610_v42  }
 0x304   : > { %v619_v43 = vpop.permute.xlu1 %618  ;;  %v614_v45 = vpop.permute.xlu0 %613 }
 0x305   : > { %v631_v47 = vmul.f32 %v614_v45, %v1061_v23  ;;  %v632_v50 = vmul.f32 %v619_v43, %v1065_v28 }
 0x308   : > { %v624_v44 = vpop.permute.xlu1 %623 }
 0x309   : > { %v633_v57 = vmul.f32 %v624_v44, %v1059_v20 }
 0x30c   : > { %v629_v46 = vpop.permute.xlu1 %628 }
 0x30d   : > { %v634_v63 = vmul.f32 %v629_v46, %v1063_v26 }
 0x310   : > { %v638_v48 = vpop.permute.xlu1 %637 }
 0x311   : > { %v655_v49 = vadd.f32 %v638_v48, %v631_v47 }
 0x313   : > { %vm659_vm8 = vcmp.ge.f32.partialorder %v655_v49, 0.0  ;;  %v663_v52 = vmul.f32 0.1, %v655_v49 }
 0x314   : > { %v643_v53 = vpop.permute.xlu1 %642 }
 0x315   : > { %v667_v54 = vsel %vm659_vm8, %v655_v49, %v663_v52  ;;  %v656_v55 = vadd.f32 %v643_v53, %v632_v50 }
 0x316   : > { %v675_v56 = vadd.f32 %v671_v51, %v667_v54 }
 0x317   : > { %vm660_vm10 = vcmp.ge.f32.partialorder %v656_v55, 0.0  ;;  %v664_v23 = vmul.f32 0.1, %v656_v55 }
 0x318   : > { %v833_v59 = vpack.c.bf16 %v675_v56, %v675_v56  ;;  %v648_v60 = vpop.permute.xlu1 %647 }
 0x319   : > { %v668_v28 = vsel %vm660_vm10, %v656_v55, %v664_v23  ;;  %v657_v61 = vadd.f32 %v648_v60, %v633_v57 }
 0x31a   : > { %696 = vst.msk [vmem:[%s1049_s10] sm:$0xf] %vm695_vm9, %v833_v59  ;;  %v676_v62 = vadd.f32 %v672_v58, %v668_v28 }
 0x31b   : > { %vm661_vm11 = vcmp.ge.f32.partialorder %v657_v61, 0.0  ;;  %v665_v20 = vmul.f32 0.1, %v657_v61 }
 0x31c   : > { %v834_v1 = vpack.c.bf16 %v676_v62, %v676_v62  ;;  %v653_v2 = vpop.permute.xlu1 %652 }
 0x31d   : > { %v669_v3 = vsel %vm661_vm11, %v657_v61, %v665_v20  ;;  %v658_v4 = vadd.f32 %v653_v2, %v634_v63 }
 0x31e   : > { %697 = vst.msk [vmem:[%s1049_s10 + $0x4] sm:$0xf] %vm695_vm9, %v834_v1  ;;  %v677_v5 = vadd.f32 %v673_v0, %v669_v3 }
 0x31f   : > { %vm662_vm12 = vcmp.ge.f32.partialorder %v658_v4, 0.0  ;;  %v666_v7 = vmul.f32 0.1, %v658_v4 }
 0x320   : > { %v835_v8 = vpack.c.bf16 %v677_v5, %v677_v5 }
 0x321   : > { %v670_v9 = vsel %vm662_vm12, %v658_v4, %v666_v7 }
 0x322   : > { %698 = vst.msk [vmem:[%s1049_s10 + $0x8] sm:$0xf] %vm695_vm9, %v835_v8  ;;  %v678_v10 = vadd.f32 %v674_v6, %v670_v9 }
 0x324   : > { %v836_v26 = vpack.c.bf16 %v678_v10, %v678_v10 }
 0x326   : > { %699 = vst.msk [vmem:[%s1049_s10 + $0xc] sm:$0xf] %vm695_vm9, %v836_v26 }
 0x327 PF: > { %s16_s25 = sadd.s32 1, %s945_s25   ;;  %s1159_s21 = smov %s937_s23 }
 0x328   : > { %p13_p9 = scmp.ge.s32.totalorder %s16_s25, 6   ;;  %s1160_s22 = smov %s941_s24 }
 0x329   : > { %s1161_s23 = smov %s1164_s26  ;;  %s1162_s24 = smov %s1168_s27 }
 0x32a   :  { %15 = sbr.rel (!%p13_p9) target bundleno = 3 (0x3), region = 89 }

// kernel: upsample_atten_forward.9
= control target key start
LH: loop header
LB: loop body
LE: loop exit
PB: predicated region body
PF: predicated region fallthrough
CT: control target
= control target key end

     0   :  { %s884_s18 = smov 0   ;;  %s886_s19 = smov 0   ;;  %s1040_s0 = inlined_call_operand.vmem [shape: bf16[2,32,16], index: 0, kind: input, shape index: {}]   ;;  %s1041_s1 = inlined_call_operand.vmem [shape: f32[32,32], index: 1, kind: input, shape index: {}]   ;;  %s1042_s2 = inlined_call_operand.vmem [shape: f32[32,1], index: 2, kind: input, shape index: {}]   ;;  %s1043_s3 = inlined_call_operand.vmem [shape: f32[32,1], index: 3, kind: input, shape index: {}]   ;;  %s1044_s4 = inlined_call_operand.vmem [shape: f32[32,1], index: 4, kind: input, shape index: {}]   ;;  %s1045_s5 = inlined_call_operand.vmem [shape: f32[2,32,16], index: 5, kind: output, shape index: {}]  }
   0x1   :  { %s888_s20 = smov 0   ;;  %s890_s21 = smov 0  }
   0x2   :  { %s892_s22 = smov 0  }
   0x3 LB: > { %s30_s23 = sadd.s32 1, %s840_s20  ;;  %s34_s24 = sadd.s32 1, %s844_s21  ;;  %s848_s22 = sphi %s892_s22, %s15_s22   ;;  %s844_s21 = sphi %s890_s21, %s1049_s21   ;;  %s840_s20 = sphi %s888_s20, %s1048_s20   ;;  %s836_s19 = sphi %s886_s19, %s1047_s19   ;;  %s832_s18 = sphi %s884_s18, %s1046_s18  }
   0x4   : > { %p32_p0 = scmp.ge.s32.totalorder %s30_s23, 2  ;;  %p718_p1 = scmp.ge.s32.totalorder %s848_s22, 1 }
   0x5   : > { %p215_p2 = scmp.lt.s32.totalorder %s848_s22, 5 }
   0x6   : > { %s1051_s23 = smov (%p32_p0, %s30_s23), 0  ;;  %s1053_s24 = smov (!%p32_p0, %s34_s24), %s844_s21 }
   0x7   : > { %p216_p3 = pnand %p718_p1, %p215_p2  ;;  %p36_p4 = scmp.ge.s32.totalorder %s1053_s24, 2 }
   0x8   : > { %p250_p5 = scmp.lt.s32.totalorder (!%p216_p3), %s836_s19, 1  ;;  %v273_v0 = vld [vmem:[%s1041_s1] sm:$0xff] (!%p216_p3)  ;;  %v274_v1 = vld [vmem:[%s1041_s1 + $0x8] sm:$0xff] (!%p216_p3)  ;;  %vm315_vm0 = vcmask (!%p216_p3), 261120   ;;  %v850_v3 = vmov (!%p216_p3), 0   ;;  %v281_v4 = vld [vmem:[%s1042_s2 + $0x10] sm:$0xff] (!%p216_p3) }
   0x9   : > { %s1055_s24 = smov (%p36_p4, %s1053_s24), 0  ;;  %219 = sbr.rel (%p216_p3) target bundleno = 803 (0x323), region = 40 }
   0xa   : > { %v277_v2 = vpack.c.bf16 (!%p216_p3), %v274_v1, %v273_v0  ;;  %801 = vset.pattern.permute.xlu1 (!%p216_p3), %v850_v3  ;;  %800 = vset.pattern.permute.xlu0 (!%p216_p3), %v850_v3  ;;  %v279_v5 = vld [vmem:[%s1042_s2] sm:$0xff] (!%p216_p3)  ;;  %v282_v6 = vld [vmem:[%s1042_s2 + $0x18] sm:$0xff] (!%p216_p3)  ;;  %v280_v7 = vld [vmem:[%s1042_s2 + $0x8] sm:$0xff] (!%p216_p3)  ;;  %p371_p6 = scmp.eq.s32.totalorder (!%p216_p3), %s832_s18, 0 }
   0xb   : > { %295 = vperm.xlu1 (!%p216_p3), %801, %v281_v4   ;;  %285 = vperm.xlu0 (!%p216_p3), %800, %v279_v5   ;;  %v275_v10 = vld [vmem:[%s1041_s1 + $0x10] sm:$0xff] (!%p216_p3)  ;;  %v276_v11 = vld [vmem:[%s1041_s1 + $0x18] sm:$0xff] (!%p216_p3) }
   0xc   : > { %744 = vmatprep.mubr.msk.bf16.mxu0 (!%p216_p3), %vm315_vm0, %v277_v2  ;;  %v278_v12 = vpack.c.bf16 (!%p216_p3), %v276_v11, %v275_v10 }
   0xf   : > { %300 = vperm.xlu1 (!%p216_p3), %801, %v282_v6   ;;  %290 = vperm.xlu0 (!%p216_p3), %800, %v280_v7  }
  0x10   : > { %s1057_s19 = smov (!%p250_p5, %s836_s19), 1  ;;  %vm377_vm1 = vcmask (%p371_p6), 7168   ;;  %v851_v25 = vmov (%p371_p6), 0.0  }
  0x11   : > { %s733_s12 = sshll.u32 %s1057_s19, 4  ;;  %s734_s13 = sshll.u32 %s1057_s19, 5  ;;  %378 = vst.msk [vmem:[#allocation2] sm:$0xff] (%p371_p6), %vm377_vm1, %v851_v25  ;;  %379 = vst.msk [vmem:[#allocation2 + $0x8] sm:$0xff] (%p371_p6), %vm377_vm1, %v851_v25 }
  0x12   : > { %s257_s16 = scalar_lea.vmem %s1040_s0, %s733_s12  ;;  %s941_s26 = scalar_lea.vmem %s1045_s5, %s734_s13  ;;  %380 = vst.msk [vmem:[#allocation2 + $0x10] sm:$0xff] (%p371_p6), %vm377_vm1, %v851_v25  ;;  %381 = vst.msk [vmem:[#allocation2 + $0x18] sm:$0xff] (%p371_p6), %vm377_vm1, %v851_v25 }
  0x13   : > { %v802_v8 = vld [vmem:[%s257_s16] sm:$0xff]   ;;  %v803_v9 = vld [vmem:[%s257_s16 + $0x8] sm:$0xff]   ;;  %382 = vst.msk [vmem:[#allocation3] sm:$0xff] (%p371_p6), %vm377_vm1, %v851_v25  ;;  %383 = vst.msk [vmem:[#allocation3 + $0x8] sm:$0xff] (%p371_p6), %vm377_vm1, %v851_v25 }
  0x14   : > { %740 = vmatprep.subr.bf16.mxu0 %v802_v8  ;;  %384 = vst.msk [vmem:[#allocation3 + $0x10] sm:$0xff] (%p371_p6), %vm377_vm1, %v851_v25  ;;  %385 = vst.msk [vmem:[#allocation3 + $0x18] sm:$0xff] (%p371_p6), %vm377_vm1, %v851_v25 }
  0x15   : > { %741 = vmatpush3.bf16.msra.mxu0 %v802_v8 }
  0x16   : > { %742 = vmatprep.subr.bf16.mxu0 %v803_v9 }
  0x19   : > { %743 = vmatpush3.bf16.msra.mxu0 %v803_v9 }
  0x1c   : > { %745 = vmatmul.mubr.msk.bf16.vlgmr.msra.gmra.mrb[0].mxu0 %vm315_vm0, %v278_v12 }
  0x8a   : > { %v296_v13 = vpop.permute.xlu1 %295  ;;  %v286_v14 = vpop.permute.xlu0 %285 }
  0x8e   : > { %v301_v18 = vpop.permute.xlu1 %300  ;;  %v291_v21 = vpop.permute.xlu0 %290 }
  0xed   : > { %376 = sbr.rel (!%p371_p6) target bundleno = 244 (0xf4), region = 44 }
  0xef   : > { %v746_v15 = vpop.f32.mrb[0].mxu0 }
  0xf0   : > { %v951_v16 = vadd.f32 %v746_v15, %v296_v13  ;;  %v356_v17 = vpop.f32.mrb[1].mxu0 }
  0xf1   : > { %v953_v19 = vadd.f32 %v356_v17, %v286_v14  ;;  %v747_v20 = vpop.f32.mrb[2].mxu0 }
  0xf2   : > { %v955_v22 = vadd.f32 %v747_v20, %v301_v18  ;;  %v359_v23 = vpop.f32.mrb[3].mxu0 }
  0xf3   : > { %v957_v24 = vadd.f32 %v359_v23, %v291_v21 }
  0xf4 PF: > { %p728_p7 = scmp.ne.s32.totalorder %s832_s18, 0 }
  0xf5   : > { %v389_v26 = vlaneseq (!%p728_p7)  ;;  %v852_v28 = vmov (!%p728_p7), 0.0   ;;  %vm405_vm3 = vcmask (!%p728_p7), 130048   ;;  %v403_v46 = vld [vmem:[#allocation2 + $0x10] sm:$0xff] (!%p728_p7)  ;;  %v401_v47 = vld [vmem:[#allocation2] sm:$0xff] (!%p728_p7)  ;;  %vm422_vm4 = vcmask (!%p728_p7), 7168   ;;  %v404_v52 = vld [vmem:[#allocation2 + $0x18] sm:$0xff] (!%p728_p7) }
  0xf6   : > { %388 = sbr.rel (%p728_p7) target bundleno = 411 (0x19b), region = 48  ;;  %v402_v53 = vld [vmem:[#allocation2 + $0x8] sm:$0xff] (!%p728_p7)  ;;  %v427_v59 = vld [vmem:[#allocation3] sm:$0xff] (!%p728_p7)  ;;  %v430_v0 = vld [vmem:[#allocation3 + $0x18] sm:$0xff] (!%p728_p7) }
  0xf7   : > { %v390_v27 = vand.u32 (!%p728_p7), 127, %v389_v26  ;;  %v428_v58 = vld [vmem:[#allocation3 + $0x8] sm:$0xff] (!%p728_p7)  ;;  %v429_v1 = vld [vmem:[#allocation3 + $0x10] sm:$0xff] (!%p728_p7) }
  0xf9   : > { %vm394_vm2 = vcmp.lt.s32.totalorder (!%p728_p7), %v390_v27, 16 }
  0xfa   : > { %v729_v29 = vsel (!%p728_p7), %vm394_vm2, 1.0, %v852_v28 }
  0xfb   : > { %v399_v30 = vmul.f32 (!%p728_p7), %v729_v29, %v951_v16  ;;  %v397_v31 = vmul.f32 (!%p728_p7), %v729_v29, %v953_v19  ;;  %v400_v32 = vmul.f32 (!%p728_p7), %v729_v29, %v955_v22  ;;  %v398_v33 = vmul.f32 (!%p728_p7), %v729_v29, %v957_v24 }
  0xfd   : > { %v412_v34 = vsel %vm405_vm3, %v399_v30, 0.0  ;;  %v406_v35 = vsel %vm405_vm3, %v397_v31, 0.0  ;;  %v415_v36 = vsel %vm405_vm3, %v400_v32, 0.0  ;;  %v409_v37 = vsel %vm405_vm3, %v398_v33, 0.0 }
  0xfe   : > { %413 = vadd.xlane.f32.xlu1 %v412_v34  ;;  %407 = vadd.xlane.f32.xlu0 %v406_v35  ;;  %v432_v38 = vmul.f32 %v398_v33, %v398_v33  ;;  %v431_v39 = vmul.f32 %v397_v31, %v397_v31  ;;  %v434_v42 = vmul.f32 %v400_v32, %v400_v32 }
  0xff   : > { %v433_v43 = vmul.f32 %v399_v30, %v399_v30 }
 0x100   : > { %v438_v40 = vsel %vm405_vm3, %v432_v38, 0.0  ;;  %v435_v41 = vsel %vm405_vm3, %v431_v39, 0.0  ;;  %v444_v44 = vsel %vm405_vm3, %v434_v42, 0.0 }
 0x101   : > { %v441_v45 = vsel %vm405_vm3, %v433_v43, 0.0 }
 0x102   : > { %416 = vadd.xlane.f32.xlu1 %v415_v36  ;;  %410 = vadd.xlane.f32.xlu0 %v409_v37 }
 0x106   : > { %439 = vadd.xlane.f32.xlu1 %v438_v40  ;;  %436 = vadd.xlane.f32.xlu0 %v435_v41 }
 0x10a   : > { %445 = vadd.xlane.f32.xlu1 %v444_v44  ;;  %442 = vadd.xlane.f32.xlu0 %v441_v45 }
 0x18b   : > { %v414_v48 = vpop.xlane.xlu1 %413  ;;  %v408_v49 = vpop.xlane.xlu0 %407 }
 0x18c   : > { %v420_v50 = vadd.f32 %v414_v48, %v403_v46  ;;  %v418_v51 = vadd.f32 %v408_v49, %v401_v47 }
 0x18e   : > { %425 = vst.msk [vmem:[#allocation2 + $0x10] sm:$0xff] %vm422_vm4, %v420_v50  ;;  %423 = vst.msk [vmem:[#allocation2] sm:$0xff] %vm422_vm4, %v418_v51 }
 0x18f   : > { %v417_v54 = vpop.xlane.xlu1 %416  ;;  %v411_v55 = vpop.xlane.xlu0 %410 }
 0x190   : > { %v421_v56 = vadd.f32 %v417_v54, %v404_v52  ;;  %v419_v57 = vadd.f32 %v411_v55, %v402_v53 }
 0x192   : > { %426 = vst.msk [vmem:[#allocation2 + $0x18] sm:$0xff] %vm422_vm4, %v421_v56  ;;  %424 = vst.msk [vmem:[#allocation2 + $0x8] sm:$0xff] %vm422_vm4, %v419_v57 }
 0x193   : > { %v440_v60 = vpop.xlane.xlu1 %439  ;;  %v437_v61 = vpop.xlane.xlu0 %436 }
 0x194   : > { %v448_v62 = vadd.f32 %v440_v60, %v428_v58  ;;  %v447_v63 = vadd.f32 %v437_v61, %v427_v59 }
 0x196   : > { %452 = vst.msk [vmem:[#allocation3 + $0x8] sm:$0xff] %vm422_vm4, %v448_v62  ;;  %451 = vst.msk [vmem:[#allocation3] sm:$0xff] %vm422_vm4, %v447_v63 }
 0x197   : > { %v446_v2 = vpop.xlane.xlu1 %445  ;;  %v443_v3 = vpop.xlane.xlu0 %442 }
 0x198   : > { %v450_v4 = vadd.f32 %v446_v2, %v430_v0  ;;  %v449_v5 = vadd.f32 %v443_v3, %v429_v1 }
 0x19a   : > { %454 = vst.msk [vmem:[#allocation3 + $0x18] sm:$0xff] %vm422_vm4, %v450_v4  ;;  %453 = vst.msk [vmem:[#allocation3 + $0x10] sm:$0xff] %vm422_vm4, %v449_v5 }
 0x19b PF: > { %p730_p8 = scmp.ne.s32.totalorder %s832_s18, 1 }
 0x19c   : > { %v461_v6 = vld [vmem:[#allocation2 + $0x10] sm:$0xff] (!%p730_p8)  ;;  %v462_v7 = vld [vmem:[#allocation2 + $0x18] sm:$0xff] (!%p730_p8)  ;;  %vm467_vm5 = vcmask (!%p730_p8), 7168   ;;  %v459_v8 = vld [vmem:[#allocation2] sm:$0xff] (!%p730_p8)  ;;  %v853_v30 = vmov (!%p730_p8), 0   ;;  %vm616_vm6 = vcmask (!%p730_p8), 130048  }
 0x19d   : > { %458 = sbr.rel (%p730_p8) target bundleno = 803 (0x323), region = 52  ;;  %v502_v9 = vsel (!%p730_p8), %vm467_vm5, %v461_v6, 0.0  ;;  %v503_v10 = vsel (!%p730_p8), %vm467_vm5, %v462_v7, 0.0  ;;  %v460_v11 = vld [vmem:[#allocation2 + $0x8] sm:$0xff] (!%p730_p8)  ;;  %v468_v12 = vsel (!%p730_p8), %vm467_vm5, %v459_v8, 0.0  ;;  %v463_v21 = vld [vmem:[#allocation3] sm:$0xff] (!%p730_p8)  ;;  %805 = vset.pattern.permute.xlu1 (!%p730_p8), %v853_v30  ;;  %804 = vset.pattern.permute.xlu0 (!%p730_p8), %v853_v30 }
 0x19e   : > { %v504_v15 = vadd.f32 (!%p730_p8), %v503_v10, %v502_v9  ;;  %v469_v17 = vsel (!%p730_p8), %vm467_vm5, %v460_v11, 0.0  ;;  %v464_v23 = vld [vmem:[#allocation3 + $0x8] sm:$0xff] (!%p730_p8)  ;;  %v481_v26 = vsel (!%p730_p8), %vm467_vm5, %v463_v21, 0.0  ;;  %v536_v10 = vld [vmem:[%s1043_s3] sm:$0xff] (!%p730_p8)  ;;  %v539_v21 = vld [vmem:[%s1043_s3 + $0x18] sm:$0xff] (!%p730_p8) }
 0x19f   : > { %v470_v25 = vadd.f32 (!%p730_p8), %v469_v17, %v468_v12  ;;  %v482_v27 = vsel (!%p730_p8), %vm467_vm5, %v464_v23, 0.0  ;;  %v537_v9 = vld [vmem:[%s1043_s3 + $0x8] sm:$0xff] (!%p730_p8) }
 0x1a0   : > { %505 = vadd.xlane.f32.xlu1 (!%p730_p8), %v504_v15  ;;  %v483_v29 = vadd.f32 (!%p730_p8), %v482_v27, %v481_v26  ;;  %v548_v26 = vld [vmem:[%s1044_s4] sm:$0xff] (!%p730_p8) }
 0x1a1   : > { %v465_v13 = vld [vmem:[#allocation3 + $0x10] sm:$0xff] (!%p730_p8)  ;;  %v466_v14 = vld [vmem:[#allocation3 + $0x18] sm:$0xff] (!%p730_p8)  ;;  %471 = vadd.xlane.f32.xlu0 (!%p730_p8), %v470_v25 }
 0x1a2   : > { %v515_v18 = vsel (!%p730_p8), %vm467_vm5, %v465_v13, 0.0  ;;  %v516_v20 = vsel (!%p730_p8), %vm467_vm5, %v466_v14, 0.0  ;;  %v538_v14 = vld [vmem:[%s1043_s3 + $0x10] sm:$0xff] (!%p730_p8) }
 0x1a3   : > { %v517_v28 = vadd.f32 (!%p730_p8), %v516_v20, %v515_v18 }
 0x1a5   : > { %518 = vadd.xlane.f32.xlu1 %v517_v28  ;;  %484 = vadd.xlane.f32.xlu0 %v483_v29 }
 0x22d   : > { %v506_v31 = vpop.xlane.xlu1 %505 }
 0x22e   : > { %v507_v32 = vrot.slane %v506_v31, 4  ;;  %v472_v33 = vpop.xlane.xlu0 %471 }
 0x22f   : > { %v473_v34 = vrot.slane %v472_v33, 4 }
 0x230   : > { %v508_v35 = vadd.f32 %v507_v32, %v506_v31  ;;  %v549_v31 = vld [vmem:[%s1044_s4 + $0x8] sm:$0xff] }
 0x231   : > { %v474_v36 = vadd.f32 %v473_v34, %v472_v33  ;;  %v550_v34 = vld [vmem:[%s1044_s4 + $0x10] sm:$0xff] }
 0x232   : > { %v519_v37 = vpop.xlane.xlu1 %518  ;;  %v509_v38 = vrot.slane %v508_v35, 2  ;;  %v485_v40 = vpop.xlane.xlu0 %484 }
 0x233   : > { %v520_v39 = vrot.slane %v519_v37, 4  ;;  %v475_v41 = vrot.slane %v474_v36, 2  ;;  %v486_v42 = vrot.slane %v485_v40, 4 }
 0x234   : > { %v510_v47 = vadd.f32 %v509_v38, %v508_v35 }
 0x235   : > { %v521_v43 = vadd.f32 %v520_v39, %v519_v37  ;;  %v487_v44 = vadd.f32 %v486_v42, %v485_v40  ;;  %v476_v45 = vadd.f32 %v475_v41, %v474_v36  ;;  %v551_v37 = vld [vmem:[%s1044_s4 + $0x18] sm:$0xff] }
 0x236   : > { %v511_v53 = vrot.slane %v510_v47, 1 }
 0x237   : > { %v522_v46 = vrot.slane %v521_v43, 2  ;;  %v488_v48 = vrot.slane %v487_v44, 2  ;;  %v477_v49 = vrot.slane %v476_v45, 1 }
 0x238   : > { %v512_v58 = vadd.f32 %v511_v53, %v510_v47 }
 0x239   : > { %v523_v50 = vadd.f32 %v522_v46, %v521_v43  ;;  %v478_v51 = vadd.f32 %v477_v49, %v476_v45  ;;  %v489_v52 = vadd.f32 %v488_v48, %v487_v44 }
 0x23b   : > { %v524_v54 = vrot.slane %v523_v50, 1  ;;  %748 = vpush %v478_v51  ;;  %v490_v55 = vrot.slane %v489_v52, 1 }
 0x23d   : > { %v491_v56 = vadd.f32 %v490_v55, %v489_v52  ;;  %v525_v57 = vadd.f32 %v524_v54, %v523_v50 }
 0x23f   : > { %750 = vpush %v491_v56 }
 0x240   : > { %752 = vpush %v512_v58 }
 0x241   : > { %754 = vpush %v525_v57 }
 0x26c   : > { %s749_s18 = spop %748 }
 0x26d   : > { %v480_v59 = vstv %s749_s18 }
 0x26e   : > { %v494_v60 = vmul.f32 0.00390625, %v480_v59 }
 0x270   : > { %s751_s30 = spop %750  ;;  %v496_v62 = vmul.f32 %v494_v60, %v494_v60  ;;  %v500_v17 = vsub.f32 0.0, %v494_v60 }
 0x271   : > { %v493_v61 = vstv %s751_s30  ;;  %s753_s6 = spop %752 }
 0x272   : > { %v495_v63 = vmul.f32 0.00390625, %v493_v61  ;;  %v514_v0 = vstv %s753_s6  ;;  %s755_s7 = spop %754 }
 0x273   : > { %v528_v1 = vmul.f32 0.00390625, %v514_v0  ;;  %v527_v2 = vstv %s755_s7 }
 0x274   : > { %v497_v3 = vsub.f32 %v495_v63, %v496_v62  ;;  %v529_v5 = vmul.f32 0.00390625, %v527_v2 }
 0x275   : > { %v530_v4 = vmul.f32 %v528_v1, %v528_v1  ;;  %v534_v27 = vsub.f32 0.0, %v528_v1 }
 0x276   : > { %v498_v6 = vadd.f32 1e-05, %v497_v3 }
 0x277   : > { %v531_v7 = vsub.f32 %v529_v5, %v530_v4 }
 0x278   : > { %806 = vrsqrt.f32 %v498_v6 }
 0x279   : > { %v532_v8 = vadd.f32 1e-05, %v531_v7 }
 0x27b   : > { %808 = vrsqrt.f32 %v532_v8 }
 0x282   : > { %v807_v11 = vpop.eup %806 }
 0x283   : > { %v541_v12 = vmul.f32 %v807_v11, %v537_v9  ;;  %v540_v13 = vmul.f32 %v807_v11, %v536_v10  ;;  %v501_v20 = vmul.f32 %v807_v11, %v500_v17 }
 0x285   : > { %v809_v15 = vpop.eup %808  ;;  %563 = vperm.xlu1 %805, %v541_v12   ;;  %558 = vperm.xlu0 %804, %v540_v13   ;;  %v544_v25 = vmul.f32 %v536_v10, %v501_v20  ;;  %v545_v29 = vmul.f32 %v537_v9, %v501_v20 }
 0x286   : > { %v542_v18 = vmul.f32 %v809_v15, %v538_v14  ;;  %v543_v23 = vmul.f32 %v809_v15, %v539_v21  ;;  %v535_v30 = vmul.f32 %v809_v15, %v534_v27 }
 0x287   : > { %v552_v28 = vadd.f32 %v548_v26, %v544_v25  ;;  %v553_v32 = vadd.f32 %v549_v31, %v545_v29 }
 0x288   : > { %v546_v33 = vmul.f32 %v538_v14, %v535_v30  ;;  %v547_v36 = vmul.f32 %v539_v21, %v535_v30 }
 0x289   : > { %568 = vperm.xlu1 %805, %v542_v18  }
 0x28a   : > { %v554_v35 = vadd.f32 %v550_v34, %v546_v33  ;;  %v555_v38 = vadd.f32 %v551_v37, %v547_v36 }
 0x28d   : > { %573 = vperm.xlu1 %805, %v543_v23  }
 0x291   : > { %582 = vperm.xlu1 %805, %v552_v28  }
 0x295   : > { %587 = vperm.xlu1 %805, %v553_v32  }
 0x299   : > { %592 = vperm.xlu1 %805, %v554_v35  }
 0x29d   : > { %597 = vperm.xlu1 %805, %v555_v38  }
 0x304   : > { %v564_v39 = vpop.permute.xlu1 %563  ;;  %v559_v41 = vpop.permute.xlu0 %558 }
 0x305   : > { %v576_v43 = vmul.f32 %v559_v41, %v953_v19  ;;  %v577_v46 = vmul.f32 %v564_v39, %v957_v24 }
 0x308   : > { %v569_v40 = vpop.permute.xlu1 %568 }
 0x309   : > { %v578_v51 = vmul.f32 %v569_v40, %v951_v16 }
 0x30c   : > { %v574_v42 = vpop.permute.xlu1 %573 }
 0x30d   : > { %v579_v24 = vmul.f32 %v574_v42, %v955_v22 }
 0x310   : > { %v583_v44 = vpop.permute.xlu1 %582 }
 0x311   : > { %v600_v45 = vadd.f32 %v583_v44, %v576_v43 }
 0x313   : > { %vm604_vm7 = vcmp.ge.f32.partialorder %v600_v45, 0.0  ;;  %v608_v47 = vmul.f32 0.1, %v600_v45 }
 0x314   : > { %v588_v48 = vpop.permute.xlu1 %587 }
 0x315   : > { %v612_v49 = vsel %vm604_vm7, %v600_v45, %v608_v47  ;;  %v601_v50 = vadd.f32 %v588_v48, %v577_v46 }
 0x316   : > { %617 = vst.msk [vmem:[%s941_s26] sm:$0xff] %vm616_vm6, %v612_v49 }
 0x317   : > { %vm605_vm8 = vcmp.ge.f32.partialorder %v601_v50, 0.0  ;;  %v609_v52 = vmul.f32 0.1, %v601_v50 }
 0x318   : > { %v593_v19 = vpop.permute.xlu1 %592 }
 0x319   : > { %v613_v53 = vsel %vm605_vm8, %v601_v50, %v609_v52  ;;  %v602_v54 = vadd.f32 %v593_v19, %v578_v51 }
 0x31a   : > { %618 = vst.msk [vmem:[%s941_s26 + $0x8] sm:$0xff] %vm616_vm6, %v613_v53 }
 0x31b   : > { %vm606_vm9 = vcmp.ge.f32.partialorder %v602_v54, 0.0  ;;  %v610_v55 = vmul.f32 0.1, %v602_v54 }
 0x31c   : > { %v598_v56 = vpop.permute.xlu1 %597 }
 0x31d   : > { %v614_v57 = vsel %vm606_vm9, %v602_v54, %v610_v55  ;;  %v603_v58 = vadd.f32 %v598_v56, %v579_v24 }
 0x31e   : > { %619 = vst.msk [vmem:[%s941_s26 + $0x10] sm:$0xff] %vm616_vm6, %v614_v57 }
 0x31f   : > { %vm607_vm10 = vcmp.ge.f32.partialorder %v603_v58, 0.0  ;;  %v611_v59 = vmul.f32 0.1, %v603_v58 }
 0x321   : > { %v615_v16 = vsel %vm607_vm10, %v603_v58, %v611_v59 }
 0x322   : > { %620 = vst.msk [vmem:[%s941_s26 + $0x18] sm:$0xff] %vm616_vm6, %v615_v16 }
 0x323 PF: > { %s15_s22 = sadd.s32 1, %s848_s22   ;;  %s1046_s18 = smov %s840_s20 }
 0x324   : > { %p12_p9 = scmp.ge.s32.totalorder %s15_s22, 6   ;;  %s1047_s19 = smov %s844_s21 }
 0x325   : > { %s1048_s20 = smov %s1051_s23  ;;  %s1049_s21 = smov %s1055_s24 }
 0x326   :  { %14 = sbr.rel (!%p12_p9) target bundleno = 3 (0x3), region = 82 }

// kernel: upsample_atten_forward.8
= control target key start
LH: loop header
LB: loop body
LE: loop exit
PB: predicated region body
PF: predicated region fallthrough
CT: control target
= control target key end

     0   :  { %s3641_s21 = smov 0   ;;  %s3643_s22 = smov 0   ;;  %s4547_s0 = inlined_call_operand.vmem [shape: f32[2,8,3,16], index: 0, kind: input, shape index: {}]   ;;  %s4548_s1 = inlined_call_operand.vmem [shape: bf16[2,32,16], index: 1, kind: input, shape index: {}]   ;;  %s4549_s2 = inlined_call_operand.vmem [shape: bf16[2,8,32,16], index: 2, kind: input, shape index: {}]   ;;  %s4550_s3 = inlined_call_operand.vmem [shape: f32[128,3], index: 3, kind: input, shape index: {}]   ;;  %s4551_s4 = inlined_call_operand.vmem [shape: f32[128,1], index: 4, kind: input, shape index: {}]   ;;  %s4552_s5 = inlined_call_operand.vmem [shape: f32[64,64], index: 5, kind: input, shape index: {}]   ;;  %s4553_s6 = inlined_call_operand.vmem [shape: bf16[2,32,16], index: 6, kind: output, shape index: {}]  }
   0x1   :  { %s3645_s23 = smov 0  }
   0x2 LB: > { %s28_s24 = sadd.s32 1, %s3598_s22  ;;  %p2898_p0 = scmp.ge.s32.totalorder %s3602_s23, 1  ;;  %s3602_s23 = sphi %s3645_s23, %s16_s23   ;;  %s3598_s22 = sphi %s3643_s22, %s4620_s22   ;;  %s3594_s21 = sphi %s3641_s21, %s4619_s21  }
   0x3   : > { %p30_p1 = scmp.ge.s32.totalorder %s28_s24, 2  ;;  %p261_p2 = scmp.lt.s32.totalorder %s3602_s23, 3 }
   0x5   : > { %s4622_s24 = smov (%p30_p1, %s28_s24), 0  ;;  %p262_p3 = pnand %p2898_p0, %p261_p2 }
   0x7   : > { %265 = sbr.rel (%p262_p3) target bundleno = 2426 (0x97a), region = 44 }
   0xe   : > { %p313_p4 = scmp.lt.s32.totalorder %s3594_s21, 1  ;;  %vm521_vm0 = vcmask 1040384   ;;  %v354_v0 = vld [vmem:[%s4550_s3] sm:$0xff]  ;;  %v355_v1 = vld [vmem:[%s4550_s3 + $0x8] sm:$0xff]  ;;  %vm496_vm1 = vcmask 23552   ;;  %v3604_v3 = vmov 0  }
   0xf   : > { %v3665_v2 = vpack.c.bf16 %v355_v1, %v354_v0  ;;  %3574 = vset.pattern.permute.xlu0 %v3604_v3  ;;  %3575 = vset.pattern.permute.xlu1 %v3604_v3  ;;  %vm522_vm2 = vcmask 1041408   ;;  %v3605_v4 = vmov 65535   ;;  %v378_v6 = vld [vmem:[%s4551_s4] sm:$0xff]  ;;  %v380_v9 = vld [vmem:[%s4551_s4 + $0x10] sm:$0xff]  ;;  %v379_v10 = vld [vmem:[%s4551_s4 + $0x8] sm:$0xff]  ;;  %vm685_vm3 = vcmask 523264  }
  0x10   : > { %s4624_s21 = smov (!%p313_p4, %s3594_s21), 1  ;;  %v523_v5 = vsel %vm521_vm0, 4294967295, %v3605_v4  ;;  %418 = vperm.xlu0 %3574, %v378_v6   ;;  %428 = vperm.xlu1 %3575, %v380_v9   ;;  %v356_v12 = vld [vmem:[%s4550_s3 + $0x10] sm:$0xff]  ;;  %v357_v13 = vld [vmem:[%s4550_s3 + $0x18] sm:$0xff]  ;;  %v358_v16 = vld [vmem:[%s4550_s3 + $0x20] sm:$0xff] }
  0x11   : > { %3278 = vmatprep.mubr.msk.bf16.mxu0 %vm496_vm1, %v3665_v2  ;;  %s3044_s29 = sshll.u32 %s4624_s21, 5  ;;  %v3683_v8 = vsel %vm522_vm2, %v523_v5, 0  ;;  %v381_v14 = vld [vmem:[%s4551_s4 + $0x18] sm:$0xff]  ;;  %v359_v17 = vld [vmem:[%s4550_s3 + $0x28] sm:$0xff]  ;;  %v386_v18 = vld [vmem:[%s4551_s4 + $0x40] sm:$0xff]  ;;  %v3710_v19 = vpack.c.bf16 %v357_v13, %v356_v12  ;;  %s3045_s16 = sshll.u32 %s4624_s21, 4 }
  0x12   : > { %s3676_s8 = scalar_lea.vmem %s4547_s0, %s3044_s29  ;;  %v3712_v20 = vpack.c.bf16 %v359_v17, %v358_v16  ;;  %v387_v21 = vld [vmem:[%s4551_s4 + $0x48] sm:$0xff]  ;;  %v388_v22 = vld [vmem:[%s4551_s4 + $0x50] sm:$0xff]  ;;  %v361_v24 = vld [vmem:[%s4550_s3 + $0x38] sm:$0xff]  ;;  %s328_s19 = scalar_lea.vmem %s4548_s1, %s3045_s16 }
  0x13   : > { %v406_v7 = vld [vmem:[%s3676_s8] sm:$0x7]  ;;  %v360_v23 = vld [vmem:[%s4550_s3 + $0x30] sm:$0xff]  ;;  %v389_v25 = vld [vmem:[%s4551_s4 + $0x58] sm:$0xff]  ;;  %s3046_s20 = sshll.u32 %s4624_s21, 7 }
  0x14   : > { %v407_v11 = vpack.c.bf16 %v406_v7, %v406_v7  ;;  %423 = vperm.xlu0 %3574, %v379_v10   ;;  %433 = vperm.xlu1 %3575, %v381_v14   ;;  %v362_v26 = vld [vmem:[%s4550_s3 + $0x40] sm:$0xff]  ;;  %v363_v27 = vld [vmem:[%s4550_s3 + $0x48] sm:$0xff]  ;;  %v3742_v29 = vpack.c.bf16 %v361_v24, %v360_v23  ;;  %v384_v32 = vld [vmem:[%s4551_s4 + $0x30] sm:$0xff]  ;;  %s3848_s27 = scalar_lea.vmem %s4549_s2, %s3046_s20 }
  0x15   : > { %v382_v28 = vld [vmem:[%s4551_s4 + $0x20] sm:$0xff]  ;;  %v3744_v30 = vpack.c.bf16 %v363_v27, %v362_v26  ;;  %v383_v31 = vld [vmem:[%s4551_s4 + $0x28] sm:$0xff]  ;;  %v364_v33 = vld [vmem:[%s4550_s3 + $0x50] sm:$0xff] }
  0x16   : > { %v526_v15 = vand.u32 %v3683_v8, %v407_v11  ;;  %v365_v34 = vld [vmem:[%s4550_s3 + $0x58] sm:$0xff]  ;;  %v366_v36 = vld [vmem:[%s4550_s3 + $0x60] sm:$0xff]  ;;  %v367_v37 = vld [vmem:[%s4550_s3 + $0x68] sm:$0xff] }
  0x17   : > { %v385_v35 = vld [vmem:[%s4551_s4 + $0x38] sm:$0xff]  ;;  %v390_v38 = vld [vmem:[%s4551_s4 + $0x60] sm:$0xff]  ;;  %v3774_v39 = vpack.c.bf16 %v365_v34, %v364_v33  ;;  %v3776_v40 = vpack.c.bf16 %v367_v37, %v366_v36  ;;  %v391_v41 = vld [vmem:[%s4551_s4 + $0x68] sm:$0xff] }
  0x18   : > { %3276 = vmatprep.subr.bf16.mxu0 %v526_v15  ;;  %458 = vperm.xlu0 %3574, %v386_v18   ;;  %v392_v42 = vld [vmem:[%s4551_s4 + $0x70] sm:$0xff]  ;;  %v369_v44 = vld [vmem:[%s4550_s3 + $0x78] sm:$0xff]  ;;  %v394_v47 = vld [vmem:[%s4552_s5] sm:$0xff] }
  0x19   : > { %3277 = vmatpush3.bf16.msra.mxu0 %v526_v15  ;;  %463 = vperm.xlu1 %3575, %v387_v21   ;;  %v368_v43 = vld [vmem:[%s4550_s3 + $0x70] sm:$0xff]  ;;  %v393_v45 = vld [vmem:[%s4551_s4 + $0x78] sm:$0xff]  ;;  %v395_v48 = vld [vmem:[%s4552_s5 + $0x8] sm:$0xff] }
  0x1a   : > { %v3797_v46 = vpack.c.bf16 %v369_v44, %v368_v43  ;;  %v3807_v49 = vpack.c.bf16 %v395_v48, %v394_v47  ;;  %v3053_v58 = vld [vmem:[%s328_s19] sm:$0xff]   ;;  %v3124_v59 = vld [vmem:[%s328_s19 + $0x8] sm:$0xff]   ;;  %s344_s19 = scalar_lea.vmem %s4553_s6, %s3045_s16 }
  0x1b   : > { %v3837_v63 = vunpack.c.l.bf16 %v3053_v58  ;;  %v3842_v4 = vunpack.c.l.bf16 %v3124_v59  ;;  %v3850_v9 = vunpack.c.h.bf16 %v3124_v59  ;;  %v3855_v13 = vunpack.c.h.bf16 %v3053_v58  ;;  %v3858_v21 = vld [vmem:[%s3848_s27] sm:$0xff]  }
  0x1c   : > { %3279 = vmatmul.mubr.msk.bf16.vlgmr.msra.gmra.mrb[0].mxu0 %vm496_vm1, %v3710_v19  ;;  %468 = vperm.xlu0 %3574, %v388_v22   ;;  %v3861_v22 = vld [vmem:[%s3848_s27 + $0x8] sm:$0xff]  }
  0x1d   : > { %3282 = vmatprep.mubr.msk.bf16.mxu0 %vm496_vm1, %v3712_v20  ;;  %473 = vperm.xlu1 %3575, %v389_v25   ;;  %v3067_v58 = vunpack.c.h.bf16 %v3861_v22 }
  0x1e   : > { %3302 = vmatprep.mubr.msk.bf16.mxu1 %vm685_vm3, %v3807_v49 }
  0x20   : > { %438 = vperm.xlu0 %3574, %v382_v28  }
  0x21   : > { %443 = vperm.xlu1 %3575, %v383_v31  }
  0x24   : > { %3283 = vmatmul.mubr.msk.bf16.gmra.mrb[4].mxu0 %vm496_vm1, %v3742_v29  ;;  %448 = vperm.xlu0 %3574, %v384_v32  }
  0x25   : > { %3286 = vmatprep.mubr.msk.bf16.mxu0 %vm496_vm1, %v3744_v30  ;;  %453 = vperm.xlu1 %3575, %v385_v35  }
  0x28   : > { %478 = vperm.xlu0 %3574, %v390_v38   ;;  %v3062_v38 = vunpack.c.l.bf16 %v3858_v21 }
  0x29   : > { %483 = vperm.xlu1 %3575, %v391_v41   ;;  %v3066_v41 = vunpack.c.l.bf16 %v3861_v22 }
  0x2c   : > { %3287 = vmatmul.mubr.msk.bf16.gmra.mrb[8].mxu0 %vm496_vm1, %v3774_v39  ;;  %488 = vperm.xlu0 %3574, %v392_v42  }
  0x2d   : > { %3290 = vmatprep.mubr.msk.bf16.mxu0 %vm496_vm1, %v3776_v40  ;;  %493 = vperm.xlu1 %3575, %v393_v45  }
  0x34   : > { %3291 = vmatmul.mubr.msk.bf16.gmra.mrb[12].mxu0 %vm496_vm1, %v3797_v46 }
  0x35   : > { %3336 = vmatprep.mubr.msk.bf16.mxu0 %vm685_vm3, %v3807_v49 }
  0x8f   : > { %v3813_v50 = vpop.permute.xlu0 %418  ;;  %v3815_v51 = vpop.permute.xlu1 %428 }
  0x93   : > { %v3817_v52 = vpop.permute.xlu0 %423  ;;  %v3819_v53 = vpop.permute.xlu1 %433 }
  0x97   : > { %v3821_v54 = vpop.permute.xlu0 %458 }
  0x98   : > { %4558 = vst [vmem:[#allocation2_spill] sm:$0xff] %v3821_v54  ;;  %v3823_v55 = vpop.permute.xlu1 %463 }
  0x9b   : > { %v3831_v56 = vpop.permute.xlu0 %468 }
  0x9c   : > { %v3833_v57 = vpop.permute.xlu1 %473 }
  0x9d   : > { %4559 = vst [vmem:[#allocation3_spill] sm:$0xff] %v3833_v57 }
  0x9f   : > { %v3839_v0 = vpop.permute.xlu0 %438 }
  0xa0   : > { %v3852_v10 = vpop.permute.xlu1 %443 }
  0xa3   : > { %v3863_v23 = vpop.permute.xlu0 %448 }
  0xa4   : > { %v3870_v34 = vpop.permute.xlu1 %453 }
  0xef   : > { %v3280_v60 = vpop.f32.mrb[0].mxu0 }
  0xf0   : > { %v571_v61 = vadd.f32 %v3280_v60, %v3815_v51  ;;  %v562_v62 = vpop.f32.mrb[1].mxu0  ;;  %v3063_v60 = vunpack.c.h.bf16 %v3858_v21 }
  0xf1   : > { %v563_v1 = vadd.f32 %v562_v62, %v3813_v50  ;;  %v3281_v3 = vpop.f32.mrb[2].mxu0 }
  0xf2   : > { %vm627_vm4 = vcmp.ge.f32.partialorder %v571_v61, 0.0  ;;  %v643_v5 = vmul.f32 0.1, %v571_v61  ;;  %v574_v6 = vadd.f32 %v3281_v3, %v3819_v53  ;;  %v565_v7 = vpop.f32.mrb[3].mxu0 }
  0xf3   : > { %vm625_vm5 = vcmp.ge.f32.partialorder %v563_v1, 0.0  ;;  %v641_v11 = vmul.f32 0.1, %v563_v1  ;;  %v566_v12 = vadd.f32 %v565_v7, %v3817_v52 }
  0xf4   : > { %v659_v14 = vsel %vm627_vm4, %v571_v61, %v643_v5  ;;  %vm628_vm6 = vcmp.ge.f32.partialorder %v574_v6, 0.0  ;;  %v644_v15 = vmul.f32 0.1, %v574_v6  ;;  %vm775_vm4 = vcmask 130048  }
  0xf5   : > { %vm626_vm7 = vcmp.ge.f32.partialorder %v566_v12, 0.0  ;;  %v642_v16 = vmul.f32 0.1, %v566_v12  ;;  %v657_v17 = vsel %vm625_vm5, %v563_v1, %v641_v11  ;;  %v675_v26 = vmul.f32 %v3842_v4, %v659_v14 }
  0xf6   : > { %v660_v18 = vsel %vm628_vm6, %v574_v6, %v644_v15  ;;  %v673_v32 = vmul.f32 %v3837_v63, %v657_v17 }
  0xf7   : > { %v3284_v24 = vpop.f32.mrb[4].mxu0  ;;  %v658_v25 = vsel %vm626_vm7, %v566_v12, %v642_v16  ;;  %v676_v27 = vmul.f32 %v3850_v9, %v660_v18 }
  0xf8   : > { %v587_v28 = vadd.f32 %v3284_v24, %v3863_v23  ;;  %v578_v31 = vpop.f32.mrb[5].mxu0  ;;  %v674_v33 = vmul.f32 %v3855_v13, %v658_v25 }
  0xf9   : > { %v579_v35 = vadd.f32 %v578_v31, %v3839_v0  ;;  %v3285_v36 = vpop.f32.mrb[6].mxu0  ;;  %v682_v37 = vpack.c.bf16 %v676_v27, %v675_v26 }
  0xfa   : > { %vm631_vm8 = vcmp.ge.f32.partialorder %v587_v28, 0.0  ;;  %v647_v42 = vmul.f32 0.1, %v587_v28  ;;  %v590_v43 = vadd.f32 %v3285_v36, %v3870_v34  ;;  %v581_v44 = vpop.f32.mrb[7].mxu0  ;;  %v681_v45 = vpack.c.bf16 %v674_v33, %v673_v32 }
  0xfb   : > { %vm629_vm9 = vcmp.ge.f32.partialorder %v579_v35, 0.0  ;;  %v645_v47 = vmul.f32 0.1, %v579_v35  ;;  %v582_v48 = vadd.f32 %v581_v44, %v3852_v10 }
  0xfc   : > { %vm632_vm10 = vcmp.ge.f32.partialorder %v590_v43, 0.0  ;;  %v648_v59 = vmul.f32 0.1, %v590_v43  ;;  %3294 = vmatprep.subr.bf16.mxu1 %v681_v45  ;;  %v663_v61 = vsel %vm631_vm8, %v587_v28, %v647_v42 }
  0xfd   : > { %vm630_vm11 = vcmp.ge.f32.partialorder %v582_v48, 0.0  ;;  %v646_v62 = vmul.f32 0.1, %v582_v48  ;;  %3295 = vmatpush3.bf16.msra.mxu1 %v681_v45  ;;  %v3879_v1 = vmul.f32 %v3066_v41, %v663_v61  ;;  %v661_v3 = vsel %vm629_vm9, %v579_v35, %v645_v47 }
  0xfe   : > { %3296 = vmatprep.subr.bf16.mxu1 %v682_v37  ;;  %v3881_v5 = vmul.f32 %v3062_v38, %v661_v3  ;;  %v664_v6 = vsel %vm632_vm10, %v590_v43, %v648_v59  ;;  %v2919_v43 = vld [vmem:[%s3676_s8 + $0x4] sm:$0x7] }
  0xff   : > { %v3288_v7 = vpop.f32.mrb[8].mxu0  ;;  %v3883_v11 = vmul.f32 %v3067_v58, %v664_v6  ;;  %v662_v12 = vsel %vm630_vm11, %v582_v48, %v646_v62  ;;  %v791_v3 = vpack.c.bf16 %v2919_v43, %v2919_v43  ;;  %v396_v6 = vld [vmem:[%s4552_s5 + $0x10] sm:$0xff] }
 0x100   : > { %v603_v14 = vadd.f32 %v3288_v7, %v3831_v56  ;;  %v594_v15 = vpop.f32.mrb[9].mxu0  ;;  %v3886_v16 = vmul.f32 %v3063_v60, %v662_v12 }
 0x101   : > { %v595_v17 = vadd.f32 %v594_v15, %v3821_v54  ;;  %v3289_v18 = vpop.f32.mrb[10].mxu0  ;;  %3297 = vmatpush3.bf16.msra.mxu1 %v682_v37  ;;  %v401_v15 = vld [vmem:[%s4552_s5 + $0x38] sm:$0xff] }
 0x102   : > { %vm635_vm12 = vcmp.ge.f32.partialorder %v603_v14, 0.0  ;;  %v651_v21 = vmul.f32 0.1, %v603_v14  ;;  %v606_v22 = vadd.f32 %v3289_v18, %v3833_v57  ;;  %v597_v24 = vpop.f32.mrb[11].mxu0  ;;  %v3941_v18 = vpop.permute.xlu0 %478 }
 0x103   : > { %vm633_vm13 = vcmp.ge.f32.partialorder %v595_v17, 0.0  ;;  %v649_v25 = vmul.f32 0.1, %v595_v17  ;;  %v598_v26 = vadd.f32 %v597_v24, %v3823_v55 }
 0x104   : > { %v667_v27 = vsel %vm635_vm12, %v603_v14, %v651_v21  ;;  %vm636_vm14 = vcmp.ge.f32.partialorder %v606_v22, 0.0  ;;  %v652_v28 = vmul.f32 0.1, %v606_v22  ;;  %v400_v14 = vld [vmem:[%s4552_s5 + $0x30] sm:$0xff]  ;;  %v3943_v21 = vpop.permute.xlu1 %483 }
 0x105   : > { %v665_v31 = vsel %vm633_vm13, %v595_v17, %v649_v25  ;;  %vm634_vm15 = vcmp.ge.f32.partialorder %v598_v26, 0.0  ;;  %v650_v32 = vmul.f32 0.1, %v598_v26  ;;  %v679_v37 = vmul.f32 %v3066_v41, %v667_v27  ;;  %v397_v41 = vld [vmem:[%s4552_s5 + $0x18] sm:$0xff] }
 0x106   : > { %v668_v33 = vsel %vm636_vm14, %v606_v22, %v652_v28  ;;  %v677_v45 = vmul.f32 %v3062_v38, %v665_v31  ;;  %v398_v38 = vld [vmem:[%s4552_s5 + $0x20] sm:$0xff]  ;;  %v3905_v7 = vpack.c.bf16 %v397_v41, %v396_v6  ;;  %v3919_v17 = vpack.c.bf16 %v401_v15, %v400_v14  ;;  %v3945_v22 = vpop.permute.xlu0 %488 }
 0x107   : > { %v666_v35 = vsel %vm634_vm15, %v598_v26, %v650_v32  ;;  %v3292_v36 = vpop.f32.mrb[12].mxu0  ;;  %v680_v42 = vmul.f32 %v3067_v58, %v668_v33  ;;  %v399_v58 = vld [vmem:[%s4552_s5 + $0x28] sm:$0xff] }
 0x108   : > { %v610_v44 = vpop.f32.mrb[13].mxu0  ;;  %v678_v47 = vmul.f32 %v3063_v60, %v666_v35  ;;  %v802_v60 = vand.u32 %v791_v3, %v3683_v8  ;;  %v3907_v12 = vpack.c.bf16 %v399_v58, %v398_v38  ;;  %v619_v24 = vadd.f32 %v3292_v36, %v3945_v22  ;;  %v3948_v26 = vpop.permute.xlu1 %493 }
 0x109   : > { %v3293_v48 = vpop.f32.mrb[14].mxu0  ;;  %v684_v59 = vpack.c.bf16 %v680_v42, %v679_v37  ;;  %v611_v27 = vadd.f32 %v610_v44, %v3941_v18 }
 0x10a   : > { %v613_v61 = vpop.f32.mrb[15].mxu0  ;;  %v683_v62 = vpack.c.bf16 %v678_v47, %v677_v45  ;;  %v622_v32 = vadd.f32 %v3293_v48, %v3948_v26  ;;  %v655_v36 = vmul.f32 0.1, %v619_v24  ;;  %vm639_vm5 = vcmp.ge.f32.partialorder %v619_v24, 0.0 }
 0x10b   : > { %v614_v37 = vadd.f32 %v613_v61, %v3943_v21  ;;  %v653_v47 = vmul.f32 0.1, %v611_v27  ;;  %vm637_vm6 = vcmp.ge.f32.partialorder %v611_v27, 0.0 }
 0x10c   : > { %3298 = vmatprep.subr.bf16.mxu1 %v683_v62  ;;  %v656_v44 = vmul.f32 0.1, %v622_v32  ;;  %vm640_vm7 = vcmp.ge.f32.partialorder %v622_v32, 0.0 }
 0x10d   : > { %3299 = vmatpush3.bf16.msra.mxu1 %v683_v62  ;;  %v654_v48 = vmul.f32 0.1, %v614_v37  ;;  %v671_v62 = vsel %vm639_vm5, %v619_v24, %v655_v36  ;;  %vm638_vm8 = vcmp.ge.f32.partialorder %v614_v37, 0.0 }
 0x10e   : > { %3300 = vmatprep.subr.bf16.mxu1 %v684_v59 }
 0x111   : > { %3301 = vmatpush3.bf16.msra.mxu1 %v684_v59 }
 0x112   : > { %3310 = vmatprep.subr.bf16.mxu1 %v802_v60 }
 0x114   : > { %3303 = vmatmul.mubr.msk.bf16.vlgmr.msra.gmra.mrb[0].mxu1 %vm685_vm3, %v3905_v7 }
 0x115   : > { %3306 = vmatprep.mubr.msk.bf16.mxu1 %vm685_vm3, %v3907_v12  ;;  %3311 = vmatpush3.bf16.msra.mxu1 %v802_v60  ;;  %v672_v60 = vsel %vm640_vm7, %v622_v32, %v656_v44 }
 0x11c   : > { %3307 = vmatmul.mubr.msk.bf16.gmra.mrb[4].mxu1 %vm685_vm3, %v3919_v17 }
 0x11d   : > { %3312 = vmatprep.mubr.msk.bf16.mxu1 %vm496_vm1, %v3665_v2 }
 0x124   : > { %3313 = vmatmul.mubr.msk.bf16.vlgmr.msra.gmra.mrb[8].mxu1 %vm496_vm1, %v3710_v19 }
 0x125   : > { %3316 = vmatprep.mubr.msk.bf16.mxu1 %vm496_vm1, %v3712_v20 }
 0x12c   : > { %3317 = vmatmul.mubr.msk.bf16.gmra.mrb[12].mxu1 %vm496_vm1, %v3742_v29 }
 0x12d   : > { %3320 = vmatprep.mubr.msk.bf16.mxu1 %vm496_vm1, %v3744_v30 }
 0x134   : > { %3321 = vmatmul.mubr.msk.bf16.gmra.mrb[16].mxu1 %vm496_vm1, %v3774_v39 }
 0x135   : > { %3324 = vmatprep.mubr.msk.bf16.mxu1 %vm496_vm1, %v3776_v40 }
 0x13c   : > { %3325 = vmatmul.mubr.msk.bf16.gmra.mrb[20].mxu1 %vm496_vm1, %v3797_v46 }
 0x13d   : > { %3370 = vmatprep.mubr.msk.bf16.mxu1 %vm685_vm3, %v3807_v49 }
 0x1e7   : > { %v3304_v25 = vpop.f32.mrb[0].mxu1 }
 0x1e8   : > { %v773_v28 = vmul.f32 %v3304_v25, %v3879_v1  ;;  %v732_v31 = vpop.f32.mrb[1].mxu1 }
 0x1e9   : > { %v771_v33 = vmul.f32 %v3881_v5, %v732_v31  ;;  %v3305_v35 = vpop.f32.mrb[2].mxu1  ;;  %v670_v31 = vsel %vm638_vm8, %v614_v37, %v654_v48 }
 0x1ea   : > { %v774_v42 = vmul.f32 %v3305_v35, %v3883_v11  ;;  %v735_v43 = vpop.f32.mrb[3].mxu1  ;;  %v779_v61 = vsel %vm775_vm4, %v773_v28, 0.0 }
 0x1eb   : > { %v772_v45 = vmul.f32 %v3886_v16, %v735_v43  ;;  %v776_v1 = vsel %vm775_vm4, %v771_v33, 0.0  ;;  %v669_v16 = vsel %vm637_vm6, %v611_v27, %v653_v47 }
 0x1ec   : > { %v781_v38 = vsel %vm775_vm4, %v774_v42, 0.0 }
 0x1ed   : > { %v777_v59 = vsel %vm775_vm4, %v772_v45, 0.0 }
 0x1ee   : > { %v778_v5 = vadd.f32 %v777_v59, %v776_v1 }
 0x1ef   : > { %v3308_v3 = vpop.f32.mrb[4].mxu1 }
 0x1f0   : > { %v780_v11 = vadd.f32 %v779_v61, %v778_v5  ;;  %v3960_v6 = vmul.f32 %v3308_v3, %v671_v62  ;;  %v748_v41 = vpop.f32.mrb[5].mxu1  ;;  %v3976_v61 = vld [vmem:[%s3848_s27 + $0x10] sm:$0xff]   ;;  %v3979_v62 = vld [vmem:[%s3848_s27 + $0x18] sm:$0xff]  }
 0x1f1   : > { %v3963_v58 = vmul.f32 %v748_v41, %v669_v16  ;;  %v3309_v14 = vpop.f32.mrb[6].mxu1 }
 0x1f2   : > { %4560 = vst [vmem:[#allocation4_spill] sm:$0xff] %v3960_v6  ;;  %v3965_v15 = vadd.f32 %v781_v38, %v780_v11  ;;  %v3967_v25 = vmul.f32 %v3309_v14, %v672_v60  ;;  %v751_v28 = vpop.f32.mrb[7].mxu1 }
 0x1f3   : > { %4561 = vst [vmem:[#allocation5_spill] sm:$0xff] %v3963_v58  ;;  %v3969_v24 = vmul.f32 %v751_v28, %v670_v31 }
 0x1f4   : > { %4562 = vst [vmem:[#allocation6_spill] sm:$0xff] %v3967_v25 }
 0x1f5   : > { %4563 = vst [vmem:[#allocation7_spill] sm:$0xff] %v3969_v24 }
 0x1f7   : > { %v3314_v33 = vpop.f32.mrb[8].mxu1 }
 0x1f8   : > { %v847_v35 = vadd.f32 %v3314_v33, %v3815_v51  ;;  %v838_v43 = vpop.f32.mrb[9].mxu1 }
 0x1f9   : > { %v839_v27 = vadd.f32 %v838_v43, %v3813_v50  ;;  %v3315_v42 = vpop.f32.mrb[10].mxu1  ;;  %v3070_v43 = vunpack.c.l.bf16 %v3976_v61 }
 0x1fa   : > { %vm903_vm9 = vcmp.ge.f32.partialorder %v847_v35, 0.0  ;;  %v919_v32 = vmul.f32 0.1, %v847_v35  ;;  %v850_v36 = vadd.f32 %v3315_v42, %v3819_v53  ;;  %v841_v45 = vpop.f32.mrb[11].mxu1 }
 0x1fb   : > { %vm901_vm10 = vcmp.ge.f32.partialorder %v839_v27, 0.0  ;;  %v917_v47 = vmul.f32 0.1, %v839_v27  ;;  %v842_v37 = vadd.f32 %v841_v45, %v3817_v52 }
 0x1fc   : > { %v935_v44 = vsel %vm903_vm9, %v847_v35, %v919_v32  ;;  %vm904_vm11 = vcmp.ge.f32.partialorder %v850_v36, 0.0  ;;  %v920_v1 = vmul.f32 0.1, %v850_v36 }
 0x1fd   : > { %v933_v59 = vsel %vm901_vm10, %v839_v27, %v917_v47  ;;  %vm902_vm12 = vcmp.ge.f32.partialorder %v842_v37, 0.0  ;;  %v918_v48 = vmul.f32 0.1, %v842_v37  ;;  %v951_v16 = vmul.f32 %v3842_v4, %v935_v44 }
 0x1fe   : > { %v936_v5 = vsel %vm904_vm11, %v850_v36, %v920_v1  ;;  %v949_v14 = vmul.f32 %v3837_v63, %v933_v59  ;;  %v3074_v27 = vunpack.c.l.bf16 %v3979_v62  ;;  %v3075_v44 = vunpack.c.h.bf16 %v3979_v62 }
 0x1ff   : > { %v934_v3 = vsel %vm902_vm12, %v842_v37, %v918_v48  ;;  %v3318_v11 = vpop.f32.mrb[12].mxu1  ;;  %v952_v41 = vmul.f32 %v3850_v9, %v936_v5  ;;  %v3071_v59 = vunpack.c.h.bf16 %v3976_v61 }
 0x200   : > { %v863_v38 = vadd.f32 %v3318_v11, %v3863_v23  ;;  %v854_v60 = vpop.f32.mrb[13].mxu1  ;;  %v950_v31 = vmul.f32 %v3855_v13, %v934_v3 }
 0x201   : > { %v855_v28 = vadd.f32 %v854_v60, %v3839_v0  ;;  %v3319_v33 = vpop.f32.mrb[14].mxu1  ;;  %v958_v35 = vpack.c.bf16 %v952_v41, %v951_v16 }
 0x202   : > { %vm907_vm13 = vcmp.ge.f32.partialorder %v863_v38, 0.0  ;;  %v923_v42 = vmul.f32 0.1, %v863_v38  ;;  %v866_v32 = vadd.f32 %v3319_v33, %v3870_v34  ;;  %v857_v36 = vpop.f32.mrb[15].mxu1  ;;  %v957_v45 = vpack.c.bf16 %v950_v31, %v949_v14 }
 0x203   : > { %vm905_vm14 = vcmp.ge.f32.partialorder %v855_v28, 0.0  ;;  %v921_v47 = vmul.f32 0.1, %v855_v28  ;;  %v858_v37 = vadd.f32 %v857_v36, %v3852_v10 }
 0x204   : > { %vm908_vm15 = vcmp.ge.f32.partialorder %v866_v32, 0.0  ;;  %v924_v1 = vmul.f32 0.1, %v866_v32  ;;  %3328 = vmatprep.subr.bf16.mxu0 %v957_v45  ;;  %v939_v48 = vsel %vm907_vm13, %v863_v38, %v923_v42 }
 0x205   : > { %vm906_vm5 = vcmp.ge.f32.partialorder %v858_v37, 0.0  ;;  %v922_v5 = vmul.f32 0.1, %v858_v37  ;;  %3329 = vmatpush3.bf16.msra.mxu0 %v957_v45  ;;  %v3993_v3 = vmul.f32 %v3074_v27, %v939_v48  ;;  %v937_v11 = vsel %vm905_vm14, %v855_v28, %v921_v47 }
 0x206   : > { %3330 = vmatprep.subr.bf16.mxu0 %v958_v35  ;;  %v3995_v16 = vmul.f32 %v3070_v43, %v937_v11  ;;  %v940_v41 = vsel %vm908_vm15, %v866_v32, %v924_v1 }
 0x207   : > { %v3322_v60 = vpop.f32.mrb[16].mxu1  ;;  %v3997_v14 = vmul.f32 %v3075_v44, %v940_v41  ;;  %v938_v62 = vsel %vm906_vm5, %v858_v37, %v922_v5 }
 0x208   : > { %v879_v31 = vadd.f32 %v3322_v60, %v3831_v56  ;;  %v870_v33 = vpop.f32.mrb[17].mxu1  ;;  %v4000_v36 = vmul.f32 %v3071_v59, %v938_v62 }
 0x209   : > { %v871_v61 = vadd.f32 %v870_v33, %v3821_v54  ;;  %v3323_v38 = vpop.f32.mrb[18].mxu1  ;;  %3331 = vmatpush3.bf16.msra.mxu0 %v958_v35  ;;  %v2936_v33 = vld [vmem:[%s3676_s8 + $0x8] sm:$0x7] }
 0x20a   : > { %vm911_vm6 = vcmp.ge.f32.partialorder %v879_v31, 0.0  ;;  %v927_v42 = vmul.f32 0.1, %v879_v31  ;;  %v882_v28 = vadd.f32 %v3323_v38, %v3833_v57  ;;  %v873_v45 = vpop.f32.mrb[19].mxu1 }
 0x20b   : > { %vm909_vm7 = vcmp.ge.f32.partialorder %v871_v61, 0.0  ;;  %v925_v32 = vmul.f32 0.1, %v871_v61  ;;  %v874_v47 = vadd.f32 %v873_v45, %v3823_v55  ;;  %v1053_v45 = vpack.c.bf16 %v2936_v33, %v2936_v33 }
 0x20c   : > { %v943_v37 = vsel %vm911_vm6, %v879_v31, %v927_v42  ;;  %vm912_vm8 = vcmp.ge.f32.partialorder %v882_v28, 0.0  ;;  %v928_v1 = vmul.f32 0.1, %v882_v28 }
 0x20d   : > { %v941_v48 = vsel %vm909_vm7, %v871_v61, %v925_v32  ;;  %vm910_vm9 = vcmp.ge.f32.partialorder %v874_v47, 0.0  ;;  %v926_v5 = vmul.f32 0.1, %v874_v47  ;;  %v955_v35 = vmul.f32 %v3074_v27, %v943_v37 }
 0x20e   : > { %v944_v11 = vsel %vm912_vm8, %v882_v28, %v928_v1  ;;  %v953_v38 = vmul.f32 %v3070_v43, %v941_v48  ;;  %v1064_v31 = vand.u32 %v1053_v45, %v3683_v8 }
 0x20f   : > { %v942_v41 = vsel %vm910_vm9, %v874_v47, %v926_v5  ;;  %v3326_v60 = vpop.f32.mrb[20].mxu1  ;;  %v956_v62 = vmul.f32 %v3075_v44, %v944_v11 }
 0x210   : > { %v886_v24 = vpop.f32.mrb[21].mxu1  ;;  %v954_v25 = vmul.f32 %v3071_v59, %v942_v41 }
 0x211   : > { %v3327_v58 = vpop.f32.mrb[22].mxu1  ;;  %v960_v6 = vpack.c.bf16 %v956_v62, %v955_v35  ;;  %v887_v43 = vadd.f32 %v886_v24, %v3941_v18 }
 0x212   : > { %v889_v57 = vpop.f32.mrb[23].mxu1  ;;  %v959_v54 = vpack.c.bf16 %v954_v25, %v953_v38  ;;  %v783_v25 = vrot.slane %v3965_v15, 4  ;;  %v898_v59 = vadd.f32 %v3327_v58, %v3948_v26 }
 0x213   : > { %v890_v28 = vadd.f32 %v889_v57, %v3943_v21  ;;  %v929_v5 = vmul.f32 0.1, %v887_v43  ;;  %vm913_vm11 = vcmp.ge.f32.partialorder %v887_v43, 0.0 }
 0x214   : > { %3332 = vmatprep.subr.bf16.mxu0 %v959_v54  ;;  %v784_v48 = vadd.f32 %v783_v25, %v3965_v15  ;;  %v932_v24 = vmul.f32 0.1, %v898_v59  ;;  %vm916_vm12 = vcmp.ge.f32.partialorder %v898_v59, 0.0 }
 0x215   : > { %3333 = vmatpush3.bf16.msra.mxu0 %v959_v54  ;;  %v895_v54 = vadd.f32 %v3326_v60, %v3945_v22  ;;  %vm914_vm13 = vcmp.ge.f32.partialorder %v890_v28, 0.0  ;;  %v945_v15 = vsel %vm913_vm11, %v887_v43, %v929_v5 }
 0x216   : > { %3334 = vmatprep.subr.bf16.mxu0 %v960_v6  ;;  %v785_v62 = vrot.slane %v784_v48, 2  ;;  %v948_v45 = vsel %vm916_vm12, %v898_v59, %v932_v24 }
 0x217   : > { %v931_v37 = vmul.f32 0.1, %v895_v54  ;;  %vm915_vm10 = vcmp.ge.f32.partialorder %v895_v54, 0.0 }
 0x219   : > { %3335 = vmatpush3.bf16.msra.mxu0 %v960_v6 }
 0x21a   : > { %3344 = vmatprep.subr.bf16.mxu0 %v1064_v31 }
 0x21c   : > { %3337 = vmatmul.mubr.msk.bf16.vlgmr.msra.gmra.mrb[16].mxu0 %vm685_vm3, %v3905_v7 }
 0x21d   : > { %3340 = vmatprep.mubr.msk.bf16.mxu0 %vm685_vm3, %v3907_v12  ;;  %3345 = vmatpush3.bf16.msra.mxu0 %v1064_v31 }
 0x224   : > { %3341 = vmatmul.mubr.msk.bf16.gmra.mrb[20].mxu0 %vm685_vm3, %v3919_v17 }
 0x225   : > { %3346 = vmatprep.mubr.msk.bf16.mxu0 %vm496_vm1, %v3665_v2 }
 0x22c   : > { %3347 = vmatmul.mubr.msk.bf16.vlgmr.msra.gmra.mrb[24].mxu0 %vm496_vm1, %v3710_v19 }
 0x22d   : > { %3350 = vmatprep.mubr.msk.bf16.mxu0 %vm496_vm1, %v3712_v20 }
 0x234   : > { %3351 = vmatmul.mubr.msk.bf16.gmra.mrb[28].mxu0 %vm496_vm1, %v3742_v29 }
 0x235   : > { %3354 = vmatprep.mubr.msk.bf16.mxu0 %vm496_vm1, %v3744_v30 }
 0x23c   : > { %3355 = vmatmul.mubr.msk.bf16.gmra.mrb[32].mxu0 %vm496_vm1, %v3774_v39 }
 0x23d   : > { %3358 = vmatprep.mubr.msk.bf16.mxu0 %vm496_vm1, %v3776_v40 }
 0x244   : > { %3359 = vmatmul.mubr.msk.bf16.gmra.mrb[36].mxu0 %vm496_vm1, %v3797_v46 }
 0x245   : > { %3404 = vmatprep.mubr.msk.bf16.mxu0 %vm685_vm3, %v3807_v49 }
 0x2ef   : > { %v3338_v6 = vpop.f32.mrb[16].mxu0 }
 0x2f0   : > { %v1036_v27 = vmul.f32 %v3338_v6, %v3993_v3  ;;  %v995_v44 = vpop.f32.mrb[17].mxu0 }
 0x2f1   : > { %v1034_v61 = vmul.f32 %v3995_v16, %v995_v44  ;;  %v3339_v42 = vpop.f32.mrb[18].mxu0  ;;  %v930_v16 = vmul.f32 0.1, %v890_v28 }
 0x2f2   : > { %v1037_v32 = vmul.f32 %v3339_v42, %v3997_v14  ;;  %v998_v47 = vpop.f32.mrb[19].mxu0  ;;  %v1041_v57 = vsel %vm775_vm4, %v1036_v27, 0.0  ;;  %v947_v14 = vsel %vm915_vm10, %v895_v54, %v931_v37  ;;  %v786_v42 = vadd.f32 %v785_v62, %v784_v48 }
 0x2f3   : > { %v1035_v1 = vmul.f32 %v4000_v36, %v998_v47  ;;  %v1038_v3 = vsel %vm775_vm4, %v1034_v61, 0.0  ;;  %v946_v44 = vsel %vm914_vm13, %v890_v28, %v930_v16 }
 0x2f4   : > { %v1043_v33 = vsel %vm775_vm4, %v1037_v32, 0.0  ;;  %v787_v32 = vrot.slane %v786_v42, 1 }
 0x2f5   : > { %v1039_v58 = vsel %vm775_vm4, %v1035_v1, 0.0 }
 0x2f6   : > { %v1040_v11 = vadd.f32 %v1039_v58, %v1038_v3 }
 0x2f7   : > { %v3342_v41 = vpop.f32.mrb[20].mxu0 }
 0x2f8   : > { %v1042_v60 = vadd.f32 %v1041_v57, %v1040_v11  ;;  %v4044_v36 = vmul.f32 %v3342_v41, %v947_v14  ;;  %v1011_v35 = vpop.f32.mrb[21].mxu0 }
 0x2f9   : > { %v4047_v38 = vmul.f32 %v1011_v35, %v945_v15  ;;  %v3343_v31 = vpop.f32.mrb[22].mxu0  ;;  %v788_v35 = vadd.f32 %v787_v32, %v786_v42 }
 0x2fa   : > { %4564 = vst [vmem:[#allocation8_spill] sm:$0xff] %v4044_v36  ;;  %v1044_v6 = vadd.f32 %v1043_v33, %v1042_v60  ;;  %v4049_v25 = vmul.f32 %v3343_v31, %v948_v45  ;;  %v1014_v27 = vpop.f32.mrb[23].mxu0  ;;  %v4058_v45 = vld [vmem:[%s3848_s27 + $0x20] sm:$0xff]   ;;  %v4061_v31 = vld [vmem:[%s3848_s27 + $0x28] sm:$0xff]  }
 0x2fb   : > { %4565 = vst [vmem:[#allocation9_spill] sm:$0xff] %v4047_v38  ;;  %v4051_v54 = vmul.f32 %v1014_v27, %v946_v44 }
 0x2fc   : > { %4566 = vst [vmem:[#allocation10_spill] sm:$0xff] %v4049_v25  ;;  %v1045_v61 = vrot.slane %v1044_v6, 4 }
 0x2fd   : > { %4567 = vst [vmem:[#allocation11_spill] sm:$0xff] %v4051_v54 }
 0x2fe   : > { %v1046_v47 = vadd.f32 %v1045_v61, %v1044_v6 }
 0x2ff   : > { %v3348_v37 = vpop.f32.mrb[24].mxu0 }
 0x300   : > { %v1047_v43 = vrot.slane %v1046_v47, 2  ;;  %v1109_v1 = vadd.f32 %v3348_v37, %v3815_v51  ;;  %v1100_v5 = vpop.f32.mrb[25].mxu0 }
 0x301   : > { %v1101_v3 = vadd.f32 %v1100_v5, %v3813_v50  ;;  %v3349_v59 = vpop.f32.mrb[26].mxu0 }
 0x302   : > { %v1048_v24 = vadd.f32 %v1047_v43, %v1046_v47  ;;  %vm1165_vm14 = vcmp.ge.f32.partialorder %v1109_v1, 0.0  ;;  %v1181_v58 = vmul.f32 0.1, %v1109_v1  ;;  %v1112_v28 = vadd.f32 %v3349_v59, %v3819_v53  ;;  %v1103_v16 = vpop.f32.mrb[27].mxu0 }
 0x303   : > { %vm1163_vm15 = vcmp.ge.f32.partialorder %v1101_v3, 0.0  ;;  %v1179_v48 = vmul.f32 0.1, %v1101_v3  ;;  %v1104_v11 = vadd.f32 %v1103_v16, %v3817_v52  ;;  %v3078_v59 = vunpack.c.l.bf16 %v4058_v45 }
 0x304   : > { %v1049_v57 = vrot.slane %v1048_v24, 1  ;;  %v1197_v14 = vsel %vm1165_vm14, %v1109_v1, %v1181_v58  ;;  %vm1166_vm5 = vcmp.ge.f32.partialorder %v1112_v28, 0.0  ;;  %v1182_v41 = vmul.f32 0.1, %v1112_v28 }
 0x305   : > { %v1195_v60 = vsel %vm1163_vm15, %v1101_v3, %v1179_v48  ;;  %vm1164_vm6 = vcmp.ge.f32.partialorder %v1104_v11, 0.0  ;;  %v1180_v15 = vmul.f32 0.1, %v1104_v11  ;;  %v1213_v27 = vmul.f32 %v3842_v4, %v1197_v14 }
 0x306   : > { %v1050_v62 = vadd.f32 %v1049_v57, %v1048_v24  ;;  %v1198_v33 = vsel %vm1166_vm5, %v1112_v28, %v1182_v41  ;;  %v1211_v42 = vmul.f32 %v3837_v63, %v1195_v60  ;;  %v3082_v24 = vunpack.c.l.bf16 %v4061_v31 }
 0x307   : > { %v1196_v6 = vsel %vm1164_vm6, %v1104_v11, %v1180_v15  ;;  %v3352_v44 = vpop.f32.mrb[28].mxu0  ;;  %v1214_v61 = vmul.f32 %v3850_v9, %v1198_v33  ;;  %v3083_v14 = vunpack.c.h.bf16 %v4061_v31  ;;  %v3079_v60 = vunpack.c.h.bf16 %v4058_v45  ;;  %v4568_v45 = vld [vmem:[#allocation2_spill] sm:$0xff] }
 0x308   : > { %v4066_v47 = vsel %vm521_vm0, %v788_v35, %v1050_v62  ;;  %v1125_v37 = vadd.f32 %v3352_v44, %v3863_v23  ;;  %v1116_v43 = vpop.f32.mrb[29].mxu0  ;;  %v1212_v1 = vmul.f32 %v3855_v13, %v1196_v6 }
 0x309   : > { %v1117_v5 = vadd.f32 %v1116_v43, %v3839_v0  ;;  %v3353_v32 = vpop.f32.mrb[30].mxu0  ;;  %v1220_v3 = vpack.c.bf16 %v1214_v61, %v1213_v27 }
 0x30a   : > { %vm1169_vm7 = vcmp.ge.f32.partialorder %v1125_v37, 0.0  ;;  %v1185_v58 = vmul.f32 0.1, %v1125_v37  ;;  %v1128_v28 = vadd.f32 %v3353_v32, %v3870_v34  ;;  %v1119_v16 = vpop.f32.mrb[31].mxu0  ;;  %v1219_v48 = vpack.c.bf16 %v1212_v1, %v1211_v42 }
 0x30b   : > { %vm1167_vm0 = vcmp.ge.f32.partialorder %v1117_v5, 0.0  ;;  %v1183_v11 = vmul.f32 0.1, %v1117_v5  ;;  %v1120_v57 = vadd.f32 %v1119_v16, %v3852_v10  ;;  %v4569_v16 = vld [vmem:[#allocation3_spill] sm:$0xff] }
 0x30c   : > { %vm1170_vm8 = vcmp.ge.f32.partialorder %v1128_v28, 0.0  ;;  %v1186_v41 = vmul.f32 0.1, %v1128_v28  ;;  %3362 = vmatprep.subr.bf16.mxu1 %v1219_v48  ;;  %v1201_v15 = vsel %vm1169_vm7, %v1125_v37, %v1185_v58 }
 0x30d   : > { %vm1168_vm9 = vcmp.ge.f32.partialorder %v1120_v57, 0.0  ;;  %v1184_v35 = vmul.f32 0.1, %v1120_v57  ;;  %3363 = vmatpush3.bf16.msra.mxu1 %v1219_v48  ;;  %v4078_v62 = vmul.f32 %v3082_v24, %v1201_v15  ;;  %v1199_v33 = vsel %vm1167_vm0, %v1117_v5, %v1183_v11 }
 0x30e   : > { %3364 = vmatprep.subr.bf16.mxu1 %v1220_v3  ;;  %v4080_v6 = vmul.f32 %v3078_v59, %v1199_v33  ;;  %v1202_v44 = vsel %vm1170_vm8, %v1128_v28, %v1186_v41 }
 0x30f   : > { %v3356_v27 = vpop.f32.mrb[32].mxu0  ;;  %v4082_v61 = vmul.f32 %v3083_v14, %v1202_v44  ;;  %v1200_v31 = vsel %vm1168_vm9, %v1120_v57, %v1184_v35 }
 0x310   : > { %v1141_v43 = vadd.f32 %v3356_v27, %v3831_v56  ;;  %v1132_v42 = vpop.f32.mrb[33].mxu0  ;;  %v1293_v1 = vmul.f32 %v3079_v60, %v1200_v31 }
 0x311   : > { %v1133_v37 = vadd.f32 %v1132_v42, %v4568_v45  ;;  %v3357_v32 = vpop.f32.mrb[34].mxu0  ;;  %3365 = vmatpush3.bf16.msra.mxu1 %v1220_v3  ;;  %v2953_v42 = vld [vmem:[%s3676_s8 + $0xc] sm:$0x7] }
 0x312   : > { %vm1173_vm10 = vcmp.ge.f32.partialorder %v1141_v43, 0.0  ;;  %v1189_v58 = vmul.f32 0.1, %v1141_v43  ;;  %v1144_v5 = vadd.f32 %v3357_v32, %v4569_v16  ;;  %v1135_v48 = vpop.f32.mrb[35].mxu0 }
 0x313   : > { %vm1171_vm11 = vcmp.ge.f32.partialorder %v1133_v37, 0.0  ;;  %v1187_v28 = vmul.f32 0.1, %v1133_v37  ;;  %v1136_v11 = vadd.f32 %v1135_v48, %v3823_v55  ;;  %v1315_v48 = vpack.c.bf16 %v2953_v42, %v2953_v42 }
 0x314   : > { %v1205_v41 = vsel %vm1173_vm10, %v1141_v43, %v1189_v58  ;;  %vm1174_vm12 = vcmp.ge.f32.partialorder %v1144_v5, 0.0  ;;  %v1190_v57 = vmul.f32 0.1, %v1144_v5 }
 0x315   : > { %v1203_v15 = vsel %vm1171_vm11, %v1133_v37, %v1187_v28  ;;  %vm1172_vm13 = vcmp.ge.f32.partialorder %v1136_v11, 0.0  ;;  %v1188_v35 = vmul.f32 0.1, %v1136_v11  ;;  %v1217_v3 = vmul.f32 %v3082_v24, %v1205_v41 }
 0x316   : > { %v1206_v33 = vsel %vm1174_vm12, %v1144_v5, %v1190_v57  ;;  %v1215_v32 = vmul.f32 %v3078_v59, %v1203_v15  ;;  %v1326_v43 = vand.u32 %v1315_v48, %v3683_v8 }
 0x317   : > { %v1204_v44 = vsel %vm1172_vm13, %v1136_v11, %v1188_v35  ;;  %v3360_v27 = vpop.f32.mrb[36].mxu0  ;;  %v1218_v31 = vmul.f32 %v3083_v14, %v1206_v33 }
 0x318   : > { %v1148_v54 = vpop.f32.mrb[37].mxu0  ;;  %v1216_v25 = vmul.f32 %v3079_v60, %v1204_v44 }
 0x319   : > { %v3361_v38 = vpop.f32.mrb[38].mxu0  ;;  %v1222_v36 = vpack.c.bf16 %v1218_v31, %v1217_v3  ;;  %v1149_v59 = vadd.f32 %v1148_v54, %v3941_v18 }
 0x31a   : > { %v1151_v16 = vpop.f32.mrb[39].mxu0  ;;  %v1221_v45 = vpack.c.bf16 %v1216_v25, %v1215_v32  ;;  %v1160_v60 = vadd.f32 %v3361_v38, %v3948_v26 }
 0x31b   : > { %v1152_v58 = vadd.f32 %v1151_v16, %v3943_v21  ;;  %v1191_v57 = vmul.f32 0.1, %v1149_v59  ;;  %vm1175_vm15 = vcmp.ge.f32.partialorder %v1149_v59, 0.0 }
 0x31c   : > { %3366 = vmatprep.subr.bf16.mxu1 %v1221_v45  ;;  %v1194_v15 = vmul.f32 0.1, %v1160_v60  ;;  %vm1178_vm5 = vcmp.ge.f32.partialorder %v1160_v60, 0.0 }
 0x31d   : > { %3367 = vmatpush3.bf16.msra.mxu1 %v1221_v45  ;;  %v1192_v35 = vmul.f32 0.1, %v1152_v58  ;;  %vm1176_vm6 = vcmp.ge.f32.partialorder %v1152_v58, 0.0 }
 0x31e   : > { %3368 = vmatprep.subr.bf16.mxu1 %v1222_v36  ;;  %v1210_v42 = vsel %vm1178_vm5, %v1160_v60, %v1194_v15 }
 0x321   : > { %3369 = vmatpush3.bf16.msra.mxu1 %v1222_v36  ;;  %v1157_v36 = vadd.f32 %v3360_v27, %v3945_v22 }
 0x322   : > { %3378 = vmatprep.subr.bf16.mxu1 %v1326_v43 }
 0x323   : > { %v1193_v11 = vmul.f32 0.1, %v1157_v36  ;;  %vm1177_vm14 = vcmp.ge.f32.partialorder %v1157_v36, 0.0 }
 0x324   : > { %3371 = vmatmul.mubr.msk.bf16.vlgmr.msra.gmra.mrb[24].mxu1 %vm685_vm3, %v3905_v7 }
 0x325   : > { %3374 = vmatprep.mubr.msk.bf16.mxu1 %vm685_vm3, %v3907_v12  ;;  %3379 = vmatpush3.bf16.msra.mxu1 %v1326_v43  ;;  %v1209_v33 = vsel %vm1177_vm14, %v1157_v36, %v1193_v11 }
 0x32c   : > { %3375 = vmatmul.mubr.msk.bf16.gmra.mrb[28].mxu1 %vm685_vm3, %v3919_v17 }
 0x32d   : > { %3380 = vmatprep.mubr.msk.bf16.mxu1 %vm496_vm1, %v3665_v2 }
 0x334   : > { %3381 = vmatmul.mubr.msk.bf16.vlgmr.msra.gmra.mrb[32].mxu1 %vm496_vm1, %v3710_v19 }
 0x335   : > { %3384 = vmatprep.mubr.msk.bf16.mxu1 %vm496_vm1, %v3712_v20 }
 0x33c   : > { %3385 = vmatmul.mubr.msk.bf16.gmra.mrb[36].mxu1 %vm496_vm1, %v3742_v29 }
 0x33d   : > { %3388 = vmatprep.mubr.msk.bf16.mxu1 %vm496_vm1, %v3744_v30 }
 0x344   : > { %3389 = vmatmul.mubr.msk.bf16.gmra.mrb[40].mxu1 %vm496_vm1, %v3774_v39 }
 0x345   : > { %3392 = vmatprep.mubr.msk.bf16.mxu1 %vm496_vm1, %v3776_v40 }
 0x34c   : > { %3393 = vmatmul.mubr.msk.bf16.gmra.mrb[44].mxu1 %vm496_vm1, %v3797_v46 }
 0x34d   : > { %3438 = vmatprep.mubr.msk.bf16.mxu1 %vm685_vm3, %v3807_v49 }
 0x3f7   : > { %v3372_v25 = vpop.f32.mrb[24].mxu1 }
 0x3f8   : > { %v1298_v24 = vmul.f32 %v3372_v25, %v4078_v62  ;;  %v1257_v14 = vpop.f32.mrb[25].mxu1  ;;  %v1208_v25 = vsel %vm1176_vm6, %v1152_v58, %v1192_v35 }
 0x3f9   : > { %v1296_v45 = vmul.f32 %v4080_v6, %v1257_v14  ;;  %v3373_v37 = vpop.f32.mrb[26].mxu1 }
 0x3fa   : > { %v1299_v5 = vmul.f32 %v3373_v37, %v4082_v61  ;;  %v1260_v28 = vpop.f32.mrb[27].mxu1  ;;  %v1303_v6 = vsel %vm775_vm4, %v1298_v24, 0.0 }
 0x3fb   : > { %v1297_v41 = vmul.f32 %v1293_v1, %v1260_v28  ;;  %v1300_v54 = vsel %vm775_vm4, %v1296_v45, 0.0  ;;  %v1207_v1 = vsel %vm1175_vm15, %v1149_v59, %v1191_v57 }
 0x3fc   : > { %v1305_v3 = vsel %vm775_vm4, %v1299_v5, 0.0 }
 0x3fd   : > { %v1301_v62 = vsel %vm775_vm4, %v1297_v41, 0.0 }
 0x3fe   : > { %v1302_v38 = vadd.f32 %v1301_v62, %v1300_v54 }
 0x3ff   : > { %v3376_v16 = vpop.f32.mrb[28].mxu1 }
 0x400   : > { %v1304_v61 = vadd.f32 %v1303_v6, %v1302_v38  ;;  %v4124_v44 = vmul.f32 %v3376_v16, %v1209_v33  ;;  %v1273_v27 = vpop.f32.mrb[29].mxu1 }
 0x401   : > { %v4127_v31 = vmul.f32 %v1273_v27, %v1207_v1  ;;  %v3377_v32 = vpop.f32.mrb[30].mxu1  ;;  %v4138_v27 = vld [vmem:[%s3848_s27 + $0x30] sm:$0xff]  }
 0x402   : > { %4570 = vst [vmem:[#allocation12_spill] sm:$0xff] %v4124_v44  ;;  %v1306_v48 = vadd.f32 %v1305_v3, %v1304_v61  ;;  %v4129_v43 = vmul.f32 %v3377_v32, %v1210_v42  ;;  %v1276_v14 = vpop.f32.mrb[31].mxu1  ;;  %v4141_v3 = vld [vmem:[%s3848_s27 + $0x38] sm:$0xff]  }
 0x403   : > { %4571 = vst [vmem:[#allocation13_spill] sm:$0xff] %v4127_v31  ;;  %v4131_v24 = vmul.f32 %v1276_v14, %v1208_v25 }
 0x404   : > { %4572 = vst [vmem:[#allocation14_spill] sm:$0xff] %v4129_v43  ;;  %v1307_v36 = vrot.slane %v1306_v48, 4 }
 0x405   : > { %4573 = vst [vmem:[#allocation15_spill] sm:$0xff] %v4131_v24 }
 0x406   : > { %v1308_v45 = vadd.f32 %v1307_v36, %v1306_v48 }
 0x407   : > { %v3382_v37 = vpop.f32.mrb[32].mxu1 }
 0x408   : > { %v1309_v28 = vrot.slane %v1308_v45, 2  ;;  %v1371_v59 = vadd.f32 %v3382_v37, %v3815_v51  ;;  %v1362_v11 = vpop.f32.mrb[33].mxu1 }
 0x409   : > { %v1363_v5 = vadd.f32 %v1362_v11, %v3813_v50  ;;  %v3383_v41 = vpop.f32.mrb[34].mxu1 }
 0x40a   : > { %v1310_v57 = vadd.f32 %v1309_v28, %v1308_v45  ;;  %vm1427_vm7 = vcmp.ge.f32.partialorder %v1371_v59, 0.0  ;;  %v1443_v60 = vmul.f32 0.1, %v1371_v59  ;;  %v1374_v58 = vadd.f32 %v3383_v41, %v3819_v53  ;;  %v1365_v15 = vpop.f32.mrb[35].mxu1 }
 0x40b   : > { %vm1425_vm0 = vcmp.ge.f32.partialorder %v1363_v5, 0.0  ;;  %v1441_v54 = vmul.f32 0.1, %v1363_v5  ;;  %v1366_v62 = vadd.f32 %v1365_v15, %v3817_v52  ;;  %v3086_v41 = vunpack.c.l.bf16 %v4138_v27 }
 0x40c   : > { %v1311_v35 = vrot.slane %v1310_v57, 1  ;;  %v1459_v38 = vsel %vm1427_vm7, %v1371_v59, %v1443_v60  ;;  %vm1428_vm8 = vcmp.ge.f32.partialorder %v1374_v58, 0.0  ;;  %v1444_v6 = vmul.f32 0.1, %v1374_v58 }
 0x40d   : > { %v1457_v33 = vsel %vm1425_vm0, %v1363_v5, %v1441_v54  ;;  %vm1426_vm9 = vcmp.ge.f32.partialorder %v1366_v62, 0.0  ;;  %v1442_v16 = vmul.f32 0.1, %v1366_v62  ;;  %v1475_v48 = vmul.f32 %v3842_v4, %v1459_v38 }
 0x40e   : > { %v1312_v61 = vadd.f32 %v1311_v35, %v1310_v57  ;;  %v1460_v1 = vsel %vm1428_vm8, %v1374_v58, %v1444_v6  ;;  %v1473_v37 = vmul.f32 %v3837_v63, %v1457_v33  ;;  %v3090_v57 = vunpack.c.l.bf16 %v4141_v3 }
 0x40f   : > { %v1458_v42 = vsel %vm1426_vm9, %v1366_v62, %v1442_v16  ;;  %v3386_v32 = vpop.f32.mrb[36].mxu1  ;;  %v1476_v25 = vmul.f32 %v3850_v9, %v1460_v1  ;;  %v3091_v35 = vunpack.c.h.bf16 %v4141_v3  ;;  %v3087_v6 = vunpack.c.h.bf16 %v4138_v27  ;;  %v4574_v27 = vld [vmem:[#allocation2_spill] sm:$0xff] }
 0x410   : > { %v4147_v14 = vsel %vm522_vm2, %v4066_v47, %v1312_v61  ;;  %v1387_v36 = vadd.f32 %v3386_v32, %v3863_v23  ;;  %v1378_v45 = vpop.f32.mrb[37].mxu1  ;;  %v1474_v28 = vmul.f32 %v3855_v13, %v1458_v42 }
 0x411   : > { %v1379_v59 = vadd.f32 %v1378_v45, %v3839_v0  ;;  %v3387_v11 = vpop.f32.mrb[38].mxu1  ;;  %v1482_v5 = vpack.c.bf16 %v1476_v25, %v1475_v48 }
 0x412   : > { %vm1431_vm10 = vcmp.ge.f32.partialorder %v1387_v36, 0.0  ;;  %v1447_v60 = vmul.f32 0.1, %v1387_v36  ;;  %v1390_v47 = vadd.f32 %v3387_v11, %v3870_v34  ;;  %v1381_v58 = vpop.f32.mrb[39].mxu1  ;;  %v1481_v15 = vpack.c.bf16 %v1474_v28, %v1473_v37 }
 0x413   : > { %vm1429_vm2 = vcmp.ge.f32.partialorder %v1379_v59, 0.0  ;;  %v1445_v54 = vmul.f32 0.1, %v1379_v59  ;;  %v1382_v62 = vadd.f32 %v1381_v58, %v3852_v10  ;;  %v4575_v58 = vld [vmem:[#allocation3_spill] sm:$0xff] }
 0x414   : > { %vm1432_vm11 = vcmp.ge.f32.partialorder %v1390_v47, 0.0  ;;  %v1448_v38 = vmul.f32 0.1, %v1390_v47  ;;  %3396 = vmatprep.subr.bf16.mxu0 %v1481_v15  ;;  %v1463_v33 = vsel %vm1431_vm10, %v1387_v36, %v1447_v60 }
 0x415   : > { %vm1430_vm12 = vcmp.ge.f32.partialorder %v1382_v62, 0.0  ;;  %v1446_v16 = vmul.f32 0.1, %v1382_v62  ;;  %3397 = vmatpush3.bf16.msra.mxu0 %v1481_v15  ;;  %v4159_v61 = vmul.f32 %v3090_v57, %v1463_v33  ;;  %v1461_v1 = vsel %vm1429_vm2, %v1379_v59, %v1445_v54 }
 0x416   : > { %3398 = vmatprep.subr.bf16.mxu0 %v1482_v5  ;;  %v4161_v42 = vmul.f32 %v3086_v41, %v1461_v1  ;;  %v1464_v32 = vsel %vm1432_vm11, %v1390_v47, %v1448_v38  ;;  %vm2625_vm11 = vcmask 1042432  }
 0x417   : > { %v3390_v48 = vpop.f32.mrb[40].mxu1  ;;  %v4163_v25 = vmul.f32 %v3091_v35, %v1464_v32  ;;  %v1462_v3 = vsel %vm1430_vm12, %v1382_v62, %v1446_v16 }
 0x418   : > { %v1403_v45 = vadd.f32 %v3390_v48, %v3831_v56  ;;  %v1394_v37 = vpop.f32.mrb[41].mxu1  ;;  %v1555_v28 = vmul.f32 %v3087_v6, %v1462_v3 }
 0x419   : > { %v1395_v36 = vadd.f32 %v1394_v37, %v4574_v27  ;;  %v3391_v11 = vpop.f32.mrb[42].mxu1  ;;  %3399 = vmatpush3.bf16.msra.mxu0 %v1482_v5  ;;  %v2970_v37 = vld [vmem:[%s3676_s8 + $0x10] sm:$0x7] }
 0x41a   : > { %vm1435_vm13 = vcmp.ge.f32.partialorder %v1403_v45, 0.0  ;;  %v1451_v60 = vmul.f32 0.1, %v1403_v45  ;;  %v1406_v59 = vadd.f32 %v3391_v11, %v4575_v58  ;;  %v1397_v15 = vpop.f32.mrb[43].mxu1 }
 0x41b   : > { %vm1433_vm14 = vcmp.ge.f32.partialorder %v1395_v36, 0.0  ;;  %v1449_v47 = vmul.f32 0.1, %v1395_v36  ;;  %v1398_v54 = vadd.f32 %v1397_v15, %v3823_v55  ;;  %v1577_v15 = vpack.c.bf16 %v2970_v37, %v2970_v37 }
 0x41c   : > { %v1467_v38 = vsel %vm1435_vm13, %v1403_v45, %v1451_v60  ;;  %vm1436_vm15 = vcmp.ge.f32.partialorder %v1406_v59, 0.0  ;;  %v1452_v62 = vmul.f32 0.1, %v1406_v59 }
 0x41d   : > { %v1465_v33 = vsel %vm1433_vm14, %v1395_v36, %v1449_v47  ;;  %vm1434_vm5 = vcmp.ge.f32.partialorder %v1398_v54, 0.0  ;;  %v1450_v16 = vmul.f32 0.1, %v1398_v54  ;;  %v1479_v5 = vmul.f32 %v3090_v57, %v1467_v38 }
 0x41e   : > { %v1468_v1 = vsel %vm1436_vm15, %v1406_v59, %v1452_v62  ;;  %v1477_v11 = vmul.f32 %v3086_v41, %v1465_v33  ;;  %v1588_v45 = vand.u32 %v1577_v15, %v3683_v8 }
 0x41f   : > { %v1466_v32 = vsel %vm1434_vm5, %v1398_v54, %v1450_v16  ;;  %v3394_v48 = vpop.f32.mrb[44].mxu1  ;;  %v1480_v3 = vmul.f32 %v3091_v35, %v1468_v1 }
 0x420   : > { %v1410_v24 = vpop.f32.mrb[45].mxu1  ;;  %v1478_v43 = vmul.f32 %v3087_v6, %v1466_v32 }
 0x421   : > { %v3395_v31 = vpop.f32.mrb[46].mxu1  ;;  %v1484_v44 = vpack.c.bf16 %v1480_v3, %v1479_v5  ;;  %v1411_v41 = vadd.f32 %v1410_v24, %v3941_v18 }
 0x422   : > { %v1413_v58 = vpop.f32.mrb[47].mxu1  ;;  %v1483_v27 = vpack.c.bf16 %v1478_v43, %v1477_v11  ;;  %v1422_v6 = vadd.f32 %v3395_v31, %v3948_v26 }
 0x423   : > { %v1414_v60 = vadd.f32 %v1413_v58, %v3943_v21  ;;  %v1453_v62 = vmul.f32 0.1, %v1411_v41  ;;  %vm1437_vm7 = vcmp.ge.f32.partialorder %v1411_v41, 0.0 }
 0x424   : > { %3400 = vmatprep.subr.bf16.mxu0 %v1483_v27  ;;  %v1456_v33 = vmul.f32 0.1, %v1422_v6  ;;  %vm1440_vm0 = vcmp.ge.f32.partialorder %v1422_v6, 0.0 }
 0x425   : > { %3401 = vmatpush3.bf16.msra.mxu0 %v1483_v27  ;;  %v1454_v16 = vmul.f32 0.1, %v1414_v60  ;;  %vm1438_vm8 = vcmp.ge.f32.partialorder %v1414_v60, 0.0 }
 0x426   : > { %3402 = vmatprep.subr.bf16.mxu0 %v1484_v44  ;;  %v1472_v37 = vsel %vm1440_vm0, %v1422_v6, %v1456_v33 }
 0x429   : > { %3403 = vmatpush3.bf16.msra.mxu0 %v1484_v44  ;;  %v1419_v44 = vadd.f32 %v3394_v48, %v3945_v22 }
 0x42a   : > { %3412 = vmatprep.subr.bf16.mxu0 %v1588_v45 }
 0x42b   : > { %v1455_v54 = vmul.f32 0.1, %v1419_v44  ;;  %vm1439_vm6 = vcmp.ge.f32.partialorder %v1419_v44, 0.0 }
 0x42c   : > { %3405 = vmatmul.mubr.msk.bf16.vlgmr.msra.gmra.mrb[40].mxu0 %vm685_vm3, %v3905_v7 }
 0x42d   : > { %3408 = vmatprep.mubr.msk.bf16.mxu0 %vm685_vm3, %v3907_v12  ;;  %3413 = vmatpush3.bf16.msra.mxu0 %v1588_v45  ;;  %v1471_v1 = vsel %vm1439_vm6, %v1419_v44, %v1455_v54 }
 0x434   : > { %3409 = vmatmul.mubr.msk.bf16.gmra.mrb[44].mxu0 %vm685_vm3, %v3919_v17 }
 0x435   : > { %3414 = vmatprep.mubr.msk.bf16.mxu0 %vm496_vm1, %v3665_v2 }
 0x43c   : > { %3415 = vmatmul.mubr.msk.bf16.vlgmr.msra.gmra.mrb[48].mxu0 %vm496_vm1, %v3710_v19 }
 0x43d   : > { %3418 = vmatprep.mubr.msk.bf16.mxu0 %vm496_vm1, %v3712_v20 }
 0x444   : > { %3419 = vmatmul.mubr.msk.bf16.gmra.mrb[52].mxu0 %vm496_vm1, %v3742_v29 }
 0x445   : > { %3422 = vmatprep.mubr.msk.bf16.mxu0 %vm496_vm1, %v3744_v30 }
 0x44c   : > { %3423 = vmatmul.mubr.msk.bf16.gmra.mrb[56].mxu0 %vm496_vm1, %v3774_v39 }
 0x44d   : > { %3426 = vmatprep.mubr.msk.bf16.mxu0 %vm496_vm1, %v3776_v40 }
 0x454   : > { %3427 = vmatmul.mubr.msk.bf16.gmra.mrb[60].mxu0 %vm496_vm1, %v3797_v46 }
 0x455   : > { %3472 = vmatprep.mubr.msk.bf16.mxu0 %vm685_vm3, %v3807_v49 }
 0x4ff   : > { %v3406_v43 = vpop.f32.mrb[40].mxu0 }
 0x500   : > { %v1560_v57 = vmul.f32 %v3406_v43, %v4159_v61  ;;  %v1519_v35 = vpop.f32.mrb[41].mxu0  ;;  %v1470_v43 = vsel %vm1438_vm8, %v1414_v60, %v1454_v16 }
 0x501   : > { %v1558_v27 = vmul.f32 %v4161_v42, %v1519_v35  ;;  %v3407_v36 = vpop.f32.mrb[42].mxu0 }
 0x502   : > { %v1561_v59 = vmul.f32 %v3407_v36, %v4163_v25  ;;  %v1522_v47 = vpop.f32.mrb[43].mxu0  ;;  %v1565_v42 = vsel %vm775_vm4, %v1560_v57, 0.0 }
 0x503   : > { %v1559_v38 = vmul.f32 %v1555_v28, %v1522_v47  ;;  %v1562_v24 = vsel %vm775_vm4, %v1558_v27, 0.0  ;;  %v1469_v28 = vsel %vm1437_vm7, %v1411_v41, %v1453_v62 }
 0x504   : > { %v1567_v5 = vsel %vm775_vm4, %v1561_v59, 0.0 }
 0x505   : > { %v1563_v61 = vsel %vm775_vm4, %v1559_v38, 0.0 }
 0x506   : > { %v1564_v31 = vadd.f32 %v1563_v61, %v1562_v24 }
 0x507   : > { %v3410_v58 = vpop.f32.mrb[44].mxu0 }
 0x508   : > { %v1566_v25 = vadd.f32 %v1565_v42, %v1564_v31  ;;  %v4205_v32 = vmul.f32 %v3410_v58, %v1471_v1  ;;  %v1535_v48 = vpop.f32.mrb[45].mxu0 }
 0x509   : > { %v4208_v3 = vmul.f32 %v1535_v48, %v1469_v28  ;;  %v3411_v11 = vpop.f32.mrb[46].mxu0  ;;  %v4219_v48 = vld [vmem:[%s3848_s27 + $0x40] sm:$0xff]  }
 0x50a   : > { %4576 = vst [vmem:[#allocation16_spill] sm:$0xff] %v4205_v32  ;;  %v1568_v15 = vadd.f32 %v1567_v5, %v1566_v25  ;;  %v4210_v45 = vmul.f32 %v3411_v11, %v1472_v37  ;;  %v1538_v35 = vpop.f32.mrb[47].mxu0  ;;  %v4222_v5 = vld [vmem:[%s3848_s27 + $0x48] sm:$0xff]  }
 0x50b   : > { %4577 = vst [vmem:[#allocation17_spill] sm:$0xff] %v4208_v3  ;;  %v4212_v57 = vmul.f32 %v1538_v35, %v1470_v43 }
 0x50c   : > { %4578 = vst [vmem:[#allocation18_spill] sm:$0xff] %v4210_v45  ;;  %v1569_v44 = vrot.slane %v1568_v15, 4 }
 0x50d   : > { %4579 = vst [vmem:[#allocation19_spill] sm:$0xff] %v4212_v57 }
 0x50e   : > { %v1570_v27 = vadd.f32 %v1569_v44, %v1568_v15 }
 0x50f   : > { %v3416_v36 = vpop.f32.mrb[48].mxu0 }
 0x510   : > { %v1571_v47 = vrot.slane %v1570_v27, 2  ;;  %v1633_v41 = vadd.f32 %v3416_v36, %v3815_v51  ;;  %v1624_v54 = vpop.f32.mrb[49].mxu0 }
 0x511   : > { %v1625_v59 = vadd.f32 %v1624_v54, %v3813_v50  ;;  %v3417_v38 = vpop.f32.mrb[50].mxu0 }
 0x512   : > { %v1572_v62 = vadd.f32 %v1571_v47, %v1570_v27  ;;  %vm1689_vm9 = vcmp.ge.f32.partialorder %v1633_v41, 0.0  ;;  %v1705_v6 = vmul.f32 0.1, %v1633_v41  ;;  %v1636_v33 = vadd.f32 %v3417_v38, %v3819_v53  ;;  %v1627_v60 = vpop.f32.mrb[51].mxu0 }
 0x513   : > { %vm1687_vm10 = vcmp.ge.f32.partialorder %v1625_v59, 0.0  ;;  %v1703_v24 = vmul.f32 0.1, %v1625_v59  ;;  %v1628_v61 = vadd.f32 %v1627_v60, %v3817_v52  ;;  %v3094_v38 = vunpack.c.l.bf16 %v4219_v48 }
 0x514   : > { %v1573_v16 = vrot.slane %v1572_v62, 1  ;;  %v1721_v31 = vsel %vm1689_vm9, %v1633_v41, %v1705_v6  ;;  %vm1690_vm2 = vcmp.ge.f32.partialorder %v1636_v33, 0.0  ;;  %v1706_v42 = vmul.f32 0.1, %v1636_v33 }
 0x515   : > { %v1719_v1 = vsel %vm1687_vm10, %v1625_v59, %v1703_v24  ;;  %vm1688_vm12 = vcmp.ge.f32.partialorder %v1628_v61, 0.0  ;;  %v1704_v58 = vmul.f32 0.1, %v1628_v61  ;;  %v1737_v15 = vmul.f32 %v3842_v4, %v1721_v31 }
 0x516   : > { %v1574_v25 = vadd.f32 %v1573_v16, %v1572_v62  ;;  %v1722_v28 = vsel %vm1690_vm2, %v1636_v33, %v1706_v42  ;;  %v1735_v36 = vmul.f32 %v3837_v63, %v1719_v1  ;;  %v3098_v62 = vunpack.c.l.bf16 %v4222_v5 }
 0x517   : > { %v1720_v37 = vsel %vm1688_vm12, %v1628_v61, %v1704_v58  ;;  %v3420_v11 = vpop.f32.mrb[52].mxu0  ;;  %v1738_v43 = vmul.f32 %v3850_v9, %v1722_v28  ;;  %v3099_v16 = vunpack.c.h.bf16 %v4222_v5  ;;  %v3095_v42 = vunpack.c.h.bf16 %v4219_v48  ;;  %v4580_v48 = vld [vmem:[#allocation2_spill] sm:$0xff] }
 0x518   : > { %v4227_v35 = vsel %vm2625_vm11, %v4147_v14, %v1574_v25  ;;  %v1649_v44 = vadd.f32 %v3420_v11, %v3863_v23  ;;  %v1640_v27 = vpop.f32.mrb[53].mxu0  ;;  %v1736_v47 = vmul.f32 %v3855_v13, %v1720_v37 }
 0x519   : > { %v1641_v41 = vadd.f32 %v1640_v27, %v3839_v0  ;;  %v3421_v54 = vpop.f32.mrb[54].mxu0  ;;  %v1744_v59 = vpack.c.bf16 %v1738_v43, %v1737_v15 }
 0x51a   : > { %vm1693_vm13 = vcmp.ge.f32.partialorder %v1649_v44, 0.0  ;;  %v1709_v6 = vmul.f32 0.1, %v1649_v44  ;;  %v1652_v14 = vadd.f32 %v3421_v54, %v3870_v34  ;;  %v1643_v33 = vpop.f32.mrb[55].mxu0  ;;  %v1743_v60 = vpack.c.bf16 %v1736_v47, %v1735_v36 }
 0x51b   : > { %vm1691_vm14 = vcmp.ge.f32.partialorder %v1641_v41, 0.0  ;;  %v1707_v24 = vmul.f32 0.1, %v1641_v41  ;;  %v1644_v61 = vadd.f32 %v1643_v33, %v3852_v10  ;;  %v4581_v33 = vld [vmem:[#allocation3_spill] sm:$0xff] }
 0x51c   : > { %vm1694_vm15 = vcmp.ge.f32.partialorder %v1652_v14, 0.0  ;;  %v1710_v31 = vmul.f32 0.1, %v1652_v14  ;;  %3430 = vmatprep.subr.bf16.mxu1 %v1743_v60  ;;  %v1725_v1 = vsel %vm1693_vm13, %v1649_v44, %v1709_v6 }
 0x51d   : > { %vm1692_vm5 = vcmp.ge.f32.partialorder %v1644_v61, 0.0  ;;  %v1708_v58 = vmul.f32 0.1, %v1644_v61  ;;  %3431 = vmatpush3.bf16.msra.mxu1 %v1743_v60  ;;  %v4239_v25 = vmul.f32 %v3098_v62, %v1725_v1  ;;  %v1723_v28 = vsel %vm1691_vm14, %v1641_v41, %v1707_v24 }
 0x51e   : > { %3432 = vmatprep.subr.bf16.mxu1 %v1744_v59  ;;  %v4241_v37 = vmul.f32 %v3094_v38, %v1723_v28  ;;  %v1726_v11 = vsel %vm1694_vm15, %v1652_v14, %v1710_v31  ;;  %vm2627_vm15 = vcmask 1043456  }
 0x51f   : > { %v3424_v15 = vpop.f32.mrb[56].mxu0  ;;  %v4243_v43 = vmul.f32 %v3099_v16, %v1726_v11  ;;  %v1724_v5 = vsel %vm1692_vm5, %v1644_v61, %v1708_v58 }
 0x520   : > { %v1665_v27 = vadd.f32 %v3424_v15, %v3831_v56  ;;  %v1656_v36 = vpop.f32.mrb[57].mxu0  ;;  %v1817_v47 = vmul.f32 %v3095_v42, %v1724_v5 }
 0x521   : > { %v1657_v44 = vadd.f32 %v1656_v36, %v4580_v48  ;;  %v3425_v54 = vpop.f32.mrb[58].mxu0  ;;  %3433 = vmatpush3.bf16.msra.mxu1 %v1744_v59  ;;  %v2987_v36 = vld [vmem:[%s3676_s8 + $0x14] sm:$0x7] }
 0x522   : > { %vm1697_vm6 = vcmp.ge.f32.partialorder %v1665_v27, 0.0  ;;  %v1713_v6 = vmul.f32 0.1, %v1665_v27  ;;  %v1668_v41 = vadd.f32 %v3425_v54, %v4581_v33  ;;  %v1659_v60 = vpop.f32.mrb[59].mxu0 }
 0x523   : > { %vm1695_vm7 = vcmp.ge.f32.partialorder %v1657_v44, 0.0  ;;  %v1711_v14 = vmul.f32 0.1, %v1657_v44  ;;  %v1660_v24 = vadd.f32 %v1659_v60, %v3823_v55  ;;  %v1839_v60 = vpack.c.bf16 %v2987_v36, %v2987_v36 }
 0x524   : > { %v1729_v31 = vsel %vm1697_vm6, %v1665_v27, %v1713_v6  ;;  %vm1698_vm0 = vcmp.ge.f32.partialorder %v1668_v41, 0.0  ;;  %v1714_v61 = vmul.f32 0.1, %v1668_v41 }
 0x525   : > { %v1727_v1 = vsel %vm1695_vm7, %v1657_v44, %v1711_v14  ;;  %vm1696_vm8 = vcmp.ge.f32.partialorder %v1660_v24, 0.0  ;;  %v1712_v58 = vmul.f32 0.1, %v1660_v24  ;;  %v1741_v59 = vmul.f32 %v3098_v62, %v1729_v31 }
 0x526   : > { %v1730_v28 = vsel %vm1698_vm0, %v1668_v41, %v1714_v61  ;;  %v1739_v54 = vmul.f32 %v3094_v38, %v1727_v1  ;;  %v1850_v27 = vand.u32 %v1839_v60, %v3683_v8 }
 0x527   : > { %v1728_v11 = vsel %vm1696_vm8, %v1660_v24, %v1712_v58  ;;  %v3428_v15 = vpop.f32.mrb[60].mxu0  ;;  %v1742_v5 = vmul.f32 %v3099_v16, %v1730_v28 }
 0x528   : > { %v1672_v57 = vpop.f32.mrb[61].mxu0  ;;  %v1740_v45 = vmul.f32 %v3095_v42, %v1728_v11 }
 0x529   : > { %v3429_v3 = vpop.f32.mrb[62].mxu0  ;;  %v1746_v32 = vpack.c.bf16 %v1742_v5, %v1741_v59  ;;  %v1673_v38 = vadd.f32 %v1672_v57, %v3941_v18 }
 0x52a   : > { %v1675_v33 = vpop.f32.mrb[63].mxu0  ;;  %v1745_v48 = vpack.c.bf16 %v1740_v45, %v1739_v54  ;;  %v1684_v42 = vadd.f32 %v3429_v3, %v3948_v26 }
 0x52b   : > { %v1676_v6 = vadd.f32 %v1675_v33, %v3943_v21  ;;  %v1715_v61 = vmul.f32 0.1, %v1673_v38  ;;  %vm1699_vm10 = vcmp.ge.f32.partialorder %v1673_v38, 0.0 }
 0x52c   : > { %3434 = vmatprep.subr.bf16.mxu1 %v1745_v48  ;;  %v1718_v1 = vmul.f32 0.1, %v1684_v42  ;;  %vm1702_vm2 = vcmp.ge.f32.partialorder %v1684_v42, 0.0 }
 0x52d   : > { %3435 = vmatpush3.bf16.msra.mxu1 %v1745_v48  ;;  %v1716_v58 = vmul.f32 0.1, %v1676_v6  ;;  %vm1700_vm11 = vcmp.ge.f32.partialorder %v1676_v6, 0.0 }
 0x52e   : > { %3436 = vmatprep.subr.bf16.mxu1 %v1746_v32  ;;  %v1734_v36 = vsel %vm1702_vm2, %v1684_v42, %v1718_v1 }
 0x531   : > { %3437 = vmatpush3.bf16.msra.mxu1 %v1746_v32  ;;  %v1681_v32 = vadd.f32 %v3428_v15, %v3945_v22 }
 0x532   : > { %3446 = vmatprep.subr.bf16.mxu1 %v1850_v27 }
 0x533   : > { %v1717_v24 = vmul.f32 0.1, %v1681_v32  ;;  %vm1701_vm9 = vcmp.ge.f32.partialorder %v1681_v32, 0.0 }
 0x534   : > { %3439 = vmatmul.mubr.msk.bf16.vlgmr.msra.gmra.mrb[48].mxu1 %vm685_vm3, %v3905_v7 }
 0x535   : > { %3442 = vmatprep.mubr.msk.bf16.mxu1 %vm685_vm3, %v3907_v12  ;;  %3447 = vmatpush3.bf16.msra.mxu1 %v1850_v27  ;;  %v1733_v28 = vsel %vm1701_vm9, %v1681_v32, %v1717_v24 }
 0x53c   : > { %3443 = vmatmul.mubr.msk.bf16.gmra.mrb[52].mxu1 %vm685_vm3, %v3919_v17 }
 0x53d   : > { %3448 = vmatprep.mubr.msk.bf16.mxu1 %vm496_vm1, %v3665_v2 }
 0x544   : > { %3449 = vmatmul.mubr.msk.bf16.vlgmr.msra.gmra.mrb[56].mxu1 %vm496_vm1, %v3710_v19 }
 0x545   : > { %3452 = vmatprep.mubr.msk.bf16.mxu1 %vm496_vm1, %v3712_v20 }
 0x54c   : > { %3453 = vmatmul.mubr.msk.bf16.gmra.mrb[60].mxu1 %vm496_vm1, %v3742_v29 }
 0x54d   : > { %3456 = vmatprep.mubr.msk.bf16.mxu1 %vm496_vm1, %v3744_v30 }
 0x554   : > { %3457 = vmatmul.mubr.msk.bf16.gmra.mrb[64].mxu1 %vm496_vm1, %v3774_v39 }
 0x555   : > { %3460 = vmatprep.mubr.msk.bf16.mxu1 %vm496_vm1, %v3776_v40 }
 0x55c   : > { %3461 = vmatmul.mubr.msk.bf16.gmra.mrb[68].mxu1 %vm496_vm1, %v3797_v46 }
 0x55d   : > { %3506 = vmatprep.mubr.msk.bf16.mxu1 %vm685_vm3, %v3807_v49 }
 0x607   : > { %v3440_v45 = vpop.f32.mrb[48].mxu1 }
 0x608   : > { %v1822_v62 = vmul.f32 %v3440_v45, %v4239_v25  ;;  %v1781_v16 = vpop.f32.mrb[49].mxu1  ;;  %v1732_v45 = vsel %vm1700_vm11, %v1676_v6, %v1716_v58 }
 0x609   : > { %v1820_v48 = vmul.f32 %v4241_v37, %v1781_v16  ;;  %v3441_v44 = vpop.f32.mrb[50].mxu1 }
 0x60a   : > { %v1823_v41 = vmul.f32 %v3441_v44, %v4243_v43  ;;  %v1784_v14 = vpop.f32.mrb[51].mxu1  ;;  %v1827_v37 = vsel %vm775_vm4, %v1822_v62, 0.0 }
 0x60b   : > { %v1821_v31 = vmul.f32 %v1817_v47, %v1784_v14  ;;  %v1824_v57 = vsel %vm775_vm4, %v1820_v48, 0.0  ;;  %v1731_v47 = vsel %vm1699_vm10, %v1673_v38, %v1715_v61 }
 0x60c   : > { %v1829_v59 = vsel %vm775_vm4, %v1823_v41, 0.0 }
 0x60d   : > { %v1825_v25 = vsel %vm775_vm4, %v1821_v31, 0.0 }
 0x60e   : > { %v1826_v3 = vadd.f32 %v1825_v25, %v1824_v57 }
 0x60f   : > { %v3444_v33 = vpop.f32.mrb[52].mxu1 }
 0x610   : > { %v1828_v43 = vadd.f32 %v1827_v37, %v1826_v3  ;;  %v4285_v11 = vmul.f32 %v3444_v33, %v1733_v28  ;;  %v1797_v15 = vpop.f32.mrb[53].mxu1 }
 0x611   : > { %v4288_v5 = vmul.f32 %v1797_v15, %v1731_v47  ;;  %v3445_v54 = vpop.f32.mrb[54].mxu1  ;;  %v4299_v15 = vld [vmem:[%s3848_s27 + $0x50] sm:$0xff]  }
 0x612   : > { %4582 = vst [vmem:[#allocation20_spill] sm:$0xff] %v4285_v11  ;;  %v1830_v60 = vadd.f32 %v1829_v59, %v1828_v43  ;;  %v4290_v27 = vmul.f32 %v3445_v54, %v1734_v36  ;;  %v1800_v16 = vpop.f32.mrb[55].mxu1  ;;  %v4302_v59 = vld [vmem:[%s3848_s27 + $0x58] sm:$0xff]  }
 0x613   : > { %4583 = vst [vmem:[#allocation21_spill] sm:$0xff] %v4288_v5  ;;  %v4292_v62 = vmul.f32 %v1800_v16, %v1732_v45 }
 0x614   : > { %4584 = vst [vmem:[#allocation22_spill] sm:$0xff] %v4290_v27  ;;  %v1831_v32 = vrot.slane %v1830_v60, 4 }
 0x615   : > { %4585 = vst [vmem:[#allocation23_spill] sm:$0xff] %v4292_v62 }
 0x616   : > { %v1832_v48 = vadd.f32 %v1831_v32, %v1830_v60 }
 0x617   : > { %v3450_v44 = vpop.f32.mrb[56].mxu1 }
 0x618   : > { %v1833_v14 = vrot.slane %v1832_v48, 2  ;;  %v1895_v38 = vadd.f32 %v3450_v44, %v3815_v51  ;;  %v1886_v24 = vpop.f32.mrb[57].mxu1 }
 0x619   : > { %v1887_v41 = vadd.f32 %v1886_v24, %v3813_v50  ;;  %v3451_v31 = vpop.f32.mrb[58].mxu1 }
 0x61a   : > { %v1834_v61 = vadd.f32 %v1833_v14, %v1832_v48  ;;  %vm1951_vm12 = vcmp.ge.f32.partialorder %v1895_v38, 0.0  ;;  %v1967_v42 = vmul.f32 0.1, %v1895_v38  ;;  %v1898_v1 = vadd.f32 %v3451_v31, %v3819_v53  ;;  %v1889_v6 = vpop.f32.mrb[59].mxu1 }
 0x61b   : > { %vm1949_vm13 = vcmp.ge.f32.partialorder %v1887_v41, 0.0  ;;  %v1965_v57 = vmul.f32 0.1, %v1887_v41  ;;  %v1890_v25 = vadd.f32 %v1889_v6, %v3817_v52  ;;  %v3102_v31 = vunpack.c.l.bf16 %v4299_v15 }
 0x61c   : > { %v1835_v58 = vrot.slane %v1834_v61, 1  ;;  %v1983_v3 = vsel %vm1951_vm12, %v1895_v38, %v1967_v42  ;;  %vm1952_vm14 = vcmp.ge.f32.partialorder %v1898_v1, 0.0  ;;  %v1968_v37 = vmul.f32 0.1, %v1898_v1 }
 0x61d   : > { %v1981_v28 = vsel %vm1949_vm13, %v1887_v41, %v1965_v57  ;;  %vm1950_vm5 = vcmp.ge.f32.partialorder %v1890_v25, 0.0  ;;  %v1966_v33 = vmul.f32 0.1, %v1890_v25  ;;  %v1999_v60 = vmul.f32 %v3842_v4, %v1983_v3 }
 0x61e   : > { %v1836_v43 = vadd.f32 %v1835_v58, %v1834_v61  ;;  %v1984_v47 = vsel %vm1952_vm14, %v1898_v1, %v1968_v37  ;;  %v1997_v44 = vmul.f32 %v3837_v63, %v1981_v28  ;;  %v3106_v61 = vunpack.c.l.bf16 %v4302_v59 }
 0x61f   : > { %v1982_v36 = vsel %vm1950_vm5, %v1890_v25, %v1966_v33  ;;  %v3454_v54 = vpop.f32.mrb[60].mxu1  ;;  %v2000_v45 = vmul.f32 %v3850_v9, %v1984_v47  ;;  %v3107_v58 = vunpack.c.h.bf16 %v4302_v59  ;;  %v3103_v37 = vunpack.c.h.bf16 %v4299_v15  ;;  %v4586_v15 = vld [vmem:[#allocation2_spill] sm:$0xff] }
 0x620   : > { %v4307_v16 = vsel %vm2627_vm15, %v4227_v35, %v1836_v43  ;;  %v1911_v32 = vadd.f32 %v3454_v54, %v3863_v23  ;;  %v1902_v48 = vpop.f32.mrb[61].mxu1  ;;  %v1998_v14 = vmul.f32 %v3855_v13, %v1982_v36 }
 0x621   : > { %v1903_v38 = vadd.f32 %v1902_v48, %v3839_v0  ;;  %v3455_v24 = vpop.f32.mrb[62].mxu1  ;;  %v2006_v41 = vpack.c.bf16 %v2000_v45, %v1999_v60 }
 0x622   : > { %vm1955_vm6 = vcmp.ge.f32.partialorder %v1911_v32, 0.0  ;;  %v1971_v42 = vmul.f32 0.1, %v1911_v32  ;;  %v1914_v35 = vadd.f32 %v3455_v24, %v3870_v34  ;;  %v1905_v1 = vpop.f32.mrb[63].mxu1  ;;  %v2005_v6 = vpack.c.bf16 %v1998_v14, %v1997_v44 }
 0x623   : > { %vm1953_vm7 = vcmp.ge.f32.partialorder %v1903_v38, 0.0  ;;  %v1969_v57 = vmul.f32 0.1, %v1903_v38  ;;  %v1906_v25 = vadd.f32 %v1905_v1, %v3852_v10  ;;  %v4587_v1 = vld [vmem:[#allocation3_spill] sm:$0xff] }
 0x624   : > { %vm1956_vm0 = vcmp.ge.f32.partialorder %v1914_v35, 0.0  ;;  %v1972_v3 = vmul.f32 0.1, %v1914_v35  ;;  %3464 = vmatprep.subr.bf16.mxu0 %v2005_v6  ;;  %v1987_v28 = vsel %vm1955_vm6, %v1911_v32, %v1971_v42 }
 0x625   : > { %vm1954_vm8 = vcmp.ge.f32.partialorder %v1906_v25, 0.0  ;;  %v1970_v33 = vmul.f32 0.1, %v1906_v25  ;;  %3465 = vmatpush3.bf16.msra.mxu0 %v2005_v6  ;;  %v4319_v43 = vmul.f32 %v3106_v61, %v1987_v28  ;;  %v1985_v47 = vsel %vm1953_vm7, %v1903_v38, %v1969_v57 }
 0x626   : > { %3466 = vmatprep.subr.bf16.mxu0 %v2006_v41  ;;  %v4321_v36 = vmul.f32 %v3102_v31, %v1985_v47  ;;  %v1988_v54 = vsel %vm1956_vm0, %v1914_v35, %v1972_v3  ;;  %vm2629_vm0 = vcmask 1044480  }
 0x627   : > { %v3458_v60 = vpop.f32.mrb[64].mxu1  ;;  %v4323_v45 = vmul.f32 %v3107_v58, %v1988_v54  ;;  %v1986_v59 = vsel %vm1954_vm8, %v1906_v25, %v1970_v33 }
 0x628   : > { %v1927_v48 = vadd.f32 %v3458_v60, %v3831_v56  ;;  %v1918_v44 = vpop.f32.mrb[65].mxu1  ;;  %v2079_v14 = vmul.f32 %v3103_v37, %v1986_v59 }
 0x629   : > { %v1919_v32 = vadd.f32 %v1918_v44, %v4586_v15  ;;  %v3459_v24 = vpop.f32.mrb[66].mxu1  ;;  %3467 = vmatpush3.bf16.msra.mxu0 %v2006_v41  ;;  %v3004_v44 = vld [vmem:[%s3676_s8 + $0x18] sm:$0x7] }
 0x62a   : > { %vm1959_vm9 = vcmp.ge.f32.partialorder %v1927_v48, 0.0  ;;  %v1975_v42 = vmul.f32 0.1, %v1927_v48  ;;  %v1930_v38 = vadd.f32 %v3459_v24, %v4587_v1  ;;  %v1921_v6 = vpop.f32.mrb[67].mxu1 }
 0x62b   : > { %vm1957_vm10 = vcmp.ge.f32.partialorder %v1919_v32, 0.0  ;;  %v1973_v35 = vmul.f32 0.1, %v1919_v32  ;;  %v1922_v57 = vadd.f32 %v1921_v6, %v3823_v55  ;;  %v2101_v6 = vpack.c.bf16 %v3004_v44, %v3004_v44 }
 0x62c   : > { %v1991_v3 = vsel %vm1959_vm9, %v1927_v48, %v1975_v42  ;;  %vm1960_vm2 = vcmp.ge.f32.partialorder %v1930_v38, 0.0  ;;  %v1976_v25 = vmul.f32 0.1, %v1930_v38 }
 0x62d   : > { %v1989_v28 = vsel %vm1957_vm10, %v1919_v32, %v1973_v35  ;;  %vm1958_vm11 = vcmp.ge.f32.partialorder %v1922_v57, 0.0  ;;  %v1974_v33 = vmul.f32 0.1, %v1922_v57  ;;  %v2003_v41 = vmul.f32 %v3106_v61, %v1991_v3 }
 0x62e   : > { %v1992_v47 = vsel %vm1960_vm2, %v1930_v38, %v1976_v25  ;;  %v2001_v24 = vmul.f32 %v3102_v31, %v1989_v28  ;;  %v2112_v48 = vand.u32 %v2101_v6, %v3683_v8 }
 0x62f   : > { %v1990_v54 = vsel %vm1958_vm11, %v1922_v57, %v1974_v33  ;;  %v3462_v60 = vpop.f32.mrb[68].mxu1  ;;  %v2004_v59 = vmul.f32 %v3107_v58, %v1992_v47 }
 0x630   : > { %v1934_v62 = vpop.f32.mrb[69].mxu1  ;;  %v2002_v27 = vmul.f32 %v3103_v37, %v1990_v54 }
 0x631   : > { %v3463_v5 = vpop.f32.mrb[70].mxu1  ;;  %v2008_v11 = vpack.c.bf16 %v2004_v59, %v2003_v41  ;;  %v1935_v31 = vadd.f32 %v1934_v62, %v3941_v18 }
 0x632   : > { %v1937_v1 = vpop.f32.mrb[71].mxu1  ;;  %v2007_v15 = vpack.c.bf16 %v2002_v27, %v2001_v24  ;;  %v1946_v37 = vadd.f32 %v3463_v5, %v3948_v26 }
 0x633   : > { %v1938_v42 = vadd.f32 %v1937_v1, %v3943_v21  ;;  %v1977_v3 = vmul.f32 0.1, %v1935_v31  ;;  %vm1961_vm13 = vcmp.ge.f32.partialorder %v1935_v31, 0.0 }
 0x634   : > { %3468 = vmatprep.subr.bf16.mxu0 %v2007_v15  ;;  %v1980_v25 = vmul.f32 0.1, %v1946_v37  ;;  %vm1964_vm14 = vcmp.ge.f32.partialorder %v1946_v37, 0.0 }
 0x635   : > { %3469 = vmatpush3.bf16.msra.mxu0 %v2007_v15  ;;  %v1978_v28 = vmul.f32 0.1, %v1938_v42  ;;  %vm1962_vm15 = vcmp.ge.f32.partialorder %v1938_v42, 0.0 }
 0x636   : > { %3470 = vmatprep.subr.bf16.mxu0 %v2008_v11  ;;  %v1996_v59 = vsel %vm1964_vm14, %v1946_v37, %v1980_v25 }
 0x639   : > { %3471 = vmatpush3.bf16.msra.mxu0 %v2008_v11  ;;  %v1943_v11 = vadd.f32 %v3462_v60, %v3945_v22 }
 0x63a   : > { %3480 = vmatprep.subr.bf16.mxu0 %v2112_v48 }
 0x63b   : > { %v1979_v57 = vmul.f32 0.1, %v1943_v11  ;;  %vm1963_vm12 = vcmp.ge.f32.partialorder %v1943_v11, 0.0 }
 0x63c   : > { %3473 = vmatmul.mubr.msk.bf16.vlgmr.msra.gmra.mrb[64].mxu0 %vm685_vm3, %v3905_v7 }
 0x63d   : > { %3476 = vmatprep.mubr.msk.bf16.mxu0 %vm685_vm3, %v3907_v12  ;;  %3481 = vmatpush3.bf16.msra.mxu0 %v2112_v48  ;;  %v1995_v33 = vsel %vm1963_vm12, %v1943_v11, %v1979_v57  ;;  %v1994_v48 = vsel %vm1962_vm15, %v1938_v42, %v1978_v28 }
 0x644   : > { %3477 = vmatmul.mubr.msk.bf16.gmra.mrb[68].mxu0 %vm685_vm3, %v3919_v17 }
 0x645   : > { %3482 = vmatprep.mubr.msk.bf16.mxu0 %vm496_vm1, %v3665_v2 }
 0x64c   : > { %3483 = vmatmul.mubr.msk.bf16.vlgmr.msra.gmra.mrb[72].mxu0 %vm496_vm1, %v3710_v19 }
 0x64d   : > { %3486 = vmatprep.mubr.msk.bf16.mxu0 %vm496_vm1, %v3712_v20 }
 0x654   : > { %3487 = vmatmul.mubr.msk.bf16.gmra.mrb[76].mxu0 %vm496_vm1, %v3742_v29 }
 0x655   : > { %3490 = vmatprep.mubr.msk.bf16.mxu0 %vm496_vm1, %v3744_v30 }
 0x65c   : > { %3491 = vmatmul.mubr.msk.bf16.gmra.mrb[80].mxu0 %vm496_vm1, %v3774_v39 }
 0x65d   : > { %3494 = vmatprep.mubr.msk.bf16.mxu0 %vm496_vm1, %v3776_v40 }
 0x664   : > { %3495 = vmatmul.mubr.msk.bf16.gmra.mrb[84].mxu0 %vm496_vm1, %v3797_v46 }
 0x665   : > { %3540 = vmatprep.mubr.msk.bf16.mxu0 %vm685_vm3, %v3807_v49 }
 0x70f   : > { %v3474_v27 = vpop.f32.mrb[64].mxu0 }
 0x710   : > { %v2084_v61 = vmul.f32 %v3474_v27, %v4319_v43  ;;  %v2043_v58 = vpop.f32.mrb[65].mxu0 }
 0x711   : > { %v2082_v15 = vmul.f32 %v4321_v36, %v2043_v58  ;;  %v3475_v32 = vpop.f32.mrb[66].mxu0 }
 0x712   : > { %v2085_v38 = vmul.f32 %v3475_v32, %v4323_v45  ;;  %v2046_v35 = vpop.f32.mrb[67].mxu0  ;;  %v2089_v36 = vsel %vm775_vm4, %v2084_v61, 0.0 }
 0x713   : > { %v2083_v49 = vmul.f32 %v2079_v14, %v2046_v35  ;;  %v2086_v62 = vsel %vm775_vm4, %v2082_v15, 0.0  ;;  %v1993_v14 = vsel %vm1961_vm13, %v1935_v31, %v1977_v3 }
 0x714   : > { %v2091_v60 = vsel %vm775_vm4, %v2085_v38, 0.0 }
 0x715   : > { %v2087_v43 = vsel %vm775_vm4, %v2083_v49, 0.0 }
 0x716   : > { %v2088_v5 = vadd.f32 %v2087_v43, %v2086_v62 }
 0x717   : > { %v3478_v1 = vpop.f32.mrb[68].mxu0 }
 0x718   : > { %v2090_v45 = vadd.f32 %v2089_v36, %v2088_v5  ;;  %v4365_v47 = vmul.f32 %v3478_v1, %v1995_v33  ;;  %v2059_v54 = vpop.f32.mrb[69].mxu0 }
 0x719   : > { %v4368_v41 = vmul.f32 %v2059_v54, %v1993_v14  ;;  %v3479_v44 = vpop.f32.mrb[70].mxu0  ;;  %v4379_v14 = vld [vmem:[%s3848_s27 + $0x60] sm:$0xff]   ;;  %v4382_v54 = vld [vmem:[%s3848_s27 + $0x68] sm:$0xff]  }
 0x71a   : > { %4588 = vst [vmem:[#allocation24_spill] sm:$0xff] %v4365_v47  ;;  %v2092_v24 = vadd.f32 %v2091_v60, %v2090_v45  ;;  %v4370_v6 = vmul.f32 %v3479_v44, %v1996_v59  ;;  %v2062_v27 = vpop.f32.mrb[71].mxu0 }
 0x71b   : > { %4589 = vst [vmem:[#allocation25_spill] sm:$0xff] %v4368_v41  ;;  %v4372_v61 = vmul.f32 %v2062_v27, %v1994_v48 }
 0x71c   : > { %4590 = vst [vmem:[#allocation26_spill] sm:$0xff] %v4370_v6  ;;  %v2093_v11 = vrot.slane %v2092_v24, 4 }
 0x71d   : > { %4591 = vst [vmem:[#allocation27_spill] sm:$0xff] %v4372_v61 }
 0x71e   : > { %v2094_v58 = vadd.f32 %v2093_v11, %v2092_v24 }
 0x71f   : > { %v3484_v15 = vpop.f32.mrb[72].mxu0 }
 0x720   : > { %v2095_v32 = vrot.slane %v2094_v58, 2  ;;  %v2157_v31 = vadd.f32 %v3484_v15, %v3815_v51  ;;  %v2148_v35 = vpop.f32.mrb[73].mxu0 }
 0x721   : > { %v2149_v38 = vadd.f32 %v2148_v35, %v3813_v50  ;;  %v3485_v57 = vpop.f32.mrb[74].mxu0 }
 0x722   : > { %v2096_v49 = vadd.f32 %v2095_v32, %v2094_v58  ;;  %vm2213_vm5 = vcmp.ge.f32.partialorder %v2157_v31, 0.0  ;;  %v2229_v37 = vmul.f32 0.1, %v2157_v31  ;;  %v2160_v3 = vadd.f32 %v3485_v57, %v3819_v53  ;;  %v2151_v42 = vpop.f32.mrb[75].mxu0 }
 0x723   : > { %vm2211_vm6 = vcmp.ge.f32.partialorder %v2149_v38, 0.0  ;;  %v2227_v25 = vmul.f32 0.1, %v2149_v38  ;;  %v2152_v62 = vadd.f32 %v2151_v42, %v3817_v52  ;;  %v3114_v57 = vunpack.c.l.bf16 %v4382_v54 }
 0x724   : > { %v2097_v43 = vrot.slane %v2096_v49, 1  ;;  %v2245_v28 = vsel %vm2213_vm5, %v2157_v31, %v2229_v37  ;;  %vm2214_vm7 = vcmp.ge.f32.partialorder %v2160_v3, 0.0  ;;  %v2230_v5 = vmul.f32 0.1, %v2160_v3 }
 0x725   : > { %v2243_v36 = vsel %vm2211_vm6, %v2149_v38, %v2227_v25  ;;  %vm2212_vm8 = vcmp.ge.f32.partialorder %v2152_v62, 0.0  ;;  %v2228_v33 = vmul.f32 0.1, %v2152_v62  ;;  %v2261_v44 = vmul.f32 %v3842_v4, %v2245_v28 }
 0x726   : > { %v2098_v1 = vadd.f32 %v2097_v43, %v2096_v49  ;;  %v2246_v45 = vsel %vm2214_vm7, %v2160_v3, %v2230_v5  ;;  %v2259_v58 = vmul.f32 %v3837_v63, %v2243_v36  ;;  %v3110_v38 = vunpack.c.l.bf16 %v4379_v14 }
 0x727   : > { %v2244_v60 = vsel %vm2212_vm8, %v2152_v62, %v2228_v33  ;;  %v3488_v59 = vpop.f32.mrb[76].mxu0  ;;  %v2262_v24 = vmul.f32 %v3850_v9, %v2246_v45  ;;  %v3115_v62 = vunpack.c.h.bf16 %v4382_v54  ;;  %v3111_v28 = vunpack.c.h.bf16 %v4379_v14 }
 0x728   : > { %v4387_v48 = vsel %vm2629_vm0, %v4307_v16, %v2098_v1  ;;  %v2173_v27 = vadd.f32 %v3488_v59, %v3863_v23  ;;  %v2164_v11 = vpop.f32.mrb[77].mxu0  ;;  %v2260_v15 = vmul.f32 %v3855_v13, %v2244_v60 }
 0x729   : > { %v2165_v32 = vadd.f32 %v2164_v11, %v3839_v0  ;;  %v3489_v31 = vpop.f32.mrb[78].mxu0  ;;  %v2268_v35 = vpack.c.bf16 %v2262_v24, %v2261_v44 }
 0x72a   : > { %vm2217_vm9 = vcmp.ge.f32.partialorder %v2173_v27, 0.0  ;;  %v2233_v49 = vmul.f32 0.1, %v2173_v27  ;;  %v2176_v16 = vadd.f32 %v3489_v31, %v3870_v34  ;;  %v2167_v37 = vpop.f32.mrb[79].mxu0  ;;  %v2267_v3 = vpack.c.bf16 %v2260_v15, %v2259_v58  ;;  %v4592_v15 = vld [vmem:[#allocation2_spill] sm:$0xff] }
 0x72b   : > { %vm2215_vm10 = vcmp.ge.f32.partialorder %v2165_v32, 0.0  ;;  %v2231_v42 = vmul.f32 0.1, %v2165_v32  ;;  %v2168_v25 = vadd.f32 %v2167_v37, %v3852_v10 }
 0x72c   : > { %vm2218_vm2 = vcmp.ge.f32.partialorder %v2176_v16, 0.0  ;;  %v2234_v43 = vmul.f32 0.1, %v2176_v16  ;;  %3498 = vmatprep.subr.bf16.mxu1 %v2267_v3  ;;  %v2249_v5 = vsel %vm2217_vm9, %v2173_v27, %v2233_v49  ;;  %v4593_v27 = vld [vmem:[#allocation3_spill] sm:$0xff] }
 0x72d   : > { %vm2216_vm11 = vcmp.ge.f32.partialorder %v2168_v25, 0.0  ;;  %v2232_v36 = vmul.f32 0.1, %v2168_v25  ;;  %3499 = vmatpush3.bf16.msra.mxu1 %v2267_v3  ;;  %v2342_v33 = vmul.f32 %v3114_v57, %v2249_v5  ;;  %v2247_v1 = vsel %vm2215_vm10, %v2165_v32, %v2231_v42 }
 0x72e   : > { %3500 = vmatprep.subr.bf16.mxu1 %v2268_v35  ;;  %v2340_v45 = vmul.f32 %v3110_v38, %v2247_v1  ;;  %v2250_v60 = vsel %vm2218_vm2, %v2176_v16, %v2234_v43  ;;  %vm2631_vm10 = vcmask 1045504  }
 0x72f   : > { %v3492_v59 = vpop.f32.mrb[80].mxu0  ;;  %v2343_v44 = vmul.f32 %v3115_v62, %v2250_v60  ;;  %v2248_v24 = vsel %vm2216_vm11, %v2168_v25, %v2232_v36 }
 0x730   : > { %v2189_v11 = vadd.f32 %v3492_v59, %v3831_v56  ;;  %v2180_v54 = vpop.f32.mrb[81].mxu0  ;;  %v2341_v58 = vmul.f32 %v3111_v28, %v2248_v24  ;;  %v3021_v24 = vld [vmem:[%s3676_s8 + $0x1c] sm:$0x7] }
 0x731   : > { %v2181_v31 = vadd.f32 %v2180_v54, %v4592_v15  ;;  %v3493_v37 = vpop.f32.mrb[82].mxu0  ;;  %3501 = vmatpush3.bf16.msra.mxu1 %v2268_v35 }
 0x732   : > { %vm2221_vm12 = vcmp.ge.f32.partialorder %v2189_v11, 0.0  ;;  %v2237_v14 = vmul.f32 0.1, %v2189_v11  ;;  %v2192_v49 = vadd.f32 %v3493_v37, %v4593_v27  ;;  %v2183_v32 = vpop.f32.mrb[83].mxu0 }
 0x733   : > { %vm2219_vm13 = vcmp.ge.f32.partialorder %v2181_v31, 0.0  ;;  %v2235_v3 = vmul.f32 0.1, %v2181_v31  ;;  %v2184_v16 = vadd.f32 %v2183_v32, %v3823_v55  ;;  %v2363_v32 = vpack.c.bf16 %v3021_v24, %v3021_v24 }
 0x734   : > { %v2253_v42 = vsel %vm2221_vm12, %v2189_v11, %v2237_v14  ;;  %vm2222_vm14 = vcmp.ge.f32.partialorder %v2192_v49, 0.0  ;;  %v2238_v25 = vmul.f32 0.1, %v2192_v49 }
 0x735   : > { %v2251_v43 = vsel %vm2219_vm13, %v2181_v31, %v2235_v3  ;;  %vm2220_vm15 = vcmp.ge.f32.partialorder %v2184_v16, 0.0  ;;  %v2236_v5 = vmul.f32 0.1, %v2184_v16  ;;  %v2265_v35 = vmul.f32 %v3114_v57, %v2253_v42 }
 0x736   : > { %v2254_v36 = vsel %vm2222_vm14, %v2192_v49, %v2238_v25  ;;  %v2263_v37 = vmul.f32 %v3110_v38, %v2251_v43  ;;  %v2374_v11 = vand.u32 %v2363_v32, %v3683_v8 }
 0x737   : > { %v2252_v1 = vsel %vm2220_vm15, %v2184_v16, %v2236_v5  ;;  %v3496_v60 = vpop.f32.mrb[84].mxu0  ;;  %v2266_v59 = vmul.f32 %v3115_v62, %v2254_v36 }
 0x738   : > { %v2196_v54 = vpop.f32.mrb[85].mxu0  ;;  %v2264_v61 = vmul.f32 %v3111_v28, %v2252_v1 }
 0x739   : > { %v3497_v6 = vpop.f32.mrb[86].mxu0  ;;  %v2270_v41 = vpack.c.bf16 %v2266_v59, %v2265_v35 }
 0x73a   : > { %v2199_v47 = vpop.f32.mrb[87].mxu0  ;;  %v2269_v27 = vpack.c.bf16 %v2264_v61, %v2263_v37 }
 0x73b   : > { %v2200_v38 = vadd.f32 %v2199_v47, %v3943_v21 }
 0x73c   : > { %3502 = vmatprep.subr.bf16.mxu1 %v2269_v27 }
 0x73d   : > { %3503 = vmatpush3.bf16.msra.mxu1 %v2269_v27  ;;  %vm2224_vm7 = vcmp.ge.f32.partialorder %v2200_v38, 0.0 }
 0x73e   : > { %3504 = vmatprep.subr.bf16.mxu1 %v2270_v41 }
 0x741   : > { %3505 = vmatpush3.bf16.msra.mxu1 %v2270_v41 }
 0x742   : > { %3514 = vmatprep.subr.bf16.mxu1 %v2374_v11 }
 0x744   : > { %3507 = vmatmul.mubr.msk.bf16.vlgmr.msra.gmra.mrb[72].mxu1 %vm685_vm3, %v3905_v7 }
 0x745   : > { %3510 = vmatprep.mubr.msk.bf16.mxu1 %vm685_vm3, %v3907_v12  ;;  %3515 = vmatpush3.bf16.msra.mxu1 %v2374_v11 }
 0x74c   : > { %3511 = vmatmul.mubr.msk.bf16.gmra.mrb[76].mxu1 %vm685_vm3, %v3919_v17 }
 0x74d   : > { %3516 = vmatprep.mubr.msk.bf16.mxu1 %vm496_vm1, %v3665_v2  ;;  %v2205_v2 = vadd.f32 %v3496_v60, %v3945_v22 }
 0x74f   : > { %v2241_v62 = vmul.f32 0.1, %v2205_v2  ;;  %vm2225_vm5 = vcmp.ge.f32.partialorder %v2205_v2, 0.0 }
 0x754   : > { %3517 = vmatmul.mubr.msk.bf16.vlgmr.msra.gmra.mrb[80].mxu1 %vm496_vm1, %v3710_v19  ;;  %v2197_v19 = vadd.f32 %v2196_v54, %v3941_v18 }
 0x755   : > { %3520 = vmatprep.mubr.msk.bf16.mxu1 %vm496_vm1, %v3712_v20 }
 0x756   : > { %v2239_v28 = vmul.f32 0.1, %v2197_v19 }
 0x75c   : > { %3521 = vmatmul.mubr.msk.bf16.gmra.mrb[84].mxu1 %vm496_vm1, %v3742_v29  ;;  %v2208_v29 = vadd.f32 %v3497_v6, %v3948_v26 }
 0x75d   : > { %3524 = vmatprep.mubr.msk.bf16.mxu1 %vm496_vm1, %v3744_v30 }
 0x75e   : > { %vm2226_vm6 = vcmp.ge.f32.partialorder %v2208_v29, 0.0 }
 0x764   : > { %3525 = vmatmul.mubr.msk.bf16.gmra.mrb[88].mxu1 %vm496_vm1, %v3774_v39 }
 0x765   : > { %3528 = vmatprep.mubr.msk.bf16.mxu1 %vm496_vm1, %v3776_v40 }
 0x76c   : > { %3529 = vmatmul.mubr.msk.bf16.gmra.mrb[92].mxu1 %vm496_vm1, %v3797_v46  ;;  %v2242_v46 = vmul.f32 0.1, %v2208_v29  ;;  %vm2223_vm1 = vcmp.ge.f32.partialorder %v2197_v19, 0.0 }
 0x76e   : > { %v2258_v25 = vsel %vm2226_vm6, %v2208_v29, %v2242_v46  ;;  %v4451_v46 = vld [vmem:[%s3848_s27 + $0x78] sm:$0xff]  }
 0x817   : > { %v3508_v8 = vpop.f32.mrb[72].mxu1 }
 0x818   : > { %v2346_v20 = vmul.f32 %v3508_v8, %v2342_v33  ;;  %v2305_v41 = vpop.f32.mrb[73].mxu1  ;;  %v2240_v33 = vmul.f32 0.1, %v2200_v38 }
 0x819   : > { %v2344_v61 = vmul.f32 %v2340_v45, %v2305_v41  ;;  %v3509_v30 = vpop.f32.mrb[74].mxu1  ;;  %v2257_v45 = vsel %vm2225_vm5, %v2205_v2, %v2241_v62 }
 0x81a   : > { %v2347_v39 = vmul.f32 %v3509_v30, %v2343_v44  ;;  %v2308_v57 = vpop.f32.mrb[75].mxu1  ;;  %v2351_v6 = vsel %vm775_vm4, %v2346_v20, 0.0  ;;  %v2256_v1 = vsel %vm2224_vm7, %v2200_v38, %v2240_v33 }
 0x81b   : > { %v2345_v40 = vmul.f32 %v2341_v58, %v2308_v57  ;;  %v2348_v31 = vsel %vm775_vm4, %v2344_v61, 0.0  ;;  %v2255_v58 = vsel %vm2223_vm1, %v2197_v19, %v2239_v28  ;;  %v4448_v28 = vld [vmem:[%s3848_s27 + $0x70] sm:$0xff]  }
 0x81c   : > { %v2353_v16 = vsel %vm775_vm4, %v2347_v39, 0.0 }
 0x81d   : > { %v2349_v14 = vsel %vm775_vm4, %v2345_v40, 0.0 }
 0x81e   : > { %v2350_v27 = vadd.f32 %v2349_v14, %v2348_v31 }
 0x81f   : > { %v3512_v49 = vpop.f32.mrb[76].mxu1 }
 0x820   : > { %v2352_v47 = vadd.f32 %v2351_v6, %v2350_v27  ;;  %v4434_v44 = vmul.f32 %v3512_v49, %v2257_v45  ;;  %v2321_v3 = vpop.f32.mrb[77].mxu1 }
 0x821   : > { %v4437_v42 = vmul.f32 %v2321_v3, %v2255_v58  ;;  %v3513_v43 = vpop.f32.mrb[78].mxu1 }
 0x822   : > { %v2354_v5 = vadd.f32 %v2353_v16, %v2352_v47  ;;  %v4439_v36 = vmul.f32 %v3513_v43, %v2258_v25  ;;  %v2324_v60 = vpop.f32.mrb[79].mxu1  ;;  %v3118_v16 = vunpack.c.l.bf16 %v4448_v28  ;;  %v3122_v25 = vunpack.c.l.bf16 %v4451_v46 }
 0x823   : > { %v4441_v35 = vmul.f32 %v2324_v60, %v2256_v1 }
 0x824   : > { %v2355_v59 = vrot.slane %v2354_v5, 4 }
 0x826   : > { %v2356_v24 = vadd.f32 %v2355_v59, %v2354_v5  ;;  %v3123_v59 = vunpack.c.h.bf16 %v4451_v46 }
 0x827   : > { %v3518_v54 = vpop.f32.mrb[80].mxu1 }
 0x828   : > { %v2357_v37 = vrot.slane %v2356_v24, 2  ;;  %v2419_v32 = vadd.f32 %v3518_v54, %v3815_v51  ;;  %v2410_v11 = vpop.f32.mrb[81].mxu1 }
 0x829   : > { %v2411_v2 = vadd.f32 %v2410_v11, %v3813_v50  ;;  %v3519_v8 = vpop.f32.mrb[82].mxu1 }
 0x82a   : > { %v2358_v19 = vadd.f32 %v2357_v37, %v2356_v24  ;;  %vm2475_vm0 = vcmp.ge.f32.partialorder %v2419_v32, 0.0  ;;  %v2491_v20 = vmul.f32 0.1, %v2419_v32  ;;  %v2422_v41 = vadd.f32 %v3519_v8, %v3819_v53  ;;  %v2413_v29 = vpop.f32.mrb[83].mxu1 }
 0x82b   : > { %vm2473_vm8 = vcmp.ge.f32.partialorder %v2411_v2, 0.0  ;;  %v2489_v61 = vmul.f32 0.1, %v2411_v2  ;;  %v2414_v30 = vadd.f32 %v2413_v29, %v3817_v52  ;;  %v3119_v24 = vunpack.c.h.bf16 %v4448_v28 }
 0x82c   : > { %v2359_v38 = vrot.slane %v2358_v19, 1  ;;  %v2507_v39 = vsel %vm2475_vm0, %v2419_v32, %v2491_v20  ;;  %vm2476_vm9 = vcmp.ge.f32.partialorder %v2422_v41, 0.0  ;;  %v2492_v51 = vmul.f32 0.1, %v2422_v41 }
 0x82d   : > { %v2505_v57 = vsel %vm2473_vm8, %v2411_v2, %v2489_v61  ;;  %vm2474_vm2 = vcmp.ge.f32.partialorder %v2414_v30, 0.0  ;;  %v2490_v50 = vmul.f32 0.1, %v2414_v30  ;;  %v2523_v14 = vmul.f32 %v3842_v4, %v2507_v39  ;;  %v4594_v39 = vld [vmem:[#allocation3_spill] sm:$0xff] }
 0x82e   : > { %v2360_v62 = vadd.f32 %v2359_v38, %v2358_v19  ;;  %v2508_v40 = vsel %vm2476_vm9, %v2422_v41, %v2492_v51  ;;  %v2521_v45 = vmul.f32 %v3837_v63, %v2505_v57  ;;  %vm2633_vm9 = vcmask 1046528  }
 0x82f   : > { %v2506_v53 = vsel %vm2474_vm2, %v2414_v30, %v2490_v50  ;;  %v3522_v31 = vpop.f32.mrb[84].mxu1  ;;  %v2524_v52 = vmul.f32 %v3850_v9, %v2508_v40 }
 0x830   : > { %v4456_v33 = vsel %vm2631_vm10, %v4387_v48, %v2360_v62  ;;  %v2435_v27 = vadd.f32 %v3522_v31, %v3863_v23  ;;  %v2426_v6 = vpop.f32.mrb[85].mxu1  ;;  %v2522_v49 = vmul.f32 %v3855_v13, %v2506_v53 }
 0x831   : > { %v2427_v47 = vadd.f32 %v2426_v6, %v3839_v0  ;;  %v3523_v58 = vpop.f32.mrb[86].mxu1  ;;  %v2530_v3 = vpack.c.bf16 %v2524_v52, %v2523_v14 }
 0x832   : > { %vm2479_vm11 = vcmp.ge.f32.partialorder %v2435_v27, 0.0  ;;  %v2495_v43 = vmul.f32 0.1, %v2435_v27  ;;  %v2438_v48 = vadd.f32 %v3523_v58, %v3870_v34  ;;  %v2429_v5 = vpop.f32.mrb[87].mxu1  ;;  %v2529_v1 = vpack.c.bf16 %v2522_v49, %v2521_v45 }
 0x833   : > { %vm2477_vm12 = vcmp.ge.f32.partialorder %v2427_v47, 0.0  ;;  %v2493_v23 = vmul.f32 0.1, %v2427_v47  ;;  %v2430_v60 = vadd.f32 %v2429_v5, %v3852_v10 }
 0x834   : > { %vm2480_vm13 = vcmp.ge.f32.partialorder %v2438_v48, 0.0  ;;  %v2496_v0 = vmul.f32 0.1, %v2438_v48  ;;  %3532 = vmatprep.subr.bf16.mxu0 %v2529_v1  ;;  %v2511_v54 = vsel %vm2479_vm11, %v2435_v27, %v2495_v43 }
 0x835   : > { %vm2478_vm14 = vcmp.ge.f32.partialorder %v2430_v60, 0.0  ;;  %v2494_v37 = vmul.f32 0.1, %v2430_v60  ;;  %3533 = vmatpush3.bf16.msra.mxu0 %v2529_v1  ;;  %v2604_v32 = vmul.f32 %v3122_v25, %v2511_v54  ;;  %v2509_v11 = vsel %vm2477_vm12, %v2427_v47, %v2493_v23 }
 0x836   : > { %3534 = vmatprep.subr.bf16.mxu0 %v2530_v3  ;;  %v2602_v34 = vmul.f32 %v3118_v16, %v2509_v11  ;;  %v2512_v2 = vsel %vm2480_vm13, %v2438_v48, %v2496_v0 }
 0x837   : > { %v3526_v8 = vpop.f32.mrb[88].mxu1  ;;  %v2605_v19 = vmul.f32 %v3123_v59, %v2512_v2  ;;  %v2510_v20 = vsel %vm2478_vm14, %v2430_v60, %v2494_v37 }
 0x838   : > { %v2451_v10 = vadd.f32 %v3526_v8, %v3831_v56  ;;  %v2442_v41 = vpop.f32.mrb[89].mxu1  ;;  %v2603_v29 = vmul.f32 %v3119_v24, %v2510_v20 }
 0x839   : > { %v2443_v61 = vadd.f32 %v2442_v41, %v4592_v15  ;;  %v3527_v30 = vpop.f32.mrb[90].mxu1  ;;  %3535 = vmatpush3.bf16.msra.mxu0 %v2530_v3 }
 0x83a   : > { %vm2483_vm15 = vcmp.ge.f32.partialorder %v2451_v10, 0.0  ;;  %v2499_v38 = vmul.f32 0.1, %v2451_v10  ;;  %v2454_v51 = vadd.f32 %v3527_v30, %v4594_v39  ;;  %v2445_v57 = vpop.f32.mrb[91].mxu1 }
 0x83b   : > { %vm2481_vm5 = vcmp.ge.f32.partialorder %v2443_v61, 0.0  ;;  %v2497_v50 = vmul.f32 0.1, %v2443_v61  ;;  %v2446_v62 = vadd.f32 %v2445_v57, %v3823_v55 }
 0x83c   : > { %v2515_v40 = vsel %vm2483_vm15, %v2451_v10, %v2499_v38  ;;  %vm2484_vm1 = vcmp.ge.f32.partialorder %v2454_v51, 0.0  ;;  %v2500_v28 = vmul.f32 0.1, %v2454_v51 }
 0x83d   : > { %v2513_v46 = vsel %vm2481_vm5, %v2443_v61, %v2497_v50  ;;  %vm2482_vm6 = vcmp.ge.f32.partialorder %v2446_v62, 0.0  ;;  %v2498_v56 = vmul.f32 0.1, %v2446_v62  ;;  %v2527_v14 = vmul.f32 %v3122_v25, %v2515_v40 }
 0x83e   : > { %v2516_v53 = vsel %vm2484_vm1, %v2454_v51, %v2500_v28  ;;  %v2525_v6 = vmul.f32 %v3118_v16, %v2513_v46 }
 0x83f   : > { %v2514_v31 = vsel %vm2482_vm6, %v2446_v62, %v2498_v56  ;;  %v3530_v15 = vpop.f32.mrb[92].mxu1  ;;  %v2528_v52 = vmul.f32 %v3123_v59, %v2516_v53 }
 0x840   : > { %v2458_v27 = vpop.f32.mrb[93].mxu1  ;;  %v2526_v45 = vmul.f32 %v3119_v24, %v2514_v31  ;;  %v2467_v55 = vadd.f32 %v3530_v15, %v3945_v22 }
 0x841   : > { %v3531_v49 = vpop.f32.mrb[94].mxu1  ;;  %v2532_v47 = vpack.c.bf16 %v2528_v52, %v2527_v14  ;;  %v2459_v25 = vadd.f32 %v2458_v27, %v3941_v18 }
 0x842   : > { %v2461_v58 = vpop.f32.mrb[95].mxu1  ;;  %v2531_v3 = vpack.c.bf16 %v2526_v45, %v2525_v6  ;;  %v2470_v5 = vadd.f32 %v3531_v49, %v3948_v26  ;;  %v2503_v0 = vmul.f32 0.1, %v2467_v55  ;;  %vm2487_vm7 = vcmp.ge.f32.partialorder %v2467_v55, 0.0 }
 0x843   : > { %v2462_v60 = vadd.f32 %v2461_v58, %v3943_v21  ;;  %v2501_v24 = vmul.f32 0.1, %v2459_v25 }
 0x844   : > { %3536 = vmatprep.subr.bf16.mxu0 %v2531_v3  ;;  %vm2488_vm0 = vcmp.ge.f32.partialorder %v2470_v5, 0.0 }
 0x845   : > { %3537 = vmatpush3.bf16.msra.mxu0 %v2531_v3  ;;  %v2502_v18 = vmul.f32 0.1, %v2462_v60  ;;  %vm2486_vm8 = vcmp.ge.f32.partialorder %v2462_v60, 0.0 }
 0x846   : > { %3538 = vmatprep.subr.bf16.mxu0 %v2532_v47 }
 0x847   : > { %v2518_v30 = vsel %vm2486_vm8, %v2462_v60, %v2502_v18  ;;  %v4596_v18 = vld [vmem:[#allocation8_spill] sm:$0xff] }
 0x849   : > { %3539 = vmatpush3.bf16.msra.mxu0 %v2532_v47  ;;  %v2654_v47 = vlaneseq }
 0x84b   : > { %v2655_v58 = vshrl.u32 %v2654_v47, 7 }
 0x84c   : > { %3541 = vmatmul.mubr.msk.bf16.vlgmr.msra.gmra.mrb[88].mxu0 %vm685_vm3, %v3905_v7 }
 0x84d   : > { %3544 = vmatprep.mubr.msk.bf16.mxu0 %vm685_vm3, %v3907_v12  ;;  %v2656_v3 = vsub.s32 0, %v2655_v58 }
 0x854   : > { %3545 = vmatmul.mubr.msk.bf16.gmra.mrb[92].mxu0 %vm685_vm3, %v3919_v17  ;;  %v2504_v17 = vmul.f32 0.1, %v2470_v5  ;;  %vm2485_vm3 = vcmp.ge.f32.partialorder %v2459_v25, 0.0 }
 0x855   : > { %v2517_v2 = vsel %vm2485_vm3, %v2459_v25, %v2501_v24  ;;  %v2688_v25 = vsub.s32 3, %v2655_v58 }
 0x856   : > { %v2520_v10 = vsel %vm2488_vm0, %v2470_v5, %v2504_v17 }
 0x91f   : > { %v3542_v16 = vpop.f32.mrb[88].mxu0 }
 0x920   : > { %v2608_v43 = vmul.f32 %v3542_v16, %v2604_v32  ;;  %v2567_v48 = vpop.f32.mrb[89].mxu0  ;;  %v2519_v32 = vsel %vm2487_vm7, %v2467_v55, %v2503_v0  ;;  %v2664_v55 = vsub.s32 1, %v2655_v58  ;;  %v2676_v16 = vsub.s32 2, %v2655_v58 }
 0x921   : > { %v2606_v1 = vmul.f32 %v2602_v34, %v2567_v48  ;;  %v3543_v23 = vpop.f32.mrb[90].mxu0  ;;  %v2724_v48 = vsub.s32 6, %v2655_v58 }
 0x922   : > { %v2609_v7 = vmul.f32 %v3543_v23, %v2605_v19  ;;  %v2570_v59 = vpop.f32.mrb[91].mxu0  ;;  %v2613_v26 = vsel %vm775_vm4, %v2608_v43, 0.0  ;;  %v2700_v43 = vsub.s32 4, %v2655_v58 }
 0x923   : > { %v2607_v12 = vmul.f32 %v2603_v29, %v2570_v59  ;;  %v2610_v22 = vsel %vm775_vm4, %v2606_v1, 0.0  ;;  %v2736_v1 = vsub.s32 7, %v2655_v58 }
 0x924   : > { %v2615_v19 = vsel %vm775_vm4, %v2609_v7, 0.0 }
 0x925   : > { %v2611_v54 = vsel %vm775_vm4, %v2607_v12, 0.0 }
 0x926   : > { %v2612_v37 = vadd.f32 %v2611_v54, %v2610_v22  ;;  %v4595_v22 = vld [vmem:[#allocation4_spill] sm:$0xff] }
 0x927   : > { %v3546_v11 = vpop.f32.mrb[92].mxu0 }
 0x928   : > { %v2614_v21 = vadd.f32 %v2613_v26, %v2612_v37  ;;  %v4485_v34 = vmul.f32 %v3546_v11, %v2519_v32  ;;  %v2583_v8 = vpop.f32.mrb[93].mxu0  ;;  %v4597_v26 = vld [vmem:[#allocation12_spill] sm:$0xff] }
 0x929   : > { %v4488_v20 = vmul.f32 %v2583_v8, %v2517_v2  ;;  %v3547_v41 = vpop.f32.mrb[94].mxu0  ;;  %v4598_v2 = vld [vmem:[#allocation16_spill] sm:$0xff] }
 0x92a   : > { %v2616_v29 = vadd.f32 %v2615_v19, %v2614_v21  ;;  %v4490_v61 = vmul.f32 %v3547_v41, %v2520_v10  ;;  %v2586_v38 = vpop.f32.mrb[95].mxu0  ;;  %v4599_v19 = vld [vmem:[#allocation20_spill] sm:$0xff] }
 0x92b   : > { %v4492_v39 = vmul.f32 %v2586_v38, %v2518_v30  ;;  %v4600_v41 = vld [vmem:[#allocation24_spill] sm:$0xff] }
 0x92c   : > { %v2617_v51 = vrot.slane %v2616_v29, 4 }
 0x92e   : > { %v2618_v57 = vadd.f32 %v2617_v51, %v2616_v29 }
 0x930   : > { %v2619_v50 = vrot.slane %v2618_v57, 2 }
 0x932   : > { %v2620_v62 = vadd.f32 %v2619_v50, %v2618_v57  ;;  %v4601_v57 = vld [vmem:[#allocation5_spill] sm:$0xff] }
 0x934   : > { %v2621_v40 = vrot.slane %v2620_v62, 1 }
 0x936   : > { %v2622_v28 = vadd.f32 %v2621_v40, %v2620_v62  ;;  %v4602_v40 = vld [vmem:[#allocation9_spill] sm:$0xff] }
 0x938   : > { %v2634_v46 = vsel %vm2633_vm9, %v4456_v33, %v2622_v28  ;;  %v2712_v33 = vsub.s32 5, %v2655_v58 }
 0x939   : > { %v2635_v56 = vmul.f32 0.17677669, %v2634_v46  ;;  %v4603_v46 = vld [vmem:[#allocation13_spill] sm:$0xff] }
 0x93b   : > { %v2636_v53 = vsel %vm775_vm4, %v2635_v56, -inf }
 0x93c   : > { %v2637_v31 = vrot.slane %v2636_v53, 4 }
 0x93e   : > { %v2638_v15 = vmax.f32 %v2636_v53, %v2637_v31  ;;  %v4604_v53 = vld [vmem:[#allocation17_spill] sm:$0xff] }
 0x940   : > { %v2639_v14 = vrot.slane %v2638_v15, 2 }
 0x942   : > { %v2640_v52 = vmax.f32 %v2638_v15, %v2639_v14 }
 0x944   : > { %v2641_v27 = vrot.slane %v2640_v52, 1 }
 0x946   : > { %v2642_v6 = vmax.f32 %v2640_v52, %v2641_v27  ;;  %v4605_v52 = vld [vmem:[#allocation21_spill] sm:$0xff] }
 0x948   : > { %v2643_v45 = vsub.f32 %v2635_v56, %v2642_v6  ;;  %v4606_v6 = vld [vmem:[#allocation25_spill] sm:$0xff] }
 0x94a   : > { %v2644_v49 = vmul.f32 1.442695, %v2643_v45 }
 0x94c   : > { %3576 = vpow2.f32 %v2644_v49 }
 0x956   : > { %v3577_v5 = vpop.eup %3576 }
 0x957   : > { %v2646_v23 = vsel %vm775_vm4, %v3577_v5, 0.0  ;;  %v2657_v60 = vrot.slane %v3577_v5, %v2656_v3  ;;  %v2665_v7 = vrot.slane %v3577_v5, %v2664_v55  ;;  %v2677_v59 = vrot.slane %v3577_v5, %v2676_v16  ;;  %v4607_v55 = vld [vmem:[#allocation6_spill] sm:$0xff] }
 0x958   : > { %v2647_v0 = vrot.slane %v2646_v23, 4  ;;  %v2689_v12 = vrot.slane %v3577_v5, %v2688_v25  ;;  %v2701_v24 = vrot.slane %v3577_v5, %v2700_v43  ;;  %v2713_v17 = vrot.slane %v3577_v5, %v2712_v33  ;;  %v4608_v25 = vld [vmem:[#allocation10_spill] sm:$0xff] }
 0x959   : > { %v2660_v54 = vmul.f32 %v2657_v60, %v4595_v22  ;;  %v2668_v37 = vmul.f32 %v2665_v7, %v4596_v18  ;;  %v2680_v32 = vmul.f32 %v2677_v59, %v4597_v26  ;;  %v2725_v11 = vrot.slane %v3577_v5, %v2724_v48  ;;  %v4609_v33 = vld [vmem:[#allocation14_spill] sm:$0xff] }
 0x95a   : > { %v2648_v21 = vadd.f32 %v2647_v0, %v2646_v23  ;;  %v2692_v8 = vmul.f32 %v2689_v12, %v4598_v2  ;;  %v2704_v10 = vmul.f32 %v2701_v24, %v4599_v19  ;;  %v2716_v29 = vmul.f32 %v2713_v17, %v4600_v41  ;;  %v4611_v0 = vld [vmem:[#allocation22_spill] sm:$0xff]  ;;  %v4613_v2 = vld [vmem:[#allocation7_spill] sm:$0xff] }
 0x95b   : > { %v2672_v30 = vadd.f32 %v2668_v37, %v2660_v54  ;;  %v2728_v38 = vmul.f32 %v2725_v11, %v4434_v44  ;;  %v2737_v51 = vrot.slane %v3577_v5, %v2736_v1  ;;  %v2658_v50 = vmul.f32 %v2657_v60, %v4601_v57  ;;  %v4612_v37 = vld [vmem:[#allocation26_spill] sm:$0xff] }
 0x95c   : > { %v2649_v62 = vrot.slane %v2648_v21, 2  ;;  %v2666_v28 = vmul.f32 %v2665_v7, %v4602_v40  ;;  %v2678_v56 = vmul.f32 %v2677_v59, %v4603_v46  ;;  %v2690_v31 = vmul.f32 %v2689_v12, %v4604_v53  ;;  %v4617_v46 = vld [vmem:[#allocation23_spill] sm:$0xff] }
 0x95d   : > { %v2684_v15 = vadd.f32 %v2680_v32, %v2672_v30  ;;  %v2740_v14 = vmul.f32 %v2737_v51, %v4485_v34  ;;  %v2702_v27 = vmul.f32 %v2701_v24, %v4605_v52  ;;  %v2714_v45 = vmul.f32 %v2713_v17, %v4606_v6  ;;  %v4610_v34 = vld [vmem:[#allocation18_spill] sm:$0xff]  ;;  %v4614_v30 = vld [vmem:[#allocation11_spill] sm:$0xff] }
 0x95e   : > { %v2650_v49 = vadd.f32 %v2649_v62, %v2648_v21  ;;  %v2670_v47 = vadd.f32 %v2666_v28, %v2658_v50  ;;  %v2726_v44 = vmul.f32 %v2725_v11, %v4437_v42  ;;  %v2738_v58 = vmul.f32 %v2737_v51, %v4488_v20  ;;  %v4615_v50 = vld [vmem:[#allocation15_spill] sm:$0xff] }
 0x95f   : > { %v2696_v3 = vadd.f32 %v2692_v8, %v2684_v15  ;;  %v2661_v16 = vmul.f32 %v2657_v60, %v4607_v55  ;;  %v2669_v43 = vmul.f32 %v2665_v7, %v4608_v25  ;;  %v2681_v48 = vmul.f32 %v2677_v59, %v4609_v33 }
 0x960   : > { %v2651_v5 = vrot.slane %v2650_v49, 1  ;;  %v2682_v1 = vadd.f32 %v2678_v56, %v2670_v47  ;;  %v2693_v23 = vmul.f32 %v2689_v12, %v4610_v34  ;;  %v2705_v22 = vmul.f32 %v2701_v24, %v4611_v0 }
 0x961   : > { %v2708_v54 = vadd.f32 %v2704_v10, %v2696_v3  ;;  %v2673_v18 = vadd.f32 %v2669_v43, %v2661_v16  ;;  %v2717_v26 = vmul.f32 %v2713_v17, %v4612_v37  ;;  %v2729_v42 = vmul.f32 %v2725_v11, %v4439_v36  ;;  %v4616_v10 = vld [vmem:[#allocation19_spill] sm:$0xff] }
 0x962   : > { %v2652_v20 = vadd.f32 %v2651_v5, %v2650_v49  ;;  %v2694_v32 = vadd.f32 %v2690_v31, %v2682_v1  ;;  %v2741_v21 = vmul.f32 %v2737_v51, %v4490_v61  ;;  %v2659_v8 = vmul.f32 %v2657_v60, %v4613_v2  ;;  %v4618_v31 = vld [vmem:[#allocation27_spill] sm:$0xff] }
 0x963   : > { %v2720_v19 = vadd.f32 %v2716_v29, %v2708_v54  ;;  %v2685_v41 = vadd.f32 %v2681_v48, %v2673_v18  ;;  %v2667_v57 = vmul.f32 %v2665_v7, %v4614_v30  ;;  %v2679_v62 = vmul.f32 %v2677_v59, %v4615_v50 }
 0x964   : > { %3578 = vrcp.f32 %v2652_v20  ;;  %v2706_v40 = vadd.f32 %v2702_v27, %v2694_v32  ;;  %v2691_v28 = vmul.f32 %v2689_v12, %v4616_v10  ;;  %v2703_v56 = vmul.f32 %v2701_v24, %v4617_v46 }
 0x965   : > { %v2732_v53 = vadd.f32 %v2728_v38, %v2720_v19  ;;  %v2697_v36 = vadd.f32 %v2693_v23, %v2685_v41  ;;  %v2671_v15 = vadd.f32 %v2667_v57, %v2659_v8  ;;  %v2715_v52 = vmul.f32 %v2713_v17, %v4618_v31 }
 0x966   : > { %v2718_v61 = vadd.f32 %v2714_v45, %v2706_v40  ;;  %v2727_v60 = vmul.f32 %v2725_v11, %v4441_v35  ;;  %v2739_v29 = vmul.f32 %v2737_v51, %v4492_v39  ;;  %vm2770_vm4 = vcmask 125952  }
 0x967   : > { %v2744_v6 = vadd.f32 %v2740_v14, %v2732_v53  ;;  %v2709_v7 = vadd.f32 %v2705_v22, %v2697_v36  ;;  %v2683_v49 = vadd.f32 %v2679_v62, %v2671_v15 }
 0x968   : > { %v2730_v59 = vadd.f32 %v2726_v44, %v2718_v61 }
 0x969   : > { %v2721_v47 = vadd.f32 %v2717_v26, %v2709_v7  ;;  %v2695_v27 = vadd.f32 %v2691_v28, %v2683_v49 }
 0x96a   : > { %v2742_v12 = vadd.f32 %v2738_v58, %v2730_v59 }
 0x96b   : > { %v2733_v3 = vadd.f32 %v2729_v42, %v2721_v47  ;;  %v2707_v24 = vadd.f32 %v2703_v56, %v2695_v27 }
 0x96d   : > { %v2745_v38 = vadd.f32 %v2741_v21, %v2733_v3  ;;  %v2719_v55 = vadd.f32 %v2715_v52, %v2707_v24 }
 0x96e   : > { %v3579_v16 = vpop.eup %3578 }
 0x96f   : > { %v2748_v25 = vmul.f32 %v3579_v16, %v2744_v6  ;;  %v2746_v17 = vmul.f32 %v3579_v16, %v2742_v12  ;;  %v2749_v45 = vmul.f32 %v3579_v16, %v2745_v38  ;;  %v2731_v43 = vadd.f32 %v2727_v60, %v2719_v55 }
 0x971   : > { %v2752_v35 = vadd.f32 %v3842_v4, %v2748_v25  ;;  %v2750_v39 = vadd.f32 %v3837_v63, %v2746_v17  ;;  %v2753_v11 = vadd.f32 %v3850_v9, %v2749_v45  ;;  %v2743_v51 = vadd.f32 %v2739_v29, %v2731_v43 }
 0x973   : > { %v3050_v14 = vpack.c.bf16 %v2752_v35, %v2752_v35  ;;  %v3048_v44 = vpack.c.bf16 %v2750_v39, %v2750_v39  ;;  %v3051_v58 = vpack.c.bf16 %v2753_v11, %v2753_v11  ;;  %v2747_v33 = vmul.f32 %v3579_v16, %v2743_v51 }
 0x975   : > { %2773 = vst.msk [vmem:[%s344_s19 + $0x8] sm:$0xf] %vm2770_vm4, %v3050_v14  ;;  %2771 = vst.msk [vmem:[%s344_s19] sm:$0xf] %vm2770_vm4, %v3048_v44  ;;  %v2751_v4 = vadd.f32 %v3855_v13, %v2747_v33 }
 0x976   : > { %2774 = vst.msk [vmem:[%s344_s19 + $0xc] sm:$0xf] %vm2770_vm4, %v3051_v58 }
 0x977   : > { %v3049_v48 = vpack.c.bf16 %v2751_v4, %v2751_v4 }
 0x979   : > { %2772 = vst.msk [vmem:[%s344_s19 + $0x4] sm:$0xf] %vm2770_vm4, %v3049_v48 }
 0x97a PF: > { %s16_s23 = sadd.s32 1, %s3602_s23   ;;  %s4619_s21 = smov %s3598_s22 }
 0x97b   : > { %p13_p5 = scmp.ge.s32.totalorder %s16_s23, 4   ;;  %s4620_s22 = smov %s4622_s24 }
 0x97d   :  { %15 = sbr.rel (!%p13_p5) target bundleno = 2 (0x2), region = 94 }

</bundles_post_ra>
